<compile_context>
chip_gen: v5e
topology: v5e:2x2
jax: 0.10.0
libtpu: 0.0.40
codegen_flags: <defaults>
</compile_context>

<pallas_src>
import jax
import jax.numpy as jnp
from jax.experimental import pallas as pl
from jax.experimental.pallas import tpu as pltpu


# ---------------------------------------------------------------------------
# Pallas kernels
# ---------------------------------------------------------------------------
def _matmul_bn_relu_kernel(x_ref, w_ref, scale_ref, bias_ref, o_ref):
    """o = relu((x @ w) * scale + bias).

    Grid = (M tiles [parallel], K tiles [arbitrary]).  The output block is
    resident across the K axis, so it is used directly as the f32 accumulator.
    x/w are bf16; jnp.dot accumulates in f32 on the MXU.
    """
    k = pl.program_id(1)

    @pl.when(k == 0)
    def _():
        o_ref[...] = jnp.zeros_like(o_ref)

    o_ref[...] += jnp.dot(x_ref[...], w_ref[...],
                          preferred_element_type=jnp.float32)

    @pl.when(k == pl.num_programs(1) - 1)
    def _():
        o_ref[...] = jnp.maximum(o_ref[...] * scale_ref[...] + bias_ref[...], 0.0)


def matmul_bn_relu(x, w, scale, bias, *, tm=128, tk=384):
    """relu((x @ w) * scale + bias).  x:(M,K), w:(K,N), scale/bias:(1,N) -> (M,N) f32."""
    M, K = x.shape
    K2, N = w.shape
    assert K == K2

    # bf16 inputs -> native MXU throughput; accumulation stays f32.
    x = x.astype(jnp.bfloat16)
    w = w.astype(jnp.bfloat16)
    scale = scale.astype(jnp.float32)
    bias = bias.astype(jnp.float32)

    # Pad K to a multiple of tk (zeros do not change the dot product).
    # tk=384 divides both 1152 (1x1 convs) and 6912 (3x3 convs on 256 ch).
    kp = pl.cdiv(K, tk) * tk
    if kp != K:
        x = jnp.pad(x, ((0, 0), (0, kp - K)))
        w = jnp.pad(w, ((0, kp - K), (0, 0)))

    # Pad N to a multiple of 128 for lane-dense (unmasked) stores; slice after.
    np_ = pl.cdiv(N, 128) * 128
    if np_ != N:
        w = jnp.pad(w, ((0, 0), (0, np_ - N)))
        scale = jnp.pad(scale, ((0, 0), (0, np_ - N)))
        bias = jnp.pad(bias, ((0, 0), (0, np_ - N)))

    # Pick the M tile: whole M when small, otherwise pad M to a multiple of tm
    # so v7x's two TensorCores can split the parallel M axis.
    if M <= tm:
        tm_eff = max(8, ((M + 7) // 8) * 8)
    else:
        tm_eff = tm
    mp = pl.cdiv(M, tm_eff) * tm_eff
    if mp != M:
        x = jnp.pad(x, ((0, mp - M), (0, 0)))

    out = pl.pallas_call(
        _matmul_bn_relu_kernel,
        out_shape=jax.ShapeDtypeStruct((mp, np_), jnp.float32),
        grid_spec=pltpu.PrefetchScalarGridSpec(
            num_scalar_prefetch=0,
            grid=(mp // tm_eff, kp // tk),
            in_specs=[
                pl.BlockSpec((tm_eff, tk), lambda i, k: (i, k)),
                pl.BlockSpec((tk, np_), lambda i, k: (k, 0)),
                pl.BlockSpec((1, np_), lambda i, k: (0, 0)),
                pl.BlockSpec((1, np_), lambda i, k: (0, 0)),
            ],
            out_specs=pl.BlockSpec((tm_eff, np_), lambda i, k: (i, 0)),
        ),
        compiler_params=pltpu.CompilerParams(
            dimension_semantics=("parallel", "arbitrary")),
    )(x, w, scale, bias)
    return out[:M, :N]


def _maxpool3d_relu_kernel(x_ref, o_ref):
    """3x3x3 max-pool, stride 2, no padding, fused with the trailing ReLU.

    One batch element per grid step.  All maxima are elementwise (VPU) on
    lane-dense (., C) slabs; no sublane reductions or stacks.
    """
    do_, ho_, wo_ = o_ref.shape[1], o_ref.shape[2], o_ref.shape[3]
    for od in range(do_):
        for oh in range(ho_):
            # Elementwise max over the 9 (kd, kh) offsets -> (W, C) slab.
            acc = x_ref[0, 2 * od, 2 * oh]
            for kd in range(3):
                for kh in range(3):
                    if kd == 0 and kh == 0:
                        continue
                    acc = jnp.maximum(acc, x_ref[0, 2 * od + kd, 2 * oh + kh])
            # Decimate along W with unit-stride (1, C) row slices.
            rows = []
            for ow in range(wo_):
                w0 = 2 * ow
                r = jnp.maximum(jnp.maximum(acc[w0:w0 + 1], acc[w0 + 1:w0 + 2]),
                                acc[w0 + 2:w0 + 3])
                rows.append(r)
            row = rows[0] if wo_ == 1 else jnp.concatenate(rows, axis=0)
            o_ref[0, od, oh, :, :] = jnp.maximum(row, 0.0)      # fused ReLU


def maxpool3d_k3s2_relu(x):
    n, d, h, w, c = x.shape
    do_, ho_, wo_ = (d - 3) // 2 + 1, (h - 3) // 2 + 1, (w - 3) // 2 + 1
    return pl.pallas_call(
        _maxpool3d_relu_kernel,
        out_shape=jax.ShapeDtypeStruct((n, do_, ho_, wo_, c), x.dtype),
        grid=(n,),
        in_specs=[pl.BlockSpec((1, d, h, w, c), lambda i: (i, 0, 0, 0, 0))],
        out_specs=pl.BlockSpec((1, do_, ho_, wo_, c), lambda i: (i, 0, 0, 0, 0)),
        compiler_params=pltpu.CompilerParams(
            dimension_semantics=("parallel",)),
    )(x)


# ---------------------------------------------------------------------------
# JAX glue: im2col + per-layer wrappers
# ---------------------------------------------------------------------------
def _im2col_3d(x, k, stride, padding):
    """x: (N, D, H, W, C) -> (N*Do*Ho*Wo, k^3*C) patch matrix."""
    if padding:
        p = padding
        x = jnp.pad(x, ((0, 0), (p, p), (p, p), (p, p), (0, 0)))
    n, d, h, w, c = x.shape
    do_ = (d - k) // stride + 1
    ho_ = (h - k) // stride + 1
    wo_ = (w - k) // stride + 1
    cols = []
    for kd in range(k):
        for kh in range(k):
            for kw in range(k):
                cols.append(x[:, kd:kd + stride * (do_ - 1) + 1:stride,
                                 kh:kh + stride * (ho_ - 1) + 1:stride,
                                 kw:kw + stride * (wo_ - 1) + 1:stride, :])
    patches = jnp.stack(cols, axis=4)             # (N, Do, Ho, Wo, k^3, C)
    return patches.reshape(n * do_ * ho_ * wo_, k ** 3 * c), (n, do_, ho_, wo_)


def basic_conv3d(x, w, scale, bias, *, stride=1, padding=0):
    """BasicConv3d: Conv3d(bias=False) + folded BN + ReLU.  x is NDHWC."""
    cout, cin, k, _, _ = w.shape
    if k == 1:
        n, d, h, w_, c = x.shape
        xm = x.reshape(n * d * h * w_, c)
        wm = w.reshape(cout, cin).T
        out_sp = (n, d, h, w_)
    else:
        xm, out_sp = _im2col_3d(x, k, stride, padding)
        wm = jnp.transpose(w, (2, 3, 4, 1, 0)).reshape(k * k * k * cin, cout)
    y = matmul_bn_relu(xm, wm, scale.reshape(1, cout), bias.reshape(1, cout))
    return y.reshape(out_sp + (cout,))


def fused_pointwise_convs(x, layers):
    """Fuse several 1x1x1 BasicConv3d layers sharing the same input into one matmul."""
    n, d, h, w_, cin = x.shape
    xm = x.reshape(n * d * h * w_, cin)
    wm = jnp.concatenate([w.reshape(w.shape[0], cin).T for (w, _, _) in layers], axis=1)
    scale = jnp.concatenate([s for (_, s, _) in layers]).reshape(1, -1)
    bias = jnp.concatenate([b for (_, _, b) in layers]).reshape(1, -1)
    y = matmul_bn_relu(xm, wm, scale, bias)
    y = y.reshape(n, d, h, w_, y.shape[-1])
    outs, off = [], 0
    for (w, _, _) in layers:
        c = w.shape[0]
        outs.append(y[..., off:off + c])
        off += c
    return outs


def reduction_b_forward(x_ncdhw, params):
    x = jnp.transpose(x_ncdhw, (0, 2, 3, 4, 1))                 # NCDHW -> NDHWC
    # branch0: maxpool with the module's trailing ReLU fused in-kernel.
    x0 = maxpool3d_k3s2_relu(x)
    # First 1x1 convs of branch1/2/3 fused into a single matmul call (N = 768).
    b1, b2, b3 = fused_pointwise_convs(
        x, [params["b1_0"], params["b2_0"], params["b3_0"]])
    b1 = basic_conv3d(b1, *params["b1_1"], stride=2)            # branch1
    b2 = basic_conv3d(b2, *params["b2_1"], stride=2)            # branch2
    b3 = basic_conv3d(b3, *params["b3_1"], padding=1)           # branch3
    b3 = basic_conv3d(b3, *params["b3_2"], stride=2)
    # Conv branches end in ReLU (>= 0), and the maxpool branch was clamped in
    # its kernel, so the post-concat ReLU of the module is already applied.
    out = jnp.concatenate([x0, b1, b2, b3], axis=-1)            # 1152+384+288+320
    return jnp.transpose(out, (0, 4, 1, 2, 3))                  # back to NCDHW


# ---------------------------------------------------------------------------
# Deterministic parameter initialization (eval-mode BN folded to scale/bias)
# ---------------------------------------------------------------------------
def _init_basic_conv3d(key, cin, cout, k):
    kw_, kg, kb, km, kv = jax.random.split(key, 5)
    fan_in = float(cin * k ** 3)
    w = jax.random.normal(kw_, (cout, cin, k, k, k), jnp.float32) / jnp.sqrt(fan_in)
    gamma = 1.0 + 0.1 * jax.random.normal(kg, (cout,), jnp.float32)
    beta = 0.1 * jax.random.normal(kb, (cout,), jnp.float32)
    running_mean = 0.1 * jax.random.normal(km, (cout,), jnp.float32)
    running_var = 0.5 + jnp.abs(jax.random.normal(kv, (cout,), jnp.float32))
    eps = 1e-3
    scale = gamma / jnp.sqrt(running_var + eps)
    bias = beta - running_mean * scale
    return w, scale, bias


def init_params(key):
    keys = jax.random.split(key, 7)
    return {
        "b1_0": _init_basic_conv3d(keys[0], 1152, 256, 1),
        "b1_1": _init_basic_conv3d(keys[1], 256, 384, 3),
        "b2_0": _init_basic_conv3d(keys[2], 1152, 256, 1),
        "b2_1": _init_basic_conv3d(keys[3], 256, 288, 3),
        "b3_0": _init_basic_conv3d(keys[4], 1152, 256, 1),
        "b3_1": _init_basic_conv3d(keys[5], 256, 288, 3),
        "b3_2": _init_basic_conv3d(keys[6], 288, 320, 3),
    }


# ---------------------------------------------------------------------------
# Pure-JAX reference (f32, HIGHEST precision) for the correctness check
# ---------------------------------------------------------------------------
def _reference_forward(x_ncdhw, params):
    x = jnp.transpose(x_ncdhw, (0, 2, 3, 4, 1))

    def conv_bn_relu(xx, w, scale, bias, stride=1, padding=0):
        y = jax.lax.conv_general_dilated(
            xx, jnp.transpose(w, (2, 3, 4, 1, 0)),
            window_strides=(stride,) * 3,
            padding=[(padding, padding)] * 3,
            dimension_numbers=("NDHWC", "DHWIO", "NDHWC"),
            precision=jax.lax.Precision.HIGHEST)
        return jnp.maximum(y * scale + bias, 0.0)

    x0 = jax.lax.reduce_window(x, -jnp.inf, jax.lax.max,
                               (1, 3, 3, 3, 1), (1, 2, 2, 2, 1), "VALID")
    b1 = conv_bn_relu(conv_bn_relu(x, *params["b1_0"]), *params["b1_1"], stride=2)
    b2 = conv_bn_relu(conv_bn_relu(x, *params["b2_0"]), *params["b2_1"], stride=2)
    b3 = conv_bn_relu(x, *params["b3_0"])
    b3 = conv_bn_relu(b3, *params["b3_1"], padding=1)
    b3 = conv_bn_relu(b3, *params["b3_2"], stride=2)
    out = jnp.maximum(jnp.concatenate([x0, b1, b2, b3], axis=-1), 0.0)
    return jnp.transpose(out, (0, 4, 1, 2, 3))


if __name__ == "__main__":
    key = jax.random.PRNGKey(0)
    kx, kp = jax.random.split(key)
    N, CIN, D, H, W = 2, 1152, 5, 5, 5          # small spatial; channels fixed by module
    x = jax.random.normal(kx, (N, CIN, D, H, W), jnp.float32)
    params = init_params(kp)

    out = jax.block_until_ready(jax.jit(reduction_b_forward)(x, params))
    assert out.shape == (N, 1152 + 384 + 288 + 320, 2, 2, 2), out.shape

    ref = jax.block_until_ready(_reference_forward(x, params))
    err = float(jnp.max(jnp.abs(out - ref)))
    # Tolerance accounts for bf16 MXU inputs (f32 accumulation) vs. f32 HIGHEST reference.
    assert bool(jnp.all(jnp.isfinite(out))) and err < 2e-1, f"max abs err {err}"

    print("KERNEL_OK")
</pallas_src>

<mosaic_0001>
module attributes {stable_mosaic.version = 11 : i64} {
  func.func @_maxpool3d_relu_kernel(%arg0: i32, %arg1: memref<1x5x5x5x1152xf32, #tpu.memory_space<vmem>>, %arg2: memref<1x2x2x2x1152xf32, #tpu.memory_space<vmem>>) attributes {dimension_semantics = [#tpu.dimension_semantics<parallel>], iteration_bounds = array<i64: 2>, scalar_prefetch = 0 : i64, scratch_operands = 0 : i64, tpu.core_type = #tpu.core_type<tc>, window_params = [{transform_indices = @transform_0, window_bounds = array<i64: 1, 5, 5, 5, 1152>}, {transform_indices = @transform_1, window_bounds = array<i64: 1, 2, 2, 2, 1152>}]} {
    %c0 = arith.constant 0 : index
    %c0_0 = arith.constant 0 : index
    %c0_1 = arith.constant 0 : index
    %c0_2 = arith.constant 0 : index
    %c0_3 = arith.constant 0 : index
    %0 = vector.load %arg1[%c0, %c0_0, %c0_1, %c0_2, %c0_3] : memref<1x5x5x5x1152xf32, #tpu.memory_space<vmem>>, vector<1x1x1x5x1152xf32>
    %1 = vector.shape_cast %0 : vector<1x1x1x5x1152xf32> to vector<5x1152xf32>
    %c0_4 = arith.constant 0 : index
    %c0_5 = arith.constant 0 : index
    %c1 = arith.constant 1 : index
    %c0_6 = arith.constant 0 : index
    %c0_7 = arith.constant 0 : index
    %2 = vector.load %arg1[%c0_4, %c0_5, %c1, %c0_6, %c0_7] : memref<1x5x5x5x1152xf32, #tpu.memory_space<vmem>>, vector<1x1x1x5x1152xf32>
    %3 = vector.shape_cast %2 : vector<1x1x1x5x1152xf32> to vector<5x1152xf32>
    %4 = arith.maximumf %1, %3 : vector<5x1152xf32>
    %c0_8 = arith.constant 0 : index
    %c0_9 = arith.constant 0 : index
    %c2 = arith.constant 2 : index
    %c0_10 = arith.constant 0 : index
    %c0_11 = arith.constant 0 : index
    %5 = vector.load %arg1[%c0_8, %c0_9, %c2, %c0_10, %c0_11] : memref<1x5x5x5x1152xf32, #tpu.memory_space<vmem>>, vector<1x1x1x5x1152xf32>
    %6 = vector.shape_cast %5 : vector<1x1x1x5x1152xf32> to vector<5x1152xf32>
    %7 = arith.maximumf %4, %6 : vector<5x1152xf32>
    %c0_12 = arith.constant 0 : index
    %c1_13 = arith.constant 1 : index
    %c0_14 = arith.constant 0 : index
    %c0_15 = arith.constant 0 : index
    %c0_16 = arith.constant 0 : index
    %8 = vector.load %arg1[%c0_12, %c1_13, %c0_14, %c0_15, %c0_16] : memref<1x5x5x5x1152xf32, #tpu.memory_space<vmem>>, vector<1x1x1x5x1152xf32>
    %9 = vector.shape_cast %8 : vector<1x1x1x5x1152xf32> to vector<5x1152xf32>
    %10 = arith.maximumf %7, %9 : vector<5x1152xf32>
    %c0_17 = arith.constant 0 : index
    %c1_18 = arith.constant 1 : index
    %c1_19 = arith.constant 1 : index
    %c0_20 = arith.constant 0 : index
    %c0_21 = arith.constant 0 : index
    %11 = vector.load %arg1[%c0_17, %c1_18, %c1_19, %c0_20, %c0_21] : memref<1x5x5x5x1152xf32, #tpu.memory_space<vmem>>, vector<1x1x1x5x1152xf32>
    %12 = vector.shape_cast %11 : vector<1x1x1x5x1152xf32> to vector<5x1152xf32>
    %13 = arith.maximumf %10, %12 : vector<5x1152xf32>
    %c0_22 = arith.constant 0 : index
    %c1_23 = arith.constant 1 : index
    %c2_24 = arith.constant 2 : index
    %c0_25 = arith.constant 0 : index
    %c0_26 = arith.constant 0 : index
    %14 = vector.load %arg1[%c0_22, %c1_23, %c2_24, %c0_25, %c0_26] : memref<1x5x5x5x1152xf32, #tpu.memory_space<vmem>>, vector<1x1x1x5x1152xf32>
    %15 = vector.shape_cast %14 : vector<1x1x1x5x1152xf32> to vector<5x1152xf32>
    %16 = arith.maximumf %13, %15 : vector<5x1152xf32>
    %c0_27 = arith.constant 0 : index
    %c2_28 = arith.constant 2 : index
    %c0_29 = arith.constant 0 : index
    %c0_30 = arith.constant 0 : index
    %c0_31 = arith.constant 0 : index
    %17 = vector.load %arg1[%c0_27, %c2_28, %c0_29, %c0_30, %c0_31] : memref<1x5x5x5x1152xf32, #tpu.memory_space<vmem>>, vector<1x1x1x5x1152xf32>
    %18 = vector.shape_cast %17 : vector<1x1x1x5x1152xf32> to vector<5x1152xf32>
    %19 = arith.maximumf %16, %18 : vector<5x1152xf32>
    %c0_32 = arith.constant 0 : index
    %c2_33 = arith.constant 2 : index
    %c1_34 = arith.constant 1 : index
    %c0_35 = arith.constant 0 : index
    %c0_36 = arith.constant 0 : index
    %20 = vector.load %arg1[%c0_32, %c2_33, %c1_34, %c0_35, %c0_36] : memref<1x5x5x5x1152xf32, #tpu.memory_space<vmem>>, vector<1x1x1x5x1152xf32>
    %21 = vector.shape_cast %20 : vector<1x1x1x5x1152xf32> to vector<5x1152xf32>
    %22 = arith.maximumf %19, %21 : vector<5x1152xf32>
    %c0_37 = arith.constant 0 : index
    %c2_38 = arith.constant 2 : index
    %c2_39 = arith.constant 2 : index
    %c0_40 = arith.constant 0 : index
    %c0_41 = arith.constant 0 : index
    %23 = vector.load %arg1[%c0_37, %c2_38, %c2_39, %c0_40, %c0_41] : memref<1x5x5x5x1152xf32, #tpu.memory_space<vmem>>, vector<1x1x1x5x1152xf32>
    %24 = vector.shape_cast %23 : vector<1x1x1x5x1152xf32> to vector<5x1152xf32>
    %25 = arith.maximumf %22, %24 : vector<5x1152xf32>
    %26 = vector.extract_strided_slice %25 {offsets = [0, 0], sizes = [1, 1152], strides = [1, 1]} : vector<5x1152xf32> to vector<1x1152xf32>
    %27 = vector.extract_strided_slice %25 {offsets = [1, 0], sizes = [1, 1152], strides = [1, 1]} : vector<5x1152xf32> to vector<1x1152xf32>
    %28 = arith.maximumf %26, %27 : vector<1x1152xf32>
    %29 = vector.extract_strided_slice %25 {offsets = [2, 0], sizes = [1, 1152], strides = [1, 1]} : vector<5x1152xf32> to vector<1x1152xf32>
    %30 = arith.maximumf %28, %29 : vector<1x1152xf32>
    %31 = vector.extract_strided_slice %25 {offsets = [2, 0], sizes = [1, 1152], strides = [1, 1]} : vector<5x1152xf32> to vector<1x1152xf32>
    %32 = vector.extract_strided_slice %25 {offsets = [3, 0], sizes = [1, 1152], strides = [1, 1]} : vector<5x1152xf32> to vector<1x1152xf32>
    %33 = arith.maximumf %31, %32 : vector<1x1152xf32>
    %34 = vector.extract_strided_slice %25 {offsets = [4, 0], sizes = [1, 1152], strides = [1, 1]} : vector<5x1152xf32> to vector<1x1152xf32>
    %35 = arith.maximumf %33, %34 : vector<1x1152xf32>
    %36 = tpu.concatenate %30, %35 in 0 : vector<1x1152xf32>, vector<1x1152xf32> -> vector<2x1152xf32>
    %cst = arith.constant 0.000000e+00 : f32
    %37 = vector.broadcast %cst : f32 to vector<2x1152xf32>
    %38 = arith.maximumf %36, %37 : vector<2x1152xf32>
    %c0_42 = arith.constant 0 : index
    %c0_43 = arith.constant 0 : index
    %c0_44 = arith.constant 0 : index
    %c0_45 = arith.constant 0 : index
    %c0_46 = arith.constant 0 : index
    %39 = vector.load %arg2[%c0_42, %c0_43, %c0_44, %c0_45, %c0_46] : memref<1x2x2x2x1152xf32, #tpu.memory_space<vmem>>, vector<1x1x1x2x1152xf32>
    %40 = vector.shape_cast %39 : vector<1x1x1x2x1152xf32> to vector<2x1152xf32>
    %41 = vector.shape_cast %38 : vector<2x1152xf32> to vector<1x1x1x2x1152xf32>
    tpu.vector_store %arg2[%c0_42, %c0_43, %c0_44, %c0_45, %c0_46], %41 {strides = array<i32>} : memref<1x2x2x2x1152xf32, #tpu.memory_space<vmem>>, vector<1x1x1x2x1152xf32>,
    %c0_47 = arith.constant 0 : index
    %c0_48 = arith.constant 0 : index
    %c2_49 = arith.constant 2 : index
    %c0_50 = arith.constant 0 : index
    %c0_51 = arith.constant 0 : index
    %42 = vector.load %arg1[%c0_47, %c0_48, %c2_49, %c0_50, %c0_51] : memref<1x5x5x5x1152xf32, #tpu.memory_space<vmem>>, vector<1x1x1x5x1152xf32>
    %43 = vector.shape_cast %42 : vector<1x1x1x5x1152xf32> to vector<5x1152xf32>
    %c0_52 = arith.constant 0 : index
    %c0_53 = arith.constant 0 : index
    %c3 = arith.constant 3 : index
    %c0_54 = arith.constant 0 : index
    %c0_55 = arith.constant 0 : index
    %44 = vector.load %arg1[%c0_52, %c0_53, %c3, %c0_54, %c0_55] : memref<1x5x5x5x1152xf32, #tpu.memory_space<vmem>>, vector<1x1x1x5x1152xf32>
    %45 = vector.shape_cast %44 : vector<1x1x1x5x1152xf32> to vector<5x1152xf32>
    %46 = arith.maximumf %43, %45 : vector<5x1152xf32>
    %c0_56 = arith.constant 0 : index
    %c0_57 = arith.constant 0 : index
    %c4 = arith.constant 4 : index
    %c0_58 = arith.constant 0 : index
    %c0_59 = arith.constant 0 : index
    %47 = vector.load %arg1[%c0_56, %c0_57, %c4, %c0_58, %c0_59] : memref<1x5x5x5x1152xf32, #tpu.memory_space<vmem>>, vector<1x1x1x5x1152xf32>
    %48 = vector.shape_cast %47 : vector<1x1x1x5x1152xf32> to vector<5x1152xf32>
    %49 = arith.maximumf %46, %48 : vector<5x1152xf32>
    %c0_60 = arith.constant 0 : index
    %c1_61 = arith.constant 1 : index
    %c2_62 = arith.constant 2 : index
    %c0_63 = arith.constant 0 : index
    %c0_64 = arith.constant 0 : index
    %50 = vector.load %arg1[%c0_60, %c1_61, %c2_62, %c0_63, %c0_64] : memref<1x5x5x5x1152xf32, #tpu.memory_space<vmem>>, vector<1x1x1x5x1152xf32>
    %51 = vector.shape_cast %50 : vector<1x1x1x5x1152xf32> to vector<5x1152xf32>
    %52 = arith.maximumf %49, %51 : vector<5x1152xf32>
    %c0_65 = arith.constant 0 : index
    %c1_66 = arith.constant 1 : index
    %c3_67 = arith.constant 3 : index
    %c0_68 = arith.constant 0 : index
    %c0_69 = arith.constant 0 : index
    %53 = vector.load %arg1[%c0_65, %c1_66, %c3_67, %c0_68, %c0_69] : memref<1x5x5x5x1152xf32, #tpu.memory_space<vmem>>, vector<1x1x1x5x1152xf32>
    %54 = vector.shape_cast %53 : vector<1x1x1x5x1152xf32> to vector<5x1152xf32>
    %55 = arith.maximumf %52, %54 : vector<5x1152xf32>
    %c0_70 = arith.constant 0 : index
    %c1_71 = arith.constant 1 : index
    %c4_72 = arith.constant 4 : index
    %c0_73 = arith.constant 0 : index
    %c0_74 = arith.constant 0 : index
    %56 = vector.load %arg1[%c0_70, %c1_71, %c4_72, %c0_73, %c0_74] : memref<1x5x5x5x1152xf32, #tpu.memory_space<vmem>>, vector<1x1x1x5x1152xf32>
    %57 = vector.shape_cast %56 : vector<1x1x1x5x1152xf32> to vector<5x1152xf32>
    %58 = arith.maximumf %55, %57 : vector<5x1152xf32>
    %c0_75 = arith.constant 0 : index
    %c2_76 = arith.constant 2 : index
    %c2_77 = arith.constant 2 : index
    %c0_78 = arith.constant 0 : index
    %c0_79 = arith.constant 0 : index
    %59 = vector.load %arg1[%c0_75, %c2_76, %c2_77, %c0_78, %c0_79] : memref<1x5x5x5x1152xf32, #tpu.memory_space<vmem>>, vector<1x1x1x5x1152xf32>
    %60 = vector.shape_cast %59 : vector<1x1x1x5x1152xf32> to vector<5x1152xf32>
    %61 = arith.maximumf %58, %60 : vector<5x1152xf32>
    %c0_80 = arith.constant 0 : index
    %c2_81 = arith.constant 2 : index
    %c3_82 = arith.constant 3 : index
    %c0_83 = arith.constant 0 : index
    %c0_84 = arith.constant 0 : index
    %62 = vector.load %arg1[%c0_80, %c2_81, %c3_82, %c0_83, %c0_84] : memref<1x5x5x5x1152xf32, #tpu.memory_space<vmem>>, vector<1x1x1x5x1152xf32>
    %63 = vector.shape_cast %62 : vector<1x1x1x5x1152xf32> to vector<5x1152xf32>
    %64 = arith.maximumf %61, %63 : vector<5x1152xf32>
    %c0_85 = arith.constant 0 : index
    %c2_86 = arith.constant 2 : index
    %c4_87 = arith.constant 4 : index
    %c0_88 = arith.constant 0 : index
    %c0_89 = arith.constant 0 : index
    %65 = vector.load %arg1[%c0_85, %c2_86, %c4_87, %c0_88, %c0_89] : memref<1x5x5x5x1152xf32, #tpu.memory_space<vmem>>, vector<1x1x1x5x1152xf32>
    %66 = vector.shape_cast %65 : vector<1x1x1x5x1152xf32> to vector<5x1152xf32>
    %67 = arith.maximumf %64, %66 : vector<5x1152xf32>
    %68 = vector.extract_strided_slice %67 {offsets = [0, 0], sizes = [1, 1152], strides = [1, 1]} : vector<5x1152xf32> to vector<1x1152xf32>
    %69 = vector.extract_strided_slice %67 {offsets = [1, 0], sizes = [1, 1152], strides = [1, 1]} : vector<5x1152xf32> to vector<1x1152xf32>
    %70 = arith.maximumf %68, %69 : vector<1x1152xf32>
    %71 = vector.extract_strided_slice %67 {offsets = [2, 0], sizes = [1, 1152], strides = [1, 1]} : vector<5x1152xf32> to vector<1x1152xf32>
    %72 = arith.maximumf %70, %71 : vector<1x1152xf32>
    %73 = vector.extract_strided_slice %67 {offsets = [2, 0], sizes = [1, 1152], strides = [1, 1]} : vector<5x1152xf32> to vector<1x1152xf32>
    %74 = vector.extract_strided_slice %67 {offsets = [3, 0], sizes = [1, 1152], strides = [1, 1]} : vector<5x1152xf32> to vector<1x1152xf32>
    %75 = arith.maximumf %73, %74 : vector<1x1152xf32>
    %76 = vector.extract_strided_slice %67 {offsets = [4, 0], sizes = [1, 1152], strides = [1, 1]} : vector<5x1152xf32> to vector<1x1152xf32>
    %77 = arith.maximumf %75, %76 : vector<1x1152xf32>
    %78 = tpu.concatenate %72, %77 in 0 : vector<1x1152xf32>, vector<1x1152xf32> -> vector<2x1152xf32>
    %cst_90 = arith.constant 0.000000e+00 : f32
    %79 = vector.broadcast %cst_90 : f32 to vector<2x1152xf32>
    %80 = arith.maximumf %78, %79 : vector<2x1152xf32>
    %c0_91 = arith.constant 0 : index
    %c0_92 = arith.constant 0 : index
    %c1_93 = arith.constant 1 : index
    %c0_94 = arith.constant 0 : index
    %c0_95 = arith.constant 0 : index
    %81 = vector.load %arg2[%c0_91, %c0_92, %c1_93, %c0_94, %c0_95] : memref<1x2x2x2x1152xf32, #tpu.memory_space<vmem>>, vector<1x1x1x2x1152xf32>
    %82 = vector.shape_cast %81 : vector<1x1x1x2x1152xf32> to vector<2x1152xf32>
    %83 = vector.shape_cast %80 : vector<2x1152xf32> to vector<1x1x1x2x1152xf32>
    tpu.vector_store %arg2[%c0_91, %c0_92, %c1_93, %c0_94, %c0_95], %83 {strides = array<i32>} : memref<1x2x2x2x1152xf32, #tpu.memory_space<vmem>>, vector<1x1x1x2x1152xf32>,
    %c0_96 = arith.constant 0 : index
    %c2_97 = arith.constant 2 : index
    %c0_98 = arith.constant 0 : index
    %c0_99 = arith.constant 0 : index
    %c0_100 = arith.constant 0 : index
    %84 = vector.load %arg1[%c0_96, %c2_97, %c0_98, %c0_99, %c0_100] : memref<1x5x5x5x1152xf32, #tpu.memory_space<vmem>>, vector<1x1x1x5x1152xf32>
    %85 = vector.shape_cast %84 : vector<1x1x1x5x1152xf32> to vector<5x1152xf32>
    %c0_101 = arith.constant 0 : index
    %c2_102 = arith.constant 2 : index
    %c1_103 = arith.constant 1 : index
    %c0_104 = arith.constant 0 : index
    %c0_105 = arith.constant 0 : index
    %86 = vector.load %arg1[%c0_101, %c2_102, %c1_103, %c0_104, %c0_105] : memref<1x5x5x5x1152xf32, #tpu.memory_space<vmem>>, vector<1x1x1x5x1152xf32>
    %87 = vector.shape_cast %86 : vector<1x1x1x5x1152xf32> to vector<5x1152xf32>
    %88 = arith.maximumf %85, %87 : vector<5x1152xf32>
    %c0_106 = arith.constant 0 : index
    %c2_107 = arith.constant 2 : index
    %c2_108 = arith.constant 2 : index
    %c0_109 = arith.constant 0 : index
    %c0_110 = arith.constant 0 : index
    %89 = vector.load %arg1[%c0_106, %c2_107, %c2_108, %c0_109, %c0_110] : memref<1x5x5x5x1152xf32, #tpu.memory_space<vmem>>, vector<1x1x1x5x1152xf32>
    %90 = vector.shape_cast %89 : vector<1x1x1x5x1152xf32> to vector<5x1152xf32>
    %91 = arith.maximumf %88, %90 : vector<5x1152xf32>
    %c0_111 = arith.constant 0 : index
    %c3_112 = arith.constant 3 : index
    %c0_113 = arith.constant 0 : index
    %c0_114 = arith.constant 0 : index
    %c0_115 = arith.constant 0 : index
    %92 = vector.load %arg1[%c0_111, %c3_112, %c0_113, %c0_114, %c0_115] : memref<1x5x5x5x1152xf32, #tpu.memory_space<vmem>>, vector<1x1x1x5x1152xf32>
    %93 = vector.shape_cast %92 : vector<1x1x1x5x1152xf32> to vector<5x1152xf32>
    %94 = arith.maximumf %91, %93 : vector<5x1152xf32>
    %c0_116 = arith.constant 0 : index
    %c3_117 = arith.constant 3 : index
    %c1_118 = arith.constant 1 : index
    %c0_119 = arith.constant 0 : index
    %c0_120 = arith.constant 0 : index
    %95 = vector.load %arg1[%c0_116, %c3_117, %c1_118, %c0_119, %c0_120] : memref<1x5x5x5x1152xf32, #tpu.memory_space<vmem>>, vector<1x1x1x5x1152xf32>
    %96 = vector.shape_cast %95 : vector<1x1x1x5x1152xf32> to vector<5x1152xf32>
    %97 = arith.maximumf %94, %96 : vector<5x1152xf32>
    %c0_121 = arith.constant 0 : index
    %c3_122 = arith.constant 3 : index
    %c2_123 = arith.constant 2 : index
    %c0_124 = arith.constant 0 : index
    %c0_125 = arith.constant 0 : index
    %98 = vector.load %arg1[%c0_121, %c3_122, %c2_123, %c0_124, %c0_125] : memref<1x5x5x5x1152xf32, #tpu.memory_space<vmem>>, vector<1x1x1x5x1152xf32>
    %99 = vector.shape_cast %98 : vector<1x1x1x5x1152xf32> to vector<5x1152xf32>
    %100 = arith.maximumf %97, %99 : vector<5x1152xf32>
    %c0_126 = arith.constant 0 : index
    %c4_127 = arith.constant 4 : index
    %c0_128 = arith.constant 0 : index
    %c0_129 = arith.constant 0 : index
    %c0_130 = arith.constant 0 : index
    %101 = vector.load %arg1[%c0_126, %c4_127, %c0_128, %c0_129, %c0_130] : memref<1x5x5x5x1152xf32, #tpu.memory_space<vmem>>, vector<1x1x1x5x1152xf32>
    %102 = vector.shape_cast %101 : vector<1x1x1x5x1152xf32> to vector<5x1152xf32>
    %103 = arith.maximumf %100, %102 : vector<5x1152xf32>
    %c0_131 = arith.constant 0 : index
    %c4_132 = arith.constant 4 : index
    %c1_133 = arith.constant 1 : index
    %c0_134 = arith.constant 0 : index
    %c0_135 = arith.constant 0 : index
    %104 = vector.load %arg1[%c0_131, %c4_132, %c1_133, %c0_134, %c0_135] : memref<1x5x5x5x1152xf32, #tpu.memory_space<vmem>>, vector<1x1x1x5x1152xf32>
    %105 = vector.shape_cast %104 : vector<1x1x1x5x1152xf32> to vector<5x1152xf32>
    %106 = arith.maximumf %103, %105 : vector<5x1152xf32>
    %c0_136 = arith.constant 0 : index
    %c4_137 = arith.constant 4 : index
    %c2_138 = arith.constant 2 : index
    %c0_139 = arith.constant 0 : index
    %c0_140 = arith.constant 0 : index
    %107 = vector.load %arg1[%c0_136, %c4_137, %c2_138, %c0_139, %c0_140] : memref<1x5x5x5x1152xf32, #tpu.memory_space<vmem>>, vector<1x1x1x5x1152xf32>
    %108 = vector.shape_cast %107 : vector<1x1x1x5x1152xf32> to vector<5x1152xf32>
    %109 = arith.maximumf %106, %108 : vector<5x1152xf32>
    %110 = vector.extract_strided_slice %109 {offsets = [0, 0], sizes = [1, 1152], strides = [1, 1]} : vector<5x1152xf32> to vector<1x1152xf32>
    %111 = vector.extract_strided_slice %109 {offsets = [1, 0], sizes = [1, 1152], strides = [1, 1]} : vector<5x1152xf32> to vector<1x1152xf32>
    %112 = arith.maximumf %110, %111 : vector<1x1152xf32>
    %113 = vector.extract_strided_slice %109 {offsets = [2, 0], sizes = [1, 1152], strides = [1, 1]} : vector<5x1152xf32> to vector<1x1152xf32>
    %114 = arith.maximumf %112, %113 : vector<1x1152xf32>
    %115 = vector.extract_strided_slice %109 {offsets = [2, 0], sizes = [1, 1152], strides = [1, 1]} : vector<5x1152xf32> to vector<1x1152xf32>
    %116 = vector.extract_strided_slice %109 {offsets = [3, 0], sizes = [1, 1152], strides = [1, 1]} : vector<5x1152xf32> to vector<1x1152xf32>
    %117 = arith.maximumf %115, %116 : vector<1x1152xf32>
    %118 = vector.extract_strided_slice %109 {offsets = [4, 0], sizes = [1, 1152], strides = [1, 1]} : vector<5x1152xf32> to vector<1x1152xf32>
    %119 = arith.maximumf %117, %118 : vector<1x1152xf32>
    %120 = tpu.concatenate %114, %119 in 0 : vector<1x1152xf32>, vector<1x1152xf32> -> vector<2x1152xf32>
    %cst_141 = arith.constant 0.000000e+00 : f32
    %121 = vector.broadcast %cst_141 : f32 to vector<2x1152xf32>
    %122 = arith.maximumf %120, %121 : vector<2x1152xf32>
    %c0_142 = arith.constant 0 : index
    %c1_143 = arith.constant 1 : index
    %c0_144 = arith.constant 0 : index
    %c0_145 = arith.constant 0 : index
    %c0_146 = arith.constant 0 : index
    %123 = vector.load %arg2[%c0_142, %c1_143, %c0_144, %c0_145, %c0_146] : memref<1x2x2x2x1152xf32, #tpu.memory_space<vmem>>, vector<1x1x1x2x1152xf32>
    %124 = vector.shape_cast %123 : vector<1x1x1x2x1152xf32> to vector<2x1152xf32>
    %125 = vector.shape_cast %122 : vector<2x1152xf32> to vector<1x1x1x2x1152xf32>
    tpu.vector_store %arg2[%c0_142, %c1_143, %c0_144, %c0_145, %c0_146], %125 {strides = array<i32>} : memref<1x2x2x2x1152xf32, #tpu.memory_space<vmem>>, vector<1x1x1x2x1152xf32>,
    %c0_147 = arith.constant 0 : index
    %c2_148 = arith.constant 2 : index
    %c2_149 = arith.constant 2 : index
    %c0_150 = arith.constant 0 : index
    %c0_151 = arith.constant 0 : index
    %126 = vector.load %arg1[%c0_147, %c2_148, %c2_149, %c0_150, %c0_151] : memref<1x5x5x5x1152xf32, #tpu.memory_space<vmem>>, vector<1x1x1x5x1152xf32>
    %127 = vector.shape_cast %126 : vector<1x1x1x5x1152xf32> to vector<5x1152xf32>
    %c0_152 = arith.constant 0 : index
    %c2_153 = arith.constant 2 : index
    %c3_154 = arith.constant 3 : index
    %c0_155 = arith.constant 0 : index
    %c0_156 = arith.constant 0 : index
    %128 = vector.load %arg1[%c0_152, %c2_153, %c3_154, %c0_155, %c0_156] : memref<1x5x5x5x1152xf32, #tpu.memory_space<vmem>>, vector<1x1x1x5x1152xf32>
    %129 = vector.shape_cast %128 : vector<1x1x1x5x1152xf32> to vector<5x1152xf32>
    %130 = arith.maximumf %127, %129 : vector<5x1152xf32>
    %c0_157 = arith.constant 0 : index
    %c2_158 = arith.constant 2 : index
    %c4_159 = arith.constant 4 : index
    %c0_160 = arith.constant 0 : index
    %c0_161 = arith.constant 0 : index
    %131 = vector.load %arg1[%c0_157, %c2_158, %c4_159, %c0_160, %c0_161] : memref<1x5x5x5x1152xf32, #tpu.memory_space<vmem>>, vector<1x1x1x5x1152xf32>
    %132 = vector.shape_cast %131 : vector<1x1x1x5x1152xf32> to vector<5x1152xf32>
    %133 = arith.maximumf %130, %132 : vector<5x1152xf32>
    %c0_162 = arith.constant 0 : index
    %c3_163 = arith.constant 3 : index
    %c2_164 = arith.constant 2 : index
    %c0_165 = arith.constant 0 : index
    %c0_166 = arith.constant 0 : index
    %134 = vector.load %arg1[%c0_162, %c3_163, %c2_164, %c0_165, %c0_166] : memref<1x5x5x5x1152xf32, #tpu.memory_space<vmem>>, vector<1x1x1x5x1152xf32>
    %135 = vector.shape_cast %134 : vector<1x1x1x5x1152xf32> to vector<5x1152xf32>
    %136 = arith.maximumf %133, %135 : vector<5x1152xf32>
    %c0_167 = arith.constant 0 : index
    %c3_168 = arith.constant 3 : index
    %c3_169 = arith.constant 3 : index
    %c0_170 = arith.constant 0 : index
    %c0_171 = arith.constant 0 : index
    %137 = vector.load %arg1[%c0_167, %c3_168, %c3_169, %c0_170, %c0_171] : memref<1x5x5x5x1152xf32, #tpu.memory_space<vmem>>, vector<1x1x1x5x1152xf32>
    %138 = vector.shape_cast %137 : vector<1x1x1x5x1152xf32> to vector<5x1152xf32>
    %139 = arith.maximumf %136, %138 : vector<5x1152xf32>
    %c0_172 = arith.constant 0 : index
    %c3_173 = arith.constant 3 : index
    %c4_174 = arith.constant 4 : index
    %c0_175 = arith.constant 0 : index
    %c0_176 = arith.constant 0 : index
    %140 = vector.load %arg1[%c0_172, %c3_173, %c4_174, %c0_175, %c0_176] : memref<1x5x5x5x1152xf32, #tpu.memory_space<vmem>>, vector<1x1x1x5x1152xf32>
    %141 = vector.shape_cast %140 : vector<1x1x1x5x1152xf32> to vector<5x1152xf32>
    %142 = arith.maximumf %139, %141 : vector<5x1152xf32>
    %c0_177 = arith.constant 0 : index
    %c4_178 = arith.constant 4 : index
    %c2_179 = arith.constant 2 : index
    %c0_180 = arith.constant 0 : index
    %c0_181 = arith.constant 0 : index
    %143 = vector.load %arg1[%c0_177, %c4_178, %c2_179, %c0_180, %c0_181] : memref<1x5x5x5x1152xf32, #tpu.memory_space<vmem>>, vector<1x1x1x5x1152xf32>
    %144 = vector.shape_cast %143 : vector<1x1x1x5x1152xf32> to vector<5x1152xf32>
    %145 = arith.maximumf %142, %144 : vector<5x1152xf32>
    %c0_182 = arith.constant 0 : index
    %c4_183 = arith.constant 4 : index
    %c3_184 = arith.constant 3 : index
    %c0_185 = arith.constant 0 : index
    %c0_186 = arith.constant 0 : index
    %146 = vector.load %arg1[%c0_182, %c4_183, %c3_184, %c0_185, %c0_186] : memref<1x5x5x5x1152xf32, #tpu.memory_space<vmem>>, vector<1x1x1x5x1152xf32>
    %147 = vector.shape_cast %146 : vector<1x1x1x5x1152xf32> to vector<5x1152xf32>
    %148 = arith.maximumf %145, %147 : vector<5x1152xf32>
    %c0_187 = arith.constant 0 : index
    %c4_188 = arith.constant 4 : index
    %c4_189 = arith.constant 4 : index
    %c0_190 = arith.constant 0 : index
    %c0_191 = arith.constant 0 : index
    %149 = vector.load %arg1[%c0_187, %c4_188, %c4_189, %c0_190, %c0_191] : memref<1x5x5x5x1152xf32, #tpu.memory_space<vmem>>, vector<1x1x1x5x1152xf32>
    %150 = vector.shape_cast %149 : vector<1x1x1x5x1152xf32> to vector<5x1152xf32>
    %151 = arith.maximumf %148, %150 : vector<5x1152xf32>
    %152 = vector.extract_strided_slice %151 {offsets = [0, 0], sizes = [1, 1152], strides = [1, 1]} : vector<5x1152xf32> to vector<1x1152xf32>
    %153 = vector.extract_strided_slice %151 {offsets = [1, 0], sizes = [1, 1152], strides = [1, 1]} : vector<5x1152xf32> to vector<1x1152xf32>
    %154 = arith.maximumf %152, %153 : vector<1x1152xf32>
    %155 = vector.extract_strided_slice %151 {offsets = [2, 0], sizes = [1, 1152], strides = [1, 1]} : vector<5x1152xf32> to vector<1x1152xf32>
    %156 = arith.maximumf %154, %155 : vector<1x1152xf32>
    %157 = vector.extract_strided_slice %151 {offsets = [2, 0], sizes = [1, 1152], strides = [1, 1]} : vector<5x1152xf32> to vector<1x1152xf32>
    %158 = vector.extract_strided_slice %151 {offsets = [3, 0], sizes = [1, 1152], strides = [1, 1]} : vector<5x1152xf32> to vector<1x1152xf32>
    %159 = arith.maximumf %157, %158 : vector<1x1152xf32>
    %160 = vector.extract_strided_slice %151 {offsets = [4, 0], sizes = [1, 1152], strides = [1, 1]} : vector<5x1152xf32> to vector<1x1152xf32>
    %161 = arith.maximumf %159, %160 : vector<1x1152xf32>
    %162 = tpu.concatenate %156, %161 in 0 : vector<1x1152xf32>, vector<1x1152xf32> -> vector<2x1152xf32>
    %cst_192 = arith.constant 0.000000e+00 : f32
    %163 = vector.broadcast %cst_192 : f32 to vector<2x1152xf32>
    %164 = arith.maximumf %162, %163 : vector<2x1152xf32>
    %c0_193 = arith.constant 0 : index
    %c1_194 = arith.constant 1 : index
    %c1_195 = arith.constant 1 : index
    %c0_196 = arith.constant 0 : index
    %c0_197 = arith.constant 0 : index
    %165 = vector.load %arg2[%c0_193, %c1_194, %c1_195, %c0_196, %c0_197] : memref<1x2x2x2x1152xf32, #tpu.memory_space<vmem>>, vector<1x1x1x2x1152xf32>
    %166 = vector.shape_cast %165 : vector<1x1x1x2x1152xf32> to vector<2x1152xf32>
    %167 = vector.shape_cast %164 : vector<2x1152xf32> to vector<1x1x1x2x1152xf32>
    tpu.vector_store %arg2[%c0_193, %c1_194, %c1_195, %c0_196, %c0_197], %167 {strides = array<i32>} : memref<1x2x2x2x1152xf32, #tpu.memory_space<vmem>>, vector<1x1x1x2x1152xf32>,
    return
  }
  func.func @transform_0(%arg0: i32) -> (i32, i32, i32, i32, i32) {
    %c0_i32 = arith.constant 0 : i32
    %c0_i32_0 = arith.constant 0 : i32
    %c0_i32_1 = arith.constant 0 : i32
    %c0_i32_2 = arith.constant 0 : i32
    %c0_i32_3 = arith.constant 0 : i32
    return %arg0, %c0_i32, %c0_i32_0, %c0_i32_1, %c0_i32_2 : i32, i32, i32, i32, i32
  }
  func.func @transform_1(%arg0: i32) -> (i32, i32, i32, i32, i32) {
    %c0_i32 = arith.constant 0 : i32
    %c0_i32_0 = arith.constant 0 : i32
    %c0_i32_1 = arith.constant 0 : i32
    %c0_i32_2 = arith.constant 0 : i32
    %c0_i32_3 = arith.constant 0 : i32
    return %arg0, %c0_i32, %c0_i32_0, %c0_i32_1, %c0_i32_2 : i32, i32, i32, i32, i32
  }
}

module attributes {stable_mosaic.version = 11 : i64} {
  func.func @_matmul_bn_relu_kernel(%arg0: i32, %arg1: i32, %arg2: memref<128x384xbf16, #tpu.memory_space<vmem>>, %arg3: memref<384x768xbf16, #tpu.memory_space<vmem>>, %arg4: memref<1x768xf32, #tpu.memory_space<vmem>>, %arg5: memref<1x768xf32, #tpu.memory_space<vmem>>, %arg6: memref<128x768xf32, #tpu.memory_space<vmem>>) attributes {dimension_semantics = [#tpu.dimension_semantics<parallel>, #tpu.dimension_semantics<arbitrary>], iteration_bounds = array<i64: 2, 3>, scalar_prefetch = 0 : i64, scratch_operands = 0 : i64, tpu.core_type = #tpu.core_type<tc>, window_params = [{transform_indices = @transform_0, window_bounds = array<i64: 128, 384>}, {transform_indices = @transform_1, window_bounds = array<i64: 384, 768>}, {pipeline_mode = #tpu.pipeline_mode<synchronous>, transform_indices = @transform_2, window_bounds = array<i64: 1, 768>}, {pipeline_mode = #tpu.pipeline_mode<synchronous>, transform_indices = @transform_3, window_bounds = array<i64: 1, 768>}, {transform_indices = @transform_4, window_bounds = array<i64: 128, 768>}]} {
    %c0_i32 = arith.constant 0 : i32
    %0 = arith.cmpi eq, %arg1, %c0_i32 : i32
    %1 = arith.extui %0 : i1 to i32
    %c0_i32_0 = arith.constant 0 : i32
    %2 = arith.cmpi ne, %1, %c0_i32_0 : i32
    scf.if %2 {
      %cst_9 = arith.constant 0.000000e+00 : f32
      %12 = vector.broadcast %cst_9 : f32 to vector<128x768xf32>
      %c0_10 = arith.constant 0 : index
      %c0_11 = arith.constant 0 : index
      %13 = vector.load %arg6[%c0_10, %c0_11] : memref<128x768xf32, #tpu.memory_space<vmem>>, vector<128x768xf32>
      tpu.vector_store %arg6[%c0_10, %c0_11], %12 {strides = array<i32>} : memref<128x768xf32, #tpu.memory_space<vmem>>, vector<128x768xf32>,
    } else {
    }
    %c0 = arith.constant 0 : index
    %c0_1 = arith.constant 0 : index
    %3 = vector.load %arg6[%c0, %c0_1] : memref<128x768xf32, #tpu.memory_space<vmem>>, vector<128x768xf32>
    %c0_2 = arith.constant 0 : index
    %c0_3 = arith.constant 0 : index
    %4 = vector.load %arg2[%c0_2, %c0_3] : memref<128x384xbf16, #tpu.memory_space<vmem>>, vector<128x384xbf16>
    %c0_4 = arith.constant 0 : index
    %c0_5 = arith.constant 0 : index
    %5 = vector.load %arg3[%c0_4, %c0_5] : memref<384x768xbf16, #tpu.memory_space<vmem>>, vector<384x768xbf16>
    %cst = arith.constant dense<0.000000e+00> : vector<128x768xf32>
    %6 = tpu.matmul %4, %5, %cst {dimension_numbers = #tpu.dot_dimension_numbers<[1], [0], [0], [1], [0, 0, 1, 1], [], []>} : vector<128x384xbf16>, vector<384x768xbf16>, vector<128x768xf32> -> vector<128x768xf32>
    %7 = arith.addf %3, %6 : vector<128x768xf32>
    %c0_6 = arith.constant 0 : index
    %c0_7 = arith.constant 0 : index
    %8 = vector.load %arg6[%c0_6, %c0_7] : memref<128x768xf32, #tpu.memory_space<vmem>>, vector<128x768xf32>
    tpu.vector_store %arg6[%c0_6, %c0_7], %7 {strides = array<i32>} : memref<128x768xf32, #tpu.memory_space<vmem>>, vector<128x768xf32>,
    %c2_i32 = arith.constant 2 : i32
    %9 = arith.cmpi eq, %arg1, %c2_i32 : i32
    %10 = arith.extui %9 : i1 to i32
    %c0_i32_8 = arith.constant 0 : i32
    %11 = arith.cmpi ne, %10, %c0_i32_8 : i32
    scf.if %11 {
      %c0_9 = arith.constant 0 : index
      %c0_10 = arith.constant 0 : index
      %12 = vector.load %arg6[%c0_9, %c0_10] : memref<128x768xf32, #tpu.memory_space<vmem>>, vector<128x768xf32>
      %c0_11 = arith.constant 0 : index
      %c0_12 = arith.constant 0 : index
      %13 = vector.load %arg4[%c0_11, %c0_12] : memref<1x768xf32, #tpu.memory_space<vmem>>, vector<1x768xf32>
      %14 = vector.broadcast %13 : vector<1x768xf32> to vector<128x768xf32>
      %15 = arith.mulf %12, %14 : vector<128x768xf32>
      %c0_13 = arith.constant 0 : index
      %c0_14 = arith.constant 0 : index
      %16 = vector.load %arg5[%c0_13, %c0_14] : memref<1x768xf32, #tpu.memory_space<vmem>>, vector<1x768xf32>
      %17 = vector.broadcast %16 : vector<1x768xf32> to vector<128x768xf32>
      %18 = arith.addf %15, %17 : vector<128x768xf32>
      %cst_15 = arith.constant 0.000000e+00 : f32
      %19 = vector.broadcast %cst_15 : f32 to vector<128x768xf32>
      %20 = arith.maximumf %18, %19 : vector<128x768xf32>
      %c0_16 = arith.constant 0 : index
      %c0_17 = arith.constant 0 : index
      %21 = vector.load %arg6[%c0_16, %c0_17] : memref<128x768xf32, #tpu.memory_space<vmem>>, vector<128x768xf32>
      tpu.vector_store %arg6[%c0_16, %c0_17], %20 {strides = array<i32>} : memref<128x768xf32, #tpu.memory_space<vmem>>, vector<128x768xf32>,
    } else {
    }
    return
  }
  func.func @transform_0(%arg0: i32, %arg1: i32) -> (i32, i32) {
    %c0_i32 = arith.constant 0 : i32
    return %arg0, %arg1 : i32, i32
  }
  func.func @transform_1(%arg0: i32, %arg1: i32) -> (i32, i32) {
    %c0_i32 = arith.constant 0 : i32
    %c0_i32_0 = arith.constant 0 : i32
    return %arg1, %c0_i32 : i32, i32
  }
  func.func @transform_2(%arg0: i32, %arg1: i32) -> (i32, i32) {
    %c0_i32 = arith.constant 0 : i32
    %c0_i32_0 = arith.constant 0 : i32
    %c0_i32_1 = arith.constant 0 : i32
    return %c0_i32, %c0_i32_0 : i32, i32
  }
  func.func @transform_3(%arg0: i32, %arg1: i32) -> (i32, i32) {
    %c0_i32 = arith.constant 0 : i32
    %c0_i32_0 = arith.constant 0 : i32
    %c0_i32_1 = arith.constant 0 : i32
    return %c0_i32, %c0_i32_0 : i32, i32
  }
  func.func @transform_4(%arg0: i32, %arg1: i32) -> (i32, i32) {
    %c0_i32 = arith.constant 0 : i32
    %c0_i32_0 = arith.constant 0 : i32
    return %arg0, %c0_i32 : i32, i32
  }
}

module attributes {stable_mosaic.version = 11 : i64} {
  func.func @_matmul_bn_relu_kernel(%arg0: i32, %arg1: i32, %arg2: memref<16x384xbf16, #tpu.memory_space<vmem>>, %arg3: memref<384x384xbf16, #tpu.memory_space<vmem>>, %arg4: memref<1x384xf32, #tpu.memory_space<vmem>>, %arg5: memref<1x384xf32, #tpu.memory_space<vmem>>, %arg6: memref<16x384xf32, #tpu.memory_space<vmem>>) attributes {dimension_semantics = [#tpu.dimension_semantics<parallel>, #tpu.dimension_semantics<arbitrary>], iteration_bounds = array<i64: 1, 18>, scalar_prefetch = 0 : i64, scratch_operands = 0 : i64, tpu.core_type = #tpu.core_type<tc>, window_params = [{transform_indices = @transform_0, window_bounds = array<i64: 16, 384>}, {transform_indices = @transform_1, window_bounds = array<i64: 384, 384>}, {pipeline_mode = #tpu.pipeline_mode<synchronous>, transform_indices = @transform_2, window_bounds = array<i64: 1, 384>}, {pipeline_mode = #tpu.pipeline_mode<synchronous>, transform_indices = @transform_3, window_bounds = array<i64: 1, 384>}, {transform_indices = @transform_4, window_bounds = array<i64: 16, 384>}]} {
    %c0_i32 = arith.constant 0 : i32
    %0 = arith.cmpi eq, %arg1, %c0_i32 : i32
    %1 = arith.extui %0 : i1 to i32
    %c0_i32_0 = arith.constant 0 : i32
    %2 = arith.cmpi ne, %1, %c0_i32_0 : i32
    scf.if %2 {
      %cst_9 = arith.constant 0.000000e+00 : f32
      %12 = vector.broadcast %cst_9 : f32 to vector<16x384xf32>
      %c0_10 = arith.constant 0 : index
      %c0_11 = arith.constant 0 : index
      %13 = vector.load %arg6[%c0_10, %c0_11] : memref<16x384xf32, #tpu.memory_space<vmem>>, vector<16x384xf32>
      tpu.vector_store %arg6[%c0_10, %c0_11], %12 {strides = array<i32>} : memref<16x384xf32, #tpu.memory_space<vmem>>, vector<16x384xf32>,
    } else {
    }
    %c0 = arith.constant 0 : index
    %c0_1 = arith.constant 0 : index
    %3 = vector.load %arg6[%c0, %c0_1] : memref<16x384xf32, #tpu.memory_space<vmem>>, vector<16x384xf32>
    %c0_2 = arith.constant 0 : index
    %c0_3 = arith.constant 0 : index
    %4 = vector.load %arg2[%c0_2, %c0_3] : memref<16x384xbf16, #tpu.memory_space<vmem>>, vector<16x384xbf16>
    %c0_4 = arith.constant 0 : index
    %c0_5 = arith.constant 0 : index
    %5 = vector.load %arg3[%c0_4, %c0_5] : memref<384x384xbf16, #tpu.memory_space<vmem>>, vector<384x384xbf16>
    %cst = arith.constant dense<0.000000e+00> : vector<16x384xf32>
    %6 = tpu.matmul %4, %5, %cst {dimension_numbers = #tpu.dot_dimension_numbers<[1], [0], [0], [1], [0, 0, 1, 1], [], []>} : vector<16x384xbf16>, vector<384x384xbf16>, vector<16x384xf32> -> vector<16x384xf32>
    %7 = arith.addf %3, %6 : vector<16x384xf32>
    %c0_6 = arith.constant 0 : index
    %c0_7 = arith.constant 0 : index
    %8 = vector.load %arg6[%c0_6, %c0_7] : memref<16x384xf32, #tpu.memory_space<vmem>>, vector<16x384xf32>
    tpu.vector_store %arg6[%c0_6, %c0_7], %7 {strides = array<i32>} : memref<16x384xf32, #tpu.memory_space<vmem>>, vector<16x384xf32>,
    %c17_i32 = arith.constant 17 : i32
    %9 = arith.cmpi eq, %arg1, %c17_i32 : i32
    %10 = arith.extui %9 : i1 to i32
    %c0_i32_8 = arith.constant 0 : i32
    %11 = arith.cmpi ne, %10, %c0_i32_8 : i32
    scf.if %11 {
      %c0_9 = arith.constant 0 : index
      %c0_10 = arith.constant 0 : index
      %12 = vector.load %arg6[%c0_9, %c0_10] : memref<16x384xf32, #tpu.memory_space<vmem>>, vector<16x384xf32>
      %c0_11 = arith.constant 0 : index
      %c0_12 = arith.constant 0 : index
      %13 = vector.load %arg4[%c0_11, %c0_12] : memref<1x384xf32, #tpu.memory_space<vmem>>, vector<1x384xf32>
      %14 = vector.broadcast %13 : vector<1x384xf32> to vector<16x384xf32>
      %15 = arith.mulf %12, %14 : vector<16x384xf32>
      %c0_13 = arith.constant 0 : index
      %c0_14 = arith.constant 0 : index
      %16 = vector.load %arg5[%c0_13, %c0_14] : memref<1x384xf32, #tpu.memory_space<vmem>>, vector<1x384xf32>
      %17 = vector.broadcast %16 : vector<1x384xf32> to vector<16x384xf32>
      %18 = arith.addf %15, %17 : vector<16x384xf32>
      %cst_15 = arith.constant 0.000000e+00 : f32
      %19 = vector.broadcast %cst_15 : f32 to vector<16x384xf32>
      %20 = arith.maximumf %18, %19 : vector<16x384xf32>
      %c0_16 = arith.constant 0 : index
      %c0_17 = arith.constant 0 : index
      %21 = vector.load %arg6[%c0_16, %c0_17] : memref<16x384xf32, #tpu.memory_space<vmem>>, vector<16x384xf32>
      tpu.vector_store %arg6[%c0_16, %c0_17], %20 {strides = array<i32>} : memref<16x384xf32, #tpu.memory_space<vmem>>, vector<16x384xf32>,
    } else {
    }
    return
  }
  func.func @transform_0(%arg0: i32, %arg1: i32) -> (i32, i32) {
    %c0_i32 = arith.constant 0 : i32
    return %arg0, %arg1 : i32, i32
  }
  func.func @transform_1(%arg0: i32, %arg1: i32) -> (i32, i32) {
    %c0_i32 = arith.constant 0 : i32
    %c0_i32_0 = arith.constant 0 : i32
    return %arg1, %c0_i32 : i32, i32
  }
  func.func @transform_2(%arg0: i32, %arg1: i32) -> (i32, i32) {
    %c0_i32 = arith.constant 0 : i32
    %c0_i32_0 = arith.constant 0 : i32
    %c0_i32_1 = arith.constant 0 : i32
    return %c0_i32, %c0_i32_0 : i32, i32
  }
  func.func @transform_3(%arg0: i32, %arg1: i32) -> (i32, i32) {
    %c0_i32 = arith.constant 0 : i32
    %c0_i32_0 = arith.constant 0 : i32
    %c0_i32_1 = arith.constant 0 : i32
    return %c0_i32, %c0_i32_0 : i32, i32
  }
  func.func @transform_4(%arg0: i32, %arg1: i32) -> (i32, i32) {
    %c0_i32 = arith.constant 0 : i32
    %c0_i32_0 = arith.constant 0 : i32
    return %arg0, %c0_i32 : i32, i32
  }
}

module attributes {stable_mosaic.version = 11 : i64} {
  func.func @_matmul_bn_relu_kernel(%arg0: i32, %arg1: i32, %arg2: memref<128x384xbf16, #tpu.memory_space<vmem>>, %arg3: memref<384x384xbf16, #tpu.memory_space<vmem>>, %arg4: memref<1x384xf32, #tpu.memory_space<vmem>>, %arg5: memref<1x384xf32, #tpu.memory_space<vmem>>, %arg6: memref<128x384xf32, #tpu.memory_space<vmem>>) attributes {dimension_semantics = [#tpu.dimension_semantics<parallel>, #tpu.dimension_semantics<arbitrary>], iteration_bounds = array<i64: 2, 18>, scalar_prefetch = 0 : i64, scratch_operands = 0 : i64, tpu.core_type = #tpu.core_type<tc>, window_params = [{transform_indices = @transform_0, window_bounds = array<i64: 128, 384>}, {transform_indices = @transform_1, window_bounds = array<i64: 384, 384>}, {pipeline_mode = #tpu.pipeline_mode<synchronous>, transform_indices = @transform_2, window_bounds = array<i64: 1, 384>}, {pipeline_mode = #tpu.pipeline_mode<synchronous>, transform_indices = @transform_3, window_bounds = array<i64: 1, 384>}, {transform_indices = @transform_4, window_bounds = array<i64: 128, 384>}]} {
    %c0_i32 = arith.constant 0 : i32
    %0 = arith.cmpi eq, %arg1, %c0_i32 : i32
    %1 = arith.extui %0 : i1 to i32
    %c0_i32_0 = arith.constant 0 : i32
    %2 = arith.cmpi ne, %1, %c0_i32_0 : i32
    scf.if %2 {
      %cst_9 = arith.constant 0.000000e+00 : f32
      %12 = vector.broadcast %cst_9 : f32 to vector<128x384xf32>
      %c0_10 = arith.constant 0 : index
      %c0_11 = arith.constant 0 : index
      %13 = vector.load %arg6[%c0_10, %c0_11] : memref<128x384xf32, #tpu.memory_space<vmem>>, vector<128x384xf32>
      tpu.vector_store %arg6[%c0_10, %c0_11], %12 {strides = array<i32>} : memref<128x384xf32, #tpu.memory_space<vmem>>, vector<128x384xf32>,
    } else {
    }
    %c0 = arith.constant 0 : index
    %c0_1 = arith.constant 0 : index
    %3 = vector.load %arg6[%c0, %c0_1] : memref<128x384xf32, #tpu.memory_space<vmem>>, vector<128x384xf32>
    %c0_2 = arith.constant 0 : index
    %c0_3 = arith.constant 0 : index
    %4 = vector.load %arg2[%c0_2, %c0_3] : memref<128x384xbf16, #tpu.memory_space<vmem>>, vector<128x384xbf16>
    %c0_4 = arith.constant 0 : index
    %c0_5 = arith.constant 0 : index
    %5 = vector.load %arg3[%c0_4, %c0_5] : memref<384x384xbf16, #tpu.memory_space<vmem>>, vector<384x384xbf16>
    %cst = arith.constant dense<0.000000e+00> : vector<128x384xf32>
    %6 = tpu.matmul %4, %5, %cst {dimension_numbers = #tpu.dot_dimension_numbers<[1], [0], [0], [1], [0, 0, 1, 1], [], []>} : vector<128x384xbf16>, vector<384x384xbf16>, vector<128x384xf32> -> vector<128x384xf32>
    %7 = arith.addf %3, %6 : vector<128x384xf32>
    %c0_6 = arith.constant 0 : index
    %c0_7 = arith.constant 0 : index
    %8 = vector.load %arg6[%c0_6, %c0_7] : memref<128x384xf32, #tpu.memory_space<vmem>>, vector<128x384xf32>
    tpu.vector_store %arg6[%c0_6, %c0_7], %7 {strides = array<i32>} : memref<128x384xf32, #tpu.memory_space<vmem>>, vector<128x384xf32>,
    %c17_i32 = arith.constant 17 : i32
    %9 = arith.cmpi eq, %arg1, %c17_i32 : i32
    %10 = arith.extui %9 : i1 to i32
    %c0_i32_8 = arith.constant 0 : i32
    %11 = arith.cmpi ne, %10, %c0_i32_8 : i32
    scf.if %11 {
      %c0_9 = arith.constant 0 : index
      %c0_10 = arith.constant 0 : index
      %12 = vector.load %arg6[%c0_9, %c0_10] : memref<128x384xf32, #tpu.memory_space<vmem>>, vector<128x384xf32>
      %c0_11 = arith.constant 0 : index
      %c0_12 = arith.constant 0 : index
      %13 = vector.load %arg4[%c0_11, %c0_12] : memref<1x384xf32, #tpu.memory_space<vmem>>, vector<1x384xf32>
      %14 = vector.broadcast %13 : vector<1x384xf32> to vector<128x384xf32>
      %15 = arith.mulf %12, %14 : vector<128x384xf32>
      %c0_13 = arith.constant 0 : index
      %c0_14 = arith.constant 0 : index
      %16 = vector.load %arg5[%c0_13, %c0_14] : memref<1x384xf32, #tpu.memory_space<vmem>>, vector<1x384xf32>
      %17 = vector.broadcast %16 : vector<1x384xf32> to vector<128x384xf32>
      %18 = arith.addf %15, %17 : vector<128x384xf32>
      %cst_15 = arith.constant 0.000000e+00 : f32
      %19 = vector.broadcast %cst_15 : f32 to vector<128x384xf32>
      %20 = arith.maximumf %18, %19 : vector<128x384xf32>
      %c0_16 = arith.constant 0 : index
      %c0_17 = arith.constant 0 : index
      %21 = vector.load %arg6[%c0_16, %c0_17] : memref<128x384xf32, #tpu.memory_space<vmem>>, vector<128x384xf32>
      tpu.vector_store %arg6[%c0_16, %c0_17], %20 {strides = array<i32>} : memref<128x384xf32, #tpu.memory_space<vmem>>, vector<128x384xf32>,
    } else {
    }
    return
  }
  func.func @transform_0(%arg0: i32, %arg1: i32) -> (i32, i32) {
    %c0_i32 = arith.constant 0 : i32
    return %arg0, %arg1 : i32, i32
  }
  func.func @transform_1(%arg0: i32, %arg1: i32) -> (i32, i32) {
    %c0_i32 = arith.constant 0 : i32
    %c0_i32_0 = arith.constant 0 : i32
    return %arg1, %c0_i32 : i32, i32
  }
  func.func @transform_2(%arg0: i32, %arg1: i32) -> (i32, i32) {
    %c0_i32 = arith.constant 0 : i32
    %c0_i32_0 = arith.constant 0 : i32
    %c0_i32_1 = arith.constant 0 : i32
    return %c0_i32, %c0_i32_0 : i32, i32
  }
  func.func @transform_3(%arg0: i32, %arg1: i32) -> (i32, i32) {
    %c0_i32 = arith.constant 0 : i32
    %c0_i32_0 = arith.constant 0 : i32
    %c0_i32_1 = arith.constant 0 : i32
    return %c0_i32, %c0_i32_0 : i32, i32
  }
  func.func @transform_4(%arg0: i32, %arg1: i32) -> (i32, i32) {
    %c0_i32 = arith.constant 0 : i32
    %c0_i32_0 = arith.constant 0 : i32
    return %arg0, %c0_i32 : i32, i32
  }
}

module attributes {stable_mosaic.version = 11 : i64} {
  func.func @_matmul_bn_relu_kernel(%arg0: i32, %arg1: i32, %arg2: memref<16x384xbf16, #tpu.memory_space<vmem>>, %arg3: memref<384x384xbf16, #tpu.memory_space<vmem>>, %arg4: memref<1x384xf32, #tpu.memory_space<vmem>>, %arg5: memref<1x384xf32, #tpu.memory_space<vmem>>, %arg6: memref<16x384xf32, #tpu.memory_space<vmem>>) attributes {dimension_semantics = [#tpu.dimension_semantics<parallel>, #tpu.dimension_semantics<arbitrary>], iteration_bounds = array<i64: 1, 21>, scalar_prefetch = 0 : i64, scratch_operands = 0 : i64, tpu.core_type = #tpu.core_type<tc>, window_params = [{transform_indices = @transform_0, window_bounds = array<i64: 16, 384>}, {transform_indices = @transform_1, window_bounds = array<i64: 384, 384>}, {pipeline_mode = #tpu.pipeline_mode<synchronous>, transform_indices = @transform_2, window_bounds = array<i64: 1, 384>}, {pipeline_mode = #tpu.pipeline_mode<synchronous>, transform_indices = @transform_3, window_bounds = array<i64: 1, 384>}, {transform_indices = @transform_4, window_bounds = array<i64: 16, 384>}]} {
    %c0_i32 = arith.constant 0 : i32
    %0 = arith.cmpi eq, %arg1, %c0_i32 : i32
    %1 = arith.extui %0 : i1 to i32
    %c0_i32_0 = arith.constant 0 : i32
    %2 = arith.cmpi ne, %1, %c0_i32_0 : i32
    scf.if %2 {
      %cst_9 = arith.constant 0.000000e+00 : f32
      %12 = vector.broadcast %cst_9 : f32 to vector<16x384xf32>
      %c0_10 = arith.constant 0 : index
      %c0_11 = arith.constant 0 : index
      %13 = vector.load %arg6[%c0_10, %c0_11] : memref<16x384xf32, #tpu.memory_space<vmem>>, vector<16x384xf32>
      tpu.vector_store %arg6[%c0_10, %c0_11], %12 {strides = array<i32>} : memref<16x384xf32, #tpu.memory_space<vmem>>, vector<16x384xf32>,
    } else {
    }
    %c0 = arith.constant 0 : index
    %c0_1 = arith.constant 0 : index
    %3 = vector.load %arg6[%c0, %c0_1] : memref<16x384xf32, #tpu.memory_space<vmem>>, vector<16x384xf32>
    %c0_2 = arith.constant 0 : index
    %c0_3 = arith.constant 0 : index
    %4 = vector.load %arg2[%c0_2, %c0_3] : memref<16x384xbf16, #tpu.memory_space<vmem>>, vector<16x384xbf16>
    %c0_4 = arith.constant 0 : index
    %c0_5 = arith.constant 0 : index
    %5 = vector.load %arg3[%c0_4, %c0_5] : memref<384x384xbf16, #tpu.memory_space<vmem>>, vector<384x384xbf16>
    %cst = arith.constant dense<0.000000e+00> : vector<16x384xf32>
    %6 = tpu.matmul %4, %5, %cst {dimension_numbers = #tpu.dot_dimension_numbers<[1], [0], [0], [1], [0, 0, 1, 1], [], []>} : vector<16x384xbf16>, vector<384x384xbf16>, vector<16x384xf32> -> vector<16x384xf32>
    %7 = arith.addf %3, %6 : vector<16x384xf32>
    %c0_6 = arith.constant 0 : index
    %c0_7 = arith.constant 0 : index
    %8 = vector.load %arg6[%c0_6, %c0_7] : memref<16x384xf32, #tpu.memory_space<vmem>>, vector<16x384xf32>
    tpu.vector_store %arg6[%c0_6, %c0_7], %7 {strides = array<i32>} : memref<16x384xf32, #tpu.memory_space<vmem>>, vector<16x384xf32>,
    %c20_i32 = arith.constant 20 : i32
    %9 = arith.cmpi eq, %arg1, %c20_i32 : i32
    %10 = arith.extui %9 : i1 to i32
    %c0_i32_8 = arith.constant 0 : i32
    %11 = arith.cmpi ne, %10, %c0_i32_8 : i32
    scf.if %11 {
      %c0_9 = arith.constant 0 : index
      %c0_10 = arith.constant 0 : index
      %12 = vector.load %arg6[%c0_9, %c0_10] : memref<16x384xf32, #tpu.memory_space<vmem>>, vector<16x384xf32>
      %c0_11 = arith.constant 0 : index
      %c0_12 = arith.constant 0 : index
      %13 = vector.load %arg4[%c0_11, %c0_12] : memref<1x384xf32, #tpu.memory_space<vmem>>, vector<1x384xf32>
      %14 = vector.broadcast %13 : vector<1x384xf32> to vector<16x384xf32>
      %15 = arith.mulf %12, %14 : vector<16x384xf32>
      %c0_13 = arith.constant 0 : index
      %c0_14 = arith.constant 0 : index
      %16 = vector.load %arg5[%c0_13, %c0_14] : memref<1x384xf32, #tpu.memory_space<vmem>>, vector<1x384xf32>
      %17 = vector.broadcast %16 : vector<1x384xf32> to vector<16x384xf32>
      %18 = arith.addf %15, %17 : vector<16x384xf32>
      %cst_15 = arith.constant 0.000000e+00 : f32
      %19 = vector.broadcast %cst_15 : f32 to vector<16x384xf32>
      %20 = arith.maximumf %18, %19 : vector<16x384xf32>
      %c0_16 = arith.constant 0 : index
      %c0_17 = arith.constant 0 : index
      %21 = vector.load %arg6[%c0_16, %c0_17] : memref<16x384xf32, #tpu.memory_space<vmem>>, vector<16x384xf32>
      tpu.vector_store %arg6[%c0_16, %c0_17], %20 {strides = array<i32>} : memref<16x384xf32, #tpu.memory_space<vmem>>, vector<16x384xf32>,
    } else {
    }
    return
  }
  func.func @transform_0(%arg0: i32, %arg1: i32) -> (i32, i32) {
    %c0_i32 = arith.constant 0 : i32
    return %arg0, %arg1 : i32, i32
  }
  func.func @transform_1(%arg0: i32, %arg1: i32) -> (i32, i32) {
    %c0_i32 = arith.constant 0 : i32
    %c0_i32_0 = arith.constant 0 : i32
    return %arg1, %c0_i32 : i32, i32
  }
  func.func @transform_2(%arg0: i32, %arg1: i32) -> (i32, i32) {
    %c0_i32 = arith.constant 0 : i32
    %c0_i32_0 = arith.constant 0 : i32
    %c0_i32_1 = arith.constant 0 : i32
    return %c0_i32, %c0_i32_0 : i32, i32
  }
  func.func @transform_3(%arg0: i32, %arg1: i32) -> (i32, i32) {
    %c0_i32 = arith.constant 0 : i32
    %c0_i32_0 = arith.constant 0 : i32
    %c0_i32_1 = arith.constant 0 : i32
    return %c0_i32, %c0_i32_0 : i32, i32
  }
  func.func @transform_4(%arg0: i32, %arg1: i32) -> (i32, i32) {
    %c0_i32 = arith.constant 0 : i32
    %c0_i32_0 = arith.constant 0 : i32
    return %arg0, %c0_i32 : i32, i32
  }
}

</mosaic_0001>

<bundles_post_ra>
// kernel: reduction_b_forward.6
= control target key start
LH: loop header
LB: loop body
LE: loop exit
PB: predicated region body
PF: predicated region fallthrough
CT: control target
= control target key end

     0   :  { %s1708_s6 = smov 0   ;;  %s2234_s0 = inlined_call_operand.vmem [shape: f32[2,5,5,5,1152], index: 0, kind: input, shape index: {}]   ;;  %s2235_s1 = inlined_call_operand.vmem [shape: f32[2,2,2,2,1152], index: 1, kind: output, shape index: {}]  }
   0x1 LB: > { %s1347_s7 = sadd.s32 4294967295, %s1696_s6   ;;  %p1351_p0 = scmp.ge.s32.totalorder %s1696_s6, 1  ;;  %s1696_s6 = sphi %s1708_s6, %s11_s6  }
   0x2   : > { %p87_p1 = scmp.lt.s32.totalorder %s1696_s6, 3 }
   0x4   : > { %p88_p2 = pnand %p1351_p0, %p87_p1 }
   0x5   : > { %p107_p3 = scmp.lt.s32.totalorder (!%p88_p2), %s1347_s7, 1 }
   0x6   : > { %91 = sbr.rel (%p88_p2) target bundleno = 176 (0xb0), region = 24 }
   0xb   : > { %s2237_s7 = smov (!%p107_p3, %s1347_s7), 1  ;;  %vm368_vm0 = vcmask 1040384   ;;  %vm401_vm1 = vcmask 1041408   ;;  %vm403_vm2 = vcmask 1045508   ;;  %vm405_vm3 = vcmask 1043456  }
   0xc   : > { %s1680_s8 = smul.u32 1800, %s2237_s7 }
   0xd   : > { %s1681_s12 = smul.u32 72, %s2237_s7 }
   0xe   : > { %s1722_s11 = scalar_lea.vmem %s2234_s0, %s1680_s8 }
   0xf   : > { %v117_v0 = vld [vmem:[%s1722_s11] sm:$0x1f]  ;;  %v118_v1 = vld [vmem:[%s1722_s11 + $0x8] sm:$0x1f]  ;;  %v119_v2 = vld [vmem:[%s1722_s11 + $0x10] sm:$0x1f]  ;;  %s1848_s15 = scalar_lea.vmem %s2235_s1, %s1681_s12 }
  0x10   : > { %v120_v3 = vld [vmem:[%s1722_s11 + $0x18] sm:$0x1f]  ;;  %v121_v4 = vld [vmem:[%s1722_s11 + $0x20] sm:$0x1f]  ;;  %v122_v5 = vld [vmem:[%s1722_s11 + $0x28] sm:$0x1f] }
  0x11   : > { %v123_v6 = vld [vmem:[%s1722_s11 + $0x30] sm:$0x1f]  ;;  %v124_v7 = vld [vmem:[%s1722_s11 + $0x38] sm:$0x1f]  ;;  %v125_v8 = vld [vmem:[%s1722_s11 + $0x40] sm:$0x1f] }
  0x12   : > { %v1354_v9 = vld [vmem:[%s1722_s11 + $0x48] sm:$0x1f]  ;;  %v1355_v10 = vld [vmem:[%s1722_s11 + $0x50] sm:$0x1f]  ;;  %v1356_v11 = vld [vmem:[%s1722_s11 + $0x58] sm:$0x1f] }
  0x13   : > { %v1357_v12 = vld [vmem:[%s1722_s11 + $0x60] sm:$0x1f]  ;;  %v1358_v13 = vld [vmem:[%s1722_s11 + $0x68] sm:$0x1f]  ;;  %v1359_v14 = vld [vmem:[%s1722_s11 + $0x70] sm:$0x1f]  ;;  %v136_v15 = vmax.f32 %v117_v0, %v1354_v9  ;;  %v137_v16 = vmax.f32 %v118_v1, %v1355_v10  ;;  %v138_v17 = vmax.f32 %v119_v2, %v1356_v11 }
  0x14   : > { %v1360_v18 = vld [vmem:[%s1722_s11 + $0x78] sm:$0x1f]  ;;  %v1361_v19 = vld [vmem:[%s1722_s11 + $0x80] sm:$0x1f]  ;;  %v1362_v20 = vld [vmem:[%s1722_s11 + $0x88] sm:$0x1f]  ;;  %v139_v21 = vmax.f32 %v120_v3, %v1357_v12  ;;  %v140_v22 = vmax.f32 %v121_v4, %v1358_v13  ;;  %v141_v23 = vmax.f32 %v122_v5, %v1359_v14 }
  0x15   : > { %v142_v24 = vmax.f32 %v123_v6, %v1360_v18  ;;  %v143_v25 = vmax.f32 %v124_v7, %v1361_v19  ;;  %v144_v26 = vmax.f32 %v125_v8, %v1362_v20  ;;  %v1363_v27 = vld [vmem:[%s1722_s11 + $0x90] sm:$0x1f]  ;;  %v1364_v28 = vld [vmem:[%s1722_s11 + $0x98] sm:$0x1f]  ;;  %v1365_v29 = vld [vmem:[%s1722_s11 + $0xa0] sm:$0x1f] }
  0x16   : > { %v1366_v30 = vld [vmem:[%s1722_s11 + $0xa8] sm:$0x1f]  ;;  %v1367_v31 = vld [vmem:[%s1722_s11 + $0xb0] sm:$0x1f]  ;;  %v1368_v32 = vld [vmem:[%s1722_s11 + $0xb8] sm:$0x1f]  ;;  %v155_v33 = vmax.f32 %v136_v15, %v1363_v27  ;;  %v156_v34 = vmax.f32 %v137_v16, %v1364_v28  ;;  %v157_v35 = vmax.f32 %v138_v17, %v1365_v29 }
  0x17   : > { %v1369_v36 = vld [vmem:[%s1722_s11 + $0xc0] sm:$0x1f]  ;;  %v1370_v37 = vld [vmem:[%s1722_s11 + $0xc8] sm:$0x1f]  ;;  %v1371_v38 = vld [vmem:[%s1722_s11 + $0xd0] sm:$0x1f]  ;;  %v158_v39 = vmax.f32 %v139_v21, %v1366_v30  ;;  %v159_v40 = vmax.f32 %v140_v22, %v1367_v31  ;;  %v160_v41 = vmax.f32 %v141_v23, %v1368_v32 }
  0x18   : > { %v161_v42 = vmax.f32 %v142_v24, %v1369_v36  ;;  %v162_v43 = vmax.f32 %v143_v25, %v1370_v37  ;;  %v163_v44 = vmax.f32 %v144_v26, %v1371_v38  ;;  %v1372_v45 = vld [vmem:[%s1722_s11 + $0x168] sm:$0x1f]  ;;  %v1373_v46 = vld [vmem:[%s1722_s11 + $0x170] sm:$0x1f]  ;;  %v1374_v47 = vld [vmem:[%s1722_s11 + $0x178] sm:$0x1f] }
  0x19   : > { %v1375_v48 = vld [vmem:[%s1722_s11 + $0x180] sm:$0x1f]  ;;  %v1376_v49 = vld [vmem:[%s1722_s11 + $0x188] sm:$0x1f]  ;;  %v1377_v50 = vld [vmem:[%s1722_s11 + $0x190] sm:$0x1f]  ;;  %v174_v51 = vmax.f32 %v155_v33, %v1372_v45  ;;  %v175_v52 = vmax.f32 %v156_v34, %v1373_v46  ;;  %v176_v53 = vmax.f32 %v157_v35, %v1374_v47 }
  0x1a   : > { %v1378_v54 = vld [vmem:[%s1722_s11 + $0x198] sm:$0x1f]  ;;  %v1379_v55 = vld [vmem:[%s1722_s11 + $0x1a0] sm:$0x1f]  ;;  %v1380_v56 = vld [vmem:[%s1722_s11 + $0x1a8] sm:$0x1f]  ;;  %v177_v57 = vmax.f32 %v158_v39, %v1375_v48  ;;  %v178_v58 = vmax.f32 %v159_v40, %v1376_v49  ;;  %v179_v59 = vmax.f32 %v160_v41, %v1377_v50 }
  0x1b   : > { %v180_v60 = vmax.f32 %v161_v42, %v1378_v54  ;;  %v181_v61 = vmax.f32 %v162_v43, %v1379_v55  ;;  %v182_v62 = vmax.f32 %v163_v44, %v1380_v56  ;;  %v1381_v63 = vld [vmem:[%s1722_s11 + $0x1b0] sm:$0x1f]  ;;  %v1382_v0 = vld [vmem:[%s1722_s11 + $0x1b8] sm:$0x1f]  ;;  %v1383_v1 = vld [vmem:[%s1722_s11 + $0x1c0] sm:$0x1f] }
  0x1c   : > { %v1384_v2 = vld [vmem:[%s1722_s11 + $0x1c8] sm:$0x1f]  ;;  %v1385_v3 = vld [vmem:[%s1722_s11 + $0x1d0] sm:$0x1f]  ;;  %v1386_v4 = vld [vmem:[%s1722_s11 + $0x1d8] sm:$0x1f]  ;;  %v193_v5 = vmax.f32 %v174_v51, %v1381_v63  ;;  %v194_v6 = vmax.f32 %v175_v52, %v1382_v0  ;;  %v195_v7 = vmax.f32 %v176_v53, %v1383_v1 }
  0x1d   : > { %v1387_v8 = vld [vmem:[%s1722_s11 + $0x1e0] sm:$0x1f]  ;;  %v1388_v9 = vld [vmem:[%s1722_s11 + $0x1e8] sm:$0x1f]  ;;  %v1389_v10 = vld [vmem:[%s1722_s11 + $0x1f0] sm:$0x1f]  ;;  %v196_v11 = vmax.f32 %v177_v57, %v1384_v2  ;;  %v197_v12 = vmax.f32 %v178_v58, %v1385_v3  ;;  %v198_v13 = vmax.f32 %v179_v59, %v1386_v4 }
  0x1e   : > { %v199_v14 = vmax.f32 %v180_v60, %v1387_v8  ;;  %v200_v15 = vmax.f32 %v181_v61, %v1388_v9  ;;  %v201_v16 = vmax.f32 %v182_v62, %v1389_v10  ;;  %v1390_v17 = vld [vmem:[%s1722_s11 + $0x1f8] sm:$0x1f]  ;;  %v1391_v18 = vld [vmem:[%s1722_s11 + $0x200] sm:$0x1f]  ;;  %v1392_v19 = vld [vmem:[%s1722_s11 + $0x208] sm:$0x1f] }
  0x1f   : > { %v1393_v20 = vld [vmem:[%s1722_s11 + $0x210] sm:$0x1f]  ;;  %v1394_v21 = vld [vmem:[%s1722_s11 + $0x218] sm:$0x1f]  ;;  %v1395_v22 = vld [vmem:[%s1722_s11 + $0x220] sm:$0x1f]  ;;  %v212_v23 = vmax.f32 %v193_v5, %v1390_v17  ;;  %v213_v24 = vmax.f32 %v194_v6, %v1391_v18  ;;  %v214_v25 = vmax.f32 %v195_v7, %v1392_v19 }
  0x20   : > { %v1396_v26 = vld [vmem:[%s1722_s11 + $0x228] sm:$0x1f]  ;;  %v1397_v27 = vld [vmem:[%s1722_s11 + $0x230] sm:$0x1f]  ;;  %v1398_v28 = vld [vmem:[%s1722_s11 + $0x238] sm:$0x1f]  ;;  %v215_v29 = vmax.f32 %v196_v11, %v1393_v20  ;;  %v216_v30 = vmax.f32 %v197_v12, %v1394_v21  ;;  %v217_v31 = vmax.f32 %v198_v13, %v1395_v22 }
  0x21   : > { %v218_v32 = vmax.f32 %v199_v14, %v1396_v26  ;;  %v219_v33 = vmax.f32 %v200_v15, %v1397_v27  ;;  %v220_v34 = vmax.f32 %v201_v16, %v1398_v28  ;;  %v1399_v35 = vld [vmem:[%s1722_s11 + $0x2d0] sm:$0x1f]  ;;  %v1400_v36 = vld [vmem:[%s1722_s11 + $0x2d8] sm:$0x1f]  ;;  %v1401_v37 = vld [vmem:[%s1722_s11 + $0x2e0] sm:$0x1f] }
  0x22   : > { %v1402_v38 = vld [vmem:[%s1722_s11 + $0x2e8] sm:$0x1f]  ;;  %v1403_v39 = vld [vmem:[%s1722_s11 + $0x2f0] sm:$0x1f]  ;;  %v1404_v40 = vld [vmem:[%s1722_s11 + $0x2f8] sm:$0x1f]  ;;  %v231_v41 = vmax.f32 %v212_v23, %v1399_v35  ;;  %v232_v42 = vmax.f32 %v213_v24, %v1400_v36  ;;  %v233_v43 = vmax.f32 %v214_v25, %v1401_v37 }
  0x23   : > { %v1405_v44 = vld [vmem:[%s1722_s11 + $0x300] sm:$0x1f]  ;;  %v1406_v45 = vld [vmem:[%s1722_s11 + $0x308] sm:$0x1f]  ;;  %v1407_v46 = vld [vmem:[%s1722_s11 + $0x310] sm:$0x1f]  ;;  %v234_v47 = vmax.f32 %v215_v29, %v1402_v38  ;;  %v235_v48 = vmax.f32 %v216_v30, %v1403_v39  ;;  %v236_v49 = vmax.f32 %v217_v31, %v1404_v40 }
  0x24   : > { %v237_v50 = vmax.f32 %v218_v32, %v1405_v44  ;;  %v238_v51 = vmax.f32 %v219_v33, %v1406_v45  ;;  %v239_v52 = vmax.f32 %v220_v34, %v1407_v46  ;;  %v1408_v53 = vld [vmem:[%s1722_s11 + $0x318] sm:$0x1f]  ;;  %v1409_v54 = vld [vmem:[%s1722_s11 + $0x320] sm:$0x1f]  ;;  %v1410_v55 = vld [vmem:[%s1722_s11 + $0x328] sm:$0x1f] }
  0x25   : > { %v1411_v56 = vld [vmem:[%s1722_s11 + $0x330] sm:$0x1f]  ;;  %v1412_v57 = vld [vmem:[%s1722_s11 + $0x338] sm:$0x1f]  ;;  %v1413_v58 = vld [vmem:[%s1722_s11 + $0x340] sm:$0x1f]  ;;  %v250_v59 = vmax.f32 %v231_v41, %v1408_v53  ;;  %v251_v60 = vmax.f32 %v232_v42, %v1409_v54  ;;  %v252_v61 = vmax.f32 %v233_v43, %v1410_v55 }
  0x26   : > { %v1414_v62 = vld [vmem:[%s1722_s11 + $0x348] sm:$0x1f]  ;;  %v1415_v63 = vld [vmem:[%s1722_s11 + $0x350] sm:$0x1f]  ;;  %v1416_v0 = vld [vmem:[%s1722_s11 + $0x358] sm:$0x1f]  ;;  %v253_v1 = vmax.f32 %v234_v47, %v1411_v56  ;;  %v254_v2 = vmax.f32 %v235_v48, %v1412_v57  ;;  %v255_v3 = vmax.f32 %v236_v49, %v1413_v58 }
  0x27   : > { %v256_v4 = vmax.f32 %v237_v50, %v1414_v62  ;;  %v257_v5 = vmax.f32 %v238_v51, %v1415_v63  ;;  %v258_v6 = vmax.f32 %v239_v52, %v1416_v0  ;;  %v1417_v7 = vld [vmem:[%s1722_s11 + $0x360] sm:$0x1f]  ;;  %v1418_v8 = vld [vmem:[%s1722_s11 + $0x368] sm:$0x1f]  ;;  %v1419_v9 = vld [vmem:[%s1722_s11 + $0x370] sm:$0x1f] }
  0x28   : > { %v1420_v10 = vld [vmem:[%s1722_s11 + $0x378] sm:$0x1f]  ;;  %v1421_v11 = vld [vmem:[%s1722_s11 + $0x380] sm:$0x1f]  ;;  %v1422_v12 = vld [vmem:[%s1722_s11 + $0x388] sm:$0x1f]  ;;  %v269_v13 = vmax.f32 %v250_v59, %v1417_v7  ;;  %v270_v14 = vmax.f32 %v251_v60, %v1418_v8  ;;  %v271_v15 = vmax.f32 %v252_v61, %v1419_v9 }
  0x29   : > { %v1423_v16 = vld [vmem:[%s1722_s11 + $0x390] sm:$0x1f]  ;;  %v1424_v17 = vld [vmem:[%s1722_s11 + $0x398] sm:$0x1f]  ;;  %v1425_v18 = vld [vmem:[%s1722_s11 + $0x3a0] sm:$0x1f]  ;;  %v272_v19 = vmax.f32 %v253_v1, %v1420_v10  ;;  %v273_v20 = vmax.f32 %v254_v2, %v1421_v11  ;;  %v274_v21 = vmax.f32 %v255_v3, %v1422_v12 }
  0x2a   : > { %v275_v22 = vmax.f32 %v256_v4, %v1423_v16  ;;  %v276_v23 = vmax.f32 %v257_v5, %v1424_v17  ;;  %v277_v24 = vmax.f32 %v258_v6, %v1425_v18  ;;  %v287_v25 = vrot.slane %v269_v13, 1  ;;  %v1811_v10 = vld [vmem:[%s1722_s11 + $0x90] sm:$0x1f]  ;;  %v1821_v16 = vld [vmem:[%s1722_s11 + $0xa0] sm:$0x1f] }
  0x2b   : > { %v288_v26 = vrot.slane %v270_v14, 1  ;;  %v289_v27 = vrot.slane %v271_v15, 1  ;;  %v290_v28 = vrot.slane %v272_v19, 1  ;;  %v291_v29 = vrot.slane %v273_v20, 1  ;;  %v1824_v17 = vld [vmem:[%s1722_s11 + $0xd8] sm:$0x1f] }
  0x2c   : > { %v292_v30 = vrot.slane %v274_v21, 1  ;;  %v293_v31 = vrot.slane %v275_v22, 1  ;;  %v294_v32 = vrot.slane %v276_v23, 1  ;;  %v295_v33 = vrot.slane %v277_v24, 1  ;;  %v1827_v18 = vld [vmem:[%s1722_s11 + $0xe0] sm:$0x1f] }
  0x2d   : > { %v305_v34 = vmax.f32 %v269_v13, %v287_v25  ;;  %v306_v35 = vmax.f32 %v270_v14, %v288_v26  ;;  %v307_v36 = vmax.f32 %v271_v15, %v289_v27  ;;  %v308_v37 = vmax.f32 %v272_v19, %v290_v28  ;;  %v1837_v25 = vld [vmem:[%s1722_s11 + $0xb0] sm:$0x1f]  ;;  %v1843_v27 = vld [vmem:[%s1722_s11 + $0xf8] sm:$0x1f] }
  0x2e   : > { %v309_v38 = vmax.f32 %v273_v20, %v291_v29  ;;  %v310_v39 = vmax.f32 %v274_v21, %v292_v30  ;;  %v311_v40 = vmax.f32 %v275_v22, %v293_v31  ;;  %v312_v41 = vmax.f32 %v276_v23, %v294_v32  ;;  %v1840_v26 = vld [vmem:[%s1722_s11 + $0xf0] sm:$0x1f]  ;;  %v1851_v32 = vld [vmem:[%s1722_s11 + $0xb8] sm:$0x1f] }
  0x2f   : > { %v313_v42 = vmax.f32 %v277_v24, %v295_v33  ;;  %v314_v43 = vrot.slane %v269_v13, 2  ;;  %v315_v44 = vrot.slane %v270_v14, 2  ;;  %v316_v45 = vrot.slane %v271_v15, 2  ;;  %v1818_v15 = vld [vmem:[%s1722_s11 + $0x98] sm:$0x1f] }
  0x30   : > { %v317_v46 = vrot.slane %v272_v19, 2  ;;  %v318_v47 = vrot.slane %v273_v20, 2  ;;  %v319_v48 = vrot.slane %v274_v21, 2  ;;  %v320_v49 = vrot.slane %v275_v22, 2  ;;  %v1830_v19 = vld [vmem:[%s1722_s11 + $0xe8] sm:$0x1f] }
  0x31   : > { %v321_v50 = vrot.slane %v276_v23, 2  ;;  %v322_v51 = vrot.slane %v277_v24, 2  ;;  %v332_v52 = vmax.f32 %v305_v34, %v314_v43  ;;  %v333_v53 = vmax.f32 %v306_v35, %v315_v44  ;;  %v1834_v24 = vld [vmem:[%s1722_s11 + $0xa8] sm:$0x1f]  ;;  %v1854_v33 = vld [vmem:[%s1722_s11 + $0xc0] sm:$0x1f] }
  0x32   : > { %v334_v54 = vmax.f32 %v307_v36, %v316_v45  ;;  %v335_v55 = vmax.f32 %v308_v37, %v317_v46  ;;  %v336_v56 = vmax.f32 %v309_v38, %v318_v47  ;;  %v337_v57 = vmax.f32 %v310_v39, %v319_v48  ;;  %v1857_v34 = vld [vmem:[%s1722_s11 + $0x100] sm:$0x1f]  ;;  %v1860_v35 = vld [vmem:[%s1722_s11 + $0x108] sm:$0x1f]  ;;  %v1443_v43 = vld [vmem:[%s1722_s11 + $0x118] sm:$0x1f] }
  0x33   : > { %v338_v58 = vmax.f32 %v311_v40, %v320_v49  ;;  %v339_v59 = vmax.f32 %v312_v41, %v321_v50  ;;  %v340_v60 = vmax.f32 %v313_v42, %v322_v51  ;;  %v350_v61 = vrot.slane %v332_v52, 1  ;;  %v1433_v40 = vld [vmem:[%s1722_s11 + $0xc8] sm:$0x1f]  ;;  %v1434_v41 = vld [vmem:[%s1722_s11 + $0xd0] sm:$0x1f] }
  0x34   : > { %v351_v62 = vrot.slane %v333_v53, 1  ;;  %v352_v63 = vrot.slane %v334_v54, 1  ;;  %v353_v0 = vrot.slane %v335_v55, 1  ;;  %v354_v1 = vrot.slane %v336_v56, 1  ;;  %v1442_v42 = vld [vmem:[%s1722_s11 + $0x110] sm:$0x1f] }
  0x35   : > { %v355_v2 = vrot.slane %v337_v57, 1  ;;  %v356_v3 = vrot.slane %v338_v58, 1  ;;  %v357_v4 = vrot.slane %v339_v59, 1  ;;  %v358_v5 = vrot.slane %v340_v60, 1  ;;  %v1444_v44 = vld [vmem:[%s1722_s11 + $0x120] sm:$0x1f] }
  0x36   : > { %v369_v6 = vsel %vm368_vm0, %v332_v52, %v350_v61  ;;  %v370_v7 = vsel %vm368_vm0, %v333_v53, %v351_v62  ;;  %v371_v8 = vsel %vm368_vm0, %v334_v54, %v352_v63  ;;  %v372_v9 = vsel %vm368_vm0, %v335_v55, %v353_v0  ;;  %v1445_v49 = vld [vmem:[%s1722_s11 + $0x128] sm:$0x1f]  ;;  %v1446_v50 = vld [vmem:[%s1722_s11 + $0x130] sm:$0x1f]  ;;  %v1447_v51 = vld [vmem:[%s1722_s11 + $0x138] sm:$0x1f] }
  0x37   : > { %v373_v11 = vsel %vm368_vm0, %v336_v56, %v354_v1  ;;  %v374_v12 = vsel %vm368_vm0, %v337_v57, %v355_v2  ;;  %v375_v13 = vsel %vm368_vm0, %v338_v58, %v356_v3  ;;  %v376_v14 = vsel %vm368_vm0, %v339_v59, %v357_v4  ;;  %v1448_v52 = vld [vmem:[%s1722_s11 + $0x140] sm:$0x1f]  ;;  %v1449_v57 = vld [vmem:[%s1722_s11 + $0x148] sm:$0x1f]  ;;  %v1450_v58 = vld [vmem:[%s1722_s11 + $0x150] sm:$0x1f] }
  0x38   : > { %v377_v20 = vsel %vm368_vm0, %v340_v60, %v358_v5  ;;  %v378_v21 = vmax.f32 %v369_v6, 0.0  ;;  %v379_v22 = vmax.f32 %v370_v7, 0.0  ;;  %v380_v23 = vmax.f32 %v371_v8, 0.0  ;;  %v1451_v59 = vld [vmem:[%s1722_s11 + $0x158] sm:$0x1f] }
  0x39   : > { %v381_v28 = vmax.f32 %v372_v9, 0.0  ;;  %v382_v29 = vmax.f32 %v373_v11, 0.0  ;;  %v383_v30 = vmax.f32 %v374_v12, 0.0  ;;  %v384_v31 = vmax.f32 %v375_v13, 0.0  ;;  %v1452_v60 = vld [vmem:[%s1722_s11 + $0x160] sm:$0x1f] }
  0x3a   : > { %v385_v36 = vmax.f32 %v376_v14, 0.0  ;;  %v386_v37 = vmax.f32 %v377_v20, 0.0  ;;  %v395_v38 = vrot.slane %v379_v22, 6  ;;  %v396_v39 = vrot.slane %v380_v23, 4  ;;  %v1453_v1 = vld [vmem:[%s1722_s11 + $0x1f8] sm:$0x1f] }
  0x3b   : > { %v397_v45 = vrot.slane %v381_v28, 2  ;;  %v398_v46 = vrot.slane %v383_v30, 6  ;;  %v399_v47 = vrot.slane %v384_v31, 4  ;;  %v434_v48 = vmax.f32 %v1811_v10, %v1824_v17  ;;  %v1454_v2 = vld [vmem:[%s1722_s11 + $0x200] sm:$0x1f] }
  0x3c   : > { %v400_v53 = vrot.slane %v385_v36, 2  ;;  %v402_v54 = vsel %vm401_vm1, %v378_v21, %v395_v38  ;;  %414 = vst [vmem:[%s1848_s15 + $0x10] sm:$0x3] %v386_v37  ;;  %v435_v55 = vmax.f32 %v1818_v15, %v1827_v18  ;;  %v436_v56 = vmax.f32 %v1821_v16, %v1830_v19  ;;  %v1455_v3 = vld [vmem:[%s1722_s11 + $0x208] sm:$0x1f] }
  0x3d   : > { %v404_v61 = vsel %vm403_vm2, %v396_v39, %v397_v45  ;;  %v407_v62 = vsel %vm401_vm1, %v382_v29, %v398_v46  ;;  %v437_v63 = vmax.f32 %v1834_v24, %v1840_v26  ;;  %v438_v0 = vmax.f32 %v1837_v25, %v1843_v27  ;;  %v1456_v4 = vld [vmem:[%s1722_s11 + $0x210] sm:$0x1f]  ;;  %v1457_v9 = vld [vmem:[%s1722_s11 + $0x218] sm:$0x1f]  ;;  %v1458_v10 = vld [vmem:[%s1722_s11 + $0x220] sm:$0x1f] }
  0x3e   : > { %v406_v5 = vsel %vm405_vm3, %v402_v54, %v404_v61  ;;  %v408_v6 = vsel %vm403_vm2, %v399_v47, %v400_v53  ;;  %v439_v7 = vmax.f32 %v1851_v32, %v1857_v34  ;;  %v440_v8 = vmax.f32 %v1854_v33, %v1860_v35  ;;  %v1459_v11 = vld [vmem:[%s1722_s11 + $0x228] sm:$0x1f]  ;;  %v1460_v12 = vld [vmem:[%s1722_s11 + $0x230] sm:$0x1f]  ;;  %v1461_v17 = vld [vmem:[%s1722_s11 + $0x238] sm:$0x1f] }
  0x3f   : > { %v409_v13 = vsel %vm405_vm3, %v407_v62, %v408_v6  ;;  %412 = vst [vmem:[%s1848_s15] sm:$0xff] %v406_v5  ;;  %v441_v14 = vmax.f32 %v1433_v40, %v1442_v42  ;;  %v442_v15 = vmax.f32 %v1434_v41, %v1443_v43  ;;  %v453_v16 = vmax.f32 %v434_v48, %v1444_v44  ;;  %v1462_v18 = vld [vmem:[%s1722_s11 + $0x240] sm:$0x1f]  ;;  %v1463_v19 = vld [vmem:[%s1722_s11 + $0x248] sm:$0x1f]  ;;  %v1464_v20 = vld [vmem:[%s1722_s11 + $0x250] sm:$0x1f] }
  0x40   : > { %413 = vst [vmem:[%s1848_s15 + $0x8] sm:$0xff] %v409_v13  ;;  %v454_v21 = vmax.f32 %v435_v55, %v1445_v49  ;;  %v455_v22 = vmax.f32 %v436_v56, %v1446_v50  ;;  %v456_v23 = vmax.f32 %v437_v63, %v1447_v51  ;;  %v457_v24 = vmax.f32 %v438_v0, %v1448_v52  ;;  %v1465_v25 = vld [vmem:[%s1722_s11 + $0x258] sm:$0x1f]  ;;  %v1466_v26 = vld [vmem:[%s1722_s11 + $0x260] sm:$0x1f] }
  0x41   : > { %v1467_v27 = vld [vmem:[%s1722_s11 + $0x268] sm:$0x1f]  ;;  %v1468_v28 = vld [vmem:[%s1722_s11 + $0x270] sm:$0x1f]  ;;  %v458_v29 = vmax.f32 %v439_v7, %v1449_v57  ;;  %v459_v30 = vmax.f32 %v440_v8, %v1450_v58  ;;  %v460_v31 = vmax.f32 %v441_v14, %v1451_v59  ;;  %v461_v32 = vmax.f32 %v442_v15, %v1452_v60  ;;  %v1469_v33 = vld [vmem:[%s1722_s11 + $0x278] sm:$0x1f] }
  0x42   : > { %v1470_v34 = vld [vmem:[%s1722_s11 + $0x280] sm:$0x1f]  ;;  %v1471_v35 = vld [vmem:[%s1722_s11 + $0x288] sm:$0x1f]  ;;  %v1472_v36 = vld [vmem:[%s1722_s11 + $0x290] sm:$0x1f]  ;;  %v471_v37 = vmax.f32 %v453_v16, %v1453_v1  ;;  %v472_v38 = vmax.f32 %v454_v21, %v1454_v2  ;;  %v473_v39 = vmax.f32 %v455_v22, %v1455_v3  ;;  %v474_v40 = vmax.f32 %v456_v23, %v1456_v4 }
  0x43   : > { %v1473_v41 = vld [vmem:[%s1722_s11 + $0x298] sm:$0x1f]  ;;  %v1474_v42 = vld [vmem:[%s1722_s11 + $0x2a0] sm:$0x1f]  ;;  %v1475_v43 = vld [vmem:[%s1722_s11 + $0x2a8] sm:$0x1f]  ;;  %v475_v44 = vmax.f32 %v457_v24, %v1457_v9  ;;  %v476_v45 = vmax.f32 %v458_v29, %v1458_v10  ;;  %v477_v46 = vmax.f32 %v459_v30, %v1459_v11  ;;  %v478_v47 = vmax.f32 %v460_v31, %v1460_v12 }
  0x44   : > { %v1476_v48 = vld [vmem:[%s1722_s11 + $0x2b0] sm:$0x1f]  ;;  %v1477_v49 = vld [vmem:[%s1722_s11 + $0x2b8] sm:$0x1f]  ;;  %v1478_v50 = vld [vmem:[%s1722_s11 + $0x2c0] sm:$0x1f]  ;;  %v479_v51 = vmax.f32 %v461_v32, %v1461_v17  ;;  %v490_v52 = vmax.f32 %v471_v37, %v1462_v18  ;;  %v491_v53 = vmax.f32 %v472_v38, %v1463_v19  ;;  %v492_v54 = vmax.f32 %v473_v39, %v1464_v20 }
  0x45   : > { %v1479_v55 = vld [vmem:[%s1722_s11 + $0x2c8] sm:$0x1f]  ;;  %v1480_v56 = vld [vmem:[%s1722_s11 + $0x360] sm:$0x1f]  ;;  %v493_v58 = vmax.f32 %v474_v40, %v1465_v25  ;;  %v494_v59 = vmax.f32 %v475_v44, %v1466_v26  ;;  %v495_v60 = vmax.f32 %v476_v45, %v1467_v27  ;;  %v496_v61 = vmax.f32 %v477_v46, %v1468_v28  ;;  %v1482_v62 = vld [vmem:[%s1722_s11 + $0x370] sm:$0x1f] }
  0x46   : > { %v1481_v57 = vld [vmem:[%s1722_s11 + $0x368] sm:$0x1f]  ;;  %v1483_v63 = vld [vmem:[%s1722_s11 + $0x378] sm:$0x1f]  ;;  %v1484_v0 = vld [vmem:[%s1722_s11 + $0x380] sm:$0x1f]  ;;  %v497_v1 = vmax.f32 %v478_v47, %v1469_v33  ;;  %v498_v2 = vmax.f32 %v479_v51, %v1470_v34  ;;  %v509_v3 = vmax.f32 %v490_v52, %v1471_v35  ;;  %v510_v4 = vmax.f32 %v491_v53, %v1472_v36 }
  0x47   : > { %v1485_v5 = vld [vmem:[%s1722_s11 + $0x388] sm:$0x1f]  ;;  %v1486_v6 = vld [vmem:[%s1722_s11 + $0x390] sm:$0x1f]  ;;  %v1487_v7 = vld [vmem:[%s1722_s11 + $0x398] sm:$0x1f]  ;;  %v511_v8 = vmax.f32 %v492_v54, %v1473_v41  ;;  %v512_v9 = vmax.f32 %v493_v58, %v1474_v42  ;;  %v513_v10 = vmax.f32 %v494_v59, %v1475_v43  ;;  %v514_v11 = vmax.f32 %v495_v60, %v1476_v48 }
  0x48   : > { %v1488_v12 = vld [vmem:[%s1722_s11 + $0x3a0] sm:$0x1f]  ;;  %v1489_v13 = vld [vmem:[%s1722_s11 + $0x3a8] sm:$0x1f]  ;;  %v1490_v14 = vld [vmem:[%s1722_s11 + $0x3b0] sm:$0x1f]  ;;  %v515_v15 = vmax.f32 %v496_v61, %v1477_v49  ;;  %v516_v16 = vmax.f32 %v497_v1, %v1478_v50  ;;  %v517_v17 = vmax.f32 %v498_v2, %v1479_v55  ;;  %v527_v18 = vmax.f32 %v509_v3, %v1480_v56 }
  0x49   : > { %v1491_v19 = vld [vmem:[%s1722_s11 + $0x3b8] sm:$0x1f]  ;;  %v1492_v20 = vld [vmem:[%s1722_s11 + $0x3c0] sm:$0x1f]  ;;  %v1493_v21 = vld [vmem:[%s1722_s11 + $0x3c8] sm:$0x1f]  ;;  %v528_v22 = vmax.f32 %v510_v4, %v1481_v57  ;;  %v529_v23 = vmax.f32 %v511_v8, %v1482_v62  ;;  %v530_v24 = vmax.f32 %v512_v9, %v1483_v63  ;;  %v531_v25 = vmax.f32 %v513_v10, %v1484_v0 }
  0x4a   : > { %v1494_v26 = vld [vmem:[%s1722_s11 + $0x3d0] sm:$0x1f]  ;;  %v1495_v27 = vld [vmem:[%s1722_s11 + $0x3d8] sm:$0x1f]  ;;  %v1496_v28 = vld [vmem:[%s1722_s11 + $0x3e0] sm:$0x1f]  ;;  %v532_v29 = vmax.f32 %v514_v11, %v1485_v5  ;;  %v533_v30 = vmax.f32 %v515_v15, %v1486_v6  ;;  %v534_v31 = vmax.f32 %v516_v16, %v1487_v7  ;;  %v535_v32 = vmax.f32 %v517_v17, %v1488_v12 }
  0x4b   : > { %v1497_v33 = vld [vmem:[%s1722_s11 + $0x3e8] sm:$0x1f]  ;;  %v1498_v34 = vld [vmem:[%s1722_s11 + $0x3f0] sm:$0x1f]  ;;  %v1499_v35 = vld [vmem:[%s1722_s11 + $0x3f8] sm:$0x1f]  ;;  %v546_v36 = vmax.f32 %v527_v18, %v1489_v13  ;;  %v547_v37 = vmax.f32 %v528_v22, %v1490_v14  ;;  %v548_v38 = vmax.f32 %v529_v23, %v1491_v19  ;;  %v549_v39 = vmax.f32 %v530_v24, %v1492_v20 }
  0x4c   : > { %v1500_v40 = vld [vmem:[%s1722_s11 + $0x400] sm:$0x1f]  ;;  %v1501_v41 = vld [vmem:[%s1722_s11 + $0x408] sm:$0x1f]  ;;  %v1502_v42 = vld [vmem:[%s1722_s11 + $0x410] sm:$0x1f]  ;;  %v550_v43 = vmax.f32 %v531_v25, %v1493_v21  ;;  %v551_v44 = vmax.f32 %v532_v29, %v1494_v26  ;;  %v552_v45 = vmax.f32 %v533_v30, %v1495_v27  ;;  %v553_v46 = vmax.f32 %v534_v31, %v1496_v28 }
  0x4d   : > { %v1503_v47 = vld [vmem:[%s1722_s11 + $0x418] sm:$0x1f]  ;;  %v1504_v48 = vld [vmem:[%s1722_s11 + $0x420] sm:$0x1f]  ;;  %v1505_v49 = vld [vmem:[%s1722_s11 + $0x428] sm:$0x1f]  ;;  %v554_v50 = vmax.f32 %v535_v32, %v1497_v33  ;;  %v565_v52 = vmax.f32 %v546_v36, %v1498_v34  ;;  %v566_v53 = vmax.f32 %v547_v37, %v1499_v35  ;;  %v567_v54 = vmax.f32 %v548_v38, %v1500_v40 }
  0x4e   : > { %v1506_v51 = vld [vmem:[%s1722_s11 + $0x430] sm:$0x1f]  ;;  %v568_v55 = vmax.f32 %v549_v39, %v1501_v41  ;;  %v569_v56 = vmax.f32 %v550_v43, %v1502_v42  ;;  %v570_v57 = vmax.f32 %v551_v44, %v1503_v47  ;;  %v571_v58 = vmax.f32 %v552_v45, %v1504_v48 }
  0x4f   : > { %v572_v59 = vmax.f32 %v553_v46, %v1505_v49  ;;  %v573_v60 = vmax.f32 %v554_v50, %v1506_v51  ;;  %v583_v61 = vrot.slane %v565_v52, 1  ;;  %v584_v62 = vrot.slane %v566_v53, 1  ;;  %v1958_v47 = vld [vmem:[%s1722_s11 + $0x2d0] sm:$0x1f] }
  0x50   : > { %v585_v63 = vrot.slane %v567_v54, 1  ;;  %v586_v0 = vrot.slane %v568_v55, 1  ;;  %v587_v1 = vrot.slane %v569_v56, 1  ;;  %v588_v2 = vrot.slane %v570_v57, 1 }
  0x51   : > { %v589_v3 = vrot.slane %v571_v58, 1  ;;  %v590_v4 = vrot.slane %v572_v59, 1  ;;  %v591_v5 = vrot.slane %v573_v60, 1  ;;  %v601_v6 = vmax.f32 %v565_v52, %v583_v61  ;;  %v1980_v61 = vld [vmem:[%s1722_s11 + $0x2e8] sm:$0x1f] }
  0x52   : > { %v602_v7 = vmax.f32 %v566_v53, %v584_v62  ;;  %v603_v8 = vmax.f32 %v567_v54, %v585_v63  ;;  %v604_v9 = vmax.f32 %v568_v55, %v586_v0  ;;  %v605_v10 = vmax.f32 %v569_v56, %v587_v1  ;;  %v1983_v62 = vld [vmem:[%s1722_s11 + $0x330] sm:$0x1f] }
  0x53   : > { %v606_v11 = vmax.f32 %v570_v57, %v588_v2  ;;  %v607_v12 = vmax.f32 %v571_v58, %v589_v3  ;;  %v608_v13 = vmax.f32 %v572_v59, %v590_v4  ;;  %v609_v14 = vmax.f32 %v573_v60, %v591_v5  ;;  %v1514_v3 = vld [vmem:[%s1722_s11 + $0x2f0] sm:$0x1f]  ;;  %v1515_v4 = vld [vmem:[%s1722_s11 + $0x2f8] sm:$0x1f]  ;;  %v1988_v5 = vld [vmem:[%s1722_s11 + $0x300] sm:$0x1f] }
  0x54   : > { %v610_v15 = vrot.slane %v565_v52, 2  ;;  %v611_v16 = vrot.slane %v566_v53, 2  ;;  %v612_v17 = vrot.slane %v567_v54, 2  ;;  %v613_v18 = vrot.slane %v568_v55, 2  ;;  %v1965_v52 = vld [vmem:[%s1722_s11 + $0x2d8] sm:$0x1f] }
  0x55   : > { %v614_v19 = vrot.slane %v569_v56, 2  ;;  %v615_v20 = vrot.slane %v570_v57, 2  ;;  %v616_v21 = vrot.slane %v571_v58, 2  ;;  %v617_v22 = vrot.slane %v572_v59, 2  ;;  %v1968_v53 = vld [vmem:[%s1722_s11 + $0x2e0] sm:$0x1f] }
  0x56   : > { %v618_v23 = vrot.slane %v573_v60, 2  ;;  %v628_v24 = vmax.f32 %v601_v6, %v610_v15  ;;  %v629_v25 = vmax.f32 %v602_v7, %v611_v16  ;;  %v630_v26 = vmax.f32 %v603_v8, %v612_v17  ;;  %v1971_v54 = vld [vmem:[%s1722_s11 + $0x318] sm:$0x1f]  ;;  %v1974_v55 = vld [vmem:[%s1722_s11 + $0x320] sm:$0x1f] }
  0x57   : > { %v631_v27 = vmax.f32 %v604_v9, %v613_v18  ;;  %v632_v28 = vmax.f32 %v605_v10, %v614_v19  ;;  %v633_v29 = vmax.f32 %v606_v11, %v615_v20  ;;  %v634_v30 = vmax.f32 %v607_v12, %v616_v21  ;;  %v1977_v56 = vld [vmem:[%s1722_s11 + $0x328] sm:$0x1f]  ;;  %v1523_v6 = vld [vmem:[%s1722_s11 + $0x338] sm:$0x1f]  ;;  %v1524_v7 = vld [vmem:[%s1722_s11 + $0x340] sm:$0x1f] }
  0x58   : > { %v635_v31 = vmax.f32 %v608_v13, %v617_v22  ;;  %v636_v32 = vmax.f32 %v609_v14, %v618_v23  ;;  %v646_v33 = vrot.slane %v628_v24, 1  ;;  %v647_v34 = vrot.slane %v629_v25, 1  ;;  %v1993_v8 = vld [vmem:[%s1722_s11 + $0x348] sm:$0x1f]  ;;  %v1518_v14 = vld [vmem:[%s1722_s11 + $0x310] sm:$0x1f] }
  0x59   : > { %v648_v35 = vrot.slane %v630_v26, 1  ;;  %v649_v36 = vrot.slane %v631_v27, 1  ;;  %v650_v37 = vrot.slane %v632_v28, 1  ;;  %v651_v38 = vrot.slane %v633_v29, 1  ;;  %v1517_v13 = vld [vmem:[%s1722_s11 + $0x308] sm:$0x1f] }
  0x5a   : > { %v652_v39 = vrot.slane %v634_v30, 1  ;;  %v653_v40 = vrot.slane %v635_v31, 1  ;;  %v654_v41 = vrot.slane %v636_v32, 1  ;;  %v664_v42 = vsel %vm368_vm0, %v628_v24, %v646_v33  ;;  %v1526_v15 = vld [vmem:[%s1722_s11 + $0x350] sm:$0x1f] }
  0x5b   : > { %v665_v43 = vsel %vm368_vm0, %v629_v25, %v647_v34  ;;  %v666_v44 = vsel %vm368_vm0, %v630_v26, %v648_v35  ;;  %v667_v45 = vsel %vm368_vm0, %v631_v27, %v649_v36  ;;  %v668_v46 = vsel %vm368_vm0, %v632_v28, %v650_v37  ;;  %v1527_v16 = vld [vmem:[%s1722_s11 + $0x358] sm:$0x1f]  ;;  %v1528_v17 = vld [vmem:[%s1722_s11 + $0x360] sm:$0x1f]  ;;  %v1529_v18 = vld [vmem:[%s1722_s11 + $0x368] sm:$0x1f] }
  0x5c   : > { %v669_v48 = vsel %vm368_vm0, %v633_v29, %v651_v38  ;;  %v670_v49 = vsel %vm368_vm0, %v634_v30, %v652_v39  ;;  %v671_v50 = vsel %vm368_vm0, %v635_v31, %v653_v40  ;;  %v672_v51 = vsel %vm368_vm0, %v636_v32, %v654_v41  ;;  %v1530_v23 = vld [vmem:[%s1722_s11 + $0x370] sm:$0x1f]  ;;  %v1531_v24 = vld [vmem:[%s1722_s11 + $0x378] sm:$0x1f]  ;;  %v1532_v25 = vld [vmem:[%s1722_s11 + $0x380] sm:$0x1f] }
  0x5d   : > { %v673_v57 = vmax.f32 %v664_v42, 0.0  ;;  %v674_v58 = vmax.f32 %v665_v43, 0.0  ;;  %v675_v59 = vmax.f32 %v666_v44, 0.0  ;;  %v676_v60 = vmax.f32 %v667_v45, 0.0  ;;  %v1533_v26 = vld [vmem:[%s1722_s11 + $0x388] sm:$0x1f] }
  0x5e   : > { %v677_v63 = vmax.f32 %v668_v46, 0.0  ;;  %v678_v0 = vmax.f32 %v669_v48, 0.0  ;;  %v679_v1 = vmax.f32 %v670_v49, 0.0  ;;  %v680_v2 = vmax.f32 %v671_v50, 0.0  ;;  %v1534_v31 = vld [vmem:[%s1722_s11 + $0x390] sm:$0x1f] }
  0x5f   : > { %v681_v9 = vmax.f32 %v672_v51, 0.0  ;;  %v690_v10 = vrot.slane %v674_v58, 6  ;;  %v691_v11 = vrot.slane %v675_v59, 4  ;;  %v692_v12 = vrot.slane %v676_v60, 2  ;;  %v1535_v32 = vld [vmem:[%s1722_s11 + $0x398] sm:$0x1f] }
  0x60   : > { %v693_v19 = vrot.slane %v678_v0, 6  ;;  %v694_v20 = vrot.slane %v679_v1, 4  ;;  %v695_v21 = vrot.slane %v680_v2, 2  ;;  %v726_v22 = vmax.f32 %v1958_v47, %v1971_v54  ;;  %v1536_v33 = vld [vmem:[%s1722_s11 + $0x3a0] sm:$0x1f] }
  0x61   : > { %v696_v27 = vsel %vm401_vm1, %v673_v57, %v690_v10  ;;  %v697_v28 = vsel %vm403_vm2, %v691_v11, %v692_v12  ;;  %1509 = vst [vmem:[%s1848_s15 + $0x22] sm:$0x3] %v681_v9  ;;  %v727_v29 = vmax.f32 %v1965_v52, %v1974_v55  ;;  %v728_v30 = vmax.f32 %v1968_v53, %v1977_v56  ;;  %v1537_v34 = vld [vmem:[%s1722_s11 + $0x438] sm:$0x1f]  ;;  %v1538_v39 = vld [vmem:[%s1722_s11 + $0x440] sm:$0x1f] }
  0x62   : > { %v698_v35 = vsel %vm405_vm3, %v696_v27, %v697_v28  ;;  %v699_v36 = vsel %vm401_vm1, %v677_v63, %v693_v19  ;;  %v700_v37 = vsel %vm403_vm2, %v694_v20, %v695_v21  ;;  %v729_v38 = vmax.f32 %v1980_v61, %v1983_v62  ;;  %v1539_v40 = vld [vmem:[%s1722_s11 + $0x448] sm:$0x1f]  ;;  %v1540_v41 = vld [vmem:[%s1722_s11 + $0x450] sm:$0x1f]  ;;  %v1541_v42 = vld [vmem:[%s1722_s11 + $0x458] sm:$0x1f] }
  0x63   : > { %v701_v43 = vsel %vm405_vm3, %v699_v36, %v700_v37  ;;  %1507 = vst [vmem:[%s1848_s15 + $0x12] sm:$0xff] %v698_v35  ;;  %v730_v44 = vmax.f32 %v1514_v3, %v1523_v6  ;;  %v731_v45 = vmax.f32 %v1515_v4, %v1524_v7  ;;  %v732_v46 = vmax.f32 %v1988_v5, %v1993_v8  ;;  %v1542_v47 = vld [vmem:[%s1722_s11 + $0x460] sm:$0x1f]  ;;  %v1543_v48 = vld [vmem:[%s1722_s11 + $0x468] sm:$0x1f] }
  0x64   : > { %v1544_v49 = vld [vmem:[%s1722_s11 + $0x470] sm:$0x1f]  ;;  %v1545_v50 = vld [vmem:[%s1722_s11 + $0x478] sm:$0x1f]  ;;  %1508 = vst [vmem:[%s1848_s15 + $0x1a] sm:$0xff] %v701_v43  ;;  %v733_v51 = vmax.f32 %v1517_v13, %v1526_v15  ;;  %v734_v52 = vmax.f32 %v1518_v14, %v1527_v16  ;;  %v744_v53 = vmax.f32 %v726_v22, %v1528_v17  ;;  %v745_v54 = vmax.f32 %v727_v29, %v1529_v18 }
  0x65   : > { %v1546_v55 = vld [vmem:[%s1722_s11 + $0x480] sm:$0x1f]  ;;  %v1547_v56 = vld [vmem:[%s1722_s11 + $0x488] sm:$0x1f]  ;;  %v1548_v57 = vld [vmem:[%s1722_s11 + $0x490] sm:$0x1f]  ;;  %v746_v59 = vmax.f32 %v728_v30, %v1530_v23  ;;  %v747_v60 = vmax.f32 %v729_v38, %v1531_v24  ;;  %v748_v61 = vmax.f32 %v730_v44, %v1532_v25  ;;  %v749_v62 = vmax.f32 %v731_v45, %v1533_v26 }
  0x66   : > { %v1549_v58 = vld [vmem:[%s1722_s11 + $0x498] sm:$0x1f]  ;;  %v1550_v63 = vld [vmem:[%s1722_s11 + $0x4a0] sm:$0x1f]  ;;  %v1551_v0 = vld [vmem:[%s1722_s11 + $0x4a8] sm:$0x1f]  ;;  %v750_v3 = vmax.f32 %v732_v46, %v1534_v31  ;;  %v751_v4 = vmax.f32 %v733_v51, %v1535_v32  ;;  %v752_v5 = vmax.f32 %v734_v52, %v1536_v33  ;;  %v763_v6 = vmax.f32 %v744_v53, %v1537_v34 }
  0x67   : > { %v1552_v1 = vld [vmem:[%s1722_s11 + $0x4b0] sm:$0x1f]  ;;  %v1553_v2 = vld [vmem:[%s1722_s11 + $0x4b8] sm:$0x1f]  ;;  %v1554_v7 = vld [vmem:[%s1722_s11 + $0x4c0] sm:$0x1f]  ;;  %v764_v11 = vmax.f32 %v745_v54, %v1538_v39  ;;  %v765_v12 = vmax.f32 %v746_v59, %v1539_v40  ;;  %v766_v13 = vmax.f32 %v747_v60, %v1540_v41  ;;  %v767_v14 = vmax.f32 %v748_v61, %v1541_v42 }
  0x68   : > { %v1555_v8 = vld [vmem:[%s1722_s11 + $0x4c8] sm:$0x1f]  ;;  %v1556_v9 = vld [vmem:[%s1722_s11 + $0x4d0] sm:$0x1f]  ;;  %v1557_v10 = vld [vmem:[%s1722_s11 + $0x4d8] sm:$0x1f]  ;;  %v768_v19 = vmax.f32 %v749_v62, %v1542_v47  ;;  %v769_v20 = vmax.f32 %v750_v3, %v1543_v48  ;;  %v770_v21 = vmax.f32 %v751_v4, %v1544_v49  ;;  %v771_v22 = vmax.f32 %v752_v5, %v1545_v50 }
  0x69   : > { %v1558_v15 = vld [vmem:[%s1722_s11 + $0x4e0] sm:$0x1f]  ;;  %v1559_v16 = vld [vmem:[%s1722_s11 + $0x4e8] sm:$0x1f]  ;;  %v1560_v17 = vld [vmem:[%s1722_s11 + $0x4f0] sm:$0x1f]  ;;  %v782_v27 = vmax.f32 %v763_v6, %v1546_v55  ;;  %v783_v28 = vmax.f32 %v764_v11, %v1547_v56  ;;  %v784_v29 = vmax.f32 %v765_v12, %v1548_v57  ;;  %v785_v30 = vmax.f32 %v766_v13, %v1549_v58 }
  0x6a   : > { %v1561_v18 = vld [vmem:[%s1722_s11 + $0x4f8] sm:$0x1f]  ;;  %v1562_v23 = vld [vmem:[%s1722_s11 + $0x500] sm:$0x1f]  ;;  %v1563_v24 = vld [vmem:[%s1722_s11 + $0x508] sm:$0x1f]  ;;  %v786_v34 = vmax.f32 %v767_v14, %v1550_v63  ;;  %v787_v35 = vmax.f32 %v768_v19, %v1551_v0  ;;  %v788_v36 = vmax.f32 %v769_v20, %v1552_v1  ;;  %v789_v37 = vmax.f32 %v770_v21, %v1553_v2 }
  0x6b   : > { %v1564_v25 = vld [vmem:[%s1722_s11 + $0x5a0] sm:$0x1f]  ;;  %v1565_v26 = vld [vmem:[%s1722_s11 + $0x5a8] sm:$0x1f]  ;;  %v1566_v31 = vld [vmem:[%s1722_s11 + $0x5b0] sm:$0x1f]  ;;  %v790_v41 = vmax.f32 %v771_v22, %v1554_v7  ;;  %v801_v42 = vmax.f32 %v782_v27, %v1555_v8  ;;  %v802_v43 = vmax.f32 %v783_v28, %v1556_v9  ;;  %v803_v44 = vmax.f32 %v784_v29, %v1557_v10 }
  0x6c   : > { %v1567_v32 = vld [vmem:[%s1722_s11 + $0x5b8] sm:$0x1f]  ;;  %v1568_v33 = vld [vmem:[%s1722_s11 + $0x5c0] sm:$0x1f]  ;;  %v1569_v38 = vld [vmem:[%s1722_s11 + $0x5c8] sm:$0x1f]  ;;  %v804_v48 = vmax.f32 %v785_v30, %v1558_v15  ;;  %v805_v49 = vmax.f32 %v786_v34, %v1559_v16  ;;  %v806_v50 = vmax.f32 %v787_v35, %v1560_v17  ;;  %v807_v51 = vmax.f32 %v788_v36, %v1561_v18 }
  0x6d   : > { %v1570_v39 = vld [vmem:[%s1722_s11 + $0x5d0] sm:$0x1f]  ;;  %v1571_v40 = vld [vmem:[%s1722_s11 + $0x5d8] sm:$0x1f]  ;;  %v1572_v45 = vld [vmem:[%s1722_s11 + $0x5e0] sm:$0x1f]  ;;  %v808_v55 = vmax.f32 %v789_v37, %v1562_v23  ;;  %v809_v56 = vmax.f32 %v790_v41, %v1563_v24  ;;  %v820_v57 = vmax.f32 %v801_v42, %v1564_v25  ;;  %v821_v58 = vmax.f32 %v802_v43, %v1565_v26 }
  0x6e   : > { %v1573_v46 = vld [vmem:[%s1722_s11 + $0x5e8] sm:$0x1f]  ;;  %v1574_v47 = vld [vmem:[%s1722_s11 + $0x5f0] sm:$0x1f]  ;;  %v1575_v52 = vld [vmem:[%s1722_s11 + $0x5f8] sm:$0x1f]  ;;  %v822_v62 = vmax.f32 %v803_v44, %v1566_v31  ;;  %v823_v63 = vmax.f32 %v804_v48, %v1567_v32  ;;  %v824_v0 = vmax.f32 %v805_v49, %v1568_v33  ;;  %v825_v1 = vmax.f32 %v806_v50, %v1569_v38 }
  0x6f   : > { %v1576_v53 = vld [vmem:[%s1722_s11 + $0x600] sm:$0x1f]  ;;  %v1577_v54 = vld [vmem:[%s1722_s11 + $0x608] sm:$0x1f]  ;;  %v1578_v59 = vld [vmem:[%s1722_s11 + $0x610] sm:$0x1f]  ;;  %v826_v5 = vmax.f32 %v807_v51, %v1570_v39  ;;  %v827_v6 = vmax.f32 %v808_v55, %v1571_v40  ;;  %v828_v7 = vmax.f32 %v809_v56, %v1572_v45  ;;  %v839_v8 = vmax.f32 %v820_v57, %v1573_v46 }
  0x70   : > { %v1579_v60 = vld [vmem:[%s1722_s11 + $0x618] sm:$0x1f]  ;;  %v1580_v61 = vld [vmem:[%s1722_s11 + $0x620] sm:$0x1f]  ;;  %v1581_v2 = vld [vmem:[%s1722_s11 + $0x628] sm:$0x1f]  ;;  %v840_v12 = vmax.f32 %v821_v58, %v1574_v47  ;;  %v841_v13 = vmax.f32 %v822_v62, %v1575_v52  ;;  %v842_v14 = vmax.f32 %v823_v63, %v1576_v53  ;;  %v843_v15 = vmax.f32 %v824_v0, %v1577_v54 }
  0x71   : > { %v1582_v3 = vld [vmem:[%s1722_s11 + $0x630] sm:$0x1f]  ;;  %v1583_v4 = vld [vmem:[%s1722_s11 + $0x638] sm:$0x1f]  ;;  %v1584_v9 = vld [vmem:[%s1722_s11 + $0x640] sm:$0x1f]  ;;  %v844_v19 = vmax.f32 %v825_v1, %v1578_v59  ;;  %v845_v20 = vmax.f32 %v826_v5, %v1579_v60  ;;  %v846_v21 = vmax.f32 %v827_v6, %v1580_v61  ;;  %v847_v22 = vmax.f32 %v828_v7, %v1581_v2 }
  0x72   : > { %v1585_v10 = vld [vmem:[%s1722_s11 + $0x648] sm:$0x1f]  ;;  %v1586_v11 = vld [vmem:[%s1722_s11 + $0x650] sm:$0x1f]  ;;  %v1587_v16 = vld [vmem:[%s1722_s11 + $0x658] sm:$0x1f]  ;;  %v858_v24 = vmax.f32 %v839_v8, %v1582_v3  ;;  %v859_v25 = vmax.f32 %v840_v12, %v1583_v4  ;;  %v860_v26 = vmax.f32 %v841_v13, %v1584_v9 }
  0x73   : > { %v1588_v17 = vld [vmem:[%s1722_s11 + $0x660] sm:$0x1f]  ;;  %v1589_v18 = vld [vmem:[%s1722_s11 + $0x668] sm:$0x1f]  ;;  %v1590_v23 = vld [vmem:[%s1722_s11 + $0x670] sm:$0x1f]  ;;  %v861_v27 = vmax.f32 %v842_v14, %v1585_v10  ;;  %v862_v28 = vmax.f32 %v843_v15, %v1586_v11  ;;  %v863_v29 = vmax.f32 %v844_v19, %v1587_v16 }
  0x74   : > { %v864_v30 = vmax.f32 %v845_v20, %v1588_v17  ;;  %v865_v31 = vmax.f32 %v846_v21, %v1589_v18  ;;  %v866_v32 = vmax.f32 %v847_v22, %v1590_v23  ;;  %v876_v33 = vrot.slane %v858_v24, 1  ;;  %v2084_v16 = vld [vmem:[%s1722_s11 + $0x360] sm:$0x1f]  ;;  %v2091_v21 = vld [vmem:[%s1722_s11 + $0x368] sm:$0x1f] }
  0x75   : > { %v877_v34 = vrot.slane %v859_v25, 1  ;;  %v878_v35 = vrot.slane %v860_v26, 1  ;;  %v879_v36 = vrot.slane %v861_v27, 1  ;;  %v880_v37 = vrot.slane %v862_v28, 1  ;;  %v2094_v22 = vld [vmem:[%s1722_s11 + $0x3a8] sm:$0x1f] }
  0x76   : > { %v881_v38 = vrot.slane %v863_v29, 1  ;;  %v882_v39 = vrot.slane %v864_v30, 1  ;;  %v883_v40 = vrot.slane %v865_v31, 1  ;;  %v884_v41 = vrot.slane %v866_v32, 1  ;;  %v2097_v23 = vld [vmem:[%s1722_s11 + $0x3b0] sm:$0x1f] }
  0x77   : > { %v894_v42 = vmax.f32 %v858_v24, %v876_v33  ;;  %v895_v43 = vmax.f32 %v859_v25, %v877_v34  ;;  %v896_v44 = vmax.f32 %v860_v26, %v878_v35  ;;  %v897_v45 = vmax.f32 %v861_v27, %v879_v36  ;;  %v2115_v36 = vld [vmem:[%s1722_s11 + $0x380] sm:$0x1f] }
  0x78   : > { %v898_v46 = vmax.f32 %v862_v28, %v880_v37  ;;  %v899_v47 = vmax.f32 %v863_v29, %v881_v38  ;;  %v900_v48 = vmax.f32 %v864_v30, %v882_v39  ;;  %v901_v49 = vmax.f32 %v865_v31, %v883_v40  ;;  %v2118_v37 = vld [vmem:[%s1722_s11 + $0x3c8] sm:$0x1f] }
  0x79   : > { %v902_v50 = vmax.f32 %v866_v32, %v884_v41  ;;  %v903_v51 = vrot.slane %v858_v24, 2  ;;  %v904_v52 = vrot.slane %v859_v25, 2  ;;  %v905_v53 = vrot.slane %v860_v26, 2 }
  0x7a   : > { %v906_v54 = vrot.slane %v861_v27, 2  ;;  %v907_v55 = vrot.slane %v862_v28, 2  ;;  %v908_v56 = vrot.slane %v863_v29, 2  ;;  %v909_v57 = vrot.slane %v864_v30, 2  ;;  %v2103_v28 = vld [vmem:[%s1722_s11 + $0x370] sm:$0x1f] }
  0x7b   : > { %v910_v58 = vrot.slane %v865_v31, 2  ;;  %v911_v59 = vrot.slane %v866_v32, 2  ;;  %v921_v60 = vmax.f32 %v894_v42, %v903_v51  ;;  %v922_v61 = vmax.f32 %v895_v43, %v904_v52  ;;  %v2106_v29 = vld [vmem:[%s1722_s11 + $0x378] sm:$0x1f]  ;;  %v2112_v31 = vld [vmem:[%s1722_s11 + $0x3c0] sm:$0x1f] }
  0x7c   : > { %v923_v62 = vmax.f32 %v896_v44, %v905_v53  ;;  %v924_v63 = vmax.f32 %v897_v45, %v906_v54  ;;  %v925_v0 = vmax.f32 %v898_v46, %v907_v55  ;;  %v926_v1 = vmax.f32 %v899_v47, %v908_v56  ;;  %v2109_v30 = vld [vmem:[%s1722_s11 + $0x3b8] sm:$0x1f]  ;;  %v1599_v42 = vld [vmem:[%s1722_s11 + $0x388] sm:$0x1f]  ;;  %v1600_v43 = vld [vmem:[%s1722_s11 + $0x390] sm:$0x1f] }
  0x7d   : > { %v927_v2 = vmax.f32 %v900_v48, %v909_v57  ;;  %v928_v3 = vmax.f32 %v901_v49, %v910_v58  ;;  %v929_v4 = vmax.f32 %v902_v50, %v911_v59  ;;  %v939_v5 = vrot.slane %v921_v60, 1  ;;  %v2123_v44 = vld [vmem:[%s1722_s11 + $0x398] sm:$0x1f]  ;;  %v1608_v45 = vld [vmem:[%s1722_s11 + $0x3d0] sm:$0x1f] }
  0x7e   : > { %v940_v6 = vrot.slane %v922_v61, 1  ;;  %v941_v7 = vrot.slane %v923_v62, 1  ;;  %v942_v8 = vrot.slane %v924_v63, 1  ;;  %v943_v9 = vrot.slane %v925_v0, 1  ;;  %v1609_v46 = vld [vmem:[%s1722_s11 + $0x3d8] sm:$0x1f] }
  0x7f   : > { %v944_v10 = vrot.slane %v926_v1, 1  ;;  %v945_v11 = vrot.slane %v927_v2, 1  ;;  %v946_v12 = vrot.slane %v928_v3, 1  ;;  %v947_v13 = vrot.slane %v929_v4, 1  ;;  %v1610_v47 = vld [vmem:[%s1722_s11 + $0x3e0] sm:$0x1f] }
  0x80   : > { %v957_v14 = vsel %vm368_vm0, %v921_v60, %v939_v5  ;;  %v958_v15 = vsel %vm368_vm0, %v922_v61, %v940_v6  ;;  %v959_v17 = vsel %vm368_vm0, %v923_v62, %v941_v7  ;;  %v960_v18 = vsel %vm368_vm0, %v924_v63, %v942_v8  ;;  %v1602_v51 = vld [vmem:[%s1722_s11 + $0x3a0] sm:$0x1f]  ;;  %v1611_v52 = vld [vmem:[%s1722_s11 + $0x3e8] sm:$0x1f]  ;;  %v1612_v54 = vld [vmem:[%s1722_s11 + $0x3f0] sm:$0x1f] }
  0x81   : > { %v961_v19 = vsel %vm368_vm0, %v925_v0, %v943_v9  ;;  %v962_v20 = vsel %vm368_vm0, %v926_v1, %v944_v10  ;;  %v963_v24 = vsel %vm368_vm0, %v927_v2, %v945_v11  ;;  %v964_v25 = vsel %vm368_vm0, %v928_v3, %v946_v12  ;;  %v1613_v55 = vld [vmem:[%s1722_s11 + $0x3f8] sm:$0x1f]  ;;  %v1614_v56 = vld [vmem:[%s1722_s11 + $0x400] sm:$0x1f]  ;;  %v1615_v61 = vld [vmem:[%s1722_s11 + $0x408] sm:$0x1f] }
  0x82   : > { %v965_v26 = vsel %vm368_vm0, %v929_v4, %v947_v13  ;;  %v966_v27 = vmax.f32 %v957_v14, 0.0  ;;  %v967_v32 = vmax.f32 %v958_v15, 0.0  ;;  %v968_v33 = vmax.f32 %v959_v17, 0.0  ;;  %v1616_v62 = vld [vmem:[%s1722_s11 + $0x410] sm:$0x1f] }
  0x83   : > { %v969_v34 = vmax.f32 %v960_v18, 0.0  ;;  %v970_v35 = vmax.f32 %v961_v19, 0.0  ;;  %v971_v38 = vmax.f32 %v962_v20, 0.0  ;;  %v972_v39 = vmax.f32 %v963_v24, 0.0  ;;  %v1617_v63 = vld [vmem:[%s1722_s11 + $0x418] sm:$0x1f] }
  0x84   : > { %v973_v40 = vmax.f32 %v964_v25, 0.0  ;;  %v974_v41 = vmax.f32 %v965_v26, 0.0  ;;  %v983_v48 = vrot.slane %v967_v32, 6  ;;  %v984_v49 = vrot.slane %v968_v33, 4  ;;  %v1618_v0 = vld [vmem:[%s1722_s11 + $0x420] sm:$0x1f] }
  0x85   : > { %v985_v50 = vrot.slane %v969_v34, 2  ;;  %v1019_v53 = vmax.f32 %v2084_v16, %v2094_v22  ;;  %v986_v57 = vrot.slane %v971_v38, 6  ;;  %v987_v58 = vrot.slane %v972_v39, 4  ;;  %v1619_v5 = vld [vmem:[%s1722_s11 + $0x428] sm:$0x1f] }
  0x86   : > { %v988_v59 = vrot.slane %v973_v40, 2  ;;  %1593 = vst [vmem:[%s1848_s15 + $0x34] sm:$0x3] %v974_v41  ;;  %v1020_v60 = vmax.f32 %v2091_v21, %v2097_v23  ;;  %v989_v1 = vsel %vm401_vm1, %v966_v27, %v983_v48  ;;  %v1021_v3 = vmax.f32 %v2103_v28, %v2109_v30  ;;  %v1620_v6 = vld [vmem:[%s1722_s11 + $0x430] sm:$0x1f] }
  0x87   : > { %v990_v2 = vsel %vm403_vm2, %v984_v49, %v985_v50  ;;  %v1022_v4 = vmax.f32 %v2106_v29, %v2112_v31  ;;  %v1621_v7 = vld [vmem:[%s1722_s11 + $0x4c8] sm:$0x1f]  ;;  %v1622_v8 = vld [vmem:[%s1722_s11 + $0x4d0] sm:$0x1f]  ;;  %v992_v10 = vsel %vm401_vm1, %v970_v35, %v986_v57  ;;  %v1023_v12 = vmax.f32 %v2115_v36, %v2118_v37  ;;  %v1623_v13 = vld [vmem:[%s1722_s11 + $0x4d8] sm:$0x1f] }
  0x88   : > { %v991_v9 = vsel %vm405_vm3, %v989_v1, %v990_v2  ;;  %v993_v11 = vsel %vm403_vm2, %v987_v58, %v988_v59  ;;  %v1624_v14 = vld [vmem:[%s1722_s11 + $0x4e0] sm:$0x1f]  ;;  %v1625_v15 = vld [vmem:[%s1722_s11 + $0x4e8] sm:$0x1f]  ;;  %v1626_v16 = vld [vmem:[%s1722_s11 + $0x4f0] sm:$0x1f]  ;;  %v1024_v18 = vmax.f32 %v1599_v42, %v1608_v45  ;;  %v1025_v19 = vmax.f32 %v1600_v43, %v1609_v46 }
  0x89   : > { %v994_v17 = vsel %vm405_vm3, %v992_v10, %v993_v11  ;;  %1591 = vst [vmem:[%s1848_s15 + $0x24] sm:$0xff] %v991_v9  ;;  %v1026_v20 = vmax.f32 %v2123_v44, %v1610_v47  ;;  %v1627_v21 = vld [vmem:[%s1722_s11 + $0x4f8] sm:$0x1f]  ;;  %v1628_v22 = vld [vmem:[%s1722_s11 + $0x500] sm:$0x1f]  ;;  %v1027_v25 = vmax.f32 %v1602_v51, %v1611_v52  ;;  %v1037_v26 = vmax.f32 %v1019_v53, %v1612_v54 }
  0x8a   : > { %v1629_v23 = vld [vmem:[%s1722_s11 + $0x508] sm:$0x1f]  ;;  %v1630_v24 = vld [vmem:[%s1722_s11 + $0x510] sm:$0x1f]  ;;  %1592 = vst [vmem:[%s1848_s15 + $0x2c] sm:$0xff] %v994_v17  ;;  %v1038_v27 = vmax.f32 %v1020_v60, %v1613_v55  ;;  %v1039_v28 = vmax.f32 %v1021_v3, %v1614_v56  ;;  %v1040_v33 = vmax.f32 %v1022_v4, %v1615_v61  ;;  %v1041_v34 = vmax.f32 %v1023_v12, %v1616_v62 }
  0x8b   : > { %v1631_v29 = vld [vmem:[%s1722_s11 + $0x518] sm:$0x1f]  ;;  %v1632_v30 = vld [vmem:[%s1722_s11 + $0x520] sm:$0x1f]  ;;  %v1633_v31 = vld [vmem:[%s1722_s11 + $0x528] sm:$0x1f]  ;;  %v1042_v35 = vmax.f32 %v1024_v18, %v1617_v63  ;;  %v1043_v36 = vmax.f32 %v1025_v19, %v1618_v0  ;;  %v1044_v41 = vmax.f32 %v1026_v20, %v1619_v5  ;;  %v1045_v42 = vmax.f32 %v1027_v25, %v1620_v6 }
  0x8c   : > { %v1634_v32 = vld [vmem:[%s1722_s11 + $0x530] sm:$0x1f]  ;;  %v1635_v37 = vld [vmem:[%s1722_s11 + $0x538] sm:$0x1f]  ;;  %v1636_v38 = vld [vmem:[%s1722_s11 + $0x540] sm:$0x1f]  ;;  %v1055_v43 = vmax.f32 %v1037_v26, %v1621_v7  ;;  %v1056_v44 = vmax.f32 %v1038_v27, %v1622_v8  ;;  %v1057_v49 = vmax.f32 %v1039_v28, %v1623_v13  ;;  %v1058_v50 = vmax.f32 %v1040_v33, %v1624_v14 }
  0x8d   : > { %v1637_v39 = vld [vmem:[%s1722_s11 + $0x548] sm:$0x1f]  ;;  %v1638_v40 = vld [vmem:[%s1722_s11 + $0x550] sm:$0x1f]  ;;  %v1639_v45 = vld [vmem:[%s1722_s11 + $0x558] sm:$0x1f]  ;;  %v1059_v51 = vmax.f32 %v1041_v34, %v1625_v15  ;;  %v1060_v52 = vmax.f32 %v1042_v35, %v1626_v16  ;;  %v1061_v57 = vmax.f32 %v1043_v36, %v1627_v21  ;;  %v1062_v58 = vmax.f32 %v1044_v41, %v1628_v22 }
  0x8e   : > { %v1640_v46 = vld [vmem:[%s1722_s11 + $0x560] sm:$0x1f]  ;;  %v1641_v47 = vld [vmem:[%s1722_s11 + $0x568] sm:$0x1f]  ;;  %v1642_v48 = vld [vmem:[%s1722_s11 + $0x570] sm:$0x1f]  ;;  %v1063_v59 = vmax.f32 %v1045_v42, %v1629_v23  ;;  %v1074_v60 = vmax.f32 %v1055_v43, %v1630_v24  ;;  %v1075_v1 = vmax.f32 %v1056_v44, %v1631_v29  ;;  %v1076_v2 = vmax.f32 %v1057_v49, %v1632_v30 }
  0x8f   : > { %v1643_v53 = vld [vmem:[%s1722_s11 + $0x578] sm:$0x1f]  ;;  %v1644_v54 = vld [vmem:[%s1722_s11 + $0x580] sm:$0x1f]  ;;  %v1645_v55 = vld [vmem:[%s1722_s11 + $0x588] sm:$0x1f]  ;;  %v1077_v3 = vmax.f32 %v1058_v50, %v1633_v31  ;;  %v1078_v4 = vmax.f32 %v1059_v51, %v1634_v32  ;;  %v1079_v8 = vmax.f32 %v1060_v52, %v1635_v37  ;;  %v1080_v9 = vmax.f32 %v1061_v57, %v1636_v38 }
  0x90   : > { %v1646_v56 = vld [vmem:[%s1722_s11 + $0x590] sm:$0x1f]  ;;  %v1647_v61 = vld [vmem:[%s1722_s11 + $0x598] sm:$0x1f]  ;;  %v1650_v0 = vld [vmem:[%s1722_s11 + $0x640] sm:$0x1f]  ;;  %v1081_v10 = vmax.f32 %v1062_v58, %v1637_v39  ;;  %v1082_v11 = vmax.f32 %v1063_v59, %v1638_v40  ;;  %v1093_v15 = vmax.f32 %v1074_v60, %v1639_v45  ;;  %v1094_v16 = vmax.f32 %v1075_v1, %v1640_v46 }
  0x91   : > { %v1648_v62 = vld [vmem:[%s1722_s11 + $0x630] sm:$0x1f]  ;;  %v1649_v63 = vld [vmem:[%s1722_s11 + $0x638] sm:$0x1f]  ;;  %v1651_v5 = vld [vmem:[%s1722_s11 + $0x648] sm:$0x1f]  ;;  %v1095_v17 = vmax.f32 %v1076_v2, %v1641_v47  ;;  %v1096_v18 = vmax.f32 %v1077_v3, %v1642_v48  ;;  %v1097_v22 = vmax.f32 %v1078_v4, %v1643_v53  ;;  %v1098_v23 = vmax.f32 %v1079_v8, %v1644_v54 }
  0x92   : > { %v1652_v6 = vld [vmem:[%s1722_s11 + $0x650] sm:$0x1f]  ;;  %v1653_v7 = vld [vmem:[%s1722_s11 + $0x658] sm:$0x1f]  ;;  %v1654_v12 = vld [vmem:[%s1722_s11 + $0x660] sm:$0x1f]  ;;  %v1099_v24 = vmax.f32 %v1080_v9, %v1645_v55  ;;  %v1100_v25 = vmax.f32 %v1081_v10, %v1646_v56  ;;  %v1101_v29 = vmax.f32 %v1082_v11, %v1647_v61  ;;  %v1111_v30 = vmax.f32 %v1093_v15, %v1648_v62 }
  0x93   : > { %v1655_v13 = vld [vmem:[%s1722_s11 + $0x668] sm:$0x1f]  ;;  %v1656_v14 = vld [vmem:[%s1722_s11 + $0x670] sm:$0x1f]  ;;  %v1657_v19 = vld [vmem:[%s1722_s11 + $0x678] sm:$0x1f]  ;;  %v1112_v31 = vmax.f32 %v1094_v16, %v1649_v63  ;;  %v1113_v32 = vmax.f32 %v1095_v17, %v1650_v0  ;;  %v1114_v36 = vmax.f32 %v1096_v18, %v1651_v5  ;;  %v1115_v37 = vmax.f32 %v1097_v22, %v1652_v6 }
  0x94   : > { %v1658_v20 = vld [vmem:[%s1722_s11 + $0x680] sm:$0x1f]  ;;  %v1659_v21 = vld [vmem:[%s1722_s11 + $0x688] sm:$0x1f]  ;;  %v1660_v26 = vld [vmem:[%s1722_s11 + $0x690] sm:$0x1f]  ;;  %v1116_v38 = vmax.f32 %v1098_v23, %v1653_v7  ;;  %v1117_v39 = vmax.f32 %v1099_v24, %v1654_v12  ;;  %v1118_v43 = vmax.f32 %v1100_v25, %v1655_v13  ;;  %v1119_v44 = vmax.f32 %v1101_v29, %v1656_v14 }
  0x95   : > { %v1661_v27 = vld [vmem:[%s1722_s11 + $0x698] sm:$0x1f]  ;;  %v1662_v28 = vld [vmem:[%s1722_s11 + $0x6a0] sm:$0x1f]  ;;  %v1663_v33 = vld [vmem:[%s1722_s11 + $0x6a8] sm:$0x1f]  ;;  %v1130_v45 = vmax.f32 %v1111_v30, %v1657_v19  ;;  %v1131_v46 = vmax.f32 %v1112_v31, %v1658_v20  ;;  %v1132_v50 = vmax.f32 %v1113_v32, %v1659_v21  ;;  %v1133_v51 = vmax.f32 %v1114_v36, %v1660_v26 }
  0x96   : > { %v1664_v34 = vld [vmem:[%s1722_s11 + $0x6b0] sm:$0x1f]  ;;  %v1665_v35 = vld [vmem:[%s1722_s11 + $0x6b8] sm:$0x1f]  ;;  %v1666_v40 = vld [vmem:[%s1722_s11 + $0x6c0] sm:$0x1f]  ;;  %v1134_v52 = vmax.f32 %v1115_v37, %v1661_v27  ;;  %v1135_v53 = vmax.f32 %v1116_v38, %v1662_v28  ;;  %v1136_v57 = vmax.f32 %v1117_v39, %v1663_v33 }
  0x97   : > { %v1667_v41 = vld [vmem:[%s1722_s11 + $0x6c8] sm:$0x1f]  ;;  %v1668_v42 = vld [vmem:[%s1722_s11 + $0x6d0] sm:$0x1f]  ;;  %v1669_v47 = vld [vmem:[%s1722_s11 + $0x6d8] sm:$0x1f]  ;;  %v1137_v58 = vmax.f32 %v1118_v43, %v1664_v34  ;;  %v1138_v59 = vmax.f32 %v1119_v44, %v1665_v35  ;;  %v1149_v60 = vmax.f32 %v1130_v45, %v1666_v40 }
  0x98   : > { %v1670_v48 = vld [vmem:[%s1722_s11 + $0x6e0] sm:$0x1f]  ;;  %v1671_v49 = vld [vmem:[%s1722_s11 + $0x6e8] sm:$0x1f]  ;;  %v1672_v54 = vld [vmem:[%s1722_s11 + $0x6f0] sm:$0x1f]  ;;  %v1150_v61 = vmax.f32 %v1131_v46, %v1667_v41  ;;  %v1151_v62 = vmax.f32 %v1132_v50, %v1668_v42  ;;  %v1152_v63 = vmax.f32 %v1133_v51, %v1669_v47 }
  0x99   : > { %v1673_v55 = vld [vmem:[%s1722_s11 + $0x6f8] sm:$0x1f]  ;;  %v1674_v56 = vld [vmem:[%s1722_s11 + $0x700] sm:$0x1f]  ;;  %v1153_v0 = vmax.f32 %v1134_v52, %v1670_v48  ;;  %v1154_v1 = vmax.f32 %v1135_v53, %v1671_v49  ;;  %v1155_v2 = vmax.f32 %v1136_v57, %v1672_v54  ;;  %v1167_v5 = vrot.slane %v1149_v60, 1 }
  0x9a   : > { %v1156_v3 = vmax.f32 %v1137_v58, %v1673_v55  ;;  %v1157_v4 = vmax.f32 %v1138_v59, %v1674_v56  ;;  %v1168_v6 = vrot.slane %v1150_v61, 1  ;;  %v1169_v7 = vrot.slane %v1151_v62, 1 }
  0x9b   : > { %v1170_v8 = vrot.slane %v1152_v63, 1  ;;  %v1171_v9 = vrot.slane %v1153_v0, 1  ;;  %v1172_v10 = vrot.slane %v1154_v1, 1  ;;  %v1173_v11 = vrot.slane %v1155_v2, 1 }
  0x9c   : > { %v1174_v12 = vrot.slane %v1156_v3, 1  ;;  %v1175_v13 = vrot.slane %v1157_v4, 1  ;;  %v1185_v14 = vmax.f32 %v1149_v60, %v1167_v5  ;;  %v1186_v15 = vmax.f32 %v1150_v61, %v1168_v6 }
  0x9d   : > { %v1187_v16 = vmax.f32 %v1151_v62, %v1169_v7  ;;  %v1188_v17 = vmax.f32 %v1152_v63, %v1170_v8  ;;  %v1189_v18 = vmax.f32 %v1153_v0, %v1171_v9  ;;  %v1190_v19 = vmax.f32 %v1154_v1, %v1172_v10 }
  0x9e   : > { %v1191_v20 = vmax.f32 %v1155_v2, %v1173_v11  ;;  %v1192_v21 = vmax.f32 %v1156_v3, %v1174_v12  ;;  %v1193_v22 = vmax.f32 %v1157_v4, %v1175_v13  ;;  %v1194_v23 = vrot.slane %v1149_v60, 2 }
  0x9f   : > { %v1195_v24 = vrot.slane %v1150_v61, 2  ;;  %v1196_v25 = vrot.slane %v1151_v62, 2  ;;  %v1197_v26 = vrot.slane %v1152_v63, 2  ;;  %v1198_v27 = vrot.slane %v1153_v0, 2 }
  0xa0   : > { %v1199_v28 = vrot.slane %v1154_v1, 2  ;;  %v1200_v29 = vrot.slane %v1155_v2, 2  ;;  %v1201_v30 = vrot.slane %v1156_v3, 2  ;;  %v1202_v31 = vrot.slane %v1157_v4, 2 }
  0xa1   : > { %v1212_v32 = vmax.f32 %v1185_v14, %v1194_v23  ;;  %v1213_v33 = vmax.f32 %v1186_v15, %v1195_v24  ;;  %v1214_v34 = vmax.f32 %v1187_v16, %v1196_v25  ;;  %v1215_v35 = vmax.f32 %v1188_v17, %v1197_v26 }
  0xa2   : > { %v1216_v36 = vmax.f32 %v1189_v18, %v1198_v27  ;;  %v1217_v37 = vmax.f32 %v1190_v19, %v1199_v28  ;;  %v1218_v38 = vmax.f32 %v1191_v20, %v1200_v29  ;;  %v1219_v39 = vmax.f32 %v1192_v21, %v1201_v30 }
  0xa3   : > { %v1220_v40 = vmax.f32 %v1193_v22, %v1202_v31  ;;  %v1230_v41 = vrot.slane %v1212_v32, 1  ;;  %v1231_v42 = vrot.slane %v1213_v33, 1  ;;  %v1232_v43 = vrot.slane %v1214_v34, 1 }
  0xa4   : > { %v1233_v44 = vrot.slane %v1215_v35, 1  ;;  %v1234_v45 = vrot.slane %v1216_v36, 1  ;;  %v1235_v46 = vrot.slane %v1217_v37, 1  ;;  %v1236_v47 = vrot.slane %v1218_v38, 1 }
  0xa5   : > { %v1237_v48 = vrot.slane %v1219_v39, 1  ;;  %v1238_v49 = vrot.slane %v1220_v40, 1  ;;  %v1248_v50 = vsel %vm368_vm0, %v1212_v32, %v1230_v41  ;;  %v1249_v51 = vsel %vm368_vm0, %v1213_v33, %v1231_v42 }
  0xa6   : > { %v1250_v52 = vsel %vm368_vm0, %v1214_v34, %v1232_v43  ;;  %v1251_v53 = vsel %vm368_vm0, %v1215_v35, %v1233_v44  ;;  %v1252_v54 = vsel %vm368_vm0, %v1216_v36, %v1234_v45  ;;  %v1253_v55 = vsel %vm368_vm0, %v1217_v37, %v1235_v46 }
  0xa7   : > { %v1254_v56 = vsel %vm368_vm0, %v1218_v38, %v1236_v47  ;;  %v1255_v57 = vsel %vm368_vm0, %v1219_v39, %v1237_v48  ;;  %v1256_v58 = vsel %vm368_vm0, %v1220_v40, %v1238_v49  ;;  %v1257_v59 = vmax.f32 %v1248_v50, 0.0 }
  0xa8   : > { %v1258_v60 = vmax.f32 %v1249_v51, 0.0  ;;  %v1259_v61 = vmax.f32 %v1250_v52, 0.0  ;;  %v1260_v62 = vmax.f32 %v1251_v53, 0.0  ;;  %v1261_v63 = vmax.f32 %v1252_v54, 0.0 }
  0xa9   : > { %v1262_v0 = vmax.f32 %v1253_v55, 0.0  ;;  %v1263_v1 = vmax.f32 %v1254_v56, 0.0  ;;  %v1264_v2 = vmax.f32 %v1255_v57, 0.0  ;;  %v1265_v3 = vmax.f32 %v1256_v58, 0.0 }
  0xaa   : > { %v1274_v4 = vrot.slane %v1258_v60, 6  ;;  %v1275_v5 = vrot.slane %v1259_v61, 4  ;;  %v1276_v6 = vrot.slane %v1260_v62, 2 }
  0xab   : > { %v1277_v7 = vrot.slane %v1262_v0, 6  ;;  %v1278_v8 = vrot.slane %v1263_v1, 4  ;;  %v1279_v9 = vrot.slane %v1264_v2, 2  ;;  %1677 = vst [vmem:[%s1848_s15 + $0x46] sm:$0x3] %v1265_v3 }
  0xac   : > { %v1280_v10 = vsel %vm401_vm1, %v1257_v59, %v1274_v4  ;;  %v1281_v11 = vsel %vm403_vm2, %v1275_v5, %v1276_v6 }
  0xad   : > { %v1283_v12 = vsel %vm401_vm1, %v1261_v63, %v1277_v7  ;;  %v1282_v13 = vsel %vm405_vm3, %v1280_v10, %v1281_v11  ;;  %v1284_v14 = vsel %vm403_vm2, %v1278_v8, %v1279_v9 }
  0xae   : > { %v1285_v15 = vsel %vm405_vm3, %v1283_v12, %v1284_v14  ;;  %1675 = vst [vmem:[%s1848_s15 + $0x36] sm:$0xff] %v1282_v13 }
  0xaf   : > { %1676 = vst [vmem:[%s1848_s15 + $0x3e] sm:$0xff] %v1285_v15 }
  0xb0 PF: > { %s11_s6 = sadd.s32 1, %s1696_s6  }
  0xb1   : > { %p8_p4 = scmp.ge.s32.totalorder %s11_s6, 4  }
  0xb3   :  { %10 = sbr.rel (!%p8_p4) target bundleno = 1 (0x1), region = 81 }

// kernel: reduction_b_forward.7
= control target key start
LH: loop header
LB: loop body
LE: loop exit
PB: predicated region body
PF: predicated region fallthrough
CT: control target
= control target key end

     0   :  { %s4285_s15 = smov 0   ;;  %s4287_s16 = smov 0   ;;  %s5947_s0 = inlined_call_operand.vmem [shape: bf16[256,1152], index: 0, kind: input, shape index: {}]   ;;  %s5948_s1 = inlined_call_operand.vmem [shape: bf16[1152,768], index: 1, kind: input, shape index: {}]   ;;  %s5949_s2 = inlined_call_operand.vmem [shape: f32[1,768], index: 2, kind: input, shape index: {}]   ;;  %s5950_s3 = inlined_call_operand.vmem [shape: f32[1,768], index: 3, kind: input, shape index: {}]   ;;  %s5951_s4 = inlined_call_operand.vmem [shape: f32[256,768], index: 4, kind: output, shape index: {}]  }
   0x1   :  { %s4289_s17 = smov 0   ;;  %s4291_s18 = smov 0  }
   0x2   :  { %s4293_s19 = smov 0   ;;  %s4295_s20 = smov 0  }
   0x3   :  { %s4297_s21 = smov 0  }
   0x4 LB: > { %s23_s22 = sadd.s32 1, %s4249_s19  ;;  %s26_s23 = sadd.s32 1, %s4253_s20  ;;  %s4257_s21 = sphi %s4297_s21, %s14_s21   ;;  %s4253_s20 = sphi %s4295_s20, %s5965_s20   ;;  %s4249_s19 = sphi %s4293_s19, %s5964_s19   ;;  %s4245_s18 = sphi %s4291_s18, %s5963_s18   ;;  %s4241_s17 = sphi %s4289_s17, %s5962_s17   ;;  %s4237_s16 = sphi %s4287_s16, %s5961_s16   ;;  %s4233_s15 = sphi %s4285_s15, %s5960_s15  }
   0x5   : > { %p24_p0 = scmp.ge.s32.totalorder %s23_s22, 3  ;;  %p42_p1 = scmp.ne.s32.totalorder %s4237_s16, %s4233_s15 }
   0x6   : > { %p43_p2 = scmp.eq.s32.totalorder %s4257_s21, 0  ;;  %s35_s27 = sadd.s32 1, %s4237_s16 }
   0x7   : > { %s5967_s22 = smov (%p24_p0, %s23_s22), 0  ;;  %s5969_s23 = smov (!%p24_p0, %s26_s23), %s4253_s20 }
   0x8   : > { %p44_p3 = por %p43_p2, %p42_p1  ;;  %p28_p4 = scmp.ge.s32.totalorder %s5969_s23, 2 }
   0x9   : > { %s31_s24 = ssub.s32 %s4249_s19, %s5967_s22  ;;  %p3241_p6 = scmp.ge.s32.totalorder %s4257_s21, 6 }
   0xa   : > { %s5971_s23 = smov (%p28_p4, %s5969_s23), 0 }
   0xb   : > { %s30_s25 = ssub.s32 %s4253_s20, %s5971_s23  ;;  %168 = sbr.rel (%p3241_p6) target bundleno = 57 (0x39), region = 24 }
   0xc   : > { %s32_s26 = sor.u32 %s31_s24, %s30_s25 }
   0xd   : > { %p33_p5 = scmp.eq.s32.totalorder %s32_s26, 0 }
   0xf   : > { %s4336_s28 = scalar_select %p33_p5, %s4237_s16, %s35_s27  }
  0x10   : > { %171 = sbr.rel (!%p44_p3) target bundleno = 57 (0x39), region = 28  ;;  %s173_s29 = sand.u32 (%p44_p3), 1, %s4237_s16  }
  0x11   : > { %s177_s30 = smul.u32 (%p44_p3), 3, %s4249_s19 }
  0x12   : > { %s4141_s5 = smul.u32 (%p44_p3), 192, %s173_s29 }
  0x13   : > { %s4142_s6 = smul.u32 (%p44_p3), 144, %s4253_s20 }
  0x14   : > { %s4350_s12 = scalar_lea.vmem (%p44_p3), [#allocation2], %s4141_s5 }
  0x15   : > { %s179_s7 = sadd.s32 %s4142_s6, %s177_s30 }
  0x16   : > { %s3244_s8 = sshll.u32 %s179_s7, 2 }
  0x17   : > { %s4345_s11 = scalar_lea.vmem %s5947_s0, %s3244_s8 }
  0x18   : > { %v196_v0 = vld [vmem:[%s4345_s11] sm:$0xff]  ;;  %v200_v2 = vld [vmem:[%s4345_s11 + $0x48] sm:$0xff]  ;;  %v204_v4 = vld [vmem:[%s4345_s11 + $0x90] sm:$0xff] }
  0x19   : > { %v198_v1 = vld [vmem:[%s4345_s11 + $0x24] sm:$0xff]  ;;  %197 = vst [vmem:[%s4350_s12] sm:$0xff] %v196_v0  ;;  %v202_v3 = vld [vmem:[%s4345_s11 + $0x6c] sm:$0xff]  ;;  %v206_v5 = vld [vmem:[%s4345_s11 + $0xb4] sm:$0xff] }
  0x1a   : > { %199 = vst [vmem:[%s4350_s12 + $0xc] sm:$0xff] %v198_v1  ;;  %v208_v6 = vld [vmem:[%s4345_s11 + $0xd8] sm:$0xff]  ;;  %v212_v8 = vld [vmem:[%s4345_s11 + $0x120] sm:$0xff]  ;;  %v216_v10 = vld [vmem:[%s4345_s11 + $0x168] sm:$0xff] }
  0x1b   : > { %201 = vst [vmem:[%s4350_s12 + $0x18] sm:$0xff] %v200_v2  ;;  %v210_v7 = vld [vmem:[%s4345_s11 + $0xfc] sm:$0xff]  ;;  %v214_v9 = vld [vmem:[%s4345_s11 + $0x144] sm:$0xff]  ;;  %v218_v11 = vld [vmem:[%s4345_s11 + $0x18c] sm:$0xff] }
  0x1c   : > { %203 = vst [vmem:[%s4350_s12 + $0x24] sm:$0xff] %v202_v3  ;;  %v220_v12 = vld [vmem:[%s4345_s11 + $0x1b0] sm:$0xff]  ;;  %v224_v14 = vld [vmem:[%s4345_s11 + $0x1f8] sm:$0xff]  ;;  %v3245_v16 = vld [vmem:[%s4345_s11 + $0x8] sm:$0xf] }
  0x1d   : > { %205 = vst [vmem:[%s4350_s12 + $0x30] sm:$0xff] %v204_v4  ;;  %v222_v13 = vld [vmem:[%s4345_s11 + $0x1d4] sm:$0xff]  ;;  %v226_v15 = vld [vmem:[%s4345_s11 + $0x21c] sm:$0xff]  ;;  %v3247_v17 = vld [vmem:[%s4345_s11 + $0x2c] sm:$0xf] }
  0x1e   : > { %207 = vst [vmem:[%s4350_s12 + $0x3c] sm:$0xff] %v206_v5  ;;  %v3249_v18 = vld [vmem:[%s4345_s11 + $0x50] sm:$0xf]  ;;  %v3251_v19 = vld [vmem:[%s4345_s11 + $0x74] sm:$0xf] }
  0x1f   : > { %209 = vst [vmem:[%s4350_s12 + $0x48] sm:$0xff] %v208_v6  ;;  %v3253_v20 = vld [vmem:[%s4345_s11 + $0x98] sm:$0xf]  ;;  %v3255_v21 = vld [vmem:[%s4345_s11 + $0xbc] sm:$0xf] }
  0x20   : > { %211 = vst [vmem:[%s4350_s12 + $0x54] sm:$0xff] %v210_v7  ;;  %v3257_v22 = vld [vmem:[%s4345_s11 + $0xe0] sm:$0xf]  ;;  %v3259_v23 = vld [vmem:[%s4345_s11 + $0x104] sm:$0xf] }
  0x21   : > { %213 = vst [vmem:[%s4350_s12 + $0x60] sm:$0xff] %v212_v8  ;;  %v3261_v24 = vld [vmem:[%s4345_s11 + $0x128] sm:$0xf]  ;;  %v3263_v25 = vld [vmem:[%s4345_s11 + $0x14c] sm:$0xf] }
  0x22   : > { %215 = vst [vmem:[%s4350_s12 + $0x6c] sm:$0xff] %v214_v9  ;;  %v3265_v26 = vld [vmem:[%s4345_s11 + $0x170] sm:$0xf]  ;;  %v3267_v27 = vld [vmem:[%s4345_s11 + $0x194] sm:$0xf] }
  0x23   : > { %217 = vst [vmem:[%s4350_s12 + $0x78] sm:$0xff] %v216_v10  ;;  %v3269_v28 = vld [vmem:[%s4345_s11 + $0x1b8] sm:$0xf]  ;;  %v3271_v29 = vld [vmem:[%s4345_s11 + $0x1dc] sm:$0xf] }
  0x24   : > { %219 = vst [vmem:[%s4350_s12 + $0x84] sm:$0xff] %v218_v11  ;;  %v3273_v30 = vld [vmem:[%s4345_s11 + $0x200] sm:$0xf]  ;;  %v3275_v31 = vld [vmem:[%s4345_s11 + $0x224] sm:$0xf] }
  0x25   : > { %221 = vst [vmem:[%s4350_s12 + $0x90] sm:$0xff] %v220_v12 }
  0x26   : > { %223 = vst [vmem:[%s4350_s12 + $0x9c] sm:$0xff] %v222_v13 }
  0x27   : > { %225 = vst [vmem:[%s4350_s12 + $0xa8] sm:$0xff] %v224_v14 }
  0x28   : > { %227 = vst [vmem:[%s4350_s12 + $0xb4] sm:$0xff] %v226_v15 }
  0x29   : > { %3246 = vst [vmem:[%s4350_s12 + $0x8] sm:$0xf] %v3245_v16 }
  0x2a   : > { %3248 = vst [vmem:[%s4350_s12 + $0x14] sm:$0xf] %v3247_v17 }
  0x2b   : > { %3250 = vst [vmem:[%s4350_s12 + $0x20] sm:$0xf] %v3249_v18 }
  0x2c   : > { %3252 = vst [vmem:[%s4350_s12 + $0x2c] sm:$0xf] %v3251_v19 }
  0x2d   : > { %3254 = vst [vmem:[%s4350_s12 + $0x38] sm:$0xf] %v3253_v20 }
  0x2e   : > { %3256 = vst [vmem:[%s4350_s12 + $0x44] sm:$0xf] %v3255_v21 }
  0x2f   : > { %3258 = vst [vmem:[%s4350_s12 + $0x50] sm:$0xf] %v3257_v22 }
  0x30   : > { %3260 = vst [vmem:[%s4350_s12 + $0x5c] sm:$0xf] %v3259_v23 }
  0x31   : > { %3262 = vst [vmem:[%s4350_s12 + $0x68] sm:$0xf] %v3261_v24 }
  0x32   : > { %3264 = vst [vmem:[%s4350_s12 + $0x74] sm:$0xf] %v3263_v25 }
  0x33   : > { %3266 = vst [vmem:[%s4350_s12 + $0x80] sm:$0xf] %v3265_v26 }
  0x34   : > { %3268 = vst [vmem:[%s4350_s12 + $0x8c] sm:$0xf] %v3267_v27 }
  0x35   : > { %3270 = vst [vmem:[%s4350_s12 + $0x98] sm:$0xf] %v3269_v28 }
  0x36   : > { %3272 = vst [vmem:[%s4350_s12 + $0xa4] sm:$0xf] %v3271_v29 }
  0x37   : > { %3274 = vst [vmem:[%s4350_s12 + $0xb0] sm:$0xf] %v3273_v30 }
  0x38   : > { %3276 = vst [vmem:[%s4350_s12 + $0xbc] sm:$0xf] %v3275_v31 }
  0x39 PF: > { %p3277_p7 = scmp.ge.s32.totalorder %s4257_s21, 1  ;;  %p282_p8 = scmp.lt.s32.totalorder %s4257_s21, 7 }
  0x3b   : > { %p283_p9 = pnand %p3277_p7, %p282_p8 }
  0x3d   : > { %286 = sbr.rel (%p283_p9) target bundleno = 1025 (0x401), region = 58 }
  0x42   : > { %s289_s13 = sand.u32 1, %s4233_s15   ;;  %s323_s14 = smul.u32 48, %s4241_s17 }
  0x43   : > { %s4143_s24 = smul.u32 192, %s289_s13  ;;  %s3279_s25 = sshll.u32 %s4245_s18, 4 }
  0x44   : > { %p324_p10 = scmp.lt.s32.totalorder %s323_s14, 143  ;;  %p331_p11 = scmp.lt.s32.totalorder %s3279_s25, 31 }
  0x45   : > { %s4428_s15 = scalar_lea.vmem [#allocation2], %s4143_s24  ;;  %p3281_p12 = scmp.ne.s32.totalorder %s4241_s17, 0 }
  0x46   : > { %s5973_s14 = smov (!%p324_p10, %s323_s14), 143  ;;  %s5975_s25 = smov (!%p331_p11, %s3279_s25), 31 }
  0x47   : > { %s4144_s26 = smul.u32 24, %s5973_s14 }
  0x48   : > { %s4145_s27 = smul.u32 48, %s5975_s25 }
  0x49   : > { %s4421_s5 = scalar_lea.vmem %s5948_s1, %s4144_s26  ;;  %340 = sbr.rel (%p3281_p12) target bundleno = 175 (0xaf), region = 66 }
  0x4a   : > { %s4426_s8 = scalar_lea.vmem %s5951_s4, %s4145_s27 }
  0x4e   : > { %v4259_v32 = vmov 0.0  }
  0x4f   : > { %341 = vst [vmem:[%s4426_s8] sm:$0xff] %v4259_v32 }
  0x50   : > { %342 = vst [vmem:[%s4426_s8 + $0x8] sm:$0xff] %v4259_v32 }
  0x51   : > { %343 = vst [vmem:[%s4426_s8 + $0x10] sm:$0xff] %v4259_v32 }
  0x52   : > { %344 = vst [vmem:[%s4426_s8 + $0x18] sm:$0xff] %v4259_v32 }
  0x53   : > { %345 = vst [vmem:[%s4426_s8 + $0x20] sm:$0xff] %v4259_v32 }
  0x54   : > { %346 = vst [vmem:[%s4426_s8 + $0x28] sm:$0xff] %v4259_v32 }
  0x55   : > { %347 = vst [vmem:[%s4426_s8 + $0x30] sm:$0xff] %v4259_v32 }
  0x56   : > { %348 = vst [vmem:[%s4426_s8 + $0x38] sm:$0xff] %v4259_v32 }
  0x57   : > { %349 = vst [vmem:[%s4426_s8 + $0x40] sm:$0xff] %v4259_v32 }
  0x58   : > { %350 = vst [vmem:[%s4426_s8 + $0x48] sm:$0xff] %v4259_v32 }
  0x59   : > { %351 = vst [vmem:[%s4426_s8 + $0x50] sm:$0xff] %v4259_v32 }
  0x5a   : > { %352 = vst [vmem:[%s4426_s8 + $0x58] sm:$0xff] %v4259_v32 }
  0x5b   : > { %353 = vst [vmem:[%s4426_s8 + $0x60] sm:$0xff] %v4259_v32 }
  0x5c   : > { %354 = vst [vmem:[%s4426_s8 + $0x68] sm:$0xff] %v4259_v32 }
  0x5d   : > { %355 = vst [vmem:[%s4426_s8 + $0x70] sm:$0xff] %v4259_v32 }
  0x5e   : > { %356 = vst [vmem:[%s4426_s8 + $0x78] sm:$0xff] %v4259_v32 }
  0x5f   : > { %357 = vst [vmem:[%s4426_s8 + $0x80] sm:$0xff] %v4259_v32 }
  0x60   : > { %358 = vst [vmem:[%s4426_s8 + $0x88] sm:$0xff] %v4259_v32 }
  0x61   : > { %359 = vst [vmem:[%s4426_s8 + $0x90] sm:$0xff] %v4259_v32 }
  0x62   : > { %360 = vst [vmem:[%s4426_s8 + $0x98] sm:$0xff] %v4259_v32 }
  0x63   : > { %361 = vst [vmem:[%s4426_s8 + $0xa0] sm:$0xff] %v4259_v32 }
  0x64   : > { %362 = vst [vmem:[%s4426_s8 + $0xa8] sm:$0xff] %v4259_v32 }
  0x65   : > { %363 = vst [vmem:[%s4426_s8 + $0xb0] sm:$0xff] %v4259_v32 }
  0x66   : > { %364 = vst [vmem:[%s4426_s8 + $0xb8] sm:$0xff] %v4259_v32 }
  0x67   : > { %365 = vst [vmem:[%s4426_s8 + $0xc0] sm:$0xff] %v4259_v32 }
  0x68   : > { %366 = vst [vmem:[%s4426_s8 + $0xc8] sm:$0xff] %v4259_v32 }
  0x69   : > { %367 = vst [vmem:[%s4426_s8 + $0xd0] sm:$0xff] %v4259_v32 }
  0x6a   : > { %368 = vst [vmem:[%s4426_s8 + $0xd8] sm:$0xff] %v4259_v32 }
  0x6b   : > { %369 = vst [vmem:[%s4426_s8 + $0xe0] sm:$0xff] %v4259_v32 }
  0x6c   : > { %370 = vst [vmem:[%s4426_s8 + $0xe8] sm:$0xff] %v4259_v32 }
  0x6d   : > { %371 = vst [vmem:[%s4426_s8 + $0xf0] sm:$0xff] %v4259_v32 }
  0x6e   : > { %372 = vst [vmem:[%s4426_s8 + $0xf8] sm:$0xff] %v4259_v32 }
  0x6f   : > { %373 = vst [vmem:[%s4426_s8 + $0x100] sm:$0xff] %v4259_v32 }
  0x70   : > { %374 = vst [vmem:[%s4426_s8 + $0x108] sm:$0xff] %v4259_v32 }
  0x71   : > { %375 = vst [vmem:[%s4426_s8 + $0x110] sm:$0xff] %v4259_v32 }
  0x72   : > { %376 = vst [vmem:[%s4426_s8 + $0x118] sm:$0xff] %v4259_v32 }
  0x73   : > { %377 = vst [vmem:[%s4426_s8 + $0x120] sm:$0xff] %v4259_v32 }
  0x74   : > { %378 = vst [vmem:[%s4426_s8 + $0x128] sm:$0xff] %v4259_v32 }
  0x75   : > { %379 = vst [vmem:[%s4426_s8 + $0x130] sm:$0xff] %v4259_v32 }
  0x76   : > { %380 = vst [vmem:[%s4426_s8 + $0x138] sm:$0xff] %v4259_v32 }
  0x77   : > { %381 = vst [vmem:[%s4426_s8 + $0x140] sm:$0xff] %v4259_v32 }
  0x78   : > { %382 = vst [vmem:[%s4426_s8 + $0x148] sm:$0xff] %v4259_v32 }
  0x79   : > { %383 = vst [vmem:[%s4426_s8 + $0x150] sm:$0xff] %v4259_v32 }
  0x7a   : > { %384 = vst [vmem:[%s4426_s8 + $0x158] sm:$0xff] %v4259_v32 }
  0x7b   : > { %385 = vst [vmem:[%s4426_s8 + $0x160] sm:$0xff] %v4259_v32 }
  0x7c   : > { %386 = vst [vmem:[%s4426_s8 + $0x168] sm:$0xff] %v4259_v32 }
  0x7d   : > { %387 = vst [vmem:[%s4426_s8 + $0x170] sm:$0xff] %v4259_v32 }
  0x7e   : > { %388 = vst [vmem:[%s4426_s8 + $0x178] sm:$0xff] %v4259_v32 }
  0x7f   : > { %389 = vst [vmem:[%s4426_s8 + $0x180] sm:$0xff] %v4259_v32 }
  0x80   : > { %390 = vst [vmem:[%s4426_s8 + $0x188] sm:$0xff] %v4259_v32 }
  0x81   : > { %391 = vst [vmem:[%s4426_s8 + $0x190] sm:$0xff] %v4259_v32 }
  0x82   : > { %392 = vst [vmem:[%s4426_s8 + $0x198] sm:$0xff] %v4259_v32 }
  0x83   : > { %393 = vst [vmem:[%s4426_s8 + $0x1a0] sm:$0xff] %v4259_v32 }
  0x84   : > { %394 = vst [vmem:[%s4426_s8 + $0x1a8] sm:$0xff] %v4259_v32 }
  0x85   : > { %395 = vst [vmem:[%s4426_s8 + $0x1b0] sm:$0xff] %v4259_v32 }
  0x86   : > { %396 = vst [vmem:[%s4426_s8 + $0x1b8] sm:$0xff] %v4259_v32 }
  0x87   : > { %397 = vst [vmem:[%s4426_s8 + $0x1c0] sm:$0xff] %v4259_v32 }
  0x88   : > { %398 = vst [vmem:[%s4426_s8 + $0x1c8] sm:$0xff] %v4259_v32 }
  0x89   : > { %399 = vst [vmem:[%s4426_s8 + $0x1d0] sm:$0xff] %v4259_v32 }
  0x8a   : > { %400 = vst [vmem:[%s4426_s8 + $0x1d8] sm:$0xff] %v4259_v32 }
  0x8b   : > { %401 = vst [vmem:[%s4426_s8 + $0x1e0] sm:$0xff] %v4259_v32 }
  0x8c   : > { %402 = vst [vmem:[%s4426_s8 + $0x1e8] sm:$0xff] %v4259_v32 }
  0x8d   : > { %403 = vst [vmem:[%s4426_s8 + $0x1f0] sm:$0xff] %v4259_v32 }
  0x8e   : > { %404 = vst [vmem:[%s4426_s8 + $0x1f8] sm:$0xff] %v4259_v32 }
  0x8f   : > { %405 = vst [vmem:[%s4426_s8 + $0x200] sm:$0xff] %v4259_v32 }
  0x90   : > { %406 = vst [vmem:[%s4426_s8 + $0x208] sm:$0xff] %v4259_v32 }
  0x91   : > { %407 = vst [vmem:[%s4426_s8 + $0x210] sm:$0xff] %v4259_v32 }
  0x92   : > { %408 = vst [vmem:[%s4426_s8 + $0x218] sm:$0xff] %v4259_v32 }
  0x93   : > { %409 = vst [vmem:[%s4426_s8 + $0x220] sm:$0xff] %v4259_v32 }
  0x94   : > { %410 = vst [vmem:[%s4426_s8 + $0x228] sm:$0xff] %v4259_v32 }
  0x95   : > { %411 = vst [vmem:[%s4426_s8 + $0x230] sm:$0xff] %v4259_v32 }
  0x96   : > { %412 = vst [vmem:[%s4426_s8 + $0x238] sm:$0xff] %v4259_v32 }
  0x97   : > { %413 = vst [vmem:[%s4426_s8 + $0x240] sm:$0xff] %v4259_v32 }
  0x98   : > { %414 = vst [vmem:[%s4426_s8 + $0x248] sm:$0xff] %v4259_v32 }
  0x99   : > { %415 = vst [vmem:[%s4426_s8 + $0x250] sm:$0xff] %v4259_v32 }
  0x9a   : > { %416 = vst [vmem:[%s4426_s8 + $0x258] sm:$0xff] %v4259_v32 }
  0x9b   : > { %417 = vst [vmem:[%s4426_s8 + $0x260] sm:$0xff] %v4259_v32 }
  0x9c   : > { %418 = vst [vmem:[%s4426_s8 + $0x268] sm:$0xff] %v4259_v32 }
  0x9d   : > { %419 = vst [vmem:[%s4426_s8 + $0x270] sm:$0xff] %v4259_v32 }
  0x9e   : > { %420 = vst [vmem:[%s4426_s8 + $0x278] sm:$0xff] %v4259_v32 }
  0x9f   : > { %421 = vst [vmem:[%s4426_s8 + $0x280] sm:$0xff] %v4259_v32 }
  0xa0   : > { %422 = vst [vmem:[%s4426_s8 + $0x288] sm:$0xff] %v4259_v32 }
  0xa1   : > { %423 = vst [vmem:[%s4426_s8 + $0x290] sm:$0xff] %v4259_v32 }
  0xa2   : > { %424 = vst [vmem:[%s4426_s8 + $0x298] sm:$0xff] %v4259_v32 }
  0xa3   : > { %425 = vst [vmem:[%s4426_s8 + $0x2a0] sm:$0xff] %v4259_v32 }
  0xa4   : > { %426 = vst [vmem:[%s4426_s8 + $0x2a8] sm:$0xff] %v4259_v32 }
  0xa5   : > { %427 = vst [vmem:[%s4426_s8 + $0x2b0] sm:$0xff] %v4259_v32 }
  0xa6   : > { %428 = vst [vmem:[%s4426_s8 + $0x2b8] sm:$0xff] %v4259_v32 }
  0xa7   : > { %429 = vst [vmem:[%s4426_s8 + $0x2c0] sm:$0xff] %v4259_v32 }
  0xa8   : > { %430 = vst [vmem:[%s4426_s8 + $0x2c8] sm:$0xff] %v4259_v32 }
  0xa9   : > { %431 = vst [vmem:[%s4426_s8 + $0x2d0] sm:$0xff] %v4259_v32 }
  0xaa   : > { %432 = vst [vmem:[%s4426_s8 + $0x2d8] sm:$0xff] %v4259_v32 }
  0xab   : > { %433 = vst [vmem:[%s4426_s8 + $0x2e0] sm:$0xff] %v4259_v32 }
  0xac   : > { %434 = vst [vmem:[%s4426_s8 + $0x2e8] sm:$0xff] %v4259_v32 }
  0xad   : > { %435 = vst [vmem:[%s4426_s8 + $0x2f0] sm:$0xff] %v4259_v32 }
  0xae   : > { %436 = vst [vmem:[%s4426_s8 + $0x2f8] sm:$0xff] %v4259_v32 }
  0xaf PF: > { %v3548_v33 = vld [vmem:[%s4421_s5 + $0x150] sm:$0xf]  ;;  %v4026_v34 = vld [vmem:[%s4421_s5 + $0x164] sm:$0xf0]  ;;  %v3524_v38 = vld [vmem:[%s4421_s5 + $0x120] sm:$0xf] }
  0xb0   : > { %v3740_v35 = vld [vmem:[%s4421_s5 + $0x2d0] sm:$0xf]  ;;  %v3549_v36 = vor.u32 %v4026_v34, %v3548_v33  ;;  %v4074_v37 = vld [vmem:[%s4421_s5 + $0x2e4] sm:$0xf0]  ;;  %v4020_v39 = vld [vmem:[%s4421_s5 + $0x134] sm:$0xf0] }
  0xb1   : > { %v3741_v40 = vor.u32 %v4074_v37, %v3740_v35  ;;  %v3716_v41 = vld [vmem:[%s4421_s5 + $0x2a0] sm:$0xf]  ;;  %v4068_v42 = vld [vmem:[%s4421_s5 + $0x2b4] sm:$0xf0]  ;;  %v3525_v43 = vor.u32 %v4020_v39, %v3524_v38  ;;  %v3500_v45 = vld [vmem:[%s4421_s5 + $0xf0] sm:$0xf] }
  0xb2   : > { %1557 = vmatpush.bf16.msra.mxu0 %v3549_v36  ;;  %4125 = vmatpush.bf16.msra.mxu2 %v3549_v36  ;;  %v3717_v44 = vor.u32 %v4068_v42, %v3716_v41  ;;  %v4014_v46 = vld [vmem:[%s4421_s5 + $0x104] sm:$0xf0]  ;;  %v3692_v47 = vld [vmem:[%s4421_s5 + $0x270] sm:$0xf]  ;;  %v3476_v51 = vld [vmem:[%s4421_s5 + $0xc0] sm:$0xf] }
  0xb3   : > { %1606 = vmatpush.bf16.msra.mxu1 %v3741_v40  ;;  %4133 = vmatpush.bf16.msra.mxu3 %v3741_v40  ;;  %v4062_v48 = vld [vmem:[%s4421_s5 + $0x284] sm:$0xf0]  ;;  %v3501_v49 = vor.u32 %v4014_v46, %v3500_v45  ;;  %v4008_v52 = vld [vmem:[%s4421_s5 + $0xd4] sm:$0xf0]  ;;  %v3668_v53 = vld [vmem:[%s4421_s5 + $0x240] sm:$0xf] }
  0xb4   : > { %v3693_v50 = vor.u32 %v4062_v48, %v3692_v47  ;;  %v4056_v54 = vld [vmem:[%s4421_s5 + $0x254] sm:$0xf0]  ;;  %v3477_v55 = vor.u32 %v4008_v52, %v3476_v51  ;;  %v3452_v57 = vld [vmem:[%s4421_s5 + $0x90] sm:$0xf]  ;;  %v4002_v58 = vld [vmem:[%s4421_s5 + $0xa4] sm:$0xf0] }
  0xb5   : > { %v3669_v56 = vor.u32 %v4056_v54, %v3668_v53  ;;  %v3644_v59 = vld [vmem:[%s4421_s5 + $0x210] sm:$0xf]  ;;  %v4050_v60 = vld [vmem:[%s4421_s5 + $0x224] sm:$0xf0]  ;;  %v3453_v61 = vor.u32 %v4002_v58, %v3452_v57  ;;  %v3428_v63 = vld [vmem:[%s4421_s5 + $0x60] sm:$0xf] }
  0xb6   : > { %1558 = vmatpush.bf16.msra.mxu0 %v3525_v43  ;;  %4126 = vmatpush.bf16.msra.mxu2 %v3525_v43  ;;  %v3645_v62 = vor.u32 %v4050_v60, %v3644_v59  ;;  %v3996_v0 = vld [vmem:[%s4421_s5 + $0x74] sm:$0xf0]  ;;  %v3620_v1 = vld [vmem:[%s4421_s5 + $0x1e0] sm:$0xf]  ;;  %v3404_v5 = vld [vmem:[%s4421_s5 + $0x30] sm:$0xf] }
  0xb7   : > { %1607 = vmatpush.bf16.msra.mxu1 %v3717_v44  ;;  %4134 = vmatpush.bf16.msra.mxu3 %v3717_v44  ;;  %v4044_v2 = vld [vmem:[%s4421_s5 + $0x1f4] sm:$0xf0]  ;;  %v3429_v3 = vor.u32 %v3996_v0, %v3428_v63  ;;  %v3990_v6 = vld [vmem:[%s4421_s5 + $0x44] sm:$0xf0]  ;;  %v3596_v7 = vld [vmem:[%s4421_s5 + $0x1b0] sm:$0xf] }
  0xb8   : > { %v3621_v4 = vor.u32 %v4044_v2, %v3620_v1  ;;  %v4038_v8 = vld [vmem:[%s4421_s5 + $0x1c4] sm:$0xf0]  ;;  %v3405_v9 = vor.u32 %v3990_v6, %v3404_v5  ;;  %v3380_v10 = vld [vmem:[%s4421_s5] sm:$0xf]  ;;  %v3984_v12 = vld [vmem:[%s4421_s5 + $0x14] sm:$0xf0] }
  0xb9   : > { %v3597_v11 = vor.u32 %v4038_v8, %v3596_v7  ;;  %v3572_v13 = vld [vmem:[%s4421_s5 + $0x180] sm:$0xf]  ;;  %v4032_v14 = vld [vmem:[%s4421_s5 + $0x194] sm:$0xf0]  ;;  %v3958_v16 = vld [vmem:[%s4428_s15 + $0x8] sm:$0xf0]  ;;  %v3381_v23 = vor.u32 %v3984_v12, %v3380_v10 }
  0xba   : > { %1559 = vmatpush.bf16.msra.mxu0 %v3501_v49  ;;  %4127 = vmatpush.bf16.msra.mxu2 %v3501_v49  ;;  %v3284_v15 = vld [vmem:[%s4428_s15] sm:$0xf]  ;;  %v3970_v18 = vld [vmem:[%s4428_s15 + $0x68] sm:$0xf0]  ;;  %v4023_v19 = vld [vmem:[%s4421_s5 + $0x154] sm:$0xf]  ;;  %v3573_v27 = vor.u32 %v4032_v14, %v3572_v13 }
  0xbb   : > { %1608 = vmatpush.bf16.msra.mxu1 %v3693_v50  ;;  %4135 = vmatpush.bf16.msra.mxu3 %v3693_v50  ;;  %v3332_v17 = vld [vmem:[%s4428_s15 + $0x60] sm:$0xf]  ;;  %v3550_v20 = vld [vmem:[%s4421_s5 + $0x168] sm:$0xf0]  ;;  %v3932_v21 = vld [vmem:[%s4421_s5 + $0x450] sm:$0xf]  ;;  %v4672_v36 = vor.u32 %v3958_v16, %v3284_v15 }
  0xbc   : > { %v4122_v22 = vld [vmem:[%s4421_s5 + $0x464] sm:$0xf0]  ;;  %v3957_v24 = vld [vmem:[%s4428_s15 + $0x4] sm:$0xf]  ;;  %v3286_v25 = vld [vmem:[%s4428_s15 + $0xc] sm:$0xf0]  ;;  %v3553_v31 = vor.u32 %v4023_v19, %v3550_v20  ;;  %v4674_v37 = vor.u32 %v3970_v18, %v3332_v17 }
  0xbd   : > { %v3969_v26 = vld [vmem:[%s4428_s15 + $0x64] sm:$0xf]  ;;  %v3334_v28 = vld [vmem:[%s4428_s15 + $0x6c] sm:$0xf0]  ;;  %v4071_v29 = vld [vmem:[%s4421_s5 + $0x2d4] sm:$0xf]  ;;  %v3933_v32 = vor.u32 %v4122_v22, %v3932_v21  ;;  %v4679_v41 = vor.u32 %v3957_v24, %v3286_v25 }
  0xbe   : > { %1560 = vmatpush.bf16.msra.mxu0 %v3477_v55  ;;  %4128 = vmatpush.bf16.msra.mxu2 %v3477_v55  ;;  %v3742_v30 = vld [vmem:[%s4421_s5 + $0x2e8] sm:$0xf0]  ;;  %v4017_v33 = vld [vmem:[%s4421_s5 + $0x124] sm:$0xf]  ;;  %v4119_v34 = vld [vmem:[%s4421_s5 + $0x454] sm:$0xf]  ;;  %v4681_v42 = vor.u32 %v3969_v26, %v3334_v28 }
  0xbf   : > { %1609 = vmatpush.bf16.msra.mxu1 %v3669_v56  ;;  %4136 = vmatpush.bf16.msra.mxu3 %v3669_v56  ;;  %v3934_v35 = vld [vmem:[%s4421_s5 + $0x468] sm:$0xf0]  ;;  %5956 = vst [vmem:[#allocation3_spill] sm:$0xff] %v4672_v36  ;;  %v3526_v38 = vld [vmem:[%s4421_s5 + $0x138] sm:$0xf0]  ;;  %v3745_v43 = vor.u32 %v4071_v29, %v3742_v30  ;;  %p3954_p13 = scmp.ne.s32.totalorder %s4241_s17, 2 }
  0xc0   : > { %v3908_v39 = vld [vmem:[%s4421_s5 + $0x420] sm:$0xf]  ;;  %v4116_v40 = vld [vmem:[%s4421_s5 + $0x434] sm:$0xf0]  ;;  %v3937_v44 = vor.u32 %v4119_v34, %v3934_v35  ;;  %v4065_v45 = vld [vmem:[%s4421_s5 + $0x2a4] sm:$0xf]  ;;  %v3529_v47 = vor.u32 %v4017_v33, %v3526_v38 }
  0xc1   : > { %v3718_v46 = vld [vmem:[%s4421_s5 + $0x2b8] sm:$0xf0]  ;;  %v3909_v48 = vor.u32 %v4116_v40, %v3908_v39  ;;  %v4011_v49 = vld [vmem:[%s4421_s5 + $0xf4] sm:$0xf]  ;;  %v4113_v50 = vld [vmem:[%s4421_s5 + $0x424] sm:$0xf] }
  0xc2   : > { %1561 = vmatpush.bf16.msra.mxu0 %v3453_v61  ;;  %4129 = vmatpush.bf16.msra.mxu2 %v3453_v61  ;;  %v3910_v51 = vld [vmem:[%s4421_s5 + $0x438] sm:$0xf0]  ;;  %v3502_v52 = vld [vmem:[%s4421_s5 + $0x108] sm:$0xf0]  ;;  %v3884_v53 = vld [vmem:[%s4421_s5 + $0x3f0] sm:$0xf]  ;;  %v3721_v55 = vor.u32 %v4065_v45, %v3718_v46 }
  0xc3   : > { %1610 = vmatpush.bf16.msra.mxu1 %v3645_v62  ;;  %4137 = vmatpush.bf16.msra.mxu3 %v3645_v62  ;;  %v4110_v54 = vld [vmem:[%s4421_s5 + $0x404] sm:$0xf0]  ;;  %v3913_v56 = vor.u32 %v4113_v50, %v3910_v51  ;;  %v4059_v57 = vld [vmem:[%s4421_s5 + $0x274] sm:$0xf]  ;;  %v3694_v58 = vld [vmem:[%s4421_s5 + $0x288] sm:$0xf0]  ;;  %v3505_v59 = vor.u32 %v4011_v49, %v3502_v52 }
  0xc4   : > { %v3885_v60 = vor.u32 %v4110_v54, %v3884_v53  ;;  %v4005_v61 = vld [vmem:[%s4421_s5 + $0xc4] sm:$0xf]  ;;  %v4107_v62 = vld [vmem:[%s4421_s5 + $0x3f4] sm:$0xf]  ;;  %v3886_v63 = vld [vmem:[%s4421_s5 + $0x408] sm:$0xf0] }
  0xc5   : > { %v3478_v0 = vld [vmem:[%s4421_s5 + $0xd8] sm:$0xf0]  ;;  %v3860_v1 = vld [vmem:[%s4421_s5 + $0x3c0] sm:$0xf]  ;;  %v4104_v2 = vld [vmem:[%s4421_s5 + $0x3d4] sm:$0xf0] }
  0xc6   : > { %1562 = vmatpush.bf16.msra.mxu0 %v3429_v3  ;;  %4130 = vmatpush.bf16.msra.mxu2 %v3429_v3  ;;  %v3697_v3 = vor.u32 %v4059_v57, %v3694_v58  ;;  %v4053_v5 = vld [vmem:[%s4421_s5 + $0x244] sm:$0xf]  ;;  %v3670_v6 = vld [vmem:[%s4421_s5 + $0x258] sm:$0xf0]  ;;  %v3296_v7 = vld [vmem:[%s4428_s15 + $0x18] sm:$0xf]  ;;  %v3861_v12 = vor.u32 %v4104_v2, %v3860_v1 }
  0xc7   : > { %1611 = vmatpush.bf16.msra.mxu1 %v3621_v4  ;;  %4138 = vmatpush.bf16.msra.mxu3 %v3621_v4  ;;  %v3889_v4 = vor.u32 %v4107_v62, %v3886_v63  ;;  %v3961_v8 = vld [vmem:[%s4428_s15 + $0x20] sm:$0xf0]  ;;  %v3999_v13 = vld [vmem:[%s4421_s5 + $0x94] sm:$0xf]  ;;  %v3862_v15 = vld [vmem:[%s4421_s5 + $0x3d8] sm:$0xf0] }
  0xc8   : > { %v3973_v10 = vld [vmem:[%s4428_s15 + $0x80] sm:$0xf0]  ;;  %v3454_v16 = vld [vmem:[%s4421_s5 + $0xa8] sm:$0xf0]  ;;  %v3836_v17 = vld [vmem:[%s4421_s5 + $0x390] sm:$0xf] }
  0xc9   : > { %v4101_v14 = vld [vmem:[%s4421_s5 + $0x3c4] sm:$0xf]  ;;  %v4098_v18 = vld [vmem:[%s4421_s5 + $0x3a4] sm:$0xf0]  ;;  %v3960_v19 = vld [vmem:[%s4428_s15 + $0x1c] sm:$0xf] }
  0xca   : > { %1563 = vmatpush.bf16.msra.mxu0 %v3405_v9  ;;  %4131 = vmatpush.bf16.msra.mxu2 %v3405_v9  ;;  %v3344_v9 = vld [vmem:[%s4428_s15 + $0x78] sm:$0xf]  ;;  %v3298_v20 = vld [vmem:[%s4428_s15 + $0x24] sm:$0xf0]  ;;  %v3972_v21 = vld [vmem:[%s4428_s15 + $0x7c] sm:$0xf]  ;;  %v3865_v24 = vor.u32 %v4101_v14, %v3862_v15  ;;  %v3837_v28 = vor.u32 %v4098_v18, %v3836_v17 }
  0xcb   : > { %1612 = vmatpush.bf16.msra.mxu1 %v3597_v11  ;;  %4139 = vmatpush.bf16.msra.mxu3 %v3597_v11  ;;  %v3481_v11 = vor.u32 %v4005_v61, %v3478_v0  ;;  %v3346_v22 = vld [vmem:[%s4428_s15 + $0x84] sm:$0xf0]  ;;  %v4047_v25 = vld [vmem:[%s4421_s5 + $0x214] sm:$0xf]  ;;  %v3646_v26 = vld [vmem:[%s4421_s5 + $0x228] sm:$0xf0]  ;;  %v4726_v33 = vor.u32 %v3973_v10, %v3344_v9  ;;  %v4731_v39 = vor.u32 %v3960_v19, %v3298_v20 }
  0xcc   : > { %v3993_v29 = vld [vmem:[%s4421_s5 + $0x64] sm:$0xf]  ;;  %v4095_v30 = vld [vmem:[%s4421_s5 + $0x394] sm:$0xf]  ;;  %v3430_v34 = vld [vmem:[%s4421_s5 + $0x78] sm:$0xf0]  ;;  %v4733_v40 = vor.u32 %v3972_v21, %v3346_v22 }
  0xcd   : > { %v3812_v35 = vld [vmem:[%s4421_s5 + $0x360] sm:$0xf]  ;;  %v4092_v38 = vld [vmem:[%s4421_s5 + $0x374] sm:$0xf0]  ;;  %v3433_v45 = vor.u32 %v3993_v29, %v3430_v34  ;;  %v3987_v49 = vld [vmem:[%s4421_s5 + $0x34] sm:$0xf] }
  0xce   : > { %1564 = vmatpush.bf16.msra.mxu0 %v3381_v23  ;;  %4132 = vmatpush.bf16.msra.mxu2 %v3381_v23  ;;  %v3673_v23 = vor.u32 %v4053_v5, %v3670_v6  ;;  %v3813_v46 = vor.u32 %v4092_v38, %v3812_v35  ;;  %v3406_v50 = vld [vmem:[%s4421_s5 + $0x48] sm:$0xf0]  ;;  %v4089_v51 = vld [vmem:[%s4421_s5 + $0x364] sm:$0xf]  ;;  %v3814_v53 = vld [vmem:[%s4421_s5 + $0x378] sm:$0xf0] }
  0xcf   : > { %1613 = vmatpush.bf16.msra.mxu1 %v3573_v27  ;;  %4140 = vmatpush.bf16.msra.mxu3 %v3573_v27  ;;  %v3457_v27 = vor.u32 %v3999_v13, %v3454_v16  ;;  %v3788_v54 = vld [vmem:[%s4421_s5 + $0x330] sm:$0xf]  ;;  %v3817_v57 = vor.u32 %v4089_v51, %v3814_v53  ;;  %v3981_v61 = vld [vmem:[%s4421_s5 + $0x4] sm:$0xf]  ;;  %v3382_v62 = vld [vmem:[%s4421_s5 + $0x18] sm:$0xf0] }
  0xd0   : > { %v4083_v63 = vld [vmem:[%s4421_s5 + $0x334] sm:$0xf]  ;;  %v3790_v0 = vld [vmem:[%s4421_s5 + $0x348] sm:$0xf0]  ;;  %v3764_v1 = vld [vmem:[%s4421_s5 + $0x300] sm:$0xf]  ;;  %v3385_v6 = vor.u32 %v3981_v61, %v3382_v62 }
  0xd1   : > { %1565 = vmatmul.bf16.vlgmr.msra.gmra.mxu0 %v4672_v36  ;;  %1585 = vmatmul.bf16.vlgmr.msra.gmra.mxu2 %v4674_v37  ;;  %v4080_v2 = vld [vmem:[%s4421_s5 + $0x314] sm:$0xf0]  ;;  %v4029_v5 = vld [vmem:[%s4421_s5 + $0x184] sm:$0xf]  ;;  %v3766_v10 = vld [vmem:[%s4421_s5 + $0x318] sm:$0xf0] }
  0xd2   : > { %1655 = vmatpush.bf16.msrb.mxu2 %v3933_v32  ;;  %1614 = vmatmul.bf16.vlgmr.msra.gmra.mxu1 %v4679_v41  ;;  %v4724_v32 = vor.u32 %v3961_v8, %v3296_v7  ;;  %v3765_v7 = vor.u32 %v4080_v2, %v3764_v1  ;;  %v3574_v8 = vld [vmem:[%s4421_s5 + $0x198] sm:$0xf0]  ;;  %v4077_v9 = vld [vmem:[%s4421_s5 + $0x304] sm:$0xf]  ;;  %v3356_v13 = vld [vmem:[%s4428_s15 + $0x90] sm:$0xf] }
  0xd3   : > { %1704 = vmatpush.bf16.msrb.mxu3 %v3553_v31  ;;  %1753 = vmatpush.bf16.msrb.mxu0 %v3745_v43  ;;  %v3838_v31 = vld [vmem:[%s4421_s5 + $0x3a8] sm:$0xf0]  ;;  %v3649_v43 = vor.u32 %v4047_v25, %v3646_v26  ;;  %v3976_v14 = vld [vmem:[%s4428_s15 + $0x98] sm:$0xf0]  ;;  %v3963_v15 = vld [vmem:[%s4428_s15 + $0x34] sm:$0xf]  ;;  %v3577_v19 = vor.u32 %v4029_v5, %v3574_v8  ;;  %v3769_v20 = vor.u32 %v4077_v9, %v3766_v10 }
  0xd4   : > { %1634 = vmatmul.bf16.vlgmr.msra.gmra.mxu3 %v4681_v42  ;;  %1802 = vmatpush.bf16.msrb.mxu1 %v3937_v44  ;;  %v3841_v44 = vor.u32 %v4095_v30, %v3838_v31  ;;  %v3310_v16 = vld [vmem:[%s4428_s15 + $0x3c] sm:$0xf0]  ;;  %v3975_v17 = vld [vmem:[%s4428_s15 + $0x94] sm:$0xf]  ;;  %v4769_v22 = vor.u32 %v3976_v14, %v3356_v13  ;;  %v3748_v25 = vld [vmem:[%s4421_s5 + $0x2d8] sm:$0xf] }
  0xd5   : > { %v3358_v18 = vld [vmem:[%s4428_s15 + $0x9c] sm:$0xf0]  ;;  %v4075_v26 = vld [vmem:[%s4421_s5 + $0x2ec] sm:$0xf0]  ;;  %v3940_v30 = vld [vmem:[%s4421_s5 + $0x458] sm:$0xf] }
  0xd6   : > { %1656 = vmatpush.bf16.msrb.mxu2 %v3909_v48  ;;  %v3622_v48 = vld [vmem:[%s4421_s5 + $0x1f8] sm:$0xf0]  ;;  %v4027_v29 = vld [vmem:[%s4421_s5 + $0x16c] sm:$0xf0]  ;;  %v3978_v51 = vld [vmem:[%s4428_s15 + $0xac] sm:$0xf] }
  0xd7   : > { %1705 = vmatpush.bf16.msrb.mxu3 %v3529_v47  ;;  %1754 = vmatpush.bf16.msrb.mxu0 %v3721_v55  ;;  %v4041_v47 = vld [vmem:[%s4421_s5 + $0x1e4] sm:$0xf]  ;;  %v4086_v55 = vld [vmem:[%s4421_s5 + $0x344] sm:$0xf0]  ;;  %v4123_v31 = vld [vmem:[%s4421_s5 + $0x46c] sm:$0xf0] }
  0xd8   : > { %1803 = vmatpush.bf16.msrb.mxu1 %v3913_v56  ;;  %v3625_v52 = vor.u32 %v4041_v47, %v3622_v48  ;;  %v3409_v56 = vor.u32 %v3987_v49, %v3406_v50  ;;  %v3789_v58 = vor.u32 %v4086_v55, %v3788_v54  ;;  %v3941_v35 = vor.u32 %v4123_v31, %v3940_v30  ;;  %v4024_v38 = vld [vmem:[%s4421_s5 + $0x15c] sm:$0xf]  ;;  %v3368_v47 = vld [vmem:[%s4428_s15 + $0xa8] sm:$0xf]  ;;  %v3979_v48 = vld [vmem:[%s4428_s15 + $0xb0] sm:$0xf0] }
  0xd9   : > { %v3966_v49 = vld [vmem:[%s4428_s15 + $0x4c] sm:$0xf]  ;;  %v3322_v50 = vld [vmem:[%s4428_s15 + $0x54] sm:$0xf0]  ;;  %v4797_v54 = vor.u32 %v3979_v48, %v3368_v47  ;;  %v4021_v61 = vld [vmem:[%s4421_s5 + $0x13c] sm:$0xf0] }
  0xda   : > { %1657 = vmatpush.bf16.msrb.mxu2 %v3885_v60  ;;  %v3598_v60 = vld [vmem:[%s4421_s5 + $0x1c8] sm:$0xf0]  ;;  %v4799_v55 = vor.u32 %v3966_v49, %v3322_v50  ;;  %v3916_v62 = vld [vmem:[%s4421_s5 + $0x428] sm:$0xf]  ;;  %v3700_v8 = vld [vmem:[%s4421_s5 + $0x278] sm:$0xf] }
  0xdb   : > { %1706 = vmatpush.bf16.msrb.mxu3 %v3505_v59  ;;  %1755 = vmatpush.bf16.msrb.mxu0 %v3697_v3  ;;  %v4035_v59 = vld [vmem:[%s4421_s5 + $0x1b4] sm:$0xf]  ;;  %v4018_v2 = vld [vmem:[%s4421_s5 + $0x12c] sm:$0xf]  ;;  %v3292_v5 = vld [vmem:[%s4428_s15 + $0x8] sm:$0xf] }
  0xdc   : > { %1804 = vmatpush.bf16.msrb.mxu1 %v3889_v4  ;;  %v3601_v3 = vor.u32 %v4035_v59, %v3598_v60  ;;  %v3793_v4 = vor.u32 %v4083_v63, %v3790_v0  ;;  %v3532_v59 = vld [vmem:[%s4421_s5 + $0x128] sm:$0xf]  ;;  %v4117_v63 = vld [vmem:[%s4421_s5 + $0x43c] sm:$0xf0]  ;;  %v4063_v9 = vld [vmem:[%s4421_s5 + $0x28c] sm:$0xf0] }
  0xdd   : > { %v3533_v0 = vor.u32 %v4021_v61, %v3532_v59  ;;  %v3917_v1 = vor.u32 %v4117_v63, %v3916_v62  ;;  %v3508_v10 = vld [vmem:[%s4421_s5 + $0xf8] sm:$0xf]  ;;  %v4111_v14 = vld [vmem:[%s4421_s5 + $0x40c] sm:$0xf0]  ;;  %v4009_v31 = vld [vmem:[%s4421_s5 + $0xdc] sm:$0xf0] }
  0xde   : > { %1658 = vmatpush.bf16.msrb.mxu2 %v3861_v12  ;;  %v3964_v12 = vld [vmem:[%s4428_s15 + $0x38] sm:$0xf0]  ;;  %v3892_v13 = vld [vmem:[%s4421_s5 + $0x3f8] sm:$0xf]  ;;  %v3965_v48 = vld [vmem:[%s4428_s15 + $0x40] sm:$0xf0] }
  0xdf   : > { %1707 = vmatpush.bf16.msrb.mxu3 %v3481_v11  ;;  %1756 = vmatpush.bf16.msrb.mxu0 %v3673_v23  ;;  %v3308_v11 = vld [vmem:[%s4428_s15 + $0x30] sm:$0xf]  ;;  %v4771_v23 = vor.u32 %v3963_v15, %v3310_v16  ;;  %v3893_v16 = vor.u32 %v4111_v14, %v3892_v13  ;;  %v3316_v47 = vld [vmem:[%s4428_s15 + $0x38] sm:$0xf]  ;;  %v4000_v62 = vld [vmem:[%s4421_s5 + $0x9c] sm:$0xf] }
  0xe0   : > { %1805 = vmatpush.bf16.msrb.mxu1 %v3865_v24  ;;  %v4767_v21 = vor.u32 %v3964_v12, %v3308_v11  ;;  %v4773_v24 = vor.u32 %v3975_v17, %v3358_v18  ;;  %v3701_v11 = vor.u32 %v4063_v9, %v3700_v8  ;;  %v4015_v12 = vld [vmem:[%s4421_s5 + $0x10c] sm:$0xf0]  ;;  %v4012_v17 = vld [vmem:[%s4421_s5 + $0xfc] sm:$0xf]  ;;  %v3510_v18 = vld [vmem:[%s4421_s5 + $0x110] sm:$0xf0]  ;;  %v4849_v49 = vor.u32 %v3965_v48, %v3316_v47 }
  0xe1   : > { %1570 = vmatmul.bf16.gmra.mxu0 %v4724_v32  ;;  %1590 = vmatmul.bf16.gmra.mxu2 %v4726_v33  ;;  %v3509_v15 = vor.u32 %v4015_v12, %v3508_v10  ;;  %v3652_v50 = vld [vmem:[%s4421_s5 + $0x218] sm:$0xf]  ;;  %v4099_v61 = vld [vmem:[%s4421_s5 + $0x3ac] sm:$0xf0]  ;;  %v3436_v8 = vld [vmem:[%s4421_s5 + $0x68] sm:$0xf] }
  0xe2   : > { %1659 = vmatpush.bf16.msrb.mxu2 %v3837_v28  ;;  %1619 = vmatmul.bf16.gmra.mxu1 %v4731_v39  ;;  %v3749_v28 = vor.u32 %v4075_v26, %v3748_v25  ;;  %v3962_v25 = vld [vmem:[%s4428_s15 + $0x28] sm:$0xf0]  ;;  %v3997_v10 = vld [vmem:[%s4421_s5 + $0x7c] sm:$0xf0]  ;;  %v3820_v12 = vld [vmem:[%s4421_s5 + $0x368] sm:$0xf] }
  0xe3   : > { %1708 = vmatpush.bf16.msrb.mxu3 %v3457_v27  ;;  %1757 = vmatpush.bf16.msrb.mxu0 %v3649_v43  ;;  %v3556_v27 = vld [vmem:[%s4421_s5 + $0x158] sm:$0xf]  ;;  %v3558_v43 = vld [vmem:[%s4421_s5 + $0x170] sm:$0xf0]  ;;  %v4093_v13 = vld [vmem:[%s4421_s5 + $0x37c] sm:$0xf0] }
  0xe4   : > { %1639 = vmatmul.bf16.gmra.mxu3 %v4733_v40  ;;  %1806 = vmatpush.bf16.msrb.mxu1 %v3841_v44  ;;  %v3557_v34 = vor.u32 %v4027_v29, %v3556_v27  ;;  %v3561_v44 = vor.u32 %v4024_v38, %v3558_v43  ;;  %v3676_v27 = vld [vmem:[%s4421_s5 + $0x248] sm:$0xf]  ;;  %v3994_v14 = vld [vmem:[%s4421_s5 + $0x6c] sm:$0xf]  ;;  %v3796_v47 = vld [vmem:[%s4421_s5 + $0x338] sm:$0xf] }
  0xe5   : > { %v3484_v29 = vld [vmem:[%s4421_s5 + $0xc8] sm:$0xf]  ;;  %v4087_v48 = vld [vmem:[%s4421_s5 + $0x34c] sm:$0xf0] }
  0xe6   : > { %1660 = vmatpush.bf16.msrb.mxu2 %v3813_v46  ;;  %v3967_v46 = vld [vmem:[%s4428_s15 + $0x50] sm:$0xf0]  ;;  %v3485_v38 = vor.u32 %v4009_v31, %v3484_v29  ;;  %v4039_v29 = vld [vmem:[%s4421_s5 + $0x1cc] sm:$0xf0] }
  0xe7   : > { %1709 = vmatpush.bf16.msrb.mxu3 %v3433_v45  ;;  %1758 = vmatpush.bf16.msrb.mxu0 %v3625_v52  ;;  %v3320_v45 = vld [vmem:[%s4428_s15 + $0x48] sm:$0xf]  ;;  %v3370_v52 = vld [vmem:[%s4428_s15 + $0xb4] sm:$0xf0] }
  0xe8   : > { %1807 = vmatpush.bf16.msrb.mxu1 %v3817_v57  ;;  %v4795_v53 = vor.u32 %v3967_v46, %v3320_v45  ;;  %v3724_v57 = vld [vmem:[%s4421_s5 + $0x2a8] sm:$0xf]  ;;  %v3486_v45 = vld [vmem:[%s4421_s5 + $0xe0] sm:$0xf0] }
  0xea   : > { %1661 = vmatpush.bf16.msrb.mxu2 %v3789_v58  ;;  %v4069_v58 = vld [vmem:[%s4421_s5 + $0x2bc] sm:$0xf0] }
  0xeb   : > { %1710 = vmatpush.bf16.msrb.mxu3 %v3409_v56  ;;  %1759 = vmatpush.bf16.msrb.mxu0 %v3601_v3  ;;  %v4801_v56 = vor.u32 %v3978_v51, %v3370_v52  ;;  %v3725_v60 = vor.u32 %v4069_v58, %v3724_v57  ;;  %v3534_v3 = vld [vmem:[%s4421_s5 + $0x140] sm:$0xf0]  ;;  %v4051_v51 = vld [vmem:[%s4421_s5 + $0x22c] sm:$0xf0]  ;;  %v3460_v52 = vld [vmem:[%s4421_s5 + $0x98] sm:$0xf] }
  0xec   : > { %1808 = vmatpush.bf16.msrb.mxu1 %v3793_v4  ;;  %v3537_v4 = vor.u32 %v4018_v2, %v3534_v3  ;;  %v3653_v57 = vor.u32 %v4051_v51, %v3652_v50  ;;  %v4003_v58 = vld [vmem:[%s4421_s5 + $0xac] sm:$0xf0]  ;;  %v3968_v2 = vld [vmem:[%s4428_s15 + $0x58] sm:$0xf0]  ;;  %v3797_v51 = vor.u32 %v4087_v48, %v3796_v47 }
  0xed   : > { %v3461_v59 = vor.u32 %v4003_v58, %v3460_v52  ;;  %v3988_v50 = vld [vmem:[%s4421_s5 + $0x3c] sm:$0xf]  ;;  %v3414_v52 = vld [vmem:[%s4421_s5 + $0x50] sm:$0xf0]  ;;  %v3974_v58 = vld [vmem:[%s4428_s15 + $0x88] sm:$0xf0] }
  0xee   : > { %1662 = vmatpush.bf16.msrb.mxu2 %v3765_v7  ;;  %v4120_v48 = vld [vmem:[%s4421_s5 + $0x45c] sm:$0xf] }
  0xef   : > { %1711 = vmatpush.bf16.msrb.mxu3 %v3385_v6  ;;  %1760 = vmatpush.bf16.msrb.mxu0 %v3577_v19  ;;  %v3959_v6 = vld [vmem:[%s4428_s15 + $0x10] sm:$0xf0]  ;;  %v3513_v19 = vor.u32 %v4012_v17, %v3510_v18  ;;  %v3340_v17 = vld [vmem:[%s4428_s15 + $0x68] sm:$0xf] }
  0xf0   : > { %1809 = vmatpush.bf16.msrb.mxu1 %v3769_v20  ;;  %v4817_v7 = vor.u32 %v3959_v6, %v3292_v5  ;;  %v3304_v20 = vld [vmem:[%s4428_s15 + $0x20] sm:$0xf]  ;;  %v3628_v5 = vld [vmem:[%s4421_s5 + $0x1e8] sm:$0xf]  ;;  %v3971_v18 = vld [vmem:[%s4428_s15 + $0x70] sm:$0xf0] }
  0xf1   : > { %1575 = vmatmul.bf16.gmra.mxu0 %v4767_v21  ;;  %1595 = vmatmul.bf16.gmra.mxu2 %v4769_v22  ;;  %v4833_v26 = vor.u32 %v3962_v25, %v3304_v20  ;;  %v4045_v6 = vld [vmem:[%s4421_s5 + $0x1fc] sm:$0xf0]  ;;  %v4881_v20 = vor.u32 %v3971_v18, %v3340_v17  ;;  %v3982_v17 = vld [vmem:[%s4421_s5 + $0xc] sm:$0xf] }
  0xf2   : > { %1624 = vmatmul.bf16.gmra.mxu1 %v4771_v23  ;;  %1851 = vmatpush.bf16.msra.mxu2 %v3557_v34  ;;  %5957 = vst [vmem:[#allocation4_spill] sm:$0xff] %v4817_v7  ;;  %v3868_v34 = vld [vmem:[%s4421_s5 + $0x3c8] sm:$0xf]  ;;  %v3629_v9 = vor.u32 %v4045_v6, %v3628_v5 }
  0xf3   : > { %1900 = vmatpush.bf16.msra.mxu3 %v3749_v28  ;;  %1949 = vmatpush.bf16.msra.mxu0 %v3941_v35  ;;  %v4057_v28 = vld [vmem:[%s4421_s5 + $0x25c] sm:$0xf0]  ;;  %v3388_v5 = vld [vmem:[%s4421_s5 + $0x8] sm:$0xf] }
  0xf4   : > { %1644 = vmatmul.bf16.gmra.mxu3 %v4773_v24  ;;  %1998 = vmatpush.bf16.msra.mxu1 %v3561_v44  ;;  %v3677_v30 = vor.u32 %v4057_v28, %v3676_v27  ;;  %v4105_v35 = vld [vmem:[%s4421_s5 + $0x3dc] sm:$0xf0]  ;;  %v4006_v44 = vld [vmem:[%s4421_s5 + $0xcc] sm:$0xf]  ;;  %v3604_v28 = vld [vmem:[%s4421_s5 + $0x1b8] sm:$0xf] }
  0xf5   : > { %v3869_v43 = vor.u32 %v4105_v35, %v3868_v34  ;;  %v3489_v46 = vor.u32 %v4006_v44, %v3486_v45  ;;  %v3605_v31 = vor.u32 %v4039_v29, %v3604_v28  ;;  %v3991_v34 = vld [vmem:[%s4421_s5 + $0x4c] sm:$0xf0]  ;;  %v3364_v28 = vld [vmem:[%s4428_s15 + $0x98] sm:$0xf]  ;;  %v3977_v29 = vld [vmem:[%s4428_s15 + $0xa0] sm:$0xf0] }
  0xf6   : > { %1852 = vmatpush.bf16.msra.mxu2 %v3533_v0  ;;  %v3462_v0 = vld [vmem:[%s4421_s5 + $0xb0] sm:$0xf0] }
  0xf7   : > { %1901 = vmatpush.bf16.msra.mxu3 %v3725_v60  ;;  %1950 = vmatpush.bf16.msra.mxu0 %v3917_v1  ;;  %v3844_v60 = vld [vmem:[%s4421_s5 + $0x398] sm:$0xf]  ;;  %v3328_v1 = vld [vmem:[%s4428_s15 + $0x50] sm:$0xf]  ;;  %v3465_v3 = vor.u32 %v4000_v62, %v3462_v0 }
  0xf8   : > { %1999 = vmatpush.bf16.msra.mxu1 %v3537_v4  ;;  %v3845_v63 = vor.u32 %v4099_v61, %v3844_v60  ;;  %v4865_v4 = vor.u32 %v3968_v2, %v3328_v1  ;;  %v3580_v2 = vld [vmem:[%s4421_s5 + $0x188] sm:$0xf] }
  0xfa   : > { %1853 = vmatpush.bf16.msra.mxu2 %v3509_v15  ;;  %v3821_v15 = vor.u32 %v4093_v13, %v3820_v12 }
  0xfb   : > { %1902 = vmatpush.bf16.msra.mxu3 %v3701_v11  ;;  %1951 = vmatpush.bf16.msra.mxu0 %v3893_v16  ;;  %v3437_v11 = vor.u32 %v3997_v10, %v3436_v8  ;;  %v3438_v16 = vld [vmem:[%s4421_s5 + $0x80] sm:$0xf0]  ;;  %v3985_v8 = vld [vmem:[%s4421_s5 + $0x1c] sm:$0xf0] }
  0xfc   : > { %2000 = vmatpush.bf16.msra.mxu1 %v3513_v19  ;;  %v3441_v19 = vor.u32 %v3994_v14, %v3438_v16  ;;  %v3389_v10 = vor.u32 %v3985_v8, %v3388_v5  ;;  %v4081_v16 = vld [vmem:[%s4421_s5 + $0x31c] sm:$0xf0]  ;;  %v3376_v5 = vld [vmem:[%s4428_s15 + $0xb0] sm:$0xf] }
  0xfe   : > { %1854 = vmatpush.bf16.msra.mxu2 %v3485_v38 }
  0xff   : > { %1903 = vmatpush.bf16.msra.mxu3 %v3677_v30  ;;  %1952 = vmatpush.bf16.msra.mxu0 %v3869_v43  ;;  %v3412_v30 = vld [vmem:[%s4421_s5 + $0x38] sm:$0xf] }
 0x100   : > { %2001 = vmatpush.bf16.msra.mxu1 %v3489_v46  ;;  %v3413_v38 = vor.u32 %v3991_v34, %v3412_v30 }
 0x101   : > { %1580 = vmatmul.bf16.gmra.mxu0 %v4795_v53  ;;  %1600 = vmatmul.bf16.gmra.mxu2 %v4797_v54 }
 0x102   : > { %1629 = vmatmul.bf16.gmra.mxu1 %v4799_v55  ;;  %1855 = vmatpush.bf16.msra.mxu2 %v3461_v59  ;;  %v3417_v59 = vor.u32 %v3988_v50, %v3414_v52  ;;  %v3942_v50 = vld [vmem:[%s4421_s5 + $0x470] sm:$0xf0] }
 0x103   : > { %1904 = vmatpush.bf16.msra.mxu3 %v3653_v57  ;;  %1953 = vmatpush.bf16.msra.mxu0 %v3845_v63  ;;  %v3352_v57 = vld [vmem:[%s4428_s15 + $0x80] sm:$0xf]  ;;  %v3945_v52 = vor.u32 %v4120_v48, %v3942_v50  ;;  %v3918_v48 = vld [vmem:[%s4421_s5 + $0x440] sm:$0xf0]  ;;  %v4066_v50 = vld [vmem:[%s4421_s5 + $0x2ac] sm:$0xf] }
 0x104   : > { %1649 = vmatmul.bf16.gmra.mxu3 %v4801_v56  ;;  %2002 = vmatpush.bf16.msra.mxu1 %v3465_v3  ;;  %v4907_v62 = vor.u32 %v3974_v58, %v3352_v57  ;;  %v4033_v3 = vld [vmem:[%s4421_s5 + $0x19c] sm:$0xf0]  ;;  %v3750_v57 = vld [vmem:[%s4421_s5 + $0x2f0] sm:$0xf0] }
 0x105   : > { %v3581_v6 = vor.u32 %v4033_v3, %v3580_v2 }
 0x106   : > { %1856 = vmatpush.bf16.msra.mxu2 %v3437_v11 }
 0x107   : > { %1905 = vmatpush.bf16.msra.mxu3 %v3629_v9  ;;  %1954 = vmatpush.bf16.msra.mxu0 %v3821_v15  ;;  %v3772_v15 = vld [vmem:[%s4421_s5 + $0x308] sm:$0xf] }
 0x108   : > { %2003 = vmatpush.bf16.msra.mxu1 %v3441_v19  ;;  %v3773_v18 = vor.u32 %v4081_v16, %v3772_v15  ;;  %v3390_v19 = vld [vmem:[%s4421_s5 + $0x20] sm:$0xf0] }
 0x109   : > { %v3393_v30 = vor.u32 %v3982_v17, %v3390_v19 }
 0x10a   : > { %1857 = vmatpush.bf16.msra.mxu2 %v3413_v38 }
 0x10b   : > { %1906 = vmatpush.bf16.msra.mxu3 %v3605_v31  ;;  %1955 = vmatpush.bf16.msra.mxu0 %v3797_v51  ;;  %v4072_v51 = vld [vmem:[%s4421_s5 + $0x2dc] sm:$0xf] }
 0x10c   : > { %2004 = vmatpush.bf16.msra.mxu1 %v3417_v59  ;;  %v3753_v59 = vor.u32 %v4072_v51, %v3750_v57  ;;  %v3726_v57 = vld [vmem:[%s4421_s5 + $0x2c0] sm:$0xf0] }
 0x10e   : > { %1858 = vmatpush.bf16.msra.mxu2 %v3389_v10  ;;  %v4028_v10 = vld [vmem:[%s4421_s5 + $0x174] sm:$0xf0] }
 0x10f   : > { %1907 = vmatpush.bf16.msra.mxu3 %v3581_v6  ;;  %1956 = vmatpush.bf16.msra.mxu0 %v3773_v18  ;;  %v3980_v6 = vld [vmem:[%s4428_s15 + $0xb8] sm:$0xf0]  ;;  %v4076_v18 = vld [vmem:[%s4421_s5 + $0x2f4] sm:$0xf0] }
 0x110   : > { %2005 = vmatpush.bf16.msra.mxu1 %v3393_v30  ;;  %v4962_v16 = vor.u32 %v3980_v6, %v3376_v5 }
 0x111   : > { %1663 = vmatmul.bf16.vlgmr.msrb.gmra.mxu2 %v4817_v7  ;;  %1761 = vmatmul.bf16.vlgmr.msrb.gmra.mxu0 %v4679_v41 }
 0x112   : > { %1810 = vmatmul.bf16.vlgmr.msrb.gmra.mxu1 %v4817_v7  ;;  %2047 = vmatpush.bf16.msrb.mxu2 %v3753_v59 }
 0x114   : > { %1712 = vmatmul.bf16.vlgmr.msrb.gmra.mxu3 %v4672_v36 }
 0x115   : > { %2096 = vmatpush.bf16.msrb.mxu3 %v3945_v52 }
 0x121   : > { %1668 = vmatmul.bf16.gmra.mxu2 %v4833_v26  ;;  %1766 = vmatmul.bf16.gmra.mxu0 %v4731_v39 }
 0x122   : > { %1815 = vmatmul.bf16.gmra.mxu1 %v4833_v26 }
 0x124   : > { %1717 = vmatmul.bf16.gmra.mxu3 %v4724_v32 }
 0x131   : > { %1673 = vmatmul.bf16.gmra.mxu2 %v4849_v49  ;;  %1771 = vmatmul.bf16.gmra.mxu0 %v4771_v23 }
 0x132   : > { %1820 = vmatmul.bf16.gmra.mxu1 %v4849_v49 }
 0x134   : > { %1722 = vmatmul.bf16.gmra.mxu3 %v4767_v21 }
 0x141   : > { %1678 = vmatmul.bf16.gmra.mxu2 %v4865_v4  ;;  %1776 = vmatmul.bf16.gmra.mxu0 %v4799_v55 }
 0x142   : > { %1825 = vmatmul.bf16.gmra.mxu1 %v4865_v4 }
 0x144   : > { %1727 = vmatmul.bf16.gmra.mxu3 %v4795_v53 }
 0x14e   : > { %v4883_v25 = vpop.f32.mrf.mxu0 }
 0x14f   : > { %v4885_v27 = vpop.f32.mrf.mxu1 }
 0x151   : > { %1683 = vmatmul.bf16.gmra.mxu2 %v4881_v20  ;;  %1781 = vmatmul.bf16.gmra.mxu0 %v4681_v42 }
 0x152   : > { %1830 = vmatmul.bf16.gmra.mxu1 %v4881_v20 }
 0x154   : > { %1732 = vmatmul.bf16.gmra.mxu3 %v4674_v37  ;;  %v1586_v35 = vpop.f32.mrf.mxu2 }
 0x156   : > { %v4897_v45 = vpop.f32.mrf.mxu0 }
 0x157   : > { %v1635_v43 = vpop.f32.mrf.mxu3  ;;  %v4899_v46 = vpop.f32.mrf.mxu1 }
 0x158   : > { %v4895_v44 = vadd.f32 %v1635_v43, %v1586_v35  ;;  %v4935_v35 = vor.u32 %v3977_v29, %v3364_v28 }
 0x15c   : > { %v1588_v60 = vpop.f32.mrf.mxu2 }
 0x15e   : > { %v4911_v0 = vpop.f32.mrf.mxu0 }
 0x15f   : > { %v1637_v61 = vpop.f32.mrf.mxu3  ;;  %v4913_v1 = vpop.f32.mrf.mxu1 }
 0x160   : > { %v4909_v63 = vadd.f32 %v1637_v61, %v1588_v60 }
 0x161   : > { %1688 = vmatmul.bf16.gmra.mxu2 %v4907_v62  ;;  %1786 = vmatmul.bf16.gmra.mxu0 %v4733_v40 }
 0x162   : > { %1835 = vmatmul.bf16.gmra.mxu1 %v4907_v62 }
 0x164   : > { %1737 = vmatmul.bf16.gmra.mxu3 %v4726_v33  ;;  %v1591_v9 = vpop.f32.mrf.mxu2 }
 0x166   : > { %v4925_v13 = vpop.f32.mrf.mxu0 }
 0x167   : > { %v1640_v11 = vpop.f32.mrf.mxu3  ;;  %v4927_v14 = vpop.f32.mrf.mxu1 }
 0x168   : > { %v4923_v12 = vadd.f32 %v1640_v11, %v1591_v9  ;;  %v3564_v9 = vld [vmem:[%s4421_s5 + $0x160] sm:$0xf] }
 0x169   : > { %v3756_v11 = vld [vmem:[%s4421_s5 + $0x2e0] sm:$0xf]  ;;  %v3565_v17 = vor.u32 %v4028_v10, %v3564_v9  ;;  %v4022_v9 = vld [vmem:[%s4421_s5 + $0x144] sm:$0xf0]  ;;  %v3732_v10 = vld [vmem:[%s4421_s5 + $0x2b0] sm:$0xf] }
 0x16a   : > { %v3757_v29 = vor.u32 %v4076_v18, %v3756_v11 }
 0x16b   : > { %2145 = vmatpush.bf16.msrb.mxu0 %v3565_v17  ;;  %v4070_v17 = vld [vmem:[%s4421_s5 + $0x2c4] sm:$0xf0] }
 0x16c   : > { %v1593_v31 = vpop.f32.mrf.mxu2  ;;  %2194 = vmatpush.bf16.msrb.mxu1 %v3757_v29 }
 0x16e   : > { %v4939_v43 = vpop.f32.mrf.mxu0 }
 0x16f   : > { %v1642_v34 = vpop.f32.mrf.mxu3  ;;  %v4941_v47 = vpop.f32.mrf.mxu1 }
 0x170   : > { %v4937_v38 = vadd.f32 %v1642_v34, %v1593_v31  ;;  %v4114_v34 = vld [vmem:[%s4421_s5 + $0x42c] sm:$0xf] }
 0x171   : > { %1693 = vmatmul.bf16.gmra.mxu2 %v4935_v35  ;;  %1791 = vmatmul.bf16.gmra.mxu0 %v4773_v24  ;;  %v3921_v52 = vor.u32 %v4114_v34, %v3918_v48  ;;  %v1616_v48 = vadd.f32 %v4885_v27, %v4883_v25 }
 0x172   : > { %1840 = vmatmul.bf16.gmra.mxu1 %v4935_v35 }
 0x173   : > { %2097 = vmatpush.bf16.msrb.mxu3 %v3921_v52  ;;  %v4108_v52 = vld [vmem:[%s4421_s5 + $0x3fc] sm:$0xf] }
 0x174   : > { %1742 = vmatmul.bf16.gmra.mxu3 %v4769_v22  ;;  %v1596_v58 = vpop.f32.mrf.mxu2 }
 0x176   : > { %v4953_v2 = vpop.f32.mrf.mxu0 }
 0x177   : > { %v1645_v60 = vpop.f32.mrf.mxu3  ;;  %v4955_v3 = vpop.f32.mrf.mxu1 }
 0x178   : > { %v4951_v61 = vadd.f32 %v1645_v60, %v1596_v58  ;;  %v3729_v60 = vor.u32 %v4066_v50, %v3726_v57  ;;  %v437_v50 = vld [vmem:[%s4426_s8] sm:$0xff]  ;;  %v3894_v57 = vld [vmem:[%s4421_s5 + $0x410] sm:$0xf0] }
 0x17a   : > { %2048 = vmatpush.bf16.msrb.mxu2 %v3729_v60  ;;  %v4060_v60 = vld [vmem:[%s4421_s5 + $0x27c] sm:$0xf] }
 0x17c   : > { %v1598_v8 = vpop.f32.mrf.mxu2 }
 0x17e   : > { %v4967_v28 = vpop.f32.mrf.mxu0 }
 0x17f   : > { %v1647_v15 = vpop.f32.mrf.mxu3  ;;  %v4969_v30 = vpop.f32.mrf.mxu1 }
 0x180   : > { %v4965_v19 = vadd.f32 %v1647_v15, %v1598_v8  ;;  %v3540_v8 = vld [vmem:[%s4421_s5 + $0x130] sm:$0xf] }
 0x181   : > { %1698 = vmatmul.bf16.gmra.mxu2 %v4962_v16  ;;  %1796 = vmatmul.bf16.gmra.mxu0 %v4801_v56  ;;  %v3541_v15 = vor.u32 %v4022_v9, %v3540_v8  ;;  %v3897_v9 = vor.u32 %v4108_v52, %v3894_v57  ;;  %v443_v52 = vld [vmem:[%s4426_s8 + $0x30] sm:$0xff]  ;;  %v3516_v57 = vld [vmem:[%s4421_s5 + $0x100] sm:$0xf] }
 0x182   : > { %1845 = vmatmul.bf16.gmra.mxu1 %v4962_v16 }
 0x183   : > { %2146 = vmatpush.bf16.msrb.mxu0 %v3541_v15  ;;  %2098 = vmatpush.bf16.msrb.mxu3 %v3897_v9 }
 0x184   : > { %1747 = vmatmul.bf16.gmra.mxu3 %v4797_v54  ;;  %v1601_v31 = vpop.f32.mrf.mxu2 }
 0x186   : > { %v4981_v59 = vpop.f32.mrf.mxu0 }
 0x187   : > { %v1650_v51 = vpop.f32.mrf.mxu3  ;;  %v4983_v5 = vpop.f32.mrf.mxu1 }
 0x188   : > { %v4979_v58 = vadd.f32 %v1650_v51, %v1601_v31  ;;  %v3733_v31 = vor.u32 %v4070_v17, %v3732_v10  ;;  %v3702_v10 = vld [vmem:[%s4421_s5 + $0x290] sm:$0xf0] }
 0x189   : > { %v3705_v17 = vor.u32 %v4060_v60, %v3702_v10  ;;  %v4016_v60 = vld [vmem:[%s4421_s5 + $0x114] sm:$0xf0]  ;;  %v3708_v10 = vld [vmem:[%s4421_s5 + $0x280] sm:$0xf] }
 0x18a   : > { %2195 = vmatpush.bf16.msrb.mxu1 %v3733_v31 }
 0x18b   : > { %2049 = vmatpush.bf16.msrb.mxu2 %v3705_v17  ;;  %v444_v17 = vld [vmem:[%s4426_s8 + $0x38] sm:$0xff] }
 0x18c   : > { %v1603_v6 = vpop.f32.mrf.mxu2 }
 0x18e   : > { %v1762_v29 = vpop.f32.mrf.mxu0 }
 0x18f   : > { %v1652_v11 = vpop.f32.mrf.mxu3  ;;  %v1811_v34 = vpop.f32.mrf.mxu1 }
 0x190   : > { %v4989_v18 = vadd.f32 %v1652_v11, %v1603_v6 }
 0x191   : > { %1859 = vmatmul.bf16.vlgmr.msra.gmra.mxu2 %v4672_v36  ;;  %1957 = vmatmul.bf16.vlgmr.msra.gmra.mxu0 %v4817_v7  ;;  %v438_v7 = vld [vmem:[%s4426_s8 + $0x8] sm:$0xff] }
 0x192   : > { %2006 = vmatmul.bf16.vlgmr.msra.gmra.mxu1 %v4672_v36  ;;  %v4064_v36 = vld [vmem:[%s4421_s5 + $0x294] sm:$0xf0] }
 0x194   : > { %1908 = vmatmul.bf16.vlgmr.msra.gmra.mxu3 %v4679_v41  ;;  %v1664_v51 = vpop.f32.mrf.mxu2 }
 0x195   : > { %v1665_v6 = vadd.f32 %v1664_v51, %v1616_v48  ;;  %v1618_v51 = vadd.f32 %v4899_v46, %v4897_v45 }
 0x196   : > { %v1764_v15 = vpop.f32.mrf.mxu0 }
 0x197   : > { %v1713_v8 = vpop.f32.mrf.mxu3  ;;  %v2439_v31 = vadd.f32 %v1665_v6, %v437_v50  ;;  %v1813_v25 = vpop.f32.mrf.mxu1 }
 0x198   : > { %v1763_v11 = vadd.f32 %v1762_v29, %v1713_v8  ;;  %v3517_v8 = vor.u32 %v4016_v60, %v3516_v57  ;;  %v4054_v57 = vld [vmem:[%s4421_s5 + $0x24c] sm:$0xf]  ;;  %v3678_v60 = vld [vmem:[%s4421_s5 + $0x260] sm:$0xf0] }
 0x199   : > { %2535 = vst [vmem:[%s4426_s8] sm:$0xff] %v2439_v31  ;;  %v449_v31 = vld [vmem:[%s4426_s8 + $0x60] sm:$0xff] }
 0x19a   : > { %v1812_v27 = vadd.f32 %v1811_v34, %v1763_v11  ;;  %2147 = vmatpush.bf16.msrb.mxu0 %v3517_v8  ;;  %v3681_v8 = vor.u32 %v4054_v57, %v3678_v60  ;;  %v456_v57 = vld [vmem:[%s4426_s8 + $0x98] sm:$0xff] }
 0x19c   : > { %v2440_v48 = vadd.f32 %v1812_v27, %v438_v7  ;;  %v1666_v29 = vpop.f32.mrf.mxu2  ;;  %v3709_v7 = vor.u32 %v4064_v36, %v3708_v10  ;;  %v1621_v36 = vadd.f32 %v4913_v1, %v4911_v0  ;;  %v4102_v27 = vld [vmem:[%s4421_s5 + $0x3cc] sm:$0xf]  ;;  %2050 = vmatpush.bf16.msrb.mxu2 %v3681_v8 }
 0x19d   : > { %v1667_v50 = vadd.f32 %v1666_v29, %v1618_v51  ;;  %v450_v0 = vld [vmem:[%s4426_s8 + $0x68] sm:$0xff] }
 0x19e   : > { %2536 = vst [vmem:[%s4426_s8 + $0x8] sm:$0xff] %v2440_v48  ;;  %v1767_v34 = vpop.f32.mrf.mxu0  ;;  %2196 = vmatpush.bf16.msrb.mxu1 %v3709_v7  ;;  %v3870_v48 = vld [vmem:[%s4421_s5 + $0x3e0] sm:$0xf0] }
 0x19f   : > { %v1715_v6 = vpop.f32.mrf.mxu3  ;;  %v2445_v11 = vadd.f32 %v1667_v50, %v443_v52  ;;  %v1816_v45 = vpop.f32.mrf.mxu1  ;;  %v3873_v29 = vor.u32 %v4102_v27, %v3870_v48  ;;  %v3684_v27 = vld [vmem:[%s4421_s5 + $0x250] sm:$0xf]  ;;  %v4058_v48 = vld [vmem:[%s4421_s5 + $0x264] sm:$0xf0] }
 0x1a0   : > { %v1765_v9 = vadd.f32 %v1764_v15, %v1715_v6 }
 0x1a1   : > { %2541 = vst [vmem:[%s4426_s8 + $0x30] sm:$0xff] %v2445_v11  ;;  %1864 = vmatmul.bf16.gmra.mxu2 %v4724_v32  ;;  %1962 = vmatmul.bf16.gmra.mxu0 %v4833_v26  ;;  %v1623_v11 = vadd.f32 %v4927_v14, %v4925_v13 }
 0x1a2   : > { %v1814_v46 = vadd.f32 %v1813_v25, %v1765_v9  ;;  %2011 = vmatmul.bf16.gmra.mxu1 %v4724_v32  ;;  %2099 = vmatpush.bf16.msrb.mxu3 %v3873_v29 }
 0x1a4   : > { %v2446_v15 = vadd.f32 %v1814_v46, %v444_v17  ;;  %1913 = vmatmul.bf16.gmra.mxu3 %v4731_v39  ;;  %v1669_v25 = vpop.f32.mrf.mxu2  ;;  %v455_v17 = vld [vmem:[%s4426_s8 + $0x90] sm:$0xff] }
 0x1a5   : > { %v1670_v51 = vadd.f32 %v1669_v25, %v1621_v36  ;;  %v3492_v46 = vld [vmem:[%s4421_s5 + $0xd0] sm:$0xf] }
 0x1a6   : > { %2542 = vst [vmem:[%s4426_s8 + $0x38] sm:$0xff] %v2446_v15  ;;  %v1769_v6 = vpop.f32.mrf.mxu0  ;;  %v4010_v15 = vld [vmem:[%s4421_s5 + $0xe4] sm:$0xf0] }
 0x1a7   : > { %v1718_v52 = vpop.f32.mrf.mxu3  ;;  %v2451_v10 = vadd.f32 %v1670_v51, %v449_v31  ;;  %v1818_v1 = vpop.f32.mrf.mxu1  ;;  %v3493_v25 = vor.u32 %v4010_v15, %v3492_v46 }
 0x1a8   : > { %v1768_v50 = vadd.f32 %v1767_v34, %v1718_v52  ;;  %v3685_v52 = vor.u32 %v4058_v48, %v3684_v27  ;;  %v1628_v27 = vadd.f32 %v4955_v3, %v4953_v2  ;;  %v467_v48 = vld [vmem:[%s4426_s8 + $0xf0] sm:$0xff] }
 0x1a9   : > { %2547 = vst [vmem:[%s4426_s8 + $0x60] sm:$0xff] %v2451_v10  ;;  %2148 = vmatpush.bf16.msrb.mxu0 %v3493_v25  ;;  %v4096_v10 = vld [vmem:[%s4421_s5 + $0x39c] sm:$0xf] }
 0x1aa   : > { %v1817_v9 = vadd.f32 %v1816_v45, %v1768_v50  ;;  %2197 = vmatpush.bf16.msrb.mxu1 %v3685_v52  ;;  %v1626_v50 = vadd.f32 %v4941_v47, %v4939_v43  ;;  %v462_v43 = vld [vmem:[%s4426_s8 + $0xc8] sm:$0xff]  ;;  %v4004_v52 = vld [vmem:[%s4421_s5 + $0xb4] sm:$0xf0] }
 0x1ac   : > { %v2452_v7 = vadd.f32 %v1817_v9, %v450_v0  ;;  %v1671_v34 = vpop.f32.mrf.mxu2  ;;  %v3846_v0 = vld [vmem:[%s4421_s5 + $0x3b0] sm:$0xf0] }
 0x1ad   : > { %v1672_v36 = vadd.f32 %v1671_v34, %v1623_v11  ;;  %v4048_v11 = vld [vmem:[%s4421_s5 + $0x21c] sm:$0xf] }
 0x1ae   : > { %2548 = vst [vmem:[%s4426_s8 + $0x68] sm:$0xff] %v2452_v7  ;;  %v1772_v45 = vpop.f32.mrf.mxu0  ;;  %v3849_v7 = vor.u32 %v4096_v10, %v3846_v0  ;;  %v468_v0 = vld [vmem:[%s4426_s8 + $0xf8] sm:$0xff] }
 0x1af   : > { %v1720_v31 = vpop.f32.mrf.mxu3  ;;  %v2457_v29 = vadd.f32 %v1672_v36, %v455_v17  ;;  %v1821_v13 = vpop.f32.mrf.mxu1  ;;  %v3654_v17 = vld [vmem:[%s4421_s5 + $0x230] sm:$0xf0] }
 0x1b0   : > { %v1770_v51 = vadd.f32 %v1769_v6, %v1720_v31  ;;  %v461_v6 = vld [vmem:[%s4426_s8 + $0xc0] sm:$0xff]  ;;  %v3657_v15 = vor.u32 %v4048_v11, %v3654_v17  ;;  %2100 = vmatpush.bf16.msrb.mxu3 %v3849_v7  ;;  %v4090_v17 = vld [vmem:[%s4421_s5 + $0x36c] sm:$0xf] }
 0x1b1   : > { %2553 = vst [vmem:[%s4426_s8 + $0x90] sm:$0xff] %v2457_v29  ;;  %1869 = vmatmul.bf16.gmra.mxu2 %v4767_v21  ;;  %1967 = vmatmul.bf16.gmra.mxu0 %v4849_v49  ;;  %v473_v7 = vld [vmem:[%s4426_s8 + $0x120] sm:$0xff] }
 0x1b2   : > { %v1819_v14 = vadd.f32 %v1818_v1, %v1770_v51  ;;  %2016 = vmatmul.bf16.gmra.mxu1 %v4767_v21  ;;  %2051 = vmatpush.bf16.msrb.mxu2 %v3657_v15 }
 0x1b4   : > { %v2458_v60 = vadd.f32 %v1819_v14, %v456_v57  ;;  %1918 = vmatmul.bf16.gmra.mxu3 %v4771_v23  ;;  %v1674_v8 = vpop.f32.mrf.mxu2 }
 0x1b5   : > { %v1675_v1 = vadd.f32 %v1674_v8, %v1626_v50  ;;  %v4052_v50 = vld [vmem:[%s4421_s5 + $0x234] sm:$0xf0] }
 0x1b6   : > { %2554 = vst [vmem:[%s4426_s8 + $0x98] sm:$0xff] %v2458_v60  ;;  %v1774_v46 = vpop.f32.mrf.mxu0  ;;  %v3660_v60 = vld [vmem:[%s4421_s5 + $0x220] sm:$0xf] }
 0x1b7   : > { %v1723_v9 = vpop.f32.mrf.mxu3  ;;  %v2463_v36 = vadd.f32 %v1675_v1, %v461_v6  ;;  %v1823_v47 = vpop.f32.mrf.mxu1  ;;  %v3661_v8 = vor.u32 %v4052_v50, %v3660_v60  ;;  %v3998_v60 = vld [vmem:[%s4421_s5 + $0x84] sm:$0xf0] }
 0x1b8   : > { %v1773_v34 = vadd.f32 %v1772_v45, %v1723_v9  ;;  %v3468_v45 = vld [vmem:[%s4421_s5 + $0xa0] sm:$0xf]  ;;  %v1631_v9 = vadd.f32 %v4969_v30, %v4967_v28  ;;  %v474_v28 = vld [vmem:[%s4426_s8 + $0x128] sm:$0xff] }
 0x1b9   : > { %2559 = vst [vmem:[%s4426_s8 + $0xc0] sm:$0xff] %v2463_v36  ;;  %v3469_v14 = vor.u32 %v4004_v52, %v3468_v45  ;;  %2198 = vmatpush.bf16.msrb.mxu1 %v3661_v8  ;;  %v1633_v52 = vadd.f32 %v4983_v5, %v4981_v59  ;;  %v3636_v8 = vld [vmem:[%s4421_s5 + $0x1f0] sm:$0xf]  ;;  %v480_v59 = vld [vmem:[%s4426_s8 + $0x158] sm:$0xff] }
 0x1ba   : > { %v1822_v31 = vadd.f32 %v1821_v13, %v1773_v34  ;;  %v3822_v34 = vld [vmem:[%s4421_s5 + $0x380] sm:$0xf0] }
 0x1bb   : > { %2149 = vmatpush.bf16.msrb.mxu0 %v3469_v14  ;;  %v3825_v36 = vor.u32 %v4090_v17, %v3822_v34  ;;  %v3444_v14 = vld [vmem:[%s4421_s5 + $0x70] sm:$0xf]  ;;  %v4084_v34 = vld [vmem:[%s4421_s5 + $0x33c] sm:$0xf] }
 0x1bc   : > { %v2464_v25 = vadd.f32 %v1822_v31, %v462_v43  ;;  %v1676_v51 = vpop.f32.mrf.mxu2  ;;  %v4042_v43 = vld [vmem:[%s4421_s5 + $0x1ec] sm:$0xf] }
 0x1bd   : > { %v1677_v29 = vadd.f32 %v1676_v51, %v1628_v27  ;;  %2101 = vmatpush.bf16.msrb.mxu3 %v3825_v36 }
 0x1be   : > { %2560 = vst [vmem:[%s4426_s8 + $0xc8] sm:$0xff] %v2464_v25  ;;  %v1777_v13 = vpop.f32.mrf.mxu0 }
 0x1bf   : > { %v1725_v57 = vpop.f32.mrf.mxu3  ;;  %v2469_v10 = vadd.f32 %v1677_v29, %v467_v48  ;;  %v1826_v2 = vpop.f32.mrf.mxu1  ;;  %v479_v29 = vld [vmem:[%s4426_s8 + $0x150] sm:$0xff] }
 0x1c0   : > { %v1775_v6 = vadd.f32 %v1774_v46, %v1725_v57 }
 0x1c1   : > { %2565 = vst [vmem:[%s4426_s8 + $0xf0] sm:$0xff] %v2469_v10  ;;  %1874 = vmatmul.bf16.gmra.mxu2 %v4795_v53  ;;  %1972 = vmatmul.bf16.gmra.mxu0 %v4865_v4  ;;  %v4046_v10 = vld [vmem:[%s4421_s5 + $0x204] sm:$0xf0] }
 0x1c2   : > { %v1824_v3 = vadd.f32 %v1823_v47, %v1775_v6  ;;  %2021 = vmatmul.bf16.gmra.mxu1 %v4795_v53  ;;  %v3630_v47 = vld [vmem:[%s4421_s5 + $0x200] sm:$0xf0] }
 0x1c3   : > { %v3633_v27 = vor.u32 %v4042_v43, %v3630_v47  ;;  %v4036_v47 = vld [vmem:[%s4421_s5 + $0x1bc] sm:$0xf] }
 0x1c4   : > { %v2470_v1 = vadd.f32 %v1824_v3, %v468_v0  ;;  %1923 = vmatmul.bf16.gmra.mxu3 %v4799_v55  ;;  %v1679_v11 = vpop.f32.mrf.mxu2  ;;  %v3637_v3 = vor.u32 %v4046_v10, %v3636_v8  ;;  %v4040_v8 = vld [vmem:[%s4421_s5 + $0x1d4] sm:$0xf0] }
 0x1c5   : > { %v1680_v46 = vadd.f32 %v1679_v11, %v1631_v9  ;;  %2052 = vmatpush.bf16.msrb.mxu2 %v3633_v27  ;;  %v485_v11 = vld [vmem:[%s4426_s8 + $0x180] sm:$0xff] }
 0x1c6   : > { %2566 = vst [vmem:[%s4426_s8 + $0xf8] sm:$0xff] %v2470_v1  ;;  %v1779_v25 = vpop.f32.mrf.mxu0  ;;  %2199 = vmatpush.bf16.msrb.mxu1 %v3637_v3 }
 0x1c7   : > { %v1728_v15 = vpop.f32.mrf.mxu3  ;;  %v2475_v48 = vadd.f32 %v1680_v46, %v473_v7  ;;  %v1828_v30 = vpop.f32.mrf.mxu1  ;;  %v3798_v46 = vld [vmem:[%s4421_s5 + $0x350] sm:$0xf0] }
 0x1c8   : > { %v1778_v31 = vadd.f32 %v1777_v13, %v1728_v15  ;;  %v3445_v13 = vor.u32 %v3998_v60, %v3444_v14  ;;  %v3801_v43 = vor.u32 %v4084_v34, %v3798_v46  ;;  %v3992_v14 = vld [vmem:[%s4421_s5 + $0x54] sm:$0xf0] }
 0x1c9   : > { %2571 = vst [vmem:[%s4426_s8 + $0x120] sm:$0xff] %v2475_v48 }
 0x1ca   : > { %v1827_v51 = vadd.f32 %v1826_v2, %v1778_v31  ;;  %2150 = vmatpush.bf16.msrb.mxu0 %v3445_v13  ;;  %v3606_v31 = vld [vmem:[%s4421_s5 + $0x1d0] sm:$0xf0]  ;;  %2102 = vmatpush.bf16.msrb.mxu3 %v3801_v43  ;;  %v3612_v13 = vld [vmem:[%s4421_s5 + $0x1c0] sm:$0xf]  ;;  %v3582_v43 = vld [vmem:[%s4421_s5 + $0x1a0] sm:$0xf0] }
 0x1cb   : > { %v3609_v48 = vor.u32 %v4036_v47, %v3606_v31 }
 0x1cc   : > { %v2476_v45 = vadd.f32 %v1827_v51, %v474_v28  ;;  %v1681_v57 = vpop.f32.mrf.mxu2 }
 0x1cd   : > { %v1682_v50 = vadd.f32 %v1681_v57, %v1633_v52  ;;  %2053 = vmatpush.bf16.msrb.mxu2 %v3609_v48  ;;  %v491_v52 = vld [vmem:[%s4426_s8 + $0x1b0] sm:$0xff]  ;;  %v3420_v57 = vld [vmem:[%s4421_s5 + $0x40] sm:$0xf]  ;;  %v498_v48 = vld [vmem:[%s4426_s8 + $0x1e8] sm:$0xff] }
 0x1ce   : > { %2572 = vst [vmem:[%s4426_s8 + $0x128] sm:$0xff] %v2476_v45  ;;  %v1782_v2 = vpop.f32.mrf.mxu0 }
 0x1cf   : > { %v1730_v6 = vpop.f32.mrf.mxu3  ;;  %v2481_v1 = vadd.f32 %v1682_v50, %v479_v29  ;;  %v1831_v5 = vpop.f32.mrf.mxu1 }
 0x1d0   : > { %v1780_v0 = vadd.f32 %v1779_v25, %v1730_v6  ;;  %v3421_v6 = vor.u32 %v3992_v14, %v3420_v57 }
 0x1d1   : > { %2577 = vst [vmem:[%s4426_s8 + $0x150] sm:$0xff] %v2481_v1  ;;  %1879 = vmatmul.bf16.gmra.mxu2 %v4674_v37  ;;  %1977 = vmatmul.bf16.gmra.mxu0 %v4881_v20  ;;  %v492_v1 = vld [vmem:[%s4426_s8 + $0x1b8] sm:$0xff] }
 0x1d2   : > { %v1829_v9 = vadd.f32 %v1828_v30, %v1780_v0  ;;  %2026 = vmatmul.bf16.gmra.mxu1 %v4674_v37  ;;  %v486_v30 = vld [vmem:[%s4426_s8 + $0x188] sm:$0xff]  ;;  %2151 = vmatpush.bf16.msrb.mxu0 %v3421_v6 }
 0x1d4   : > { %v2482_v7 = vadd.f32 %v1829_v9, %v480_v59  ;;  %1928 = vmatmul.bf16.gmra.mxu3 %v4681_v42  ;;  %v1684_v17 = vpop.f32.mrf.mxu2  ;;  %v497_v9 = vld [vmem:[%s4426_s8 + $0x1e0] sm:$0xff] }
 0x1d5   : > { %v1685_v15 = vadd.f32 %v1684_v17, %v4895_v44  ;;  %v3774_v17 = vld [vmem:[%s4421_s5 + $0x320] sm:$0xf0] }
 0x1d6   : > { %2578 = vst [vmem:[%s4426_s8 + $0x158] sm:$0xff] %v2482_v7  ;;  %v1784_v27 = vpop.f32.mrf.mxu0 }
 0x1d7   : > { %v1733_v36 = vpop.f32.mrf.mxu3  ;;  %v2487_v28 = vadd.f32 %v1685_v15, %v485_v11  ;;  %v1833_v51 = vpop.f32.mrf.mxu1  ;;  %v4078_v11 = vld [vmem:[%s4421_s5 + $0x30c] sm:$0xf] }
 0x1d8   : > { %v1783_v25 = vadd.f32 %v1782_v2, %v1733_v36  ;;  %v3613_v2 = vor.u32 %v4040_v8, %v3612_v13  ;;  %v3777_v15 = vor.u32 %v4078_v11, %v3774_v17  ;;  %v4030_v36 = vld [vmem:[%s4421_s5 + $0x18c] sm:$0xf]  ;;  %v3948_v17 = vld [vmem:[%s4421_s5 + $0x460] sm:$0xf] }
 0x1d9   : > { %2583 = vst [vmem:[%s4426_s8 + $0x180] sm:$0xff] %v2487_v28 }
 0x1da   : > { %v1832_v45 = vadd.f32 %v1831_v5, %v1783_v25  ;;  %2200 = vmatpush.bf16.msrb.mxu1 %v3613_v2  ;;  %v3585_v25 = vor.u32 %v4030_v36, %v3582_v43  ;;  %2103 = vmatpush.bf16.msrb.mxu3 %v3777_v15 }
 0x1dc   : > { %v2488_v44 = vadd.f32 %v1832_v45, %v486_v30  ;;  %v1686_v29 = vpop.f32.mrf.mxu2  ;;  %2054 = vmatpush.bf16.msrb.mxu2 %v3585_v25 }
 0x1dd   : > { %v1687_v60 = vadd.f32 %v1686_v29, %v4909_v63 }
 0x1de   : > { %2584 = vst [vmem:[%s4426_s8 + $0x188] sm:$0xff] %v2488_v44  ;;  %v1787_v0 = vpop.f32.mrf.mxu0  ;;  %v3396_v44 = vld [vmem:[%s4421_s5 + $0x10] sm:$0xf] }
 0x1df   : > { %v1735_v50 = vpop.f32.mrf.mxu3  ;;  %v2493_v3 = vadd.f32 %v1687_v60, %v491_v52  ;;  %v1836_v59 = vpop.f32.mrf.mxu1  ;;  %v3986_v52 = vld [vmem:[%s4421_s5 + $0x24] sm:$0xf0]  ;;  %v3588_v60 = vld [vmem:[%s4421_s5 + $0x190] sm:$0xf] }
 0x1e0   : > { %v1785_v10 = vadd.f32 %v1784_v27, %v1735_v50  ;;  %v3397_v14 = vor.u32 %v3986_v52, %v3396_v44  ;;  %v4034_v50 = vld [vmem:[%s4421_s5 + $0x1a4] sm:$0xf0]  ;;  %v4121_v44 = vld [vmem:[%s4421_s5 + $0x464] sm:$0xf]  ;;  %v3950_v52 = vld [vmem:[%s4421_s5 + $0x478] sm:$0xf0] }
 0x1e1   : > { %2589 = vst [vmem:[%s4426_s8 + $0x1b0] sm:$0xff] %v2493_v3  ;;  %1884 = vmatmul.bf16.gmra.mxu2 %v4726_v33  ;;  %1982 = vmatmul.bf16.gmra.mxu0 %v4907_v62  ;;  %v3589_v8 = vor.u32 %v4034_v50, %v3588_v60  ;;  %v516_v50 = vld [vmem:[%s4426_s8 + $0x278] sm:$0xff] }
 0x1e2   : > { %v1834_v5 = vadd.f32 %v1833_v51, %v1785_v10  ;;  %2031 = vmatmul.bf16.gmra.mxu1 %v4726_v33  ;;  %v503_v51 = vld [vmem:[%s4426_s8 + $0x210] sm:$0xff]  ;;  %2152 = vmatpush.bf16.msrb.mxu0 %v3397_v14  ;;  %v3953_v14 = vor.u32 %v4121_v44, %v3950_v52 }
 0x1e3   : > { %2201 = vmatpush.bf16.msrb.mxu1 %v3589_v8  ;;  %v521_v8 = vld [vmem:[%s4426_s8 + $0x2a0] sm:$0xff] }
 0x1e4   : > { %v2494_v63 = vadd.f32 %v1834_v5, %v492_v1  ;;  %1933 = vmatmul.bf16.gmra.mxu3 %v4733_v40  ;;  %v1689_v7 = vpop.f32.mrf.mxu2  ;;  %v509_v1 = vld [vmem:[%s4426_s8 + $0x240] sm:$0xff] }
 0x1e5   : > { %v1690_v34 = vadd.f32 %v1689_v7, %v4923_v12  ;;  %v4025_v5 = vld [vmem:[%s4421_s5 + $0x164] sm:$0xf] }
 0x1e6   : > { %2590 = vst [vmem:[%s4426_s8 + $0x1b8] sm:$0xff] %v2494_v63  ;;  %v1789_v31 = vpop.f32.mrf.mxu0  ;;  %v3566_v63 = vld [vmem:[%s4421_s5 + $0x178] sm:$0xf0] }
 0x1e7   : > { %v1738_v46 = vpop.f32.mrf.mxu3  ;;  %v2499_v27 = vadd.f32 %v1690_v34, %v497_v9  ;;  %v1838_v28 = vpop.f32.mrf.mxu1  ;;  %v3569_v11 = vor.u32 %v4025_v5, %v3566_v63  ;;  %v4124_v34 = vld [vmem:[%s4421_s5 + $0x474] sm:$0xf0]  ;;  %2390 = vmatpush.bf16.msra.mxu1 %v3953_v14  ;;  %v4118_v5 = vld [vmem:[%s4421_s5 + $0x444] sm:$0xf0] }
 0x1e8   : > { %v1788_v47 = vadd.f32 %v1787_v0, %v1738_v46  ;;  %v504_v0 = vld [vmem:[%s4426_s8 + $0x218] sm:$0xff]  ;;  %v3949_v36 = vor.u32 %v4124_v34, %v3948_v17  ;;  %v522_v17 = vld [vmem:[%s4426_s8 + $0x2a8] sm:$0xff] }
 0x1e9   : > { %2595 = vst [vmem:[%s4426_s8 + $0x1e0] sm:$0xff] %v2499_v27  ;;  %2292 = vmatpush.bf16.msra.mxu3 %v3569_v11  ;;  %v515_v27 = vld [vmem:[%s4426_s8 + $0x270] sm:$0xff] }
 0x1ea   : > { %v1837_v30 = vadd.f32 %v1836_v59, %v1788_v47  ;;  %v510_v47 = vld [vmem:[%s4426_s8 + $0x248] sm:$0xff]  ;;  %2243 = vmatpush.bf16.msra.mxu2 %v3949_v36 }
 0x1ec   : > { %v2500_v12 = vadd.f32 %v1837_v30, %v498_v48  ;;  %v1691_v45 = vpop.f32.mrf.mxu2  ;;  %v3758_v30 = vld [vmem:[%s4421_s5 + $0x2f8] sm:$0xf0] }
 0x1ed   : > { %v1692_v29 = vadd.f32 %v1691_v45, %v4937_v38 }
 0x1ee   : > { %2596 = vst [vmem:[%s4426_s8 + $0x1e8] sm:$0xff] %v2500_v12  ;;  %v1792_v13 = vpop.f32.mrf.mxu0 }
 0x1ef   : > { %v1740_v57 = vpop.f32.mrf.mxu3  ;;  %v2505_v10 = vadd.f32 %v1692_v29, %v503_v51  ;;  %v1841_v2 = vpop.f32.mrf.mxu1 }
 0x1f0   : > { %v1790_v6 = vadd.f32 %v1789_v31, %v1740_v57 }
 0x1f1   : > { %2601 = vst [vmem:[%s4426_s8 + $0x210] sm:$0xff] %v2505_v10  ;;  %1889 = vmatmul.bf16.gmra.mxu2 %v4769_v22  ;;  %1987 = vmatmul.bf16.gmra.mxu0 %v4935_v35 }
 0x1f2   : > { %v1839_v3 = vadd.f32 %v1838_v28, %v1790_v6  ;;  %2036 = vmatmul.bf16.gmra.mxu1 %v4769_v22  ;;  %v4073_v28 = vld [vmem:[%s4421_s5 + $0x2e4] sm:$0xf] }
 0x1f3   : > { %v3761_v45 = vor.u32 %v4073_v28, %v3758_v30 }
 0x1f4   : > { %v2506_v38 = vadd.f32 %v1839_v3, %v504_v0  ;;  %1938 = vmatmul.bf16.gmra.mxu3 %v4773_v24  ;;  %v1694_v59 = vpop.f32.mrf.mxu2  ;;  %v4019_v0 = vld [vmem:[%s4421_s5 + $0x134] sm:$0xf] }
 0x1f5   : > { %v1695_v9 = vadd.f32 %v1694_v59, %v4951_v61  ;;  %2341 = vmatpush.bf16.msra.mxu0 %v3761_v45  ;;  %v3924_v59 = vld [vmem:[%s4421_s5 + $0x430] sm:$0xf]  ;;  %v528_v45 = vld [vmem:[%s4426_s8 + $0x2d8] sm:$0xff] }
 0x1f6   : > { %2602 = vst [vmem:[%s4426_s8 + $0x218] sm:$0xff] %v2506_v38  ;;  %v1794_v15 = vpop.f32.mrf.mxu0 }
 0x1f7   : > { %v1743_v7 = vpop.f32.mrf.mxu3  ;;  %v2511_v43 = vadd.f32 %v1695_v9, %v509_v1  ;;  %v1843_v31 = vpop.f32.mrf.mxu1 }
 0x1f8   : > { %v1793_v46 = vadd.f32 %v1792_v13, %v1743_v7  ;;  %v3925_v7 = vor.u32 %v4118_v5, %v3924_v59 }
 0x1f9   : > { %2607 = vst [vmem:[%s4426_s8 + $0x240] sm:$0xff] %v2511_v43  ;;  %v4067_v43 = vld [vmem:[%s4421_s5 + $0x2b4] sm:$0xf] }
 0x1fa   : > { %v1842_v25 = vadd.f32 %v1841_v2, %v1793_v46  ;;  %v3542_v2 = vld [vmem:[%s4421_s5 + $0x148] sm:$0xf0]  ;;  %2244 = vmatpush.bf16.msra.mxu2 %v3925_v7 }
 0x1fb   : > { %v3545_v1 = vor.u32 %v4019_v0, %v3542_v2 }
 0x1fc   : > { %v2512_v61 = vadd.f32 %v1842_v25, %v510_v47  ;;  %v1696_v48 = vpop.f32.mrf.mxu2  ;;  %v3734_v47 = vld [vmem:[%s4421_s5 + $0x2c8] sm:$0xf0] }
 0x1fd   : > { %v1697_v12 = vadd.f32 %v1696_v48, %v4965_v19  ;;  %2293 = vmatpush.bf16.msra.mxu3 %v3545_v1  ;;  %v3926_v48 = vld [vmem:[%s4421_s5 + $0x448] sm:$0xf0] }
 0x1fe   : > { %2608 = vst [vmem:[%s4426_s8 + $0x248] sm:$0xff] %v2512_v61  ;;  %v1797_v57 = vpop.f32.mrf.mxu0  ;;  %v3737_v61 = vor.u32 %v4067_v43, %v3734_v47 }
 0x1ff   : > { %v1745_v51 = vpop.f32.mrf.mxu3  ;;  %v2517_v60 = vadd.f32 %v1697_v12, %v515_v27  ;;  %v1846_v6 = vpop.f32.mrf.mxu1  ;;  %v4115_v27 = vld [vmem:[%s4421_s5 + $0x434] sm:$0xf] }
 0x200   : > { %v1795_v29 = vadd.f32 %v1794_v15, %v1745_v51  ;;  %v527_v15 = vld [vmem:[%s4426_s8 + $0x2d0] sm:$0xff]  ;;  %v3929_v12 = vor.u32 %v4115_v27, %v3926_v48  ;;  %2342 = vmatpush.bf16.msra.mxu0 %v3737_v61  ;;  %v3494_v27 = vld [vmem:[%s4421_s5 + $0xe8] sm:$0xf0] }
 0x201   : > { %2613 = vst [vmem:[%s4426_s8 + $0x270] sm:$0xff] %v2517_v60  ;;  %1894 = vmatmul.bf16.gmra.mxu2 %v4797_v54  ;;  %1992 = vmatmul.bf16.gmra.mxu0 %v4962_v16  ;;  %v4013_v60 = vld [vmem:[%s4421_s5 + $0x104] sm:$0xf]  ;;  %v4007_v61 = vld [vmem:[%s4421_s5 + $0xd4] sm:$0xf] }
 0x202   : > { %v1844_v13 = vadd.f32 %v1843_v31, %v1795_v29  ;;  %2041 = vmatmul.bf16.gmra.mxu1 %v4797_v54 }
 0x203   : > { %2391 = vmatpush.bf16.msra.mxu1 %v3929_v12  ;;  %v4106_v12 = vld [vmem:[%s4421_s5 + $0x3e4] sm:$0xf0] }
 0x204   : > { %v2518_v19 = vadd.f32 %v1844_v13, %v516_v50  ;;  %1943 = vmatmul.bf16.gmra.mxu3 %v4801_v56  ;;  %v1699_v10 = vpop.f32.mrf.mxu2  ;;  %v3518_v50 = vld [vmem:[%s4421_s5 + $0x118] sm:$0xf0] }
 0x205   : > { %v1700_v3 = vadd.f32 %v1699_v10, %v4979_v58  ;;  %v3521_v13 = vor.u32 %v4013_v60, %v3518_v50 }
 0x206   : > { %2614 = vst [vmem:[%s4426_s8 + $0x278] sm:$0xff] %v2518_v19  ;;  %v1799_v9 = vpop.f32.mrf.mxu0  ;;  %v3900_v19 = vld [vmem:[%s4421_s5 + $0x400] sm:$0xf] }
 0x207   : > { %v1748_v38 = vpop.f32.mrf.mxu3  ;;  %v2523_v11 = vadd.f32 %v1700_v3, %v521_v8  ;;  %v1848_v34 = vpop.f32.mrf.mxu1  ;;  %v4112_v8 = vld [vmem:[%s4421_s5 + $0x414] sm:$0xf0]  ;;  %v439_v3 = vld [vmem:[%s4426_s8 + $0x10] sm:$0xff]  ;;  %2294 = vmatpush.bf16.msra.mxu3 %v3521_v13 }
 0x208   : > { %v1798_v63 = vadd.f32 %v1797_v57, %v1748_v38  ;;  %v5959_v57 = vld [vmem:[#allocation4_spill] sm:$0xff]  ;;  %v3901_v2 = vor.u32 %v4112_v8, %v3900_v19  ;;  %v4055_v13 = vld [vmem:[%s4421_s5 + $0x254] sm:$0xf] }
 0x209   : > { %2619 = vst [vmem:[%s4426_s8 + $0x2a0] sm:$0xff] %v2523_v11  ;;  %v3686_v19 = vld [vmem:[%s4421_s5 + $0x268] sm:$0xf0] }
 0x20a   : > { %v1847_v46 = vadd.f32 %v1846_v6, %v1798_v63  ;;  %2245 = vmatpush.bf16.msra.mxu2 %v3901_v2  ;;  %v4061_v63 = vld [vmem:[%s4421_s5 + $0x284] sm:$0xf]  ;;  %v3878_v2 = vld [vmem:[%s4421_s5 + $0x3e8] sm:$0xf0] }
 0x20c   : > { %v2524_v58 = vadd.f32 %v1847_v46, %v522_v17  ;;  %v1701_v36 = vpop.f32.mrf.mxu2  ;;  %v4109_v17 = vld [vmem:[%s4421_s5 + $0x404] sm:$0xf] }
 0x20d   : > { %v1702_v31 = vadd.f32 %v1701_v36, %v4989_v18  ;;  %v5958_v18 = vld [vmem:[#allocation3_spill] sm:$0xff] }
 0x20e   : > { %2620 = vst [vmem:[%s4426_s8 + $0x2a8] sm:$0xff] %v2524_v58  ;;  %v1958_v30 = vpop.f32.mrf.mxu0  ;;  %v445_v36 = vld [vmem:[%s4426_s8 + $0x40] sm:$0xff] }
 0x20f   : > { %v1750_v25 = vpop.f32.mrf.mxu3  ;;  %v2529_v51 = vadd.f32 %v1702_v31, %v527_v15  ;;  %v5173_v44 = vpop.f32.mrf.mxu1 }
 0x210   : > { %v1800_v28 = vadd.f32 %v1799_v9, %v1750_v25  ;;  %v3710_v9 = vld [vmem:[%s4421_s5 + $0x298] sm:$0xf0] }
 0x211   : > { %2625 = vst [vmem:[%s4426_s8 + $0x2d0] sm:$0xff] %v2529_v51  ;;  %2055 = vmatmul.bf16.vlgmr.msrb.gmra.mxu2 %v4679_v41  ;;  %2153 = vmatmul.bf16.vlgmr.msrb.gmra.mxu0 %v5958_v18  ;;  %v3713_v11 = vor.u32 %v4061_v63, %v3710_v9 }
 0x212   : > { %v1849_v52 = vadd.f32 %v1848_v34, %v1800_v28  ;;  %2202 = vmatmul.bf16.vlgmr.msrb.gmra.mxu1 %v4679_v41  ;;  %v3902_v34 = vld [vmem:[%s4421_s5 + $0x418] sm:$0xf0]  ;;  %v3497_v28 = vor.u32 %v4007_v61, %v3494_v27  ;;  %v463_v61 = vld [vmem:[%s4426_s8 + $0xd0] sm:$0xff] }
 0x213   : > { %v3905_v15 = vor.u32 %v4109_v17, %v3902_v34  ;;  %2343 = vmatpush.bf16.msra.mxu0 %v3713_v11  ;;  %v4001_v17 = vld [vmem:[%s4421_s5 + $0xa4] sm:$0xf]  ;;  %v3470_v34 = vld [vmem:[%s4421_s5 + $0xb8] sm:$0xf0] }
 0x214   : > { %v2530_v29 = vadd.f32 %v1849_v52, %v528_v45  ;;  %2104 = vmatmul.bf16.vlgmr.msrb.gmra.mxu3 %v5959_v57  ;;  %v1860_v14 = vpop.f32.mrf.mxu2 }
 0x215   : > { %2392 = vmatpush.bf16.msra.mxu1 %v3905_v15  ;;  %2295 = vmatpush.bf16.msra.mxu3 %v3497_v28  ;;  %v3852_v15 = vld [vmem:[%s4421_s5 + $0x3a0] sm:$0xf] }
 0x216   : > { %2626 = vst [vmem:[%s4426_s8 + $0x2d8] sm:$0xff] %v2530_v29  ;;  %v1960_v0 = vpop.f32.mrf.mxu0  ;;  %v451_v29 = vld [vmem:[%s4426_s8 + $0x70] sm:$0xff] }
 0x217   : > { %v1909_v6 = vpop.f32.mrf.mxu3  ;;  %v5186_v38 = vpop.f32.mrf.mxu1 }
 0x218   : > { %v1910_v10 = vadd.f32 %v1909_v6, %v1860_v14 }
 0x21a   : > { %v1959_v1 = vadd.f32 %v1958_v30, %v1910_v10  ;;  %v3876_v30 = vld [vmem:[%s4421_s5 + $0x3d0] sm:$0xf]  ;;  %v3689_v10 = vor.u32 %v4055_v13, %v3686_v19  ;;  %v469_v19 = vld [vmem:[%s4426_s8 + $0x100] sm:$0xff] }
 0x21b   : > { %v3877_v52 = vor.u32 %v4106_v12, %v3876_v30  ;;  %v4049_v12 = vld [vmem:[%s4421_s5 + $0x224] sm:$0xf] }
 0x21c   : > { %v2441_v59 = vadd.f32 %v1959_v1, %v439_v3  ;;  %v1862_v5 = vpop.f32.mrf.mxu2  ;;  %2344 = vmatpush.bf16.msra.mxu0 %v3689_v10 }
 0x21d   : > { %2246 = vmatpush.bf16.msra.mxu2 %v3877_v52 }
 0x21e   : > { %2537 = vst [vmem:[%s4426_s8 + $0x10] sm:$0xff] %v2441_v59  ;;  %v1963_v58 = vpop.f32.mrf.mxu0 }
 0x21f   : > { %v1911_v7 = vpop.f32.mrf.mxu3  ;;  %v5194_v43 = vpop.f32.mrf.mxu1 }
 0x220   : > { %v1912_v46 = vadd.f32 %v1911_v7, %v1862_v5  ;;  %v457_v5 = vld [vmem:[%s4426_s8 + $0xa0] sm:$0xff] }
 0x221   : > { %2060 = vmatmul.bf16.gmra.mxu2 %v4731_v39  ;;  %2158 = vmatmul.bf16.gmra.mxu0 %v4724_v32 }
 0x222   : > { %v1961_v47 = vadd.f32 %v1960_v0, %v1912_v46  ;;  %2207 = vmatmul.bf16.gmra.mxu1 %v4731_v39  ;;  %v4103_v0 = vld [vmem:[%s4421_s5 + $0x3d4] sm:$0xf] }
 0x223   : > { %v3881_v59 = vor.u32 %v4103_v0, %v3878_v2 }
 0x224   : > { %v2447_v31 = vadd.f32 %v1961_v47, %v445_v36  ;;  %2109 = vmatmul.bf16.gmra.mxu3 %v4833_v26  ;;  %v1865_v25 = vpop.f32.mrf.mxu2  ;;  %v4100_v36 = vld [vmem:[%s4421_s5 + $0x3b4] sm:$0xf0] }
 0x225   : > { %2393 = vmatpush.bf16.msra.mxu1 %v3881_v59 }
 0x226   : > { %2543 = vst [vmem:[%s4426_s8 + $0x40] sm:$0xff] %v2447_v31  ;;  %v1965_v45 = vpop.f32.mrf.mxu0 }
 0x227   : > { %v1914_v48 = vpop.f32.mrf.mxu3  ;;  %v5206_v14 = vpop.f32.mrf.mxu1 }
 0x228   : > { %v1915_v51 = vadd.f32 %v1914_v48, %v1865_v25  ;;  %v3853_v25 = vor.u32 %v4100_v36, %v3852_v15 }
 0x22a   : > { %v1964_v60 = vadd.f32 %v1963_v58, %v1915_v51  ;;  %v3473_v58 = vor.u32 %v4001_v17, %v3470_v34  ;;  %2247 = vmatpush.bf16.msra.mxu2 %v3853_v25  ;;  %v3662_v51 = vld [vmem:[%s4421_s5 + $0x238] sm:$0xf0]  ;;  %v3638_v25 = vld [vmem:[%s4421_s5 + $0x208] sm:$0xf0] }
 0x22b   : > { %v3665_v52 = vor.u32 %v4049_v12, %v3662_v51 }
 0x22c   : > { %v2453_v50 = vadd.f32 %v1964_v60, %v451_v29  ;;  %v1867_v6 = vpop.f32.mrf.mxu2  ;;  %2296 = vmatpush.bf16.msra.mxu3 %v3473_v58  ;;  %v4097_v29 = vld [vmem:[%s4421_s5 + $0x3a4] sm:$0xf]  ;;  %v3854_v60 = vld [vmem:[%s4421_s5 + $0x3b8] sm:$0xf0] }
 0x22d   : > { %v3857_v13 = vor.u32 %v4097_v29, %v3854_v60  ;;  %2345 = vmatpush.bf16.msra.mxu0 %v3665_v52  ;;  %v481_v52 = vld [vmem:[%s4426_s8 + $0x160] sm:$0xff] }
 0x22e   : > { %2549 = vst [vmem:[%s4426_s8 + $0x70] sm:$0xff] %v2453_v50  ;;  %v1968_v1 = vpop.f32.mrf.mxu0 }
 0x22f   : > { %v1916_v8 = vpop.f32.mrf.mxu3  ;;  %v5214_v63 = vpop.f32.mrf.mxu1  ;;  %2394 = vmatpush.bf16.msra.mxu1 %v3857_v13  ;;  %v3989_v13 = vld [vmem:[%s4421_s5 + $0x44] sm:$0xf] }
 0x230   : > { %v1917_v3 = vadd.f32 %v1916_v8, %v1867_v6 }
 0x231   : > { %2065 = vmatmul.bf16.gmra.mxu2 %v4771_v23  ;;  %2163 = vmatmul.bf16.gmra.mxu0 %v4767_v21 }
 0x232   : > { %v1966_v9 = vadd.f32 %v1965_v45, %v1917_v3  ;;  %2212 = vmatmul.bf16.gmra.mxu1 %v4771_v23  ;;  %v3995_v3 = vld [vmem:[%s4421_s5 + $0x74] sm:$0xf] }
 0x234   : > { %v2459_v7 = vadd.f32 %v1966_v9, %v457_v5  ;;  %2114 = vmatmul.bf16.gmra.mxu3 %v4849_v49  ;;  %v1870_v11 = vpop.f32.mrf.mxu2  ;;  %v3828_v9 = vld [vmem:[%s4421_s5 + $0x370] sm:$0xf] }
 0x236   : > { %2555 = vst [vmem:[%s4426_s8 + $0xa0] sm:$0xff] %v2459_v7  ;;  %v1970_v31 = vpop.f32.mrf.mxu0  ;;  %v4094_v7 = vld [vmem:[%s4421_s5 + $0x384] sm:$0xf0] }
 0x237   : > { %v1919_v46 = vpop.f32.mrf.mxu3  ;;  %v5226_v27 = vpop.f32.mrf.mxu1  ;;  %v3829_v34 = vor.u32 %v4094_v7, %v3828_v9  ;;  %v487_v9 = vld [vmem:[%s4426_s8 + $0x190] sm:$0xff] }
 0x238   : > { %v1920_v47 = vadd.f32 %v1919_v46, %v1870_v11  ;;  %v475_v46 = vld [vmem:[%s4426_s8 + $0x130] sm:$0xff] }
 0x239   : > { %2248 = vmatpush.bf16.msra.mxu2 %v3829_v34 }
 0x23a   : > { %v1969_v48 = vadd.f32 %v1968_v1, %v1920_v47  ;;  %v3446_v1 = vld [vmem:[%s4421_s5 + $0x88] sm:$0xf0] }
 0x23b   : > { %v3449_v5 = vor.u32 %v3995_v3, %v3446_v1  ;;  %v4088_v3 = vld [vmem:[%s4421_s5 + $0x354] sm:$0xf0] }
 0x23c   : > { %v2465_v28 = vadd.f32 %v1969_v48, %v463_v61  ;;  %v1872_v30 = vpop.f32.mrf.mxu2 }
 0x23d   : > { %2297 = vmatpush.bf16.msra.mxu3 %v3449_v5 }
 0x23e   : > { %2561 = vst [vmem:[%s4426_s8 + $0xd0] sm:$0xff] %v2465_v28  ;;  %v1973_v6 = vpop.f32.mrf.mxu0  ;;  %v4091_v28 = vld [vmem:[%s4421_s5 + $0x374] sm:$0xf] }
 0x23f   : > { %v1921_v45 = vpop.f32.mrf.mxu3  ;;  %v5234_v8 = vpop.f32.mrf.mxu1 }
 0x240   : > { %v1922_v50 = vadd.f32 %v1921_v45, %v1872_v30  ;;  %v3830_v30 = vld [vmem:[%s4421_s5 + $0x388] sm:$0xf0] }
 0x241   : > { %2070 = vmatmul.bf16.gmra.mxu2 %v4799_v55  ;;  %2168 = vmatmul.bf16.gmra.mxu0 %v4795_v53  ;;  %v3833_v45 = vor.u32 %v4091_v28, %v3830_v30  ;;  %v493_v30 = vld [vmem:[%s4426_s8 + $0x1c0] sm:$0xff] }
 0x242   : > { %v1971_v10 = vadd.f32 %v1970_v31, %v1922_v50  ;;  %2217 = vmatmul.bf16.gmra.mxu1 %v4799_v55  ;;  %v4043_v31 = vld [vmem:[%s4421_s5 + $0x1f4] sm:$0xf] }
 0x243   : > { %v3641_v48 = vor.u32 %v4043_v31, %v3638_v25  ;;  %2395 = vmatpush.bf16.msra.mxu1 %v3833_v45  ;;  %v4085_v31 = vld [vmem:[%s4421_s5 + $0x344] sm:$0xf]  ;;  %v3806_v25 = vld [vmem:[%s4421_s5 + $0x358] sm:$0xf0] }
 0x244   : > { %v2471_v0 = vadd.f32 %v1971_v10, %v469_v19  ;;  %2119 = vmatmul.bf16.gmra.mxu3 %v4865_v4  ;;  %v1875_v2 = vpop.f32.mrf.mxu2  ;;  %v3422_v19 = vld [vmem:[%s4421_s5 + $0x58] sm:$0xf0]  ;;  %v3809_v28 = vor.u32 %v4085_v31, %v3806_v25 }
 0x245   : > { %2346 = vmatpush.bf16.msra.mxu0 %v3641_v48 }
 0x246   : > { %2567 = vst [vmem:[%s4426_s8 + $0x100] sm:$0xff] %v2471_v0  ;;  %v1975_v17 = vpop.f32.mrf.mxu0  ;;  %v3425_v0 = vor.u32 %v3989_v13, %v3422_v19  ;;  %v3780_v19 = vld [vmem:[%s4421_s5 + $0x310] sm:$0xf] }
 0x247   : > { %v1924_v59 = vpop.f32.mrf.mxu3  ;;  %v5246_v58 = vpop.f32.mrf.mxu1  ;;  %2396 = vmatpush.bf16.msra.mxu1 %v3809_v28  ;;  %v505_v28 = vld [vmem:[%s4426_s8 + $0x220] sm:$0xff] }
 0x248   : > { %v1925_v11 = vadd.f32 %v1924_v59, %v1875_v2  ;;  %v3804_v2 = vld [vmem:[%s4421_s5 + $0x340] sm:$0xf]  ;;  %2298 = vmatpush.bf16.msra.mxu3 %v3425_v0 }
 0x249   : > { %v3805_v5 = vor.u32 %v4088_v3, %v3804_v2 }
 0x24a   : > { %v1974_v15 = vadd.f32 %v1973_v6, %v1925_v11 }
 0x24b   : > { %2249 = vmatpush.bf16.msra.mxu2 %v3805_v5 }
 0x24c   : > { %v2477_v36 = vadd.f32 %v1974_v15, %v475_v46  ;;  %v1877_v47 = vpop.f32.mrf.mxu2  ;;  %v4037_v46 = vld [vmem:[%s4421_s5 + $0x1c4] sm:$0xf]  ;;  %v3614_v15 = vld [vmem:[%s4421_s5 + $0x1d8] sm:$0xf0] }
 0x24e   : > { %2573 = vst [vmem:[%s4426_s8 + $0x130] sm:$0xff] %v2477_v36  ;;  %v1978_v51 = vpop.f32.mrf.mxu0 }
 0x24f   : > { %v1926_v61 = vpop.f32.mrf.mxu3  ;;  %v5254_v29 = vpop.f32.mrf.mxu1 }
 0x250   : > { %v1927_v12 = vadd.f32 %v1926_v61, %v1877_v47  ;;  %v3617_v47 = vor.u32 %v4037_v46, %v3614_v15 }
 0x251   : > { %2075 = vmatmul.bf16.gmra.mxu2 %v4681_v42  ;;  %2173 = vmatmul.bf16.gmra.mxu0 %v4674_v37 }
 0x252   : > { %v1976_v60 = vadd.f32 %v1975_v17, %v1927_v12  ;;  %2222 = vmatmul.bf16.gmra.mxu1 %v4681_v42  ;;  %2347 = vmatpush.bf16.msra.mxu0 %v3617_v47  ;;  %v3782_v47 = vld [vmem:[%s4421_s5 + $0x328] sm:$0xf0] }
 0x254   : > { %v2483_v50 = vadd.f32 %v1976_v60, %v481_v52  ;;  %2124 = vmatmul.bf16.gmra.mxu3 %v4881_v20  ;;  %v1880_v6 = vpop.f32.mrf.mxu2  ;;  %v3983_v60 = vld [vmem:[%s4421_s5 + $0x14] sm:$0xf] }
 0x256   : > { %2579 = vst [vmem:[%s4426_s8 + $0x160] sm:$0xff] %v2483_v50  ;;  %v1980_v59 = vpop.f32.mrf.mxu0  ;;  %v3398_v50 = vld [vmem:[%s4421_s5 + $0x28] sm:$0xf0] }
 0x257   : > { %v1929_v10 = vpop.f32.mrf.mxu3  ;;  %v5266_v7 = vpop.f32.mrf.mxu1  ;;  %v3401_v13 = vor.u32 %v3983_v60, %v3398_v50 }
 0x258   : > { %v1930_v1 = vadd.f32 %v1929_v10, %v1880_v6  ;;  %v4082_v10 = vld [vmem:[%s4421_s5 + $0x324] sm:$0xf0] }
 0x259   : > { %v3781_v3 = vor.u32 %v4082_v10, %v3780_v19  ;;  %2299 = vmatpush.bf16.msra.mxu3 %v3401_v13 }
 0x25a   : > { %v1979_v11 = vadd.f32 %v1978_v51, %v1930_v1  ;;  %v499_v1 = vld [vmem:[%s4426_s8 + $0x1f0] sm:$0xff] }
 0x25b   : > { %2250 = vmatpush.bf16.msra.mxu2 %v3781_v3 }
 0x25c   : > { %v2489_v17 = vadd.f32 %v1979_v11, %v487_v9  ;;  %v1882_v34 = vpop.f32.mrf.mxu2 }
 0x25e   : > { %2585 = vst [vmem:[%s4426_s8 + $0x190] sm:$0xff] %v2489_v17  ;;  %v1983_v48 = vpop.f32.mrf.mxu0  ;;  %v4031_v17 = vld [vmem:[%s4421_s5 + $0x194] sm:$0xf] }
 0x25f   : > { %v1931_v36 = vpop.f32.mrf.mxu3  ;;  %v5274_v12 = vpop.f32.mrf.mxu1 }
 0x260   : > { %v1932_v61 = vadd.f32 %v1931_v36, %v1882_v34  ;;  %v3590_v34 = vld [vmem:[%s4421_s5 + $0x1a8] sm:$0xf0]  ;;  %v4079_v36 = vld [vmem:[%s4421_s5 + $0x314] sm:$0xf] }
 0x261   : > { %2080 = vmatmul.bf16.gmra.mxu2 %v4733_v40  ;;  %2178 = vmatmul.bf16.gmra.mxu0 %v4726_v33  ;;  %v3593_v15 = vor.u32 %v4031_v17, %v3590_v34 }
 0x262   : > { %v1981_v51 = vadd.f32 %v1980_v59, %v1932_v61  ;;  %2227 = vmatmul.bf16.gmra.mxu1 %v4733_v40  ;;  %v3785_v61 = vor.u32 %v4079_v36, %v3782_v47  ;;  %v523_v47 = vld [vmem:[%s4426_s8 + $0x2b0] sm:$0xff] }
 0x263   : > { %2348 = vmatpush.bf16.msra.mxu0 %v3593_v15 }
 0x264   : > { %v2495_v45 = vadd.f32 %v1981_v51, %v493_v30  ;;  %2129 = vmatmul.bf16.gmra.mxu3 %v4907_v62  ;;  %v1885_v52 = vpop.f32.mrf.mxu2  ;;  %2397 = vmatpush.bf16.msra.mxu1 %v3785_v61 }
 0x266   : > { %2591 = vst [vmem:[%s4426_s8 + $0x1c0] sm:$0xff] %v2495_v45  ;;  %v1985_v2 = vpop.f32.mrf.mxu0 }
 0x267   : > { %v1934_v6 = vpop.f32.mrf.mxu3  ;;  %v5286_v59 = vpop.f32.mrf.mxu1 }
 0x268   : > { %v1935_v0 = vadd.f32 %v1934_v6, %v1885_v52  ;;  %v511_v6 = vld [vmem:[%s4426_s8 + $0x250] sm:$0xff] }
 0x26a   : > { %v1984_v5 = vadd.f32 %v1983_v48, %v1935_v0 }
 0x26c   : > { %v2501_v9 = vadd.f32 %v1984_v5, %v499_v1  ;;  %v1887_v11 = vpop.f32.mrf.mxu2  ;;  %v517_v5 = vld [vmem:[%s4426_s8 + $0x280] sm:$0xff] }
 0x26e   : > { %2597 = vst [vmem:[%s4426_s8 + $0x1f0] sm:$0xff] %v2501_v9  ;;  %v1988_v25 = vpop.f32.mrf.mxu0 }
 0x26f   : > { %v1936_v46 = vpop.f32.mrf.mxu3  ;;  %v5294_v30 = vpop.f32.mrf.mxu1 }
 0x270   : > { %v1937_v31 = vadd.f32 %v1936_v46, %v1887_v11 }
 0x271   : > { %2085 = vmatmul.bf16.gmra.mxu2 %v4773_v24  ;;  %2183 = vmatmul.bf16.gmra.mxu0 %v4769_v22 }
 0x272   : > { %v1986_v48 = vadd.f32 %v1985_v2, %v1937_v31  ;;  %2232 = vmatmul.bf16.gmra.mxu1 %v4773_v24 }
 0x274   : > { %v2507_v51 = vadd.f32 %v1986_v48, %v505_v28  ;;  %2134 = vmatmul.bf16.gmra.mxu3 %v4935_v35  ;;  %v1890_v45 = vpop.f32.mrf.mxu2 }
 0x276   : > { %2603 = vst [vmem:[%s4426_s8 + $0x220] sm:$0xff] %v2507_v51  ;;  %v1990_v50 = vpop.f32.mrf.mxu0 }
 0x277   : > { %v1939_v52 = vpop.f32.mrf.mxu3  ;;  %v5302_v13 = vpop.f32.mrf.mxu1 }
 0x278   : > { %v1940_v60 = vadd.f32 %v1939_v52, %v1890_v45  ;;  %v529_v52 = vld [vmem:[%s4426_s8 + $0x2e0] sm:$0xff] }
 0x27a   : > { %v1989_v19 = vadd.f32 %v1988_v25, %v1940_v60 }
 0x27c   : > { %v2513_v10 = vadd.f32 %v1989_v19, %v511_v6  ;;  %v1892_v0 = vpop.f32.mrf.mxu2 }
 0x27e   : > { %2609 = vst [vmem:[%s4426_s8 + $0x250] sm:$0xff] %v2513_v10  ;;  %v1993_v1 = vpop.f32.mrf.mxu0 }
 0x27f   : > { %v1941_v2 = vpop.f32.mrf.mxu3  ;;  %v5306_v9 = vpop.f32.mrf.mxu1 }
 0x280   : > { %v1942_v3 = vadd.f32 %v1941_v2, %v1892_v0 }
 0x281   : > { %2090 = vmatmul.bf16.gmra.mxu2 %v4801_v56  ;;  %2188 = vmatmul.bf16.gmra.mxu0 %v4797_v54 }
 0x282   : > { %v1991_v11 = vadd.f32 %v1990_v50, %v1942_v3  ;;  %2237 = vmatmul.bf16.gmra.mxu1 %v4801_v56  ;;  %v440_v3 = vld [vmem:[%s4426_s8 + $0x18] sm:$0xff] }
 0x284   : > { %v2519_v17 = vadd.f32 %v1991_v11, %v517_v5  ;;  %2139 = vmatmul.bf16.gmra.mxu3 %v4962_v16  ;;  %v1895_v34 = vpop.f32.mrf.mxu2 }
 0x286   : > { %2615 = vst [vmem:[%s4426_s8 + $0x280] sm:$0xff] %v2519_v17  ;;  %v1995_v36 = vpop.f32.mrf.mxu0 }
 0x287   : > { %v1944_v46 = vpop.f32.mrf.mxu3  ;;  %v5314_v31 = vpop.f32.mrf.mxu1 }
 0x288   : > { %v1945_v15 = vadd.f32 %v1944_v46, %v1895_v34 }
 0x28a   : > { %v1994_v25 = vadd.f32 %v1993_v1, %v1945_v15 }
 0x28c   : > { %v2525_v61 = vadd.f32 %v1994_v25, %v523_v47  ;;  %v1897_v28 = vpop.f32.mrf.mxu2 }
 0x28e   : > { %2621 = vst [vmem:[%s4426_s8 + $0x2b0] sm:$0xff] %v2525_v61  ;;  %v2154_v45 = vpop.f32.mrf.mxu0 }
 0x28f   : > { %v1946_v48 = vpop.f32.mrf.mxu3  ;;  %v2203_v60 = vpop.f32.mrf.mxu1 }
 0x290   : > { %v1947_v51 = vadd.f32 %v1946_v48, %v1897_v28  ;;  %v5318_v6 = vadd.f32 %v2203_v60, %v2154_v45  ;;  %v452_v48 = vld [vmem:[%s4426_s8 + $0x78] sm:$0xff] }
 0x291   : > { %2251 = vmatmul.bf16.vlgmr.msra.gmra.mxu2 %v5959_v57  ;;  %2349 = vmatmul.bf16.vlgmr.msra.gmra.mxu0 %v4679_v41 }
 0x292   : > { %v1996_v50 = vadd.f32 %v1995_v36, %v1947_v51  ;;  %2398 = vmatmul.bf16.vlgmr.msra.gmra.mxu1 %v5959_v57  ;;  %v446_v57 = vld [vmem:[%s4426_s8 + $0x48] sm:$0xff] }
 0x294   : > { %v2531_v19 = vadd.f32 %v1996_v50, %v529_v52  ;;  %2300 = vmatmul.bf16.vlgmr.msra.gmra.mxu3 %v5958_v18  ;;  %v2056_v10 = vpop.f32.mrf.mxu2 }
 0x295   : > { %v2057_v0 = vadd.f32 %v2056_v10, %v5173_v44 }
 0x296   : > { %2627 = vst [vmem:[%s4426_s8 + $0x2e0] sm:$0xff] %v2531_v19  ;;  %v2156_v1 = vpop.f32.mrf.mxu0 }
 0x297   : > { %v2105_v2 = vpop.f32.mrf.mxu3  ;;  %v2205_v11 = vpop.f32.mrf.mxu1 }
 0x298   : > { %v2106_v5 = vadd.f32 %v2105_v2, %v2057_v0  ;;  %v5327_v17 = vadd.f32 %v2205_v11, %v2156_v1  ;;  %v464_v11 = vld [vmem:[%s4426_s8 + $0xd8] sm:$0xff] }
 0x29a   : > { %v2442_v34 = vadd.f32 %v2106_v5, %v440_v3 }
 0x29c   : > { %2538 = vst [vmem:[%s4426_s8 + $0x18] sm:$0xff] %v2442_v34  ;;  %v2058_v41 = vpop.f32.mrf.mxu2 }
 0x29d   : > { %v2059_v18 = vadd.f32 %v2058_v41, %v5186_v38 }
 0x29e   : > { %v2159_v15 = vpop.f32.mrf.mxu0 }
 0x29f   : > { %v2107_v46 = vpop.f32.mrf.mxu3  ;;  %v2208_v47 = vpop.f32.mrf.mxu1 }
 0x2a0   : > { %v2108_v36 = vadd.f32 %v2107_v46, %v2059_v18  ;;  %v5332_v44 = vadd.f32 %v2208_v47, %v2159_v15 }
 0x2a1   : > { %2256 = vmatmul.bf16.gmra.mxu2 %v4833_v26  ;;  %2354 = vmatmul.bf16.gmra.mxu0 %v4731_v39 }
 0x2a2   : > { %v2448_v25 = vadd.f32 %v2108_v36, %v446_v57  ;;  %2403 = vmatmul.bf16.gmra.mxu1 %v4833_v26  ;;  %v458_v26 = vld [vmem:[%s4426_s8 + $0xa8] sm:$0xff] }
 0x2a4   : > { %2305 = vmatmul.bf16.gmra.mxu3 %v4724_v32  ;;  %2544 = vst [vmem:[%s4426_s8 + $0x48] sm:$0xff] %v2448_v25  ;;  %v2061_v38 = vpop.f32.mrf.mxu2 }
 0x2a5   : > { %v2062_v61 = vadd.f32 %v2061_v38, %v5194_v43 }
 0x2a6   : > { %v2161_v51 = vpop.f32.mrf.mxu0 }
 0x2a7   : > { %v2110_v28 = vpop.f32.mrf.mxu3  ;;  %v2210_v52 = vpop.f32.mrf.mxu1 }
 0x2a8   : > { %v2111_v45 = vadd.f32 %v2110_v28, %v2062_v61  ;;  %v5341_v60 = vadd.f32 %v2210_v52, %v2161_v51 }
 0x2aa   : > { %v2454_v50 = vadd.f32 %v2111_v45, %v452_v48  ;;  %v476_v48 = vld [vmem:[%s4426_s8 + $0x138] sm:$0xff] }
 0x2ac   : > { %2550 = vst [vmem:[%s4426_s8 + $0x78] sm:$0xff] %v2454_v50  ;;  %v2063_v39 = vpop.f32.mrf.mxu2 }
 0x2ad   : > { %v2064_v32 = vadd.f32 %v2063_v39, %v5206_v14 }
 0x2ae   : > { %v2164_v10 = vpop.f32.mrf.mxu0 }
 0x2af   : > { %v2112_v19 = vpop.f32.mrf.mxu3  ;;  %v2213_v2 = vpop.f32.mrf.mxu1 }
 0x2b0   : > { %v2113_v0 = vadd.f32 %v2112_v19, %v2064_v32  ;;  %v5346_v43 = vadd.f32 %v2213_v2, %v2164_v10 }
 0x2b1   : > { %2261 = vmatmul.bf16.gmra.mxu2 %v4849_v49  ;;  %2359 = vmatmul.bf16.gmra.mxu0 %v4771_v23 }
 0x2b2   : > { %v2460_v3 = vadd.f32 %v2113_v0, %v458_v26  ;;  %2408 = vmatmul.bf16.gmra.mxu1 %v4849_v49  ;;  %v470_v49 = vld [vmem:[%s4426_s8 + $0x108] sm:$0xff] }
 0x2b4   : > { %2310 = vmatmul.bf16.gmra.mxu3 %v4767_v21  ;;  %2556 = vst [vmem:[%s4426_s8 + $0xa8] sm:$0xff] %v2460_v3  ;;  %v2066_v14 = vpop.f32.mrf.mxu2 }
 0x2b5   : > { %v2067_v1 = vadd.f32 %v2066_v14, %v5214_v63  ;;  %v488_v14 = vld [vmem:[%s4426_s8 + $0x198] sm:$0xff] }
 0x2b6   : > { %v2166_v34 = vpop.f32.mrf.mxu0 }
 0x2b7   : > { %v2115_v5 = vpop.f32.mrf.mxu3  ;;  %v2215_v18 = vpop.f32.mrf.mxu1 }
 0x2b8   : > { %v2116_v41 = vadd.f32 %v2115_v5, %v2067_v1  ;;  %v5355_v46 = vadd.f32 %v2215_v18, %v2166_v34 }
 0x2ba   : > { %v2466_v57 = vadd.f32 %v2116_v41, %v464_v11 }
 0x2bc   : > { %2562 = vst [vmem:[%s4426_s8 + $0xd8] sm:$0xff] %v2466_v57  ;;  %v2068_v23 = vpop.f32.mrf.mxu2 }
 0x2bd   : > { %v2069_v21 = vadd.f32 %v2068_v23, %v5226_v27 }
 0x2be   : > { %v2169_v36 = vpop.f32.mrf.mxu0 }
 0x2bf   : > { %v2117_v15 = vpop.f32.mrf.mxu3  ;;  %v2218_v25 = vpop.f32.mrf.mxu1 }
 0x2c0   : > { %v2118_v47 = vadd.f32 %v2117_v15, %v2069_v21  ;;  %v5360_v63 = vadd.f32 %v2218_v25, %v2169_v36 }
 0x2c1   : > { %2266 = vmatmul.bf16.gmra.mxu2 %v4865_v4  ;;  %2364 = vmatmul.bf16.gmra.mxu0 %v4799_v55 }
 0x2c2   : > { %v2472_v38 = vadd.f32 %v2118_v47, %v470_v49  ;;  %2413 = vmatmul.bf16.gmra.mxu1 %v4865_v4  ;;  %v482_v4 = vld [vmem:[%s4426_s8 + $0x168] sm:$0xff]  ;;  %v500_v47 = vld [vmem:[%s4426_s8 + $0x1f8] sm:$0xff] }
 0x2c4   : > { %2315 = vmatmul.bf16.gmra.mxu3 %v4795_v53  ;;  %2568 = vst [vmem:[%s4426_s8 + $0x108] sm:$0xff] %v2472_v38  ;;  %v2071_v27 = vpop.f32.mrf.mxu2 }
 0x2c5   : > { %v2072_v61 = vadd.f32 %v2071_v27, %v5234_v8 }
 0x2c6   : > { %v2171_v51 = vpop.f32.mrf.mxu0 }
 0x2c7   : > { %v2120_v28 = vpop.f32.mrf.mxu3  ;;  %v2220_v52 = vpop.f32.mrf.mxu1 }
 0x2c8   : > { %v2121_v45 = vadd.f32 %v2120_v28, %v2072_v61  ;;  %v5369_v50 = vadd.f32 %v2220_v52, %v2171_v51 }
 0x2ca   : > { %v2478_v39 = vadd.f32 %v2121_v45, %v476_v48 }
 0x2cc   : > { %2574 = vst [vmem:[%s4426_s8 + $0x138] sm:$0xff] %v2478_v39  ;;  %v2073_v55 = vpop.f32.mrf.mxu2 }
 0x2cd   : > { %v2074_v53 = vadd.f32 %v2073_v55, %v5246_v58 }
 0x2ce   : > { %v2174_v19 = vpop.f32.mrf.mxu0 }
 0x2cf   : > { %v2122_v32 = vpop.f32.mrf.mxu3  ;;  %v2223_v10 = vpop.f32.mrf.mxu1 }
 0x2d0   : > { %v2123_v26 = vadd.f32 %v2122_v32, %v2074_v53  ;;  %v5374_v8 = vadd.f32 %v2223_v10, %v2174_v19  ;;  %v512_v32 = vld [vmem:[%s4426_s8 + $0x258] sm:$0xff] }
 0x2d1   : > { %2271 = vmatmul.bf16.gmra.mxu2 %v4881_v20  ;;  %2369 = vmatmul.bf16.gmra.mxu0 %v4681_v42 }
 0x2d2   : > { %v2484_v0 = vadd.f32 %v2123_v26, %v482_v4  ;;  %2418 = vmatmul.bf16.gmra.mxu1 %v4881_v20  ;;  %v494_v20 = vld [vmem:[%s4426_s8 + $0x1c8] sm:$0xff] }
 0x2d4   : > { %2320 = vmatmul.bf16.gmra.mxu3 %v4674_v37  ;;  %2580 = vst [vmem:[%s4426_s8 + $0x168] sm:$0xff] %v2484_v0  ;;  %v2076_v58 = vpop.f32.mrf.mxu2 }
 0x2d5   : > { %v2077_v2 = vadd.f32 %v2076_v58, %v5254_v29 }
 0x2d6   : > { %v2176_v1 = vpop.f32.mrf.mxu0 }
 0x2d7   : > { %v2125_v3 = vpop.f32.mrf.mxu3  ;;  %v2225_v11 = vpop.f32.mrf.mxu1 }
 0x2d8   : > { %v2126_v5 = vadd.f32 %v2125_v3, %v2077_v2  ;;  %v5383_v34 = vadd.f32 %v2225_v11, %v2176_v1 }
 0x2da   : > { %v2490_v41 = vadd.f32 %v2126_v5, %v488_v14 }
 0x2dc   : > { %2586 = vst [vmem:[%s4426_s8 + $0x198] sm:$0xff] %v2490_v41  ;;  %v2078_v42 = vpop.f32.mrf.mxu2  ;;  %v524_v41 = vld [vmem:[%s4426_s8 + $0x2b8] sm:$0xff] }
 0x2dd   : > { %v2079_v37 = vadd.f32 %v2078_v42, %v5266_v7 }
 0x2de   : > { %v2179_v57 = vpop.f32.mrf.mxu0 }
 0x2df   : > { %v2127_v18 = vpop.f32.mrf.mxu3  ;;  %v2228_v21 = vpop.f32.mrf.mxu1 }
 0x2e0   : > { %v2128_v23 = vadd.f32 %v2127_v18, %v2079_v37  ;;  %v5388_v29 = vadd.f32 %v2228_v21, %v2179_v57 }
 0x2e1   : > { %2276 = vmatmul.bf16.gmra.mxu2 %v4907_v62  ;;  %2374 = vmatmul.bf16.gmra.mxu0 %v4733_v40 }
 0x2e2   : > { %v2496_v15 = vadd.f32 %v2128_v23, %v494_v20  ;;  %2423 = vmatmul.bf16.gmra.mxu1 %v4907_v62  ;;  %v506_v62 = vld [vmem:[%s4426_s8 + $0x228] sm:$0xff] }
 0x2e3   : > { %v530_v23 = vld [vmem:[%s4426_s8 + $0x2e8] sm:$0xff] }
 0x2e4   : > { %2325 = vmatmul.bf16.gmra.mxu3 %v4726_v33  ;;  %2592 = vst [vmem:[%s4426_s8 + $0x1c8] sm:$0xff] %v2496_v15  ;;  %v2081_v7 = vpop.f32.mrf.mxu2 }
 0x2e5   : > { %v2082_v49 = vadd.f32 %v2081_v7, %v5274_v12 }
 0x2e6   : > { %v2181_v25 = vpop.f32.mrf.mxu0 }
 0x2e7   : > { %v2130_v36 = vpop.f32.mrf.mxu3  ;;  %v2230_v27 = vpop.f32.mrf.mxu1 }
 0x2e8   : > { %v2131_v38 = vadd.f32 %v2130_v36, %v2082_v49  ;;  %v5397_v61 = vadd.f32 %v2230_v27, %v2181_v25  ;;  %v441_v49 = vld [vmem:[%s4426_s8 + $0x20] sm:$0xff] }
 0x2ea   : > { %v2502_v28 = vadd.f32 %v2131_v38, %v500_v47 }
 0x2ec   : > { %2598 = vst [vmem:[%s4426_s8 + $0x1f8] sm:$0xff] %v2502_v28  ;;  %v2083_v40 = vpop.f32.mrf.mxu2 }
 0x2ed   : > { %v2084_v33 = vadd.f32 %v2083_v40, %v5286_v59 }
 0x2ee   : > { %v2184_v51 = vpop.f32.mrf.mxu0 }
 0x2ef   : > { %v2132_v48 = vpop.f32.mrf.mxu3  ;;  %v2233_v52 = vpop.f32.mrf.mxu1 }
 0x2f0   : > { %v2133_v45 = vadd.f32 %v2132_v48, %v2084_v33  ;;  %v5402_v12 = vadd.f32 %v2233_v52, %v2184_v51 }
 0x2f1   : > { %2281 = vmatmul.bf16.gmra.mxu2 %v4935_v35  ;;  %2379 = vmatmul.bf16.gmra.mxu0 %v4773_v24 }
 0x2f2   : > { %v2508_v39 = vadd.f32 %v2133_v45, %v506_v62  ;;  %2428 = vmatmul.bf16.gmra.mxu1 %v4935_v35  ;;  %v518_v35 = vld [vmem:[%s4426_s8 + $0x288] sm:$0xff]  ;;  %v447_v62 = vld [vmem:[%s4426_s8 + $0x50] sm:$0xff] }
 0x2f4   : > { %2330 = vmatmul.bf16.gmra.mxu3 %v4769_v22  ;;  %2604 = vst [vmem:[%s4426_s8 + $0x228] sm:$0xff] %v2508_v39  ;;  %v2086_v59 = vpop.f32.mrf.mxu2 }
 0x2f5   : > { %v2087_v55 = vadd.f32 %v2086_v59, %v5294_v30 }
 0x2f6   : > { %v2186_v4 = vpop.f32.mrf.mxu0 }
 0x2f7   : > { %v2135_v53 = vpop.f32.mrf.mxu3  ;;  %v2235_v26 = vpop.f32.mrf.mxu1 }
 0x2f8   : > { %v2136_v19 = vadd.f32 %v2135_v53, %v2087_v55  ;;  %v5411_v10 = vadd.f32 %v2235_v26, %v2186_v4  ;;  %v448_v55 = vld [vmem:[%s4426_s8 + $0x58] sm:$0xff] }
 0x2fa   : > { %v2514_v0 = vadd.f32 %v2136_v19, %v512_v32  ;;  %v453_v19 = vld [vmem:[%s4426_s8 + $0x80] sm:$0xff] }
 0x2fc   : > { %2610 = vst [vmem:[%s4426_s8 + $0x258] sm:$0xff] %v2514_v0  ;;  %v2088_v24 = vpop.f32.mrf.mxu2 }
 0x2fd   : > { %v2089_v22 = vadd.f32 %v2088_v24, %v5302_v13 }
 0x2fe   : > { %v2189_v2 = vpop.f32.mrf.mxu0 }
 0x2ff   : > { %v2137_v58 = vpop.f32.mrf.mxu3  ;;  %v2238_v14 = vpop.f32.mrf.mxu1 }
 0x300   : > { %v2138_v3 = vadd.f32 %v2137_v58, %v2089_v22  ;;  %v5416_v30 = vadd.f32 %v2238_v14, %v2189_v2 }
 0x301   : > { %2286 = vmatmul.bf16.gmra.mxu2 %v4962_v16  ;;  %2384 = vmatmul.bf16.gmra.mxu0 %v4801_v56 }
 0x302   : > { %v2520_v1 = vadd.f32 %v2138_v3, %v518_v35  ;;  %2433 = vmatmul.bf16.gmra.mxu1 %v4962_v16  ;;  %v454_v35 = vld [vmem:[%s4426_s8 + $0x88] sm:$0xff] }
 0x304   : > { %2335 = vmatmul.bf16.gmra.mxu3 %v4797_v54  ;;  %2616 = vst [vmem:[%s4426_s8 + $0x288] sm:$0xff] %v2520_v1  ;;  %v2091_v13 = vpop.f32.mrf.mxu2  ;;  %v459_v1 = vld [vmem:[%s4426_s8 + $0xb0] sm:$0xff] }
 0x305   : > { %v2092_v5 = vadd.f32 %v2091_v13, %v5306_v9 }
 0x306   : > { %v2191_v42 = vpop.f32.mrf.mxu0 }
 0x307   : > { %v2140_v11 = vpop.f32.mrf.mxu3  ;;  %v2240_v18 = vpop.f32.mrf.mxu1 }
 0x308   : > { %v2141_v37 = vadd.f32 %v2140_v11, %v2092_v5  ;;  %v5425_v20 = vadd.f32 %v2240_v18, %v2191_v42 }
 0x30a   : > { %v2526_v57 = vadd.f32 %v2141_v37, %v524_v41  ;;  %v460_v37 = vld [vmem:[%s4426_s8 + $0xb8] sm:$0xff] }
 0x30c   : > { %2622 = vst [vmem:[%s4426_s8 + $0x2b8] sm:$0xff] %v2526_v57  ;;  %v2093_v56 = vpop.f32.mrf.mxu2 }
 0x30d   : > { %v2094_v54 = vadd.f32 %v2093_v56, %v5314_v31  ;;  %v442_v31 = vld [vmem:[%s4426_s8 + $0x28] sm:$0xff] }
 0x30e   : > { %v2350_v21 = vpop.f32.mrf.mxu0 }
 0x30f   : > { %v2142_v16 = vpop.f32.mrf.mxu3  ;;  %v2399_v15 = vpop.f32.mrf.mxu1 }
 0x310   : > { %v2143_v9 = vadd.f32 %v2142_v16, %v2094_v54  ;;  %v465_v54 = vld [vmem:[%s4426_s8 + $0xe0] sm:$0xff] }
 0x312   : > { %v2532_v7 = vadd.f32 %v2143_v9, %v530_v23 }
 0x314   : > { %2628 = vst [vmem:[%s4426_s8 + $0x2e8] sm:$0xff] %v2532_v7  ;;  %v2252_v36 = vpop.f32.mrf.mxu2  ;;  %v466_v7 = vld [vmem:[%s4426_s8 + $0xe8] sm:$0xff] }
 0x315   : > { %v2253_v47 = vadd.f32 %v2252_v36, %v5318_v6 }
 0x316   : > { %v2352_v27 = vpop.f32.mrf.mxu0 }
 0x317   : > { %v2301_v25 = vpop.f32.mrf.mxu3  ;;  %v2443_v28 = vadd.f32 %v2253_v47, %v441_v49  ;;  %v2401_v40 = vpop.f32.mrf.mxu1 }
 0x318   : > { %v2351_v38 = vadd.f32 %v2350_v21, %v2301_v25  ;;  %v471_v25 = vld [vmem:[%s4426_s8 + $0x110] sm:$0xff] }
 0x319   : > { %2539 = vst [vmem:[%s4426_s8 + $0x20] sm:$0xff] %v2443_v28 }
 0x31a   : > { %v2400_v33 = vadd.f32 %v2399_v15, %v2351_v38 }
 0x31c   : > { %v2444_v48 = vadd.f32 %v2400_v33, %v442_v31  ;;  %v2254_v51 = vpop.f32.mrf.mxu2  ;;  %v472_v33 = vld [vmem:[%s4426_s8 + $0x118] sm:$0xff] }
 0x31d   : > { %v2255_v45 = vadd.f32 %v2254_v51, %v5327_v17 }
 0x31e   : > { %2540 = vst [vmem:[%s4426_s8 + $0x28] sm:$0xff] %v2444_v48  ;;  %v2355_v39 = vpop.f32.mrf.mxu0 }
 0x31f   : > { %v2303_v52 = vpop.f32.mrf.mxu3  ;;  %v2449_v59 = vadd.f32 %v2255_v45, %v447_v62  ;;  %v2404_v53 = vpop.f32.mrf.mxu1  ;;  %v477_v45 = vld [vmem:[%s4426_s8 + $0x140] sm:$0xff] }
 0x320   : > { %v2353_v6 = vadd.f32 %v2352_v27, %v2303_v52 }
 0x321   : > { %2545 = vst [vmem:[%s4426_s8 + $0x50] sm:$0xff] %v2449_v59 }
 0x322   : > { %v2402_v32 = vadd.f32 %v2401_v40, %v2353_v6 }
 0x324   : > { %v2450_v4 = vadd.f32 %v2402_v32, %v448_v55  ;;  %v2257_v26 = vpop.f32.mrf.mxu2 }
 0x325   : > { %v2258_v0 = vadd.f32 %v2257_v26, %v5332_v44  ;;  %v483_v26 = vld [vmem:[%s4426_s8 + $0x170] sm:$0xff] }
 0x326   : > { %2546 = vst [vmem:[%s4426_s8 + $0x58] sm:$0xff] %v2450_v4  ;;  %v2357_v22 = vpop.f32.mrf.mxu0 }
 0x327   : > { %v2306_v24 = vpop.f32.mrf.mxu3  ;;  %v2455_v58 = vadd.f32 %v2258_v0, %v453_v19  ;;  %v2406_v2 = vpop.f32.mrf.mxu1 }
 0x328   : > { %v2356_v17 = vadd.f32 %v2355_v39, %v2306_v24 }
 0x329   : > { %2551 = vst [vmem:[%s4426_s8 + $0x80] sm:$0xff] %v2455_v58 }
 0x32a   : > { %v2405_v3 = vadd.f32 %v2404_v53, %v2356_v17  ;;  %v478_v53 = vld [vmem:[%s4426_s8 + $0x148] sm:$0xff] }
 0x32c   : > { %v2456_v14 = vadd.f32 %v2405_v3, %v454_v35  ;;  %v2259_v13 = vpop.f32.mrf.mxu2  ;;  %v484_v35 = vld [vmem:[%s4426_s8 + $0x178] sm:$0xff] }
 0x32d   : > { %v2260_v5 = vadd.f32 %v2259_v13, %v5341_v60 }
 0x32e   : > { %2552 = vst [vmem:[%s4426_s8 + $0x88] sm:$0xff] %v2456_v14  ;;  %v2360_v41 = vpop.f32.mrf.mxu0 }
 0x32f   : > { %v2308_v11 = vpop.f32.mrf.mxu3  ;;  %v2461_v42 = vadd.f32 %v2260_v5, %v459_v1  ;;  %v2409_v18 = vpop.f32.mrf.mxu1  ;;  %v489_v1 = vld [vmem:[%s4426_s8 + $0x1a0] sm:$0xff] }
 0x330   : > { %v2358_v44 = vadd.f32 %v2357_v22, %v2308_v11 }
 0x331   : > { %2557 = vst [vmem:[%s4426_s8 + $0xb0] sm:$0xff] %v2461_v42  ;;  %v490_v42 = vld [vmem:[%s4426_s8 + $0x1a8] sm:$0xff] }
 0x332   : > { %v2407_v57 = vadd.f32 %v2406_v2, %v2358_v44 }
 0x334   : > { %v2462_v56 = vadd.f32 %v2407_v57, %v460_v37  ;;  %v2262_v16 = vpop.f32.mrf.mxu2 }
 0x335   : > { %v2263_v23 = vadd.f32 %v2262_v16, %v5346_v43 }
 0x336   : > { %2558 = vst [vmem:[%s4426_s8 + $0xb8] sm:$0xff] %v2462_v56  ;;  %v2362_v9 = vpop.f32.mrf.mxu0  ;;  %v495_v56 = vld [vmem:[%s4426_s8 + $0x1d0] sm:$0xff] }
 0x337   : > { %v2311_v21 = vpop.f32.mrf.mxu3  ;;  %v2467_v15 = vadd.f32 %v2263_v23, %v465_v54  ;;  %v2411_v49 = vpop.f32.mrf.mxu1 }
 0x338   : > { %v2361_v60 = vadd.f32 %v2360_v41, %v2311_v21 }
 0x339   : > { %2563 = vst [vmem:[%s4426_s8 + $0xe0] sm:$0xff] %v2467_v15 }
 0x33a   : > { %v2410_v36 = vadd.f32 %v2409_v18, %v2361_v60 }
 0x33c   : > { %v2468_v47 = vadd.f32 %v2410_v36, %v466_v7  ;;  %v2264_v38 = vpop.f32.mrf.mxu2  ;;  %v501_v36 = vld [vmem:[%s4426_s8 + $0x200] sm:$0xff] }
 0x33d   : > { %v2265_v27 = vadd.f32 %v2264_v38, %v5355_v46 }
 0x33e   : > { %2564 = vst [vmem:[%s4426_s8 + $0xe8] sm:$0xff] %v2468_v47  ;;  %v2365_v31 = vpop.f32.mrf.mxu0 }
 0x33f   : > { %v2313_v28 = vpop.f32.mrf.mxu3  ;;  %v2473_v40 = vadd.f32 %v2265_v27, %v471_v25  ;;  %v2414_v48 = vpop.f32.mrf.mxu1 }
 0x340   : > { %v2363_v43 = vadd.f32 %v2362_v9, %v2313_v28  ;;  %v496_v9 = vld [vmem:[%s4426_s8 + $0x1d8] sm:$0xff] }
 0x341   : > { %2569 = vst [vmem:[%s4426_s8 + $0x110] sm:$0xff] %v2473_v40 }
 0x342   : > { %v2412_v62 = vadd.f32 %v2411_v49, %v2363_v43  ;;  %v502_v43 = vld [vmem:[%s4426_s8 + $0x208] sm:$0xff] }
 0x344   : > { %v2474_v51 = vadd.f32 %v2412_v62, %v472_v33  ;;  %v2267_v52 = vpop.f32.mrf.mxu2 }
 0x345   : > { %v2268_v6 = vadd.f32 %v2267_v52, %v5360_v63 }
 0x346   : > { %2570 = vst [vmem:[%s4426_s8 + $0x118] sm:$0xff] %v2474_v51  ;;  %v2367_v59 = vpop.f32.mrf.mxu0 }
 0x347   : > { %v2316_v39 = vpop.f32.mrf.mxu3  ;;  %v2479_v55 = vadd.f32 %v2268_v6, %v477_v45  ;;  %v2416_v32 = vpop.f32.mrf.mxu1  ;;  %v508_v6 = vld [vmem:[%s4426_s8 + $0x238] sm:$0xff] }
 0x348   : > { %v2366_v46 = vadd.f32 %v2365_v31, %v2316_v39 }
 0x349   : > { %2575 = vst [vmem:[%s4426_s8 + $0x140] sm:$0xff] %v2479_v55 }
 0x34a   : > { %v2415_v4 = vadd.f32 %v2414_v48, %v2366_v46  ;;  %v507_v48 = vld [vmem:[%s4426_s8 + $0x230] sm:$0xff] }
 0x34c   : > { %v2480_v19 = vadd.f32 %v2415_v4, %v478_v53  ;;  %v2269_v0 = vpop.f32.mrf.mxu2  ;;  %v513_v53 = vld [vmem:[%s4426_s8 + $0x260] sm:$0xff] }
 0x34d   : > { %v2270_v24 = vadd.f32 %v2269_v0, %v5369_v50  ;;  %v514_v0 = vld [vmem:[%s4426_s8 + $0x268] sm:$0xff] }
 0x34e   : > { %2576 = vst [vmem:[%s4426_s8 + $0x148] sm:$0xff] %v2480_v19  ;;  %v2370_v22 = vpop.f32.mrf.mxu0 }
 0x34f   : > { %v2318_v17 = vpop.f32.mrf.mxu3  ;;  %v2485_v58 = vadd.f32 %v2270_v24, %v483_v26  ;;  %v2419_v2 = vpop.f32.mrf.mxu1 }
 0x350   : > { %v2368_v63 = vadd.f32 %v2367_v59, %v2318_v17 }
 0x351   : > { %2581 = vst [vmem:[%s4426_s8 + $0x170] sm:$0xff] %v2485_v58  ;;  %v519_v58 = vld [vmem:[%s4426_s8 + $0x290] sm:$0xff] }
 0x352   : > { %v2417_v3 = vadd.f32 %v2416_v32, %v2368_v63 }
 0x354   : > { %v2486_v14 = vadd.f32 %v2417_v3, %v484_v35  ;;  %v2272_v13 = vpop.f32.mrf.mxu2 }
 0x355   : > { %v2273_v5 = vadd.f32 %v2272_v13, %v5374_v8 }
 0x356   : > { %2582 = vst [vmem:[%s4426_s8 + $0x178] sm:$0xff] %v2486_v14  ;;  %v2372_v44 = vpop.f32.mrf.mxu0 }
 0x357   : > { %v2321_v11 = vpop.f32.mrf.mxu3  ;;  %v2491_v41 = vadd.f32 %v2273_v5, %v489_v1  ;;  %v2421_v37 = vpop.f32.mrf.mxu1  ;;  %v520_v1 = vld [vmem:[%s4426_s8 + $0x298] sm:$0xff] }
 0x358   : > { %v2371_v50 = vadd.f32 %v2370_v22, %v2321_v11 }
 0x359   : > { %2587 = vst [vmem:[%s4426_s8 + $0x1a0] sm:$0xff] %v2491_v41 }
 0x35a   : > { %v2420_v18 = vadd.f32 %v2419_v2, %v2371_v50  ;;  %v525_v50 = vld [vmem:[%s4426_s8 + $0x2c0] sm:$0xff] }
 0x35c   : > { %v2492_v57 = vadd.f32 %v2420_v18, %v490_v42  ;;  %v2274_v54 = vpop.f32.mrf.mxu2 }
 0x35d   : > { %v2275_v16 = vadd.f32 %v2274_v54, %v5383_v34 }
 0x35e   : > { %2588 = vst [vmem:[%s4426_s8 + $0x1a8] sm:$0xff] %v2492_v57  ;;  %v2375_v21 = vpop.f32.mrf.mxu0  ;;  %v526_v57 = vld [vmem:[%s4426_s8 + $0x2c8] sm:$0xff] }
 0x35f   : > { %v2323_v23 = vpop.f32.mrf.mxu3  ;;  %v2497_v60 = vadd.f32 %v2275_v16, %v495_v56  ;;  %v2424_v15 = vpop.f32.mrf.mxu1  ;;  %v531_v16 = vld [vmem:[%s4426_s8 + $0x2f0] sm:$0xff] }
 0x360   : > { %v2373_v8 = vadd.f32 %v2372_v44, %v2323_v23 }
 0x361   : > { %2593 = vst [vmem:[%s4426_s8 + $0x1d0] sm:$0xff] %v2497_v60 }
 0x362   : > { %v2422_v7 = vadd.f32 %v2421_v37, %v2373_v8 }
 0x364   : > { %v2498_v49 = vadd.f32 %v2422_v7, %v496_v9  ;;  %v2277_v47 = vpop.f32.mrf.mxu2  ;;  %v532_v7 = vld [vmem:[%s4426_s8 + $0x2f8] sm:$0xff] }
 0x365   : > { %v2278_v25 = vadd.f32 %v2277_v47, %v5388_v29 }
 0x366   : > { %2594 = vst [vmem:[%s4426_s8 + $0x1d8] sm:$0xff] %v2498_v49  ;;  %v2377_v27 = vpop.f32.mrf.mxu0 }
 0x367   : > { %v2326_v38 = vpop.f32.mrf.mxu3  ;;  %v2503_v28 = vadd.f32 %v2278_v25, %v501_v36  ;;  %v2426_v31 = vpop.f32.mrf.mxu1 }
 0x368   : > { %v2376_v34 = vadd.f32 %v2375_v21, %v2326_v38 }
 0x369   : > { %2599 = vst [vmem:[%s4426_s8 + $0x200] sm:$0xff] %v2503_v28 }
 0x36a   : > { %v2425_v40 = vadd.f32 %v2424_v15, %v2376_v34 }
 0x36c   : > { %v2504_v33 = vadd.f32 %v2425_v40, %v502_v43  ;;  %v2279_v62 = vpop.f32.mrf.mxu2 }
 0x36d   : > { %v2280_v51 = vadd.f32 %v2279_v62, %v5397_v61 }
 0x36e   : > { %2600 = vst [vmem:[%s4426_s8 + $0x208] sm:$0xff] %v2504_v33  ;;  %v2380_v39 = vpop.f32.mrf.mxu0 }
 0x36f   : > { %v2328_v45 = vpop.f32.mrf.mxu3  ;;  %v2509_v52 = vadd.f32 %v2280_v51, %v507_v48  ;;  %v2429_v59 = vpop.f32.mrf.mxu1 }
 0x370   : > { %v2378_v29 = vadd.f32 %v2377_v27, %v2328_v45 }
 0x371   : > { %2605 = vst [vmem:[%s4426_s8 + $0x230] sm:$0xff] %v2509_v52 }
 0x372   : > { %v2427_v46 = vadd.f32 %v2426_v31, %v2378_v29 }
 0x374   : > { %v2510_v55 = vadd.f32 %v2427_v46, %v508_v6  ;;  %v2282_v32 = vpop.f32.mrf.mxu2 }
 0x375   : > { %v2283_v4 = vadd.f32 %v2282_v32, %v5402_v12 }
 0x376   : > { %2606 = vst [vmem:[%s4426_s8 + $0x238] sm:$0xff] %v2510_v55  ;;  %v2382_v17 = vpop.f32.mrf.mxu0 }
 0x377   : > { %v2331_v19 = vpop.f32.mrf.mxu3  ;;  %v2515_v26 = vadd.f32 %v2283_v4, %v513_v53  ;;  %v2431_v22 = vpop.f32.mrf.mxu1 }
 0x378   : > { %v2381_v61 = vadd.f32 %v2380_v39, %v2331_v19 }
 0x379   : > { %2611 = vst [vmem:[%s4426_s8 + $0x260] sm:$0xff] %v2515_v26 }
 0x37a   : > { %v2430_v24 = vadd.f32 %v2429_v59, %v2381_v61 }
 0x37c   : > { %v2516_v63 = vadd.f32 %v2430_v24, %v514_v0  ;;  %v2284_v35 = vpop.f32.mrf.mxu2 }
 0x37d   : > { %v2285_v2 = vadd.f32 %v2284_v35, %v5411_v10 }
 0x37e   : > { %2612 = vst [vmem:[%s4426_s8 + $0x268] sm:$0xff] %v2516_v63  ;;  %v2385_v11 = vpop.f32.mrf.mxu0 }
 0x37f   : > { %v2333_v3 = vpop.f32.mrf.mxu3  ;;  %v2521_v14 = vadd.f32 %v2285_v2, %v519_v58  ;;  %v2434_v41 = vpop.f32.mrf.mxu1 }
 0x380   : > { %v2383_v12 = vadd.f32 %v2382_v17, %v2333_v3 }
 0x381   : > { %2617 = vst [vmem:[%s4426_s8 + $0x290] sm:$0xff] %v2521_v14 }
 0x382   : > { %v2432_v13 = vadd.f32 %v2431_v22, %v2383_v12 }
 0x384   : > { %v2522_v5 = vadd.f32 %v2432_v13, %v520_v1  ;;  %v2287_v44 = vpop.f32.mrf.mxu2 }
 0x385   : > { %v2288_v42 = vadd.f32 %v2287_v44, %v5416_v30 }
 0x386   : > { %2618 = vst [vmem:[%s4426_s8 + $0x298] sm:$0xff] %v2522_v5  ;;  %v2387_v8 = vpop.f32.mrf.mxu0 }
 0x387   : > { %v2336_v37 = vpop.f32.mrf.mxu3  ;;  %v2527_v18 = vadd.f32 %v2288_v42, %v525_v50  ;;  %v2436_v15 = vpop.f32.mrf.mxu1 }
 0x388   : > { %v2386_v10 = vadd.f32 %v2385_v11, %v2336_v37 }
 0x389   : > { %2623 = vst [vmem:[%s4426_s8 + $0x2c0] sm:$0xff] %v2527_v18 }
 0x38a   : > { %v2435_v56 = vadd.f32 %v2434_v41, %v2386_v10 }
 0x38c   : > { %v2528_v54 = vadd.f32 %v2435_v56, %v526_v57  ;;  %v2289_v23 = vpop.f32.mrf.mxu2 }
 0x38d   : > { %v2290_v21 = vadd.f32 %v2289_v23, %v5425_v20 }
 0x38e   : > { %2624 = vst [vmem:[%s4426_s8 + $0x2c8] sm:$0xff] %v2528_v54 }
 0x38f   : > { %v2338_v60 = vpop.f32.mrf.mxu3  ;;  %v2533_v30 = vadd.f32 %v2290_v21, %v531_v16 }
 0x390   : > { %v2388_v9 = vadd.f32 %v2387_v8, %v2338_v60 }
 0x391   : > { %2629 = vst [vmem:[%s4426_s8 + $0x2f0] sm:$0xff] %v2533_v30 }
 0x392   : > { %v2437_v49 = vadd.f32 %v2436_v15, %v2388_v9  ;;  %2634 = sbr.rel (%p3954_p13) target bundleno = 1025 (0x401), region = 70 }
 0x394   : > { %v2534_v36 = vadd.f32 %v2437_v49, %v532_v7 }
 0x396   : > { %2630 = vst [vmem:[%s4426_s8 + $0x2f8] sm:$0xff] %v2534_v36 }
 0x397   : > { %v2635_v47 = vld [vmem:[%s4426_s8] sm:$0xff]  ;;  %v2636_v27 = vld [vmem:[%s4426_s8 + $0x8] sm:$0xff]  ;;  %v2637_v31 = vld [vmem:[%s4426_s8 + $0x10] sm:$0xff] }
 0x398   : > { %v2731_v20 = vld [vmem:[%s5949_s2] sm:$0x3f]  ;;  %v2638_v48 = vld [vmem:[%s4426_s8 + $0x18] sm:$0xff]  ;;  %v2640_v46 = vld [vmem:[%s4426_s8 + $0x28] sm:$0xff] }
 0x399   : > { %v2841_v25 = vld [vmem:[%s5950_s3] sm:$0x3f]  ;;  %v5519_v38 = vperm.slane %v2731_v20, 0  ;;  %v5524_v28 = vperm.slane %v2731_v20, 1  ;;  %v5529_v40 = vperm.slane %v2731_v20, 2  ;;  %v5534_v62 = vperm.slane %v2731_v20, 3 }
 0x39a   : > { %v5521_v34 = vperm.slane %v2841_v25, 0  ;;  %v5526_v43 = vperm.slane %v2841_v25, 1  ;;  %v5531_v33 = vperm.slane %v2841_v25, 2  ;;  %v5536_v51 = vperm.slane %v2841_v25, 3  ;;  %v2639_v45 = vld [vmem:[%s4426_s8 + $0x20] sm:$0xff]  ;;  %v2641_v59 = vld [vmem:[%s4426_s8 + $0x30] sm:$0xff] }
 0x39b   : > { %v2745_v29 = vmul.f32 %v5519_v38, %v2635_v47  ;;  %v2746_v52 = vmul.f32 %v5524_v28, %v2636_v27  ;;  %v5541_v6 = vperm.slane %v2731_v20, 4  ;;  %v5543_v39 = vperm.slane %v2841_v25, 4  ;;  %v2642_v55 = vld [vmem:[%s4426_s8 + $0x38] sm:$0xff]  ;;  %v2643_v35 = vld [vmem:[%s4426_s8 + $0x40] sm:$0xff]  ;;  %v2644_v2 = vld [vmem:[%s4426_s8 + $0x48] sm:$0xff] }
 0x39c   : > { %v2747_v53 = vmul.f32 %v5529_v40, %v2637_v31  ;;  %v2748_v32 = vmul.f32 %v5534_v62, %v2638_v48  ;;  %v5550_v4 = vperm.slane %v2731_v20, 5  ;;  %v5552_v19 = vperm.slane %v2841_v25, 5  ;;  %v2645_v13 = vld [vmem:[%s4426_s8 + $0x50] sm:$0xff]  ;;  %v2646_v5 = vld [vmem:[%s4426_s8 + $0x58] sm:$0xff]  ;;  %v2647_v42 = vld [vmem:[%s4426_s8 + $0x60] sm:$0xff] }
 0x39d   : > { %v2855_v61 = vadd.f32 %v5521_v34, %v2745_v29  ;;  %v2856_v26 = vadd.f32 %v5526_v43, %v2746_v52  ;;  %v2749_v0 = vmul.f32 %v5541_v6, %v2639_v45  ;;  %v2751_v24 = vmul.f32 %v5519_v38, %v2641_v59  ;;  %v2648_v37 = vld [vmem:[%s4426_s8 + $0x68] sm:$0xff]  ;;  %v2649_v54 = vld [vmem:[%s4426_s8 + $0x70] sm:$0xff]  ;;  %v2650_v16 = vld [vmem:[%s4426_s8 + $0x78] sm:$0xff] }
 0x39e   : > { %v2857_v17 = vadd.f32 %v5531_v33, %v2747_v53  ;;  %v2858_v63 = vadd.f32 %v5536_v51, %v2748_v32  ;;  %v2750_v22 = vmul.f32 %v5550_v4, %v2640_v46  ;;  %v2752_v58 = vmul.f32 %v5524_v28, %v2642_v55  ;;  %v2651_v25 = vld [vmem:[%s4426_s8 + $0x80] sm:$0xff]  ;;  %v2652_v27 = vld [vmem:[%s4426_s8 + $0x88] sm:$0xff]  ;;  %v2653_v45 = vld [vmem:[%s4426_s8 + $0x90] sm:$0xff] }
 0x39f   : > { %v2951_v3 = vmax.f32 %v2855_v61, 0.0  ;;  %v2952_v12 = vmax.f32 %v2856_v26, 0.0  ;;  %v2859_v14 = vadd.f32 %v5543_v39, %v2749_v0  ;;  %v2861_v1 = vadd.f32 %v5521_v34, %v2751_v24  ;;  %v2654_v29 = vld [vmem:[%s4426_s8 + $0x98] sm:$0xff]  ;;  %v2655_v59 = vld [vmem:[%s4426_s8 + $0xa0] sm:$0xff]  ;;  %v2656_v26 = vld [vmem:[%s4426_s8 + $0xa8] sm:$0xff] }
 0x3a0   : > { %v2953_v11 = vmax.f32 %v2857_v17, 0.0  ;;  %v2954_v50 = vmax.f32 %v2858_v63, 0.0  ;;  %v2860_v44 = vadd.f32 %v5552_v19, %v2750_v22  ;;  %v2862_v41 = vadd.f32 %v5526_v43, %v2752_v58  ;;  %v2657_v22 = vld [vmem:[%s4426_s8 + $0xb0] sm:$0xff] }
 0x3a1   : > { %3047 = vst [vmem:[%s4426_s8] sm:$0xff] %v2951_v3  ;;  %v2955_v10 = vmax.f32 %v2859_v14, 0.0  ;;  %v2957_v18 = vmax.f32 %v2861_v1, 0.0  ;;  %v2753_v57 = vmul.f32 %v5529_v40, %v2643_v35  ;;  %v2754_v56 = vmul.f32 %v5534_v62, %v2644_v2  ;;  %v2658_v3 = vld [vmem:[%s4426_s8 + $0xb8] sm:$0xff] }
 0x3a2   : > { %3048 = vst [vmem:[%s4426_s8 + $0x8] sm:$0xff] %v2952_v12  ;;  %v2956_v23 = vmax.f32 %v2860_v44, 0.0  ;;  %v2958_v8 = vmax.f32 %v2862_v41, 0.0  ;;  %v2755_v21 = vmul.f32 %v5541_v6, %v2645_v13  ;;  %v2756_v60 = vmul.f32 %v5550_v4, %v2646_v5  ;;  %v2659_v13 = vld [vmem:[%s4426_s8 + $0xc0] sm:$0xff]  ;;  %v2660_v44 = vld [vmem:[%s4426_s8 + $0xc8] sm:$0xff] }
 0x3a3   : > { %3049 = vst [vmem:[%s4426_s8 + $0x10] sm:$0xff] %v2953_v11  ;;  %v2863_v9 = vadd.f32 %v5531_v33, %v2753_v57  ;;  %v2864_v15 = vadd.f32 %v5536_v51, %v2754_v56  ;;  %v2757_v30 = vmul.f32 %v5519_v38, %v2647_v42  ;;  %v2758_v7 = vmul.f32 %v5524_v28, %v2648_v37 }
 0x3a4   : > { %3050 = vst [vmem:[%s4426_s8 + $0x18] sm:$0xff] %v2954_v50  ;;  %v2865_v49 = vadd.f32 %v5543_v39, %v2755_v21  ;;  %v2866_v36 = vadd.f32 %v5552_v19, %v2756_v60  ;;  %v2759_v47 = vmul.f32 %v5529_v40, %v2649_v54  ;;  %v2760_v20 = vmul.f32 %v5534_v62, %v2650_v16  ;;  %v2662_v54 = vld [vmem:[%s4426_s8 + $0xd8] sm:$0xff]  ;;  %v2663_v21 = vld [vmem:[%s4426_s8 + $0xe0] sm:$0xff] }
 0x3a5   : > { %3051 = vst [vmem:[%s4426_s8 + $0x20] sm:$0xff] %v2955_v10  ;;  %v2959_v31 = vmax.f32 %v2863_v9, 0.0  ;;  %v2867_v48 = vadd.f32 %v5521_v34, %v2757_v30  ;;  %v2960_v52 = vmax.f32 %v2864_v15, 0.0  ;;  %v2868_v46 = vadd.f32 %v5526_v43, %v2758_v7  ;;  %v2661_v10 = vld [vmem:[%s4426_s8 + $0xd0] sm:$0xff]  ;;  %v2664_v30 = vld [vmem:[%s4426_s8 + $0xe8] sm:$0xff] }
 0x3a6   : > { %3052 = vst [vmem:[%s4426_s8 + $0x28] sm:$0xff] %v2956_v23  ;;  %v2961_v55 = vmax.f32 %v2865_v49, 0.0  ;;  %v2869_v53 = vadd.f32 %v5531_v33, %v2759_v47  ;;  %v2761_v32 = vmul.f32 %v5541_v6, %v2651_v25  ;;  %v2762_v61 = vmul.f32 %v5550_v4, %v2652_v27  ;;  %v2665_v47 = vld [vmem:[%s4426_s8 + $0xf0] sm:$0xff] }
 0x3a7   : > { %3053 = vst [vmem:[%s4426_s8 + $0x30] sm:$0xff] %v2957_v18  ;;  %v2962_v0 = vmax.f32 %v2866_v36, 0.0  ;;  %v2870_v24 = vadd.f32 %v5536_v51, %v2760_v20  ;;  %v2763_v17 = vmul.f32 %v5519_v38, %v2653_v45  ;;  %v2764_v63 = vmul.f32 %v5524_v28, %v2654_v29 }
 0x3a8   : > { %3054 = vst [vmem:[%s4426_s8 + $0x38] sm:$0xff] %v2958_v8  ;;  %v2963_v58 = vmax.f32 %v2867_v48, 0.0  ;;  %v2871_v35 = vadd.f32 %v5543_v39, %v2761_v32  ;;  %v2765_v2 = vmul.f32 %v5529_v40, %v2655_v59  ;;  %v2964_v12 = vmax.f32 %v2868_v46, 0.0 }
 0x3a9   : > { %3055 = vst [vmem:[%s4426_s8 + $0x40] sm:$0xff] %v2959_v31  ;;  %v2872_v14 = vadd.f32 %v5552_v19, %v2762_v61  ;;  %v2766_v1 = vmul.f32 %v5534_v62, %v2656_v26  ;;  %v2965_v5 = vmax.f32 %v2869_v53, 0.0  ;;  %v2873_v11 = vadd.f32 %v5521_v34, %v2763_v17  ;;  %v2666_v31 = vld [vmem:[%s4426_s8 + $0xf8] sm:$0xff]  ;;  %v2668_v53 = vld [vmem:[%s4426_s8 + $0x108] sm:$0xff] }
 0x3aa   : > { %3056 = vst [vmem:[%s4426_s8 + $0x48] sm:$0xff] %v2960_v52  ;;  %v2767_v50 = vmul.f32 %v5541_v6, %v2657_v22  ;;  %v2966_v41 = vmax.f32 %v2870_v24, 0.0  ;;  %v2874_v42 = vadd.f32 %v5526_v43, %v2764_v63  ;;  %v2768_v37 = vmul.f32 %v5550_v4, %v2658_v3  ;;  %v2667_v52 = vld [vmem:[%s4426_s8 + $0x100] sm:$0xff]  ;;  %v2670_v22 = vld [vmem:[%s4426_s8 + $0x118] sm:$0xff] }
 0x3ab   : > { %3057 = vst [vmem:[%s4426_s8 + $0x50] sm:$0xff] %v2961_v55  ;;  %v2967_v18 = vmax.f32 %v2871_v35, 0.0  ;;  %v2875_v57 = vadd.f32 %v5531_v33, %v2765_v2  ;;  %v2769_v56 = vmul.f32 %v5519_v38, %v2659_v13  ;;  %v2968_v16 = vmax.f32 %v2872_v14, 0.0  ;;  %v2671_v3 = vld [vmem:[%s4426_s8 + $0x120] sm:$0xff]  ;;  %v2672_v13 = vld [vmem:[%s4426_s8 + $0x128] sm:$0xff] }
 0x3ac   : > { %3058 = vst [vmem:[%s4426_s8 + $0x58] sm:$0xff] %v2962_v0  ;;  %v2876_v23 = vadd.f32 %v5536_v51, %v2766_v1  ;;  %v2770_v8 = vmul.f32 %v5524_v28, %v2660_v44  ;;  %v2969_v60 = vmax.f32 %v2873_v11, 0.0  ;;  %v2877_v9 = vadd.f32 %v5543_v39, %v2767_v50  ;;  %v2669_v0 = vld [vmem:[%s4426_s8 + $0x110] sm:$0xff] }
 0x3ad   : > { %3059 = vst [vmem:[%s4426_s8 + $0x60] sm:$0xff] %v2963_v58  ;;  %v2771_v15 = vmul.f32 %v5529_v40, %v2661_v10  ;;  %v2970_v7 = vmax.f32 %v2874_v42, 0.0  ;;  %v2878_v49 = vadd.f32 %v5552_v19, %v2768_v37  ;;  %v2772_v36 = vmul.f32 %v5534_v62, %v2662_v54  ;;  %v2673_v44 = vld [vmem:[%s4426_s8 + $0x130] sm:$0xff]  ;;  %v2674_v10 = vld [vmem:[%s4426_s8 + $0x138] sm:$0xff]  ;;  %v2675_v54 = vld [vmem:[%s4426_s8 + $0x140] sm:$0xff] }
 0x3ae   : > { %3060 = vst [vmem:[%s4426_s8 + $0x68] sm:$0xff] %v2964_v12  ;;  %v2971_v20 = vmax.f32 %v2875_v57, 0.0  ;;  %v2879_v25 = vadd.f32 %v5521_v34, %v2769_v56  ;;  %v2773_v27 = vmul.f32 %v5541_v6, %v2663_v21  ;;  %v2972_v48 = vmax.f32 %v2876_v23, 0.0  ;;  %v2676_v21 = vld [vmem:[%s4426_s8 + $0x148] sm:$0xff] }
 0x3af   : > { %3061 = vst [vmem:[%s4426_s8 + $0x70] sm:$0xff] %v2965_v5  ;;  %v2880_v45 = vadd.f32 %v5526_v43, %v2770_v8  ;;  %v2774_v29 = vmul.f32 %v5550_v4, %v2664_v30  ;;  %v2973_v46 = vmax.f32 %v2877_v9, 0.0  ;;  %v2881_v59 = vadd.f32 %v5531_v33, %v2771_v15  ;;  %v2677_v30 = vld [vmem:[%s4426_s8 + $0x150] sm:$0xff] }
 0x3b0   : > { %3062 = vst [vmem:[%s4426_s8 + $0x78] sm:$0xff] %v2966_v41  ;;  %v2775_v55 = vmul.f32 %v5519_v38, %v2665_v47  ;;  %v2974_v32 = vmax.f32 %v2878_v49, 0.0  ;;  %v2882_v61 = vadd.f32 %v5536_v51, %v2772_v36  ;;  %v2776_v26 = vmul.f32 %v5524_v28, %v2666_v31  ;;  %v2678_v47 = vld [vmem:[%s4426_s8 + $0x158] sm:$0xff]  ;;  %v2679_v31 = vld [vmem:[%s4426_s8 + $0x160] sm:$0xff] }
 0x3b1   : > { %3063 = vst [vmem:[%s4426_s8 + $0x80] sm:$0xff] %v2967_v18  ;;  %v2975_v24 = vmax.f32 %v2879_v25, 0.0  ;;  %v2883_v17 = vadd.f32 %v5543_v39, %v2773_v27  ;;  %v2777_v63 = vmul.f32 %v5529_v40, %v2667_v52  ;;  %v2976_v58 = vmax.f32 %v2880_v45, 0.0  ;;  %v2680_v52 = vld [vmem:[%s4426_s8 + $0x168] sm:$0xff] }
 0x3b2   : > { %3064 = vst [vmem:[%s4426_s8 + $0x88] sm:$0xff] %v2968_v16  ;;  %v2884_v35 = vadd.f32 %v5552_v19, %v2774_v29  ;;  %v2778_v2 = vmul.f32 %v5534_v62, %v2668_v53  ;;  %v2977_v12 = vmax.f32 %v2881_v59, 0.0  ;;  %v2885_v14 = vadd.f32 %v5521_v34, %v2775_v55  ;;  %v2681_v53 = vld [vmem:[%s4426_s8 + $0x170] sm:$0xff] }
 0x3b3   : > { %3065 = vst [vmem:[%s4426_s8 + $0x90] sm:$0xff] %v2969_v60  ;;  %v2779_v1 = vmul.f32 %v5541_v6, %v2669_v0  ;;  %v2978_v5 = vmax.f32 %v2882_v61, 0.0  ;;  %v2886_v11 = vadd.f32 %v5526_v43, %v2776_v26  ;;  %v2780_v50 = vmul.f32 %v5550_v4, %v2670_v22  ;;  %v2682_v0 = vld [vmem:[%s4426_s8 + $0x178] sm:$0xff]  ;;  %v2683_v22 = vld [vmem:[%s4426_s8 + $0x180] sm:$0xff] }
 0x3b4   : > { %3066 = vst [vmem:[%s4426_s8 + $0x98] sm:$0xff] %v2970_v7  ;;  %v2979_v41 = vmax.f32 %v2883_v17, 0.0  ;;  %v2887_v42 = vadd.f32 %v5531_v33, %v2777_v63  ;;  %v2781_v37 = vmul.f32 %v5519_v38, %v2671_v3  ;;  %v2980_v18 = vmax.f32 %v2884_v35, 0.0  ;;  %v2684_v3 = vld [vmem:[%s4426_s8 + $0x188] sm:$0xff] }
 0x3b5   : > { %3067 = vst [vmem:[%s4426_s8 + $0xa0] sm:$0xff] %v2971_v20  ;;  %v2888_v57 = vadd.f32 %v5536_v51, %v2778_v2  ;;  %v2782_v56 = vmul.f32 %v5524_v28, %v2672_v13  ;;  %v2981_v16 = vmax.f32 %v2885_v14, 0.0  ;;  %v2889_v23 = vadd.f32 %v5543_v39, %v2779_v1  ;;  %v2685_v13 = vld [vmem:[%s4426_s8 + $0x190] sm:$0xff] }
 0x3b6   : > { %3068 = vst [vmem:[%s4426_s8 + $0xa8] sm:$0xff] %v2972_v48  ;;  %v2783_v8 = vmul.f32 %v5529_v40, %v2673_v44  ;;  %v2982_v60 = vmax.f32 %v2886_v11, 0.0  ;;  %v2890_v9 = vadd.f32 %v5552_v19, %v2780_v50  ;;  %v2784_v15 = vmul.f32 %v5534_v62, %v2674_v10  ;;  %v2686_v44 = vld [vmem:[%s4426_s8 + $0x198] sm:$0xff]  ;;  %v2687_v10 = vld [vmem:[%s4426_s8 + $0x1a0] sm:$0xff] }
 0x3b7   : > { %3069 = vst [vmem:[%s4426_s8 + $0xb0] sm:$0xff] %v2973_v46  ;;  %v2983_v7 = vmax.f32 %v2887_v42, 0.0  ;;  %v2891_v49 = vadd.f32 %v5521_v34, %v2781_v37  ;;  %v2785_v36 = vmul.f32 %v5541_v6, %v2675_v54  ;;  %v2984_v20 = vmax.f32 %v2888_v57, 0.0  ;;  %v2688_v54 = vld [vmem:[%s4426_s8 + $0x1a8] sm:$0xff] }
 0x3b8   : > { %3070 = vst [vmem:[%s4426_s8 + $0xb8] sm:$0xff] %v2974_v32  ;;  %v2892_v25 = vadd.f32 %v5526_v43, %v2782_v56  ;;  %v2786_v27 = vmul.f32 %v5550_v4, %v2676_v21  ;;  %v2985_v48 = vmax.f32 %v2889_v23, 0.0  ;;  %v2893_v45 = vadd.f32 %v5531_v33, %v2783_v8  ;;  %v2689_v21 = vld [vmem:[%s4426_s8 + $0x1b0] sm:$0xff] }
 0x3b9   : > { %3071 = vst [vmem:[%s4426_s8 + $0xc0] sm:$0xff] %v2975_v24  ;;  %v2787_v29 = vmul.f32 %v5519_v38, %v2677_v30  ;;  %v2986_v46 = vmax.f32 %v2890_v9, 0.0  ;;  %v2894_v59 = vadd.f32 %v5536_v51, %v2784_v15  ;;  %v2788_v55 = vmul.f32 %v5524_v28, %v2678_v47  ;;  %v2690_v30 = vld [vmem:[%s4426_s8 + $0x1b8] sm:$0xff]  ;;  %v2691_v47 = vld [vmem:[%s4426_s8 + $0x1c0] sm:$0xff] }
 0x3ba   : > { %3072 = vst [vmem:[%s4426_s8 + $0xc8] sm:$0xff] %v2976_v58  ;;  %v2987_v32 = vmax.f32 %v2891_v49, 0.0  ;;  %v2895_v61 = vadd.f32 %v5543_v39, %v2785_v36  ;;  %v2789_v26 = vmul.f32 %v5529_v40, %v2679_v31  ;;  %v2988_v24 = vmax.f32 %v2892_v25, 0.0  ;;  %v2692_v31 = vld [vmem:[%s4426_s8 + $0x1c8] sm:$0xff] }
 0x3bb   : > { %3073 = vst [vmem:[%s4426_s8 + $0xd0] sm:$0xff] %v2977_v12  ;;  %v2896_v17 = vadd.f32 %v5552_v19, %v2786_v27  ;;  %v2790_v63 = vmul.f32 %v5534_v62, %v2680_v52  ;;  %v2989_v58 = vmax.f32 %v2893_v45, 0.0  ;;  %v2897_v35 = vadd.f32 %v5521_v34, %v2787_v29  ;;  %v2693_v52 = vld [vmem:[%s4426_s8 + $0x1d0] sm:$0xff] }
 0x3bc   : > { %3074 = vst [vmem:[%s4426_s8 + $0xd8] sm:$0xff] %v2978_v5  ;;  %v2791_v2 = vmul.f32 %v5541_v6, %v2681_v53  ;;  %v2990_v12 = vmax.f32 %v2894_v59, 0.0  ;;  %v2898_v14 = vadd.f32 %v5526_v43, %v2788_v55  ;;  %v2792_v1 = vmul.f32 %v5550_v4, %v2682_v0  ;;  %v2694_v53 = vld [vmem:[%s4426_s8 + $0x1d8] sm:$0xff]  ;;  %v2695_v0 = vld [vmem:[%s4426_s8 + $0x1e0] sm:$0xff] }
 0x3bd   : > { %3075 = vst [vmem:[%s4426_s8 + $0xe0] sm:$0xff] %v2979_v41  ;;  %v2991_v5 = vmax.f32 %v2895_v61, 0.0  ;;  %v2899_v11 = vadd.f32 %v5531_v33, %v2789_v26  ;;  %v2793_v50 = vmul.f32 %v5519_v38, %v2683_v22  ;;  %v2992_v41 = vmax.f32 %v2896_v17, 0.0  ;;  %v2696_v22 = vld [vmem:[%s4426_s8 + $0x1e8] sm:$0xff] }
 0x3be   : > { %3076 = vst [vmem:[%s4426_s8 + $0xe8] sm:$0xff] %v2980_v18  ;;  %v2900_v42 = vadd.f32 %v5536_v51, %v2790_v63  ;;  %v2794_v37 = vmul.f32 %v5524_v28, %v2684_v3  ;;  %v2993_v18 = vmax.f32 %v2897_v35, 0.0  ;;  %v2901_v57 = vadd.f32 %v5543_v39, %v2791_v2  ;;  %v2697_v3 = vld [vmem:[%s4426_s8 + $0x1f0] sm:$0xff] }
 0x3bf   : > { %3077 = vst [vmem:[%s4426_s8 + $0xf0] sm:$0xff] %v2981_v16  ;;  %v2795_v56 = vmul.f32 %v5529_v40, %v2685_v13  ;;  %v2994_v16 = vmax.f32 %v2898_v14, 0.0  ;;  %v2902_v23 = vadd.f32 %v5552_v19, %v2792_v1  ;;  %v2796_v8 = vmul.f32 %v5534_v62, %v2686_v44  ;;  %v2698_v13 = vld [vmem:[%s4426_s8 + $0x1f8] sm:$0xff]  ;;  %v2699_v44 = vld [vmem:[%s4426_s8 + $0x200] sm:$0xff] }
 0x3c0   : > { %3078 = vst [vmem:[%s4426_s8 + $0xf8] sm:$0xff] %v2982_v60  ;;  %v2995_v60 = vmax.f32 %v2899_v11, 0.0  ;;  %v2903_v9 = vadd.f32 %v5521_v34, %v2793_v50  ;;  %v2797_v15 = vmul.f32 %v5541_v6, %v2687_v10  ;;  %v2904_v49 = vadd.f32 %v5526_v43, %v2794_v37  ;;  %v2700_v10 = vld [vmem:[%s4426_s8 + $0x208] sm:$0xff] }
 0x3c1   : > { %3079 = vst [vmem:[%s4426_s8 + $0x100] sm:$0xff] %v2983_v7  ;;  %v2996_v7 = vmax.f32 %v2900_v42, 0.0  ;;  %v2798_v36 = vmul.f32 %v5550_v4, %v2688_v54  ;;  %v2905_v25 = vadd.f32 %v5531_v33, %v2795_v56  ;;  %v2799_v27 = vmul.f32 %v5519_v38, %v2689_v21  ;;  %v2701_v54 = vld [vmem:[%s4426_s8 + $0x210] sm:$0xff]  ;;  %v2702_v21 = vld [vmem:[%s4426_s8 + $0x218] sm:$0xff] }
 0x3c2   : > { %3080 = vst [vmem:[%s4426_s8 + $0x108] sm:$0xff] %v2984_v20  ;;  %v2997_v20 = vmax.f32 %v2901_v57, 0.0  ;;  %v2906_v45 = vadd.f32 %v5536_v51, %v2796_v8  ;;  %v2800_v29 = vmul.f32 %v5524_v28, %v2690_v30  ;;  %v2907_v59 = vadd.f32 %v5543_v39, %v2797_v15  ;;  %v2703_v30 = vld [vmem:[%s4426_s8 + $0x220] sm:$0xff] }
 0x3c3   : > { %3081 = vst [vmem:[%s4426_s8 + $0x110] sm:$0xff] %v2985_v48  ;;  %v2998_v48 = vmax.f32 %v2902_v23, 0.0  ;;  %v2801_v55 = vmul.f32 %v5529_v40, %v2691_v47  ;;  %v2908_v61 = vadd.f32 %v5552_v19, %v2798_v36  ;;  %v2802_v26 = vmul.f32 %v5534_v62, %v2692_v31  ;;  %v2704_v47 = vld [vmem:[%s4426_s8 + $0x228] sm:$0xff]  ;;  %v2705_v31 = vld [vmem:[%s4426_s8 + $0x230] sm:$0xff] }
 0x3c4   : > { %3082 = vst [vmem:[%s4426_s8 + $0x118] sm:$0xff] %v2986_v46  ;;  %v2999_v46 = vmax.f32 %v2903_v9, 0.0  ;;  %v2909_v17 = vadd.f32 %v5521_v34, %v2799_v27  ;;  %v2803_v63 = vmul.f32 %v5541_v6, %v2693_v52  ;;  %v2910_v35 = vadd.f32 %v5526_v43, %v2800_v29  ;;  %v2706_v52 = vld [vmem:[%s4426_s8 + $0x238] sm:$0xff] }
 0x3c5   : > { %3083 = vst [vmem:[%s4426_s8 + $0x120] sm:$0xff] %v2987_v32  ;;  %v3000_v32 = vmax.f32 %v2904_v49, 0.0  ;;  %v2804_v2 = vmul.f32 %v5550_v4, %v2694_v53  ;;  %v2911_v14 = vadd.f32 %v5531_v33, %v2801_v55  ;;  %v2805_v1 = vmul.f32 %v5519_v38, %v2695_v0  ;;  %v2707_v53 = vld [vmem:[%s4426_s8 + $0x240] sm:$0xff]  ;;  %v2708_v0 = vld [vmem:[%s4426_s8 + $0x248] sm:$0xff] }
 0x3c6   : > { %3084 = vst [vmem:[%s4426_s8 + $0x128] sm:$0xff] %v2988_v24  ;;  %v3001_v24 = vmax.f32 %v2905_v25, 0.0  ;;  %v2912_v11 = vadd.f32 %v5536_v51, %v2802_v26  ;;  %v2806_v50 = vmul.f32 %v5524_v28, %v2696_v22  ;;  %v2913_v42 = vadd.f32 %v5543_v39, %v2803_v63  ;;  %v2709_v22 = vld [vmem:[%s4426_s8 + $0x250] sm:$0xff] }
 0x3c7   : > { %3085 = vst [vmem:[%s4426_s8 + $0x130] sm:$0xff] %v2989_v58  ;;  %v3002_v58 = vmax.f32 %v2906_v45, 0.0  ;;  %v2807_v37 = vmul.f32 %v5529_v40, %v2697_v3  ;;  %v2914_v57 = vadd.f32 %v5552_v19, %v2804_v2  ;;  %v2808_v56 = vmul.f32 %v5534_v62, %v2698_v13  ;;  %v2710_v3 = vld [vmem:[%s4426_s8 + $0x258] sm:$0xff]  ;;  %v2711_v13 = vld [vmem:[%s4426_s8 + $0x260] sm:$0xff] }
 0x3c8   : > { %3086 = vst [vmem:[%s4426_s8 + $0x138] sm:$0xff] %v2990_v12  ;;  %v3003_v12 = vmax.f32 %v2907_v59, 0.0  ;;  %v2915_v23 = vadd.f32 %v5521_v34, %v2805_v1  ;;  %v2809_v8 = vmul.f32 %v5541_v6, %v2699_v44  ;;  %v2916_v9 = vadd.f32 %v5526_v43, %v2806_v50  ;;  %v2712_v44 = vld [vmem:[%s4426_s8 + $0x268] sm:$0xff] }
 0x3c9   : > { %3087 = vst [vmem:[%s4426_s8 + $0x140] sm:$0xff] %v2991_v5  ;;  %v3004_v5 = vmax.f32 %v2908_v61, 0.0  ;;  %v2810_v15 = vmul.f32 %v5550_v4, %v2700_v10  ;;  %v2917_v49 = vadd.f32 %v5531_v33, %v2807_v37  ;;  %v2811_v36 = vmul.f32 %v5519_v38, %v2701_v54  ;;  %v2713_v10 = vld [vmem:[%s4426_s8 + $0x270] sm:$0xff]  ;;  %v2714_v54 = vld [vmem:[%s4426_s8 + $0x278] sm:$0xff] }
 0x3ca   : > { %3088 = vst [vmem:[%s4426_s8 + $0x148] sm:$0xff] %v2992_v41  ;;  %v3005_v41 = vmax.f32 %v2909_v17, 0.0  ;;  %v2918_v25 = vadd.f32 %v5536_v51, %v2808_v56  ;;  %v2812_v27 = vmul.f32 %v5524_v28, %v2702_v21  ;;  %v2919_v45 = vadd.f32 %v5543_v39, %v2809_v8  ;;  %v2715_v21 = vld [vmem:[%s4426_s8 + $0x280] sm:$0xff] }
 0x3cb   : > { %3089 = vst [vmem:[%s4426_s8 + $0x150] sm:$0xff] %v2993_v18  ;;  %v3006_v18 = vmax.f32 %v2910_v35, 0.0  ;;  %v2813_v29 = vmul.f32 %v5529_v40, %v2703_v30  ;;  %v2920_v59 = vadd.f32 %v5552_v19, %v2810_v15  ;;  %v2814_v55 = vmul.f32 %v5534_v62, %v2704_v47  ;;  %v2716_v30 = vld [vmem:[%s4426_s8 + $0x288] sm:$0xff]  ;;  %v2717_v47 = vld [vmem:[%s4426_s8 + $0x290] sm:$0xff] }
 0x3cc   : > { %3090 = vst [vmem:[%s4426_s8 + $0x158] sm:$0xff] %v2994_v16  ;;  %v3007_v16 = vmax.f32 %v2911_v14, 0.0  ;;  %v2921_v61 = vadd.f32 %v5521_v34, %v2811_v36  ;;  %v2815_v26 = vmul.f32 %v5541_v6, %v2705_v31  ;;  %v2922_v17 = vadd.f32 %v5526_v43, %v2812_v27  ;;  %v2718_v31 = vld [vmem:[%s4426_s8 + $0x298] sm:$0xff] }
 0x3cd   : > { %3091 = vst [vmem:[%s4426_s8 + $0x160] sm:$0xff] %v2995_v60  ;;  %v3008_v60 = vmax.f32 %v2912_v11, 0.0  ;;  %v2816_v63 = vmul.f32 %v5550_v4, %v2706_v52  ;;  %v2923_v35 = vadd.f32 %v5531_v33, %v2813_v29  ;;  %v2817_v2 = vmul.f32 %v5519_v38, %v2707_v53  ;;  %v2719_v52 = vld [vmem:[%s4426_s8 + $0x2a0] sm:$0xff]  ;;  %v2720_v53 = vld [vmem:[%s4426_s8 + $0x2a8] sm:$0xff] }
 0x3ce   : > { %3092 = vst [vmem:[%s4426_s8 + $0x168] sm:$0xff] %v2996_v7  ;;  %v3009_v7 = vmax.f32 %v2913_v42, 0.0  ;;  %v2924_v14 = vadd.f32 %v5536_v51, %v2814_v55  ;;  %v2818_v1 = vmul.f32 %v5524_v28, %v2708_v0  ;;  %v2925_v11 = vadd.f32 %v5543_v39, %v2815_v26  ;;  %v2721_v0 = vld [vmem:[%s4426_s8 + $0x2b0] sm:$0xff] }
 0x3cf   : > { %3093 = vst [vmem:[%s4426_s8 + $0x170] sm:$0xff] %v2997_v20  ;;  %v3010_v20 = vmax.f32 %v2914_v57, 0.0  ;;  %v2819_v50 = vmul.f32 %v5529_v40, %v2709_v22  ;;  %v2926_v42 = vadd.f32 %v5552_v19, %v2816_v63  ;;  %v2820_v37 = vmul.f32 %v5534_v62, %v2710_v3  ;;  %v2722_v22 = vld [vmem:[%s4426_s8 + $0x2b8] sm:$0xff]  ;;  %v2723_v3 = vld [vmem:[%s4426_s8 + $0x2c0] sm:$0xff] }
 0x3d0   : > { %3094 = vst [vmem:[%s4426_s8 + $0x178] sm:$0xff] %v2998_v48  ;;  %v3011_v48 = vmax.f32 %v2915_v23, 0.0  ;;  %v2927_v57 = vadd.f32 %v5521_v34, %v2817_v2  ;;  %v2821_v56 = vmul.f32 %v5541_v6, %v2711_v13  ;;  %v2928_v23 = vadd.f32 %v5526_v43, %v2818_v1  ;;  %v2724_v13 = vld [vmem:[%s4426_s8 + $0x2c8] sm:$0xff] }
 0x3d1   : > { %3095 = vst [vmem:[%s4426_s8 + $0x180] sm:$0xff] %v2999_v46  ;;  %v3012_v46 = vmax.f32 %v2916_v9, 0.0  ;;  %v2822_v8 = vmul.f32 %v5550_v4, %v2712_v44  ;;  %v2929_v9 = vadd.f32 %v5531_v33, %v2819_v50  ;;  %v2823_v15 = vmul.f32 %v5519_v38, %v2713_v10  ;;  %v2725_v44 = vld [vmem:[%s4426_s8 + $0x2d0] sm:$0xff]  ;;  %v2726_v10 = vld [vmem:[%s4426_s8 + $0x2d8] sm:$0xff] }
 0x3d2   : > { %3096 = vst [vmem:[%s4426_s8 + $0x188] sm:$0xff] %v3000_v32  ;;  %v3013_v32 = vmax.f32 %v2917_v49, 0.0  ;;  %v2930_v49 = vadd.f32 %v5536_v51, %v2820_v37  ;;  %v2824_v36 = vmul.f32 %v5524_v28, %v2714_v54  ;;  %v2825_v27 = vmul.f32 %v5529_v40, %v2715_v21  ;;  %v2727_v54 = vld [vmem:[%s4426_s8 + $0x2e0] sm:$0xff]  ;;  %v2728_v21 = vld [vmem:[%s4426_s8 + $0x2e8] sm:$0xff] }
 0x3d3   : > { %3097 = vst [vmem:[%s4426_s8 + $0x190] sm:$0xff] %v3001_v24  ;;  %v3014_v24 = vmax.f32 %v2918_v25, 0.0  ;;  %v2931_v25 = vadd.f32 %v5543_v39, %v2821_v56  ;;  %v2826_v29 = vmul.f32 %v5534_v62, %v2716_v30  ;;  %v2827_v55 = vmul.f32 %v5541_v6, %v2717_v47  ;;  %v2729_v30 = vld [vmem:[%s4426_s8 + $0x2f0] sm:$0xff]  ;;  %v2730_v47 = vld [vmem:[%s4426_s8 + $0x2f8] sm:$0xff] }
 0x3d4   : > { %3098 = vst [vmem:[%s4426_s8 + $0x198] sm:$0xff] %v3002_v58  ;;  %v3015_v58 = vmax.f32 %v2919_v45, 0.0  ;;  %v2932_v45 = vadd.f32 %v5552_v19, %v2822_v8  ;;  %v2828_v26 = vmul.f32 %v5550_v4, %v2718_v31  ;;  %v2829_v63 = vmul.f32 %v5519_v38, %v2719_v52 }
 0x3d5   : > { %3099 = vst [vmem:[%s4426_s8 + $0x1a0] sm:$0xff] %v3003_v12  ;;  %v3016_v12 = vmax.f32 %v2920_v59, 0.0  ;;  %v2933_v59 = vadd.f32 %v5521_v34, %v2823_v15  ;;  %v2830_v2 = vmul.f32 %v5524_v28, %v2720_v53  ;;  %v2831_v1 = vmul.f32 %v5529_v40, %v2721_v0 }
 0x3d6   : > { %3100 = vst [vmem:[%s4426_s8 + $0x1a8] sm:$0xff] %v3004_v5  ;;  %v3017_v5 = vmax.f32 %v2921_v61, 0.0  ;;  %v2934_v61 = vadd.f32 %v5526_v43, %v2824_v36  ;;  %v2832_v50 = vmul.f32 %v5534_v62, %v2722_v22  ;;  %v2833_v37 = vmul.f32 %v5541_v6, %v2723_v3 }
 0x3d7   : > { %3101 = vst [vmem:[%s4426_s8 + $0x1b0] sm:$0xff] %v3005_v41  ;;  %v3018_v41 = vmax.f32 %v2922_v17, 0.0  ;;  %v2935_v17 = vadd.f32 %v5531_v33, %v2825_v27  ;;  %v2834_v56 = vmul.f32 %v5550_v4, %v2724_v13  ;;  %v2835_v8 = vmul.f32 %v5519_v38, %v2725_v44 }
 0x3d8   : > { %3102 = vst [vmem:[%s4426_s8 + $0x1b8] sm:$0xff] %v3006_v18  ;;  %v3019_v18 = vmax.f32 %v2923_v35, 0.0  ;;  %v2936_v35 = vadd.f32 %v5536_v51, %v2826_v29  ;;  %v2836_v15 = vmul.f32 %v5524_v28, %v2726_v10  ;;  %v2837_v36 = vmul.f32 %v5529_v40, %v2727_v54 }
 0x3d9   : > { %3103 = vst [vmem:[%s4426_s8 + $0x1c0] sm:$0xff] %v3007_v16  ;;  %v3020_v16 = vmax.f32 %v2924_v14, 0.0  ;;  %v2937_v14 = vadd.f32 %v5543_v39, %v2827_v55  ;;  %v2945_v28 = vadd.f32 %v5521_v34, %v2835_v8  ;;  %v2839_v31 = vmul.f32 %v5541_v6, %v2729_v30 }
 0x3da   : > { %3104 = vst [vmem:[%s4426_s8 + $0x1c8] sm:$0xff] %v3008_v60  ;;  %v3021_v60 = vmax.f32 %v2925_v11, 0.0  ;;  %v2938_v11 = vadd.f32 %v5552_v19, %v2828_v26  ;;  %v2946_v40 = vadd.f32 %v5526_v43, %v2836_v15 }
 0x3db   : > { %3105 = vst [vmem:[%s4426_s8 + $0x1d0] sm:$0xff] %v3009_v7  ;;  %v3022_v7 = vmax.f32 %v2926_v42, 0.0  ;;  %v2939_v42 = vadd.f32 %v5521_v34, %v2829_v63  ;;  %v3041_v6 = vmax.f32 %v2945_v28, 0.0 }
 0x3dc   : > { %3106 = vst [vmem:[%s4426_s8 + $0x1d8] sm:$0xff] %v3010_v20  ;;  %v3023_v20 = vmax.f32 %v2927_v57, 0.0  ;;  %v2940_v57 = vadd.f32 %v5526_v43, %v2830_v2  ;;  %v2949_v43 = vadd.f32 %v5543_v39, %v2839_v31 }
 0x3dd   : > { %3107 = vst [vmem:[%s4426_s8 + $0x1e0] sm:$0xff] %v3011_v48  ;;  %v3024_v48 = vmax.f32 %v2928_v23, 0.0  ;;  %v2941_v23 = vadd.f32 %v5531_v33, %v2831_v1 }
 0x3de   : > { %3108 = vst [vmem:[%s4426_s8 + $0x1e8] sm:$0xff] %v3012_v46  ;;  %v3025_v46 = vmax.f32 %v2929_v9, 0.0  ;;  %v2942_v9 = vadd.f32 %v5536_v51, %v2832_v50  ;;  %v3036_v38 = vmax.f32 %v2940_v57, 0.0  ;;  %v3045_v55 = vmax.f32 %v2949_v43, 0.0 }
 0x3df   : > { %3109 = vst [vmem:[%s4426_s8 + $0x1f0] sm:$0xff] %v3013_v32  ;;  %v3026_v32 = vmax.f32 %v2930_v49, 0.0  ;;  %v2943_v49 = vadd.f32 %v5543_v39, %v2833_v37  ;;  %v3037_v27 = vmax.f32 %v2941_v23, 0.0 }
 0x3e0   : > { %3110 = vst [vmem:[%s4426_s8 + $0x1f8] sm:$0xff] %v3014_v24  ;;  %v3027_v24 = vmax.f32 %v2931_v25, 0.0  ;;  %v2838_v25 = vmul.f32 %v5534_v62, %v2728_v21  ;;  %v2947_v62 = vadd.f32 %v5531_v33, %v2837_v36 }
 0x3e1   : > { %3111 = vst [vmem:[%s4426_s8 + $0x200] sm:$0xff] %v3015_v58  ;;  %v3028_v58 = vmax.f32 %v2932_v45, 0.0  ;;  %v2840_v45 = vmul.f32 %v5550_v4, %v2730_v47  ;;  %v3039_v29 = vmax.f32 %v2943_v49, 0.0  ;;  %v3042_v4 = vmax.f32 %v2946_v40, 0.0 }
 0x3e2   : > { %3112 = vst [vmem:[%s4426_s8 + $0x208] sm:$0xff] %v3016_v12  ;;  %v3029_v12 = vmax.f32 %v2933_v59, 0.0  ;;  %v2948_v34 = vadd.f32 %v5536_v51, %v2838_v25  ;;  %v3043_v59 = vmax.f32 %v2947_v62, 0.0 }
 0x3e3   : > { %3113 = vst [vmem:[%s4426_s8 + $0x210] sm:$0xff] %v3017_v5  ;;  %v3030_v5 = vmax.f32 %v2934_v61, 0.0 }
 0x3e4   : > { %3114 = vst [vmem:[%s4426_s8 + $0x218] sm:$0xff] %v3018_v41  ;;  %v3031_v41 = vmax.f32 %v2935_v17, 0.0  ;;  %v3044_v33 = vmax.f32 %v2948_v34, 0.0 }
 0x3e5   : > { %3115 = vst [vmem:[%s4426_s8 + $0x220] sm:$0xff] %v3019_v18  ;;  %v3032_v18 = vmax.f32 %v2936_v35, 0.0 }
 0x3e6   : > { %3116 = vst [vmem:[%s4426_s8 + $0x228] sm:$0xff] %v3020_v16  ;;  %v3033_v16 = vmax.f32 %v2937_v14, 0.0 }
 0x3e7   : > { %3117 = vst [vmem:[%s4426_s8 + $0x230] sm:$0xff] %v3021_v60  ;;  %v3034_v60 = vmax.f32 %v2938_v11, 0.0 }
 0x3e8   : > { %3118 = vst [vmem:[%s4426_s8 + $0x238] sm:$0xff] %v3022_v7  ;;  %v3035_v7 = vmax.f32 %v2939_v42, 0.0 }
 0x3e9   : > { %3119 = vst [vmem:[%s4426_s8 + $0x240] sm:$0xff] %v3023_v20  ;;  %v2944_v20 = vadd.f32 %v5552_v19, %v2834_v56 }
 0x3ea   : > { %3120 = vst [vmem:[%s4426_s8 + $0x248] sm:$0xff] %v3024_v48  ;;  %v3038_v48 = vmax.f32 %v2942_v9, 0.0 }
 0x3eb   : > { %3121 = vst [vmem:[%s4426_s8 + $0x250] sm:$0xff] %v3025_v46  ;;  %v3040_v52 = vmax.f32 %v2944_v20, 0.0  ;;  %v2950_v46 = vadd.f32 %v5552_v19, %v2840_v45 }
 0x3ec   : > { %3122 = vst [vmem:[%s4426_s8 + $0x258] sm:$0xff] %v3026_v32 }
 0x3ed   : > { %3123 = vst [vmem:[%s4426_s8 + $0x260] sm:$0xff] %v3027_v24  ;;  %v3046_v53 = vmax.f32 %v2950_v46, 0.0 }
 0x3ee   : > { %3124 = vst [vmem:[%s4426_s8 + $0x268] sm:$0xff] %v3028_v58 }
 0x3ef   : > { %3125 = vst [vmem:[%s4426_s8 + $0x270] sm:$0xff] %v3029_v12 }
 0x3f0   : > { %3126 = vst [vmem:[%s4426_s8 + $0x278] sm:$0xff] %v3030_v5 }
 0x3f1   : > { %3127 = vst [vmem:[%s4426_s8 + $0x280] sm:$0xff] %v3031_v41 }
 0x3f2   : > { %3128 = vst [vmem:[%s4426_s8 + $0x288] sm:$0xff] %v3032_v18 }
 0x3f3   : > { %3129 = vst [vmem:[%s4426_s8 + $0x290] sm:$0xff] %v3033_v16 }
 0x3f4   : > { %3130 = vst [vmem:[%s4426_s8 + $0x298] sm:$0xff] %v3034_v60 }
 0x3f5   : > { %3131 = vst [vmem:[%s4426_s8 + $0x2a0] sm:$0xff] %v3035_v7 }
 0x3f6   : > { %3132 = vst [vmem:[%s4426_s8 + $0x2a8] sm:$0xff] %v3036_v38 }
 0x3f7   : > { %3133 = vst [vmem:[%s4426_s8 + $0x2b0] sm:$0xff] %v3037_v27 }
 0x3f8   : > { %3134 = vst [vmem:[%s4426_s8 + $0x2b8] sm:$0xff] %v3038_v48 }
 0x3f9   : > { %3135 = vst [vmem:[%s4426_s8 + $0x2c0] sm:$0xff] %v3039_v29 }
 0x3fa   : > { %3136 = vst [vmem:[%s4426_s8 + $0x2c8] sm:$0xff] %v3040_v52 }
 0x3fb   : > { %3137 = vst [vmem:[%s4426_s8 + $0x2d0] sm:$0xff] %v3041_v6 }
 0x3fc   : > { %3138 = vst [vmem:[%s4426_s8 + $0x2d8] sm:$0xff] %v3042_v4 }
 0x3fd   : > { %3139 = vst [vmem:[%s4426_s8 + $0x2e0] sm:$0xff] %v3043_v59 }
 0x3fe   : > { %3140 = vst [vmem:[%s4426_s8 + $0x2e8] sm:$0xff] %v3044_v33 }
 0x3ff   : > { %3141 = vst [vmem:[%s4426_s8 + $0x2f0] sm:$0xff] %v3045_v55 }
 0x400   : > { %3142 = vst [vmem:[%s4426_s8 + $0x2f8] sm:$0xff] %v3046_v53 }
 0x401 PF: > { %s14_s21 = sadd.s32 1, %s4257_s21   ;;  %s5960_s15 = smov %s4237_s16 }
 0x402   : > { %p11_p0 = scmp.ge.s32.totalorder %s14_s21, 8   ;;  %s5961_s16 = smov %s4336_s28 }
 0x403   : > { %s5962_s17 = smov %s4249_s19  ;;  %s5963_s18 = smov %s4253_s20 }
 0x404   : > { %s5964_s19 = smov %s5967_s22  ;;  %s5965_s20 = smov %s5971_s23 }
 0x405   :  { %13 = sbr.rel (!%p11_p0) target bundleno = 4 (0x4), region = 114 }

// kernel: reduction_b_forward.8
= control target key start
LH: loop header
LB: loop body
LE: loop exit
PB: predicated region body
PF: predicated region fallthrough
CT: control target
= control target key end

     0   :  { %s1576_s15 = smov 0   ;;  %s1578_s16 = smov 0   ;;  %s1908_s0 = inlined_call_operand.vmem [shape: bf16[16,6912], index: 0, kind: input, shape index: {}]   ;;  %s1909_s1 = inlined_call_operand.vmem [shape: bf16[6912,384], index: 1, kind: input, shape index: {}]   ;;  %s1910_s2 = inlined_call_operand.vmem [shape: f32[1,384], index: 2, kind: input, shape index: {}]   ;;  %s1911_s3 = inlined_call_operand.vmem [shape: f32[1,384], index: 3, kind: input, shape index: {}]   ;;  %s1912_s4 = inlined_call_operand.vmem [shape: f32[16,384], index: 4, kind: output, shape index: {}]  }
   0x1   :  { %s1580_s17 = smov 0   ;;  %s1582_s18 = smov 0  }
   0x2   :  { %s1584_s19 = smov 0  }
   0x3 LB: > { %s23_s20 = sadd.s32 1, %s1544_s18  ;;  %p42_p1 = scmp.ne.s32.totalorder %s1536_s16, %s1532_s15  ;;  %s1548_s19 = sphi %s1584_s19, %s14_s19   ;;  %s1544_s18 = sphi %s1582_s18, %s1916_s18   ;;  %s1540_s17 = sphi %s1580_s17, %s1915_s17   ;;  %s1536_s16 = sphi %s1578_s16, %s1914_s16   ;;  %s1532_s15 = sphi %s1576_s15, %s1913_s15  }
   0x4   : > { %p24_p0 = scmp.ge.s32.totalorder %s23_s20, 18  ;;  %p43_p2 = scmp.eq.s32.totalorder %s1548_s19, 0 }
   0x5   : > { %s35_s22 = sadd.s32 1, %s1536_s16  ;;  %p1076_p5 = scmp.ge.s32.totalorder %s1548_s19, 18 }
   0x6   : > { %s1918_s20 = smov (%p24_p0, %s23_s20), 0  ;;  %p44_p3 = por %p43_p2, %p42_p1 }
   0x7   : > { %s31_s21 = ssub.s32 %s1544_s18, %s1918_s20  ;;  %168 = sbr.rel (%p1076_p5) target bundleno = 21 (0x15), region = 24 }
   0x8   : > { %p33_p4 = scmp.eq.s32.totalorder %s31_s21, 0 }
   0xa   : > { %s1611_s23 = scalar_select %p33_p4, %s1536_s16, %s35_s22  }
   0xc   : > { %171 = sbr.rel (!%p44_p3) target bundleno = 21 (0x15), region = 28  ;;  %s173_s24 = sand.u32 (%p44_p3), 1, %s1536_s16  }
   0xd   : > { %s1390_s25 = smul.u32 (%p44_p3), 12, %s1544_s18 }
   0xe   : > { %s1466_s26 = smul.u32 (%p44_p3), 24, %s173_s24 }
   0xf   : > { %s181_s29 = scalar_lea.vmem (%p44_p3), %s1908_s0, %s1390_s25 }
  0x10   : > { %v196_v0 = vld [vmem:[%s181_s29] sm:$0xff] (%p44_p3)  ;;  %v198_v1 = vld [vmem:[%s181_s29 + $0xd8] sm:$0xff] (%p44_p3)  ;;  %v1078_v2 = vld [vmem:[%s181_s29 + $0x8] sm:$0xf] (%p44_p3)  ;;  %s175_s30 = scalar_lea.vmem (%p44_p3), [#allocation2], %s1466_s26 }
  0x11   : > { %197 = vst [vmem:[%s175_s30] sm:$0xff] %v196_v0  ;;  %v1080_v3 = vld [vmem:[%s181_s29 + $0xe0] sm:$0xf] }
  0x12   : > { %199 = vst [vmem:[%s175_s30 + $0xc] sm:$0xff] %v198_v1 }
  0x13   : > { %1079 = vst [vmem:[%s175_s30 + $0x8] sm:$0xf] %v1078_v2 }
  0x14   : > { %1081 = vst [vmem:[%s175_s30 + $0x14] sm:$0xf] %v1080_v3 }
  0x15 PF: > { %p1082_p6 = scmp.ge.s32.totalorder %s1548_s19, 1  ;;  %p226_p7 = scmp.lt.s32.totalorder %s1548_s19, 19 }
  0x17   : > { %p227_p8 = pnand %p1082_p6, %p226_p7 }
  0x18   : > { %s233_s5 = sand.u32 (!%p227_p8), 1, %s1532_s15   ;;  %s267_s6 = smul.u32 (!%p227_p8), 48, %s1540_s17 }
  0x19   : > { %230 = sbr.rel (%p227_p8) target bundleno = 295 (0x127), region = 58  ;;  %p1084_p10 = scmp.ne.s32.totalorder (!%p227_p8), %s1540_s17, 0 }
  0x1a   : > { %s1467_s7 = smul.u32 (!%p227_p8), 24, %s233_s5  ;;  %p268_p9 = scmp.lt.s32.totalorder (!%p227_p8), %s267_s6, 863 }
  0x1c   : > { %s1628_s12 = scalar_lea.vmem (!%p227_p8), [#allocation2], %s1467_s7 }
  0x1e   : > { %s1920_s6 = smov (!%p268_p9, %s267_s6), 863  ;;  %284 = sbr.rel (%p1084_p10) target bundleno = 42 (0x2a), region = 66 }
  0x1f   : > { %s1468_s8 = smul.u32 12, %s1920_s6 }
  0x21   : > { %s1626_s11 = scalar_lea.vmem %s1909_s1, %s1468_s8 }
  0x23   : > { %v1550_v4 = vmov 0.0  }
  0x24   : > { %285 = vst [vmem:[%s1912_s4] sm:$0xff] %v1550_v4 }
  0x25   : > { %286 = vst [vmem:[%s1912_s4 + $0x8] sm:$0xff] %v1550_v4 }
  0x26   : > { %287 = vst [vmem:[%s1912_s4 + $0x10] sm:$0xff] %v1550_v4 }
  0x27   : > { %288 = vst [vmem:[%s1912_s4 + $0x18] sm:$0xff] %v1550_v4 }
  0x28   : > { %289 = vst [vmem:[%s1912_s4 + $0x20] sm:$0xff] %v1550_v4 }
  0x29   : > { %290 = vst [vmem:[%s1912_s4 + $0x28] sm:$0xff] %v1550_v4 }
  0x2a PF: > { %v1183_v5 = vld [vmem:[%s1626_s11 + $0xa8] sm:$0xf]  ;;  %v1416_v6 = vld [vmem:[%s1626_s11 + $0xb0] sm:$0xf0]  ;;  %v1171_v7 = vld [vmem:[%s1626_s11 + $0x90] sm:$0xf] }
  0x2b   : > { %v1184_v8 = vor.u32 %v1416_v6, %v1183_v5  ;;  %v1413_v9 = vld [vmem:[%s1626_s11 + $0x98] sm:$0xf0]  ;;  %v1279_v10 = vld [vmem:[%s1626_s11 + $0x168] sm:$0xf]  ;;  %v1440_v11 = vld [vmem:[%s1626_s11 + $0x170] sm:$0xf0] }
  0x2c   : > { %v1280_v12 = vor.u32 %v1440_v11, %v1279_v10  ;;  %v1267_v13 = vld [vmem:[%s1626_s11 + $0x150] sm:$0xf]  ;;  %v1172_v14 = vor.u32 %v1413_v9, %v1171_v7  ;;  %v1159_v15 = vld [vmem:[%s1626_s11 + $0x78] sm:$0xf]  ;;  %v1410_v16 = vld [vmem:[%s1626_s11 + $0x80] sm:$0xf0] }
  0x2d   : > { %797 = vmatpush.bf16.msra.mxu0 %v1184_v8  ;;  %v1437_v17 = vld [vmem:[%s1626_s11 + $0x158] sm:$0xf0]  ;;  %v1255_v19 = vld [vmem:[%s1626_s11 + $0x138] sm:$0xf]  ;;  %v1434_v20 = vld [vmem:[%s1626_s11 + $0x140] sm:$0xf0]  ;;  %v1160_v27 = vor.u32 %v1410_v16, %v1159_v15 }
  0x2e   : > { %811 = vmatpush.bf16.msra.mxu1 %v1280_v12  ;;  %v1268_v18 = vor.u32 %v1437_v17, %v1267_v13  ;;  %v1375_v21 = vld [vmem:[%s1626_s11 + $0x228] sm:$0xf]  ;;  %v1464_v22 = vld [vmem:[%s1626_s11 + $0x230] sm:$0xf0]  ;;  %v1415_v23 = vld [vmem:[%s1626_s11 + $0xac] sm:$0xf]  ;;  %v1256_v32 = vor.u32 %v1434_v20, %v1255_v19 }
  0x2f   : > { %v1185_v24 = vld [vmem:[%s1626_s11 + $0xb4] sm:$0xf0]  ;;  %v1376_v25 = vor.u32 %v1464_v22, %v1375_v21  ;;  %v1147_v28 = vld [vmem:[%s1626_s11 + $0x60] sm:$0xf]  ;;  %v1363_v29 = vld [vmem:[%s1626_s11 + $0x210] sm:$0xf] }
  0x30   : > { %v1188_v26 = vor.u32 %v1415_v23, %v1185_v24  ;;  %v1461_v30 = vld [vmem:[%s1626_s11 + $0x218] sm:$0xf0]  ;;  %v1407_v31 = vld [vmem:[%s1626_s11 + $0x68] sm:$0xf0]  ;;  %v1412_v34 = vld [vmem:[%s1626_s11 + $0x94] sm:$0xf] }
  0x31   : > { %798 = vmatpush.bf16.msra.mxu0 %v1172_v14  ;;  %825 = vmatpush.bf16.msra.mxu2 %v1376_v25  ;;  %v1364_v33 = vor.u32 %v1461_v30, %v1363_v29  ;;  %v1173_v35 = vld [vmem:[%s1626_s11 + $0x9c] sm:$0xf0]  ;;  %v1431_v37 = vld [vmem:[%s1626_s11 + $0x128] sm:$0xf0]  ;;  %v1351_v39 = vld [vmem:[%s1626_s11 + $0x1f8] sm:$0xf]  ;;  %v1148_v42 = vor.u32 %v1407_v31, %v1147_v28 }
  0x32   : > { %812 = vmatpush.bf16.msra.mxu1 %v1268_v18  ;;  %839 = vmatpush.bf16.msra.mxu3 %v1188_v26  ;;  %v1243_v36 = vld [vmem:[%s1626_s11 + $0x120] sm:$0xf]  ;;  %v1176_v38 = vor.u32 %v1412_v34, %v1173_v35  ;;  %v1458_v40 = vld [vmem:[%s1626_s11 + $0x200] sm:$0xf0]  ;;  %v1409_v41 = vld [vmem:[%s1626_s11 + $0x7c] sm:$0xf] }
  0x33   : > { %v1161_v43 = vld [vmem:[%s1626_s11 + $0x84] sm:$0xf0]  ;;  %v1404_v45 = vld [vmem:[%s1626_s11 + $0x50] sm:$0xf0]  ;;  %v1244_v46 = vor.u32 %v1431_v37, %v1243_v36  ;;  %v1352_v48 = vor.u32 %v1458_v40, %v1351_v39  ;;  %v1339_v51 = vld [vmem:[%s1626_s11 + $0x1e0] sm:$0xf] }
  0x34   : > { %v1135_v44 = vld [vmem:[%s1626_s11 + $0x48] sm:$0xf]  ;;  %v1428_v49 = vld [vmem:[%s1626_s11 + $0x110] sm:$0xf0]  ;;  %v1164_v50 = vor.u32 %v1409_v41, %v1161_v43  ;;  %v1455_v52 = vld [vmem:[%s1626_s11 + $0x1e8] sm:$0xf0] }
  0x35   : > { %799 = vmatpush.bf16.msra.mxu0 %v1160_v27  ;;  %826 = vmatpush.bf16.msra.mxu2 %v1364_v33  ;;  %v1231_v47 = vld [vmem:[%s1626_s11 + $0x108] sm:$0xf]  ;;  %v1406_v53 = vld [vmem:[%s1626_s11 + $0x64] sm:$0xf]  ;;  %v1149_v54 = vld [vmem:[%s1626_s11 + $0x6c] sm:$0xf0]  ;;  %v1136_v55 = vor.u32 %v1404_v45, %v1135_v44  ;;  %v1340_v60 = vor.u32 %v1455_v52, %v1339_v51 }
  0x36   : > { %813 = vmatpush.bf16.msra.mxu1 %v1256_v32  ;;  %840 = vmatpush.bf16.msra.mxu3 %v1176_v38  ;;  %v1123_v56 = vld [vmem:[%s1626_s11 + $0x30] sm:$0xf]  ;;  %v1401_v57 = vld [vmem:[%s1626_s11 + $0x38] sm:$0xf0]  ;;  %v1232_v58 = vor.u32 %v1428_v49, %v1231_v47  ;;  %v1152_v62 = vor.u32 %v1406_v53, %v1149_v54  ;;  %v1327_v63 = vld [vmem:[%s1626_s11 + $0x1c8] sm:$0xf] }
  0x37   : > { %v1219_v59 = vld [vmem:[%s1626_s11 + $0xf0] sm:$0xf]  ;;  %v1425_v61 = vld [vmem:[%s1626_s11 + $0xf8] sm:$0xf0]  ;;  %v1452_v0 = vld [vmem:[%s1626_s11 + $0x1d0] sm:$0xf0]  ;;  %v1124_v3 = vor.u32 %v1401_v57, %v1123_v56 }
  0x38   : > { %v1403_v1 = vld [vmem:[%s1626_s11 + $0x4c] sm:$0xf]  ;;  %v1137_v2 = vld [vmem:[%s1626_s11 + $0x54] sm:$0xf0]  ;;  %v1398_v5 = vld [vmem:[%s1626_s11 + $0x20] sm:$0xf0]  ;;  %v1220_v6 = vor.u32 %v1425_v61, %v1219_v59  ;;  %v1328_v8 = vor.u32 %v1452_v0, %v1327_v63 }
  0x39   : > { %800 = vmatpush.bf16.msra.mxu0 %v1148_v42  ;;  %827 = vmatpush.bf16.msra.mxu2 %v1352_v48  ;;  %v1111_v4 = vld [vmem:[%s1626_s11 + $0x18] sm:$0xf]  ;;  %v1422_v9 = vld [vmem:[%s1626_s11 + $0xe0] sm:$0xf0]  ;;  %v1140_v10 = vor.u32 %v1403_v1, %v1137_v2  ;;  %v1315_v11 = vld [vmem:[%s1626_s11 + $0x1b0] sm:$0xf] }
  0x3a   : > { %814 = vmatpush.bf16.msra.mxu1 %v1244_v46  ;;  %841 = vmatpush.bf16.msra.mxu3 %v1164_v50  ;;  %v1207_v7 = vld [vmem:[%s1626_s11 + $0xd8] sm:$0xf]  ;;  %v1449_v12 = vld [vmem:[%s1626_s11 + $0x1b8] sm:$0xf0]  ;;  %v1400_v13 = vld [vmem:[%s1626_s11 + $0x34] sm:$0xf]  ;;  %v1112_v15 = vor.u32 %v1398_v5, %v1111_v4 }
  0x3b   : > { %v1125_v14 = vld [vmem:[%s1626_s11 + $0x3c] sm:$0xf0]  ;;  %v1395_v17 = vld [vmem:[%s1626_s11 + $0x8] sm:$0xf0]  ;;  %v1208_v18 = vor.u32 %v1422_v9, %v1207_v7  ;;  %v1281_v20 = vld [vmem:[%s1626_s11 + $0x174] sm:$0xf0]  ;;  %v1316_v21 = vor.u32 %v1449_v12, %v1315_v11 }
  0x3c   : > { %v1099_v16 = vld [vmem:[%s1626_s11] sm:$0xf]  ;;  %v1439_v19 = vld [vmem:[%s1626_s11 + $0x16c] sm:$0xf]  ;;  %v1128_v24 = vor.u32 %v1400_v13, %v1125_v14  ;;  %v1377_v26 = vld [vmem:[%s1626_s11 + $0x234] sm:$0xf0] }
  0x3d   : > { %801 = vmatpush.bf16.msra.mxu0 %v1136_v55  ;;  %828 = vmatpush.bf16.msra.mxu2 %v1340_v60  ;;  %v1195_v22 = vld [vmem:[%s1626_s11 + $0xc0] sm:$0xf]  ;;  %v1419_v23 = vld [vmem:[%s1626_s11 + $0xc8] sm:$0xf0]  ;;  %v1303_v27 = vld [vmem:[%s1626_s11 + $0x198] sm:$0xf]  ;;  %v1100_v29 = vor.u32 %v1395_v17, %v1099_v16  ;;  %v1284_v34 = vor.u32 %v1439_v19, %v1281_v20 }
  0x3e   : > { %815 = vmatpush.bf16.msra.mxu1 %v1232_v58  ;;  %842 = vmatpush.bf16.msra.mxu3 %v1152_v62  ;;  %v1463_v25 = vld [vmem:[%s1626_s11 + $0x22c] sm:$0xf]  ;;  %v1446_v28 = vld [vmem:[%s1626_s11 + $0x1a0] sm:$0xf0]  ;;  %v1436_v30 = vld [vmem:[%s1626_s11 + $0x154] sm:$0xf]  ;;  %v1196_v35 = vor.u32 %v1419_v23, %v1195_v22 }
  0x3f   : > { %v1269_v31 = vld [vmem:[%s1626_s11 + $0x15c] sm:$0xf0]  ;;  %v1397_v32 = vld [vmem:[%s1626_s11 + $0x1c] sm:$0xf]  ;;  %v1113_v33 = vld [vmem:[%s1626_s11 + $0x24] sm:$0xf0]  ;;  %v1380_v39 = vor.u32 %v1463_v25, %v1377_v26  ;;  %v1304_v40 = vor.u32 %v1446_v28, %v1303_v27 }
  0x40   : > { %v1460_v36 = vld [vmem:[%s1626_s11 + $0x214] sm:$0xf]  ;;  %v1365_v37 = vld [vmem:[%s1626_s11 + $0x21c] sm:$0xf0]  ;;  %v1443_v41 = vld [vmem:[%s1626_s11 + $0x188] sm:$0xf0]  ;;  %v1116_v44 = vor.u32 %v1397_v32, %v1113_v33  ;;  %v1272_v51 = vor.u32 %v1436_v30, %v1269_v31 }
  0x41   : > { %802 = vmatpush.bf16.msra.mxu0 %v1124_v3  ;;  %829 = vmatpush.bf16.msra.mxu2 %v1328_v8  ;;  %v1291_v38 = vld [vmem:[%s1626_s11 + $0x180] sm:$0xf]  ;;  %v1394_v42 = vld [vmem:[%s1626_s11 + $0x4] sm:$0xf]  ;;  %v1101_v43 = vld [vmem:[%s1626_s11 + $0xc] sm:$0xf0]  ;;  %v1368_v58 = vor.u32 %v1460_v36, %v1365_v37 }
  0x42   : > { %816 = vmatpush.bf16.msra.mxu1 %v1220_v6  ;;  %843 = vmatpush.bf16.msra.mxu3 %v1140_v10  ;;  %v1191_v45 = vld [vmem:[%s1626_s11 + $0xb0] sm:$0xf]  ;;  %v1417_v46 = vld [vmem:[%s1626_s11 + $0xb8] sm:$0xf0]  ;;  %v1087_v47 = vld [vmem:[%s1628_s12] sm:$0xf]  ;;  %v1292_v59 = vor.u32 %v1443_v41, %v1291_v38  ;;  %v1104_v62 = vor.u32 %v1394_v42, %v1101_v43 }
  0x43   : > { %v1392_v48 = vld [vmem:[%s1628_s12 + $0x8] sm:$0xf0]  ;;  %v1391_v49 = vld [vmem:[%s1628_s12 + $0x4] sm:$0xf]  ;;  %v1089_v50 = vld [vmem:[%s1628_s12 + $0xc] sm:$0xf0]  ;;  %v1192_v1 = vor.u32 %v1417_v46, %v1191_v45 }
  0x44   : > { %v1433_v52 = vld [vmem:[%s1626_s11 + $0x13c] sm:$0xf]  ;;  %v1287_v53 = vld [vmem:[%s1626_s11 + $0x170] sm:$0xf]  ;;  %v1730_v55 = vor.u32 %v1392_v48, %v1087_v47  ;;  %v1732_v56 = vor.u32 %v1391_v49, %v1089_v50  ;;  %v1257_v57 = vld [vmem:[%s1626_s11 + $0x144] sm:$0xf0] }
  0x45   : > { %803 = vmatpush.bf16.msra.mxu0 %v1112_v15  ;;  %830 = vmatpush.bf16.msra.mxu2 %v1316_v21  ;;  %v1441_v54 = vld [vmem:[%s1626_s11 + $0x178] sm:$0xf0]  ;;  %v1095_v60 = vld [vmem:[%s1628_s12 + $0x8] sm:$0xf]  ;;  %v1393_v61 = vld [vmem:[%s1628_s12 + $0x10] sm:$0xf0]  ;;  %v1260_v5 = vor.u32 %v1433_v52, %v1257_v57 }
  0x46   : > { %817 = vmatpush.bf16.msra.mxu1 %v1208_v18  ;;  %844 = vmatpush.bf16.msra.mxu3 %v1128_v24  ;;  %v1457_v63 = vld [vmem:[%s1626_s11 + $0x1fc] sm:$0xf]  ;;  %v1353_v0 = vld [vmem:[%s1626_s11 + $0x204] sm:$0xf0]  ;;  %v1288_v2 = vor.u32 %v1441_v54, %v1287_v53  ;;  %v1179_v3 = vld [vmem:[%s1626_s11 + $0x98] sm:$0xf]  ;;  %v1743_v6 = vor.u32 %v1393_v61, %v1095_v60 }
  0x47   : > { %v1414_v4 = vld [vmem:[%s1626_s11 + $0xa0] sm:$0xf0]  ;;  %v1275_v7 = vld [vmem:[%s1626_s11 + $0x158] sm:$0xf]  ;;  %v1245_v10 = vld [vmem:[%s1626_s11 + $0x12c] sm:$0xf0]  ;;  %v1356_v11 = vor.u32 %v1457_v63, %v1353_v0 }
  0x48   : > { %v1438_v8 = vld [vmem:[%s1626_s11 + $0x160] sm:$0xf0]  ;;  %v1341_v13 = vld [vmem:[%s1626_s11 + $0x1ec] sm:$0xf0]  ;;  %v1180_v14 = vor.u32 %v1414_v4, %v1179_v3  ;;  %v1167_v16 = vld [vmem:[%s1626_s11 + $0x80] sm:$0xf] }
  0x49   : > { %804 = vmatpush.bf16.msra.mxu0 %v1100_v29  ;;  %831 = vmatpush.bf16.msra.mxu2 %v1304_v40  ;;  %v1430_v9 = vld [vmem:[%s1626_s11 + $0x124] sm:$0xf]  ;;  %v1276_v15 = vor.u32 %v1438_v8, %v1275_v7  ;;  %v1411_v17 = vld [vmem:[%s1626_s11 + $0x88] sm:$0xf0]  ;;  %v1263_v19 = vld [vmem:[%s1626_s11 + $0x140] sm:$0xf] }
  0x4a   : > { %818 = vmatpush.bf16.msra.mxu1 %v1196_v35  ;;  %845 = vmatpush.bf16.msra.mxu3 %v1116_v44  ;;  %v1454_v12 = vld [vmem:[%s1626_s11 + $0x1e4] sm:$0xf]  ;;  %v1248_v18 = vor.u32 %v1430_v9, %v1245_v10  ;;  %v1435_v20 = vld [vmem:[%s1626_s11 + $0x148] sm:$0xf0]  ;;  %v1233_v22 = vld [vmem:[%s1626_s11 + $0x114] sm:$0xf0]  ;;  %v1168_v26 = vor.u32 %v1411_v17, %v1167_v16 }
  0x4b   : > { %v1427_v21 = vld [vmem:[%s1626_s11 + $0x10c] sm:$0xf]  ;;  %v1344_v23 = vor.u32 %v1454_v12, %v1341_v13  ;;  %v1329_v25 = vld [vmem:[%s1626_s11 + $0x1d4] sm:$0xf0]  ;;  %v1264_v27 = vor.u32 %v1435_v20, %v1263_v19  ;;  %v1155_v28 = vld [vmem:[%s1626_s11 + $0x68] sm:$0xf] }
  0x4c   : > { %805 = vmatmul.bf16.vlgmr.msra.gmra.mxu0 %v1730_v55  ;;  %v1451_v24 = vld [vmem:[%s1626_s11 + $0x1cc] sm:$0xf]  ;;  %v1408_v29 = vld [vmem:[%s1626_s11 + $0x70] sm:$0xf0]  ;;  %v1236_v30 = vor.u32 %v1427_v21, %v1233_v22  ;;  %v1251_v31 = vld [vmem:[%s1626_s11 + $0x128] sm:$0xf] }
  0x4d   : > { %853 = vmatpush.bf16.msrb.mxu0 %v1284_v34  ;;  %819 = vmatmul.bf16.vlgmr.msra.gmra.mxu1 %v1732_v56  ;;  %v1432_v32 = vld [vmem:[%s1626_s11 + $0x130] sm:$0xf0]  ;;  %v1221_v34 = vld [vmem:[%s1626_s11 + $0xfc] sm:$0xf0]  ;;  %v1332_v35 = vor.u32 %v1451_v24, %v1329_v25  ;;  %v1156_v38 = vor.u32 %v1408_v29, %v1155_v28  ;;  %v1143_v40 = vld [vmem:[%s1626_s11 + $0x50] sm:$0xf] }
  0x4e   : > { %867 = vmatpush.bf16.msrb.mxu1 %v1380_v39  ;;  %832 = vmatpush.bf16.msra.mxu2 %v1292_v59  ;;  %v1424_v33 = vld [vmem:[%s1626_s11 + $0xf4] sm:$0xf]  ;;  %v1317_v37 = vld [vmem:[%s1626_s11 + $0x1bc] sm:$0xf0]  ;;  %v1252_v39 = vor.u32 %v1432_v32, %v1251_v31  ;;  %v1405_v41 = vld [vmem:[%s1626_s11 + $0x58] sm:$0xf0] }
  0x4f   : > { %846 = vmatpush.bf16.msra.mxu3 %v1104_v62  ;;  %v1448_v36 = vld [vmem:[%s1626_s11 + $0x1b4] sm:$0xf]  ;;  %v1224_v42 = vor.u32 %v1424_v33, %v1221_v34  ;;  %v1239_v43 = vld [vmem:[%s1626_s11 + $0x110] sm:$0xf]  ;;  %v1429_v44 = vld [vmem:[%s1626_s11 + $0x118] sm:$0xf0]  ;;  %v1144_v50 = vor.u32 %v1405_v41, %v1143_v40 }
  0x50   : > { %v1421_v45 = vld [vmem:[%s1626_s11 + $0xdc] sm:$0xf]  ;;  %v1209_v46 = vld [vmem:[%s1626_s11 + $0xe4] sm:$0xf0]  ;;  %v1320_v47 = vor.u32 %v1448_v36, %v1317_v37  ;;  %v1131_v52 = vld [vmem:[%s1626_s11 + $0x38] sm:$0xf] }
  0x51   : > { %854 = vmatpush.bf16.msrb.mxu0 %v1272_v51  ;;  %833 = vmatmul.bf16.vlgmr.msra.gmra.mxu2 %v1743_v6  ;;  %v1445_v48 = vld [vmem:[%s1626_s11 + $0x19c] sm:$0xf]  ;;  %v1305_v49 = vld [vmem:[%s1626_s11 + $0x1a4] sm:$0xf0]  ;;  %v1240_v51 = vor.u32 %v1429_v44, %v1239_v43  ;;  %v1402_v53 = vld [vmem:[%s1626_s11 + $0x40] sm:$0xf0]  ;;  %v1212_v54 = vor.u32 %v1421_v45, %v1209_v46 }
  0x52   : > { %868 = vmatpush.bf16.msrb.mxu1 %v1368_v58  ;;  %881 = vmatpush.bf16.msrb.mxu2 %v1192_v1  ;;  %v1227_v57 = vld [vmem:[%s1626_s11 + $0xf8] sm:$0xf]  ;;  %v1426_v58 = vld [vmem:[%s1626_s11 + $0x100] sm:$0xf0]  ;;  %v1197_v60 = vld [vmem:[%s1626_s11 + $0xcc] sm:$0xf0]  ;;  %v1308_v61 = vor.u32 %v1445_v48, %v1305_v49 }
  0x53   : > { %895 = vmatpush.bf16.msrb.mxu3 %v1288_v2  ;;  %v1418_v59 = vld [vmem:[%s1626_s11 + $0xc4] sm:$0xf]  ;;  %v1383_v62 = vld [vmem:[%s1626_s11 + $0x230] sm:$0xf]  ;;  %v1465_v63 = vld [vmem:[%s1626_s11 + $0x238] sm:$0xf0]  ;;  %v1132_v2 = vor.u32 %v1402_v53, %v1131_v52  ;;  %v1228_v3 = vor.u32 %v1426_v58, %v1227_v57 }
  0x54   : > { %847 = vmatmul.bf16.vlgmr.msra.gmra.mxu3 %v1730_v55  ;;  %v1442_v0 = vld [vmem:[%s1626_s11 + $0x184] sm:$0xf]  ;;  %v1293_v1 = vld [vmem:[%s1626_s11 + $0x18c] sm:$0xf0]  ;;  %v1119_v4 = vld [vmem:[%s1626_s11 + $0x20] sm:$0xf]  ;;  %v1200_v7 = vor.u32 %v1418_v59, %v1197_v60  ;;  %v1384_v10 = vor.u32 %v1465_v63, %v1383_v62 }
  0x55   : > { %855 = vmatpush.bf16.msrb.mxu0 %v1260_v5  ;;  %v1399_v5 = vld [vmem:[%s1626_s11 + $0x28] sm:$0xf0]  ;;  %v1215_v8 = vld [vmem:[%s1626_s11 + $0xe0] sm:$0xf]  ;;  %v1371_v12 = vld [vmem:[%s1626_s11 + $0x218] sm:$0xf] }
  0x56   : > { %869 = vmatpush.bf16.msrb.mxu1 %v1356_v11  ;;  %882 = vmatpush.bf16.msrb.mxu2 %v1180_v14  ;;  %v1423_v9 = vld [vmem:[%s1626_s11 + $0xe8] sm:$0xf0]  ;;  %v1296_v11 = vor.u32 %v1442_v0, %v1293_v1  ;;  %v1462_v13 = vld [vmem:[%s1626_s11 + $0x220] sm:$0xf0]  ;;  %v1120_v14 = vor.u32 %v1399_v5, %v1119_v4  ;;  %v1107_v16 = vld [vmem:[%s1626_s11 + $0x8] sm:$0xf] }
  0x57   : > { %896 = vmatpush.bf16.msrb.mxu3 %v1276_v15  ;;  %v1216_v15 = vor.u32 %v1423_v9, %v1215_v8  ;;  %v1396_v17 = vld [vmem:[%s1626_s11 + $0x10] sm:$0xf0]  ;;  %v1372_v20 = vor.u32 %v1462_v13, %v1371_v12  ;;  %v1359_v21 = vld [vmem:[%s1626_s11 + $0x200] sm:$0xf]  ;;  %v1459_v22 = vld [vmem:[%s1626_s11 + $0x208] sm:$0xf0] }
  0x58   : > { %v1420_v19 = vld [vmem:[%s1626_s11 + $0xd0] sm:$0xf0]  ;;  %v1360_v25 = vor.u32 %v1459_v22, %v1359_v21  ;;  %v1335_v29 = vld [vmem:[%s1626_s11 + $0x1d0] sm:$0xf]  ;;  %v1323_v32 = vld [vmem:[%s1626_s11 + $0x1b8] sm:$0xf] }
  0x59   : > { %856 = vmatpush.bf16.msrb.mxu0 %v1248_v18  ;;  %v1203_v18 = vld [vmem:[%s1626_s11 + $0xc8] sm:$0xf]  ;;  %v1450_v33 = vld [vmem:[%s1626_s11 + $0x1c0] sm:$0xf0]  ;;  %v1447_v36 = vld [vmem:[%s1626_s11 + $0x1a8] sm:$0xf0] }
  0x5a   : > { %870 = vmatpush.bf16.msrb.mxu1 %v1344_v23  ;;  %883 = vmatpush.bf16.msrb.mxu2 %v1168_v26  ;;  %v1108_v23 = vor.u32 %v1396_v17, %v1107_v16  ;;  %v1204_v24 = vor.u32 %v1420_v19, %v1203_v18  ;;  %v1347_v26 = vld [vmem:[%s1626_s11 + $0x1e8] sm:$0xf]  ;;  %v1324_v34 = vor.u32 %v1450_v33, %v1323_v32  ;;  %v295_v1 = vld [vmem:[%s1912_s4 + $0x20] sm:$0xff]  ;;  %v293_v8 = vld [vmem:[%s1912_s4 + $0x10] sm:$0xff]  ;;  %p1385_p11 = scmp.ne.s32.totalorder %s1540_s17, 17 }
  0x5b   : > { %897 = vmatpush.bf16.msrb.mxu3 %v1264_v27  ;;  %v1456_v27 = vld [vmem:[%s1626_s11 + $0x1f0] sm:$0xf0]  ;;  %v292_v58 = vld [vmem:[%s1912_s4 + $0x8] sm:$0xff] }
  0x5c   : > { %v1348_v28 = vor.u32 %v1456_v27, %v1347_v26 }
  0x5d   : > { %857 = vmatpush.bf16.msrb.mxu0 %v1236_v30  ;;  %v1453_v30 = vld [vmem:[%s1626_s11 + $0x1d8] sm:$0xf0] }
  0x5e   : > { %871 = vmatpush.bf16.msrb.mxu1 %v1332_v35  ;;  %884 = vmatpush.bf16.msrb.mxu2 %v1156_v38  ;;  %v1336_v31 = vor.u32 %v1453_v30, %v1335_v29  ;;  %v1311_v35 = vld [vmem:[%s1626_s11 + $0x1a0] sm:$0xf]  ;;  %v1299_v38 = vld [vmem:[%s1626_s11 + $0x188] sm:$0xf] }
  0x5f   : > { %898 = vmatpush.bf16.msrb.mxu3 %v1252_v39  ;;  %v1312_v37 = vor.u32 %v1447_v36, %v1311_v35  ;;  %v1444_v39 = vld [vmem:[%s1626_s11 + $0x190] sm:$0xf0] }
  0x60   : > { %v1300_v40 = vor.u32 %v1444_v39, %v1299_v38 }
  0x61   : > { %858 = vmatpush.bf16.msrb.mxu0 %v1224_v42  ;;  %v291_v42 = vld [vmem:[%s1912_s4] sm:$0xff] }
  0x62   : > { %872 = vmatpush.bf16.msrb.mxu1 %v1320_v47  ;;  %885 = vmatpush.bf16.msrb.mxu2 %v1144_v50 }
  0x63   : > { %899 = vmatpush.bf16.msrb.mxu3 %v1240_v51 }
  0x65   : > { %859 = vmatpush.bf16.msrb.mxu0 %v1212_v54 }
  0x66   : > { %873 = vmatpush.bf16.msrb.mxu1 %v1308_v61  ;;  %886 = vmatpush.bf16.msrb.mxu2 %v1132_v2 }
  0x67   : > { %900 = vmatpush.bf16.msrb.mxu3 %v1228_v3 }
  0x69   : > { %860 = vmatpush.bf16.msrb.mxu0 %v1200_v7 }
  0x6a   : > { %874 = vmatpush.bf16.msrb.mxu1 %v1296_v11  ;;  %887 = vmatpush.bf16.msrb.mxu2 %v1120_v14 }
  0x6b   : > { %901 = vmatpush.bf16.msrb.mxu3 %v1216_v15  ;;  %v296_v15 = vld [vmem:[%s1912_s4 + $0x28] sm:$0xff] }
  0x6c   : > { %861 = vmatmul.bf16.vlgmr.msrb.gmra.mxu0 %v1732_v56 }
  0x6d   : > { %909 = vmatpush.bf16.msra.mxu0 %v1384_v10  ;;  %875 = vmatmul.bf16.vlgmr.msrb.gmra.mxu1 %v1743_v6 }
  0x6e   : > { %888 = vmatpush.bf16.msrb.mxu2 %v1108_v23 }
  0x6f   : > { %902 = vmatpush.bf16.msrb.mxu3 %v1204_v24 }
  0x71   : > { %910 = vmatpush.bf16.msra.mxu0 %v1372_v20  ;;  %889 = vmatmul.bf16.vlgmr.msrb.gmra.mxu2 %v1730_v55 }
  0x72   : > { %903 = vmatmul.bf16.vlgmr.msrb.gmra.mxu3 %v1732_v56 }
  0x75   : > { %911 = vmatpush.bf16.msra.mxu0 %v1360_v25 }
  0x79   : > { %912 = vmatpush.bf16.msra.mxu0 %v1348_v28 }
  0x7d   : > { %913 = vmatpush.bf16.msra.mxu0 %v1336_v31 }
  0x81   : > { %914 = vmatpush.bf16.msra.mxu0 %v1324_v34 }
  0x85   : > { %915 = vmatpush.bf16.msra.mxu0 %v1312_v37 }
  0x89   : > { %916 = vmatpush.bf16.msra.mxu0 %v1300_v40 }
  0x8c   : > { %917 = vmatmul.bf16.vlgmr.msra.gmra.mxu0 %v1743_v6  ;;  %v294_v6 = vld [vmem:[%s1912_s4 + $0x18] sm:$0xff] }
  0xc9   : > { %v806_v56 = vpop.f32.mrf.mxu0 }
  0xca   : > { %v820_v55 = vpop.f32.mrf.mxu1 }
  0xcb   : > { %v821_v41 = vadd.f32 %v820_v55, %v806_v56 }
  0xd1   : > { %v808_v47 = vpop.f32.mrf.mxu0 }
  0xd2   : > { %v822_v45 = vpop.f32.mrf.mxu1 }
  0xd3   : > { %v823_v48 = vadd.f32 %v822_v45, %v808_v47 }
  0xd4   : > { %v834_v43 = vpop.f32.mrf.mxu2 }
  0xd5   : > { %v835_v44 = vadd.f32 %v834_v43, %v821_v41 }
  0xd7   : > { %v923_v46 = vadd.f32 %v835_v44, %v291_v42  ;;  %v848_v52 = vpop.f32.mrf.mxu3 }
  0xd9   : > { %929 = vst [vmem:[%s1912_s4] sm:$0xff] %v923_v46 }
  0xdc   : > { %v836_v49 = vpop.f32.mrf.mxu2 }
  0xdd   : > { %v837_v50 = vadd.f32 %v836_v49, %v823_v48 }
  0xdf   : > { %v926_v51 = vadd.f32 %v837_v50, %v294_v6  ;;  %v850_v61 = vpop.f32.mrf.mxu3 }
  0xe1   : > { %932 = vst [vmem:[%s1912_s4 + $0x18] sm:$0xff] %v926_v51 }
  0xe9   : > { %v862_v53 = vpop.f32.mrf.mxu0 }
  0xea   : > { %v863_v54 = vadd.f32 %v862_v53, %v848_v52  ;;  %v876_v57 = vpop.f32.mrf.mxu1 }
  0xec   : > { %v877_v59 = vadd.f32 %v876_v57, %v863_v54 }
  0xee   : > { %v924_v60 = vadd.f32 %v877_v59, %v292_v58 }
  0xf0   : > { %930 = vst [vmem:[%s1912_s4 + $0x8] sm:$0xff] %v924_v60 }
  0xf1   : > { %v864_v62 = vpop.f32.mrf.mxu0 }
  0xf2   : > { %v865_v63 = vadd.f32 %v864_v62, %v850_v61  ;;  %v878_v0 = vpop.f32.mrf.mxu1 }
  0xf4   : > { %v879_v2 = vadd.f32 %v878_v0, %v865_v63  ;;  %v890_v4 = vpop.f32.mrf.mxu2 }
  0xf5   : > { %v904_v5 = vpop.f32.mrf.mxu3 }
  0xf6   : > { %v927_v3 = vadd.f32 %v879_v2, %v295_v1  ;;  %v905_v7 = vadd.f32 %v904_v5, %v890_v4 }
  0xf8   : > { %933 = vst [vmem:[%s1912_s4 + $0x20] sm:$0xff] %v927_v3 }
  0xfc   : > { %v892_v12 = vpop.f32.mrf.mxu2 }
  0xfd   : > { %v906_v13 = vpop.f32.mrf.mxu3 }
  0xfe   : > { %v907_v14 = vadd.f32 %v906_v13, %v892_v12 }
 0x109   : > { %v918_v9 = vpop.f32.mrf.mxu0 }
 0x10a   : > { %v919_v10 = vadd.f32 %v918_v9, %v905_v7 }
 0x10c   : > { %v925_v11 = vadd.f32 %v919_v10, %v293_v8 }
 0x10e   : > { %931 = vst [vmem:[%s1912_s4 + $0x10] sm:$0xff] %v925_v11 }
 0x111   : > { %v920_v16 = vpop.f32.mrf.mxu0 }
 0x112   : > { %v921_v17 = vadd.f32 %v920_v16, %v907_v14  ;;  %938 = sbr.rel (%p1385_p11) target bundleno = 295 (0x127), region = 70 }
 0x114   : > { %v928_v18 = vadd.f32 %v921_v17, %v296_v15 }
 0x116   : > { %934 = vst [vmem:[%s1912_s4 + $0x28] sm:$0xff] %v928_v18 }
 0x117   : > { %v939_v19 = vld [vmem:[%s1912_s4] sm:$0xff]  ;;  %v940_v24 = vld [vmem:[%s1912_s4 + $0x8] sm:$0xff]  ;;  %v941_v27 = vld [vmem:[%s1912_s4 + $0x10] sm:$0xff] }
 0x118   : > { %v945_v20 = vld [vmem:[%s1910_s2] sm:$0x7]  ;;  %v942_v30 = vld [vmem:[%s1912_s4 + $0x18] sm:$0xff] }
 0x119   : > { %v959_v21 = vld [vmem:[%s1911_s3] sm:$0x7]  ;;  %v947_v22 = vperm.slane %v945_v20, 0  ;;  %v948_v25 = vperm.slane %v945_v20, 1  ;;  %v949_v28 = vperm.slane %v945_v20, 2 }
 0x11a   : > { %v961_v23 = vperm.slane %v959_v21, 0  ;;  %v962_v26 = vperm.slane %v959_v21, 1  ;;  %v963_v29 = vperm.slane %v959_v21, 2  ;;  %v943_v31 = vld [vmem:[%s1912_s4 + $0x20] sm:$0xff] }
 0x11b   : > { %v953_v33 = vmul.f32 %v947_v22, %v939_v19  ;;  %v954_v34 = vmul.f32 %v948_v25, %v940_v24  ;;  %v956_v35 = vmul.f32 %v947_v22, %v942_v30  ;;  %v957_v36 = vmul.f32 %v948_v25, %v943_v31 }
 0x11c   : > { %v955_v37 = vmul.f32 %v949_v28, %v941_v27 }
 0x11d   : > { %v944_v32 = vld [vmem:[%s1912_s4 + $0x28] sm:$0xff]  ;;  %v967_v39 = vadd.f32 %v961_v23, %v953_v33  ;;  %v968_v40 = vadd.f32 %v962_v26, %v954_v34  ;;  %v970_v55 = vadd.f32 %v961_v23, %v956_v35  ;;  %v971_v56 = vadd.f32 %v962_v26, %v957_v36 }
 0x11e   : > { %v958_v38 = vmul.f32 %v949_v28, %v944_v32  ;;  %v969_v41 = vadd.f32 %v963_v29, %v955_v37 }
 0x11f   : > { %v973_v43 = vmax.f32 %v967_v39, 0.0  ;;  %v974_v44 = vmax.f32 %v968_v40, 0.0  ;;  %v976_v46 = vmax.f32 %v970_v55, 0.0  ;;  %v977_v47 = vmax.f32 %v971_v56, 0.0 }
 0x120   : > { %v972_v42 = vadd.f32 %v963_v29, %v958_v38  ;;  %v975_v45 = vmax.f32 %v969_v41, 0.0 }
 0x121   : > { %979 = vst [vmem:[%s1912_s4] sm:$0xff] %v973_v43 }
 0x122   : > { %980 = vst [vmem:[%s1912_s4 + $0x8] sm:$0xff] %v974_v44  ;;  %v978_v48 = vmax.f32 %v972_v42, 0.0 }
 0x123   : > { %981 = vst [vmem:[%s1912_s4 + $0x10] sm:$0xff] %v975_v45 }
 0x124   : > { %982 = vst [vmem:[%s1912_s4 + $0x18] sm:$0xff] %v976_v46 }
 0x125   : > { %983 = vst [vmem:[%s1912_s4 + $0x20] sm:$0xff] %v977_v47 }
 0x126   : > { %984 = vst [vmem:[%s1912_s4 + $0x28] sm:$0xff] %v978_v48 }
 0x127 PF: > { %s14_s19 = sadd.s32 1, %s1548_s19   ;;  %s1913_s15 = smov %s1536_s16 }
 0x128   : > { %p11_p12 = scmp.ge.s32.totalorder %s14_s19, 20   ;;  %s1914_s16 = smov %s1611_s23 }
 0x129   : > { %s1915_s17 = smov %s1544_s18  ;;  %s1916_s18 = smov %s1918_s20 }
 0x12a   :  { %13 = sbr.rel (!%p11_p12) target bundleno = 3 (0x3), region = 114 }

// kernel: reduction_b_forward.10
= control target key start
LH: loop header
LB: loop body
LE: loop exit
PB: predicated region body
PF: predicated region fallthrough
CT: control target
= control target key end

     0   :  { %s2664_s15 = smov 0   ;;  %s2666_s16 = smov 0   ;;  %s3582_s0 = inlined_call_operand.vmem [shape: bf16[256,6912], index: 0, kind: input, shape index: {}]   ;;  %s3583_s1 = inlined_call_operand.vmem [shape: bf16[6912,384], index: 1, kind: input, shape index: {}]   ;;  %s3584_s2 = inlined_call_operand.vmem [shape: f32[1,384], index: 2, kind: input, shape index: {}]   ;;  %s3585_s3 = inlined_call_operand.vmem [shape: f32[1,384], index: 3, kind: input, shape index: {}]   ;;  %s3586_s4 = inlined_call_operand.vmem [shape: f32[256,384], index: 4, kind: output, shape index: {}]  }
   0x1   :  { %s2668_s17 = smov 0   ;;  %s2670_s18 = smov 0  }
   0x2   :  { %s2672_s19 = smov 0   ;;  %s2674_s20 = smov 0  }
   0x3   :  { %s2676_s21 = smov 0  }
   0x4 LB: > { %s23_s22 = sadd.s32 1, %s2628_s19  ;;  %s26_s23 = sadd.s32 1, %s2632_s20  ;;  %s2636_s21 = sphi %s2676_s21, %s14_s21   ;;  %s2632_s20 = sphi %s2674_s20, %s3592_s20   ;;  %s2628_s19 = sphi %s2672_s19, %s3591_s19   ;;  %s2624_s18 = sphi %s2670_s18, %s3590_s18   ;;  %s2620_s17 = sphi %s2668_s17, %s3589_s17   ;;  %s2616_s16 = sphi %s2666_s16, %s3588_s16   ;;  %s2612_s15 = sphi %s2664_s15, %s3587_s15  }
   0x5   : > { %p24_p0 = scmp.ge.s32.totalorder %s23_s22, 18  ;;  %p42_p1 = scmp.ne.s32.totalorder %s2616_s16, %s2612_s15 }
   0x6   : > { %p43_p2 = scmp.eq.s32.totalorder %s2636_s21, 0  ;;  %s35_s27 = sadd.s32 1, %s2616_s16 }
   0x7   : > { %s3594_s22 = smov (%p24_p0, %s23_s22), 0  ;;  %s3596_s23 = smov (!%p24_p0, %s26_s23), %s2632_s20 }
   0x8   : > { %p44_p3 = por %p43_p2, %p42_p1  ;;  %p28_p4 = scmp.ge.s32.totalorder %s3596_s23, 2 }
   0x9   : > { %s31_s24 = ssub.s32 %s2628_s19, %s3594_s22  ;;  %p1972_p6 = scmp.ge.s32.totalorder %s2636_s21, 36 }
   0xa   : > { %s3598_s23 = smov (%p28_p4, %s3596_s23), 0 }
   0xb   : > { %s30_s25 = ssub.s32 %s2632_s20, %s3598_s23  ;;  %168 = sbr.rel (%p1972_p6) target bundleno = 57 (0x39), region = 24 }
   0xc   : > { %s32_s26 = sor.u32 %s31_s24, %s30_s25 }
   0xd   : > { %p33_p5 = scmp.eq.s32.totalorder %s32_s26, 0 }
   0xf   : > { %s2715_s28 = scalar_select %p33_p5, %s2616_s16, %s35_s27  }
  0x10   : > { %171 = sbr.rel (!%p44_p3) target bundleno = 57 (0x39), region = 28  ;;  %s173_s29 = sand.u32 (%p44_p3), 1, %s2616_s16  }
  0x11   : > { %s177_s30 = smul.u32 (%p44_p3), 3, %s2628_s19 }
  0x12   : > { %s2520_s5 = smul.u32 (%p44_p3), 192, %s173_s29 }
  0x13   : > { %s2521_s6 = smul.u32 (%p44_p3), 864, %s2632_s20 }
  0x14   : > { %s2729_s12 = scalar_lea.vmem (%p44_p3), [#allocation2], %s2520_s5 }
  0x15   : > { %s179_s7 = sadd.s32 %s2521_s6, %s177_s30 }
  0x16   : > { %s1975_s8 = sshll.u32 %s179_s7, 2 }
  0x17   : > { %s2724_s11 = scalar_lea.vmem %s3582_s0, %s1975_s8 }
  0x18   : > { %v196_v0 = vld [vmem:[%s2724_s11] sm:$0xff]  ;;  %v198_v1 = vld [vmem:[%s2724_s11 + $0xd8] sm:$0xff]  ;;  %v200_v2 = vld [vmem:[%s2724_s11 + $0x1b0] sm:$0xff] }
  0x19   : > { %197 = vst [vmem:[%s2729_s12] sm:$0xff] %v196_v0  ;;  %v202_v3 = vld [vmem:[%s2724_s11 + $0x288] sm:$0xff]  ;;  %v204_v4 = vld [vmem:[%s2724_s11 + $0x360] sm:$0xff]  ;;  %v206_v5 = vld [vmem:[%s2724_s11 + $0x438] sm:$0xff] }
  0x1a   : > { %199 = vst [vmem:[%s2729_s12 + $0xc] sm:$0xff] %v198_v1  ;;  %v208_v6 = vld [vmem:[%s2724_s11 + $0x510] sm:$0xff]  ;;  %v210_v7 = vld [vmem:[%s2724_s11 + $0x5e8] sm:$0xff]  ;;  %v212_v8 = vld [vmem:[%s2724_s11 + $0x6c0] sm:$0xff] }
  0x1b   : > { %201 = vst [vmem:[%s2729_s12 + $0x18] sm:$0xff] %v200_v2  ;;  %v214_v9 = vld [vmem:[%s2724_s11 + $0x798] sm:$0xff]  ;;  %v216_v10 = vld [vmem:[%s2724_s11 + $0x870] sm:$0xff]  ;;  %v218_v11 = vld [vmem:[%s2724_s11 + $0x948] sm:$0xff] }
  0x1c   : > { %203 = vst [vmem:[%s2729_s12 + $0x24] sm:$0xff] %v202_v3  ;;  %v220_v12 = vld [vmem:[%s2724_s11 + $0xa20] sm:$0xff]  ;;  %v222_v13 = vld [vmem:[%s2724_s11 + $0xaf8] sm:$0xff]  ;;  %v224_v14 = vld [vmem:[%s2724_s11 + $0xbd0] sm:$0xff] }
  0x1d   : > { %205 = vst [vmem:[%s2729_s12 + $0x30] sm:$0xff] %v204_v4  ;;  %v226_v15 = vld [vmem:[%s2724_s11 + $0xca8] sm:$0xff]  ;;  %v1978_v17 = vld [vmem:[%s2724_s11 + $0xe0] sm:$0xf]  ;;  %v1980_v18 = vld [vmem:[%s2724_s11 + $0x1b8] sm:$0xf] }
  0x1e   : > { %207 = vst [vmem:[%s2729_s12 + $0x3c] sm:$0xff] %v206_v5  ;;  %v1976_v16 = vld [vmem:[%s2724_s11 + $0x8] sm:$0xf]  ;;  %v1982_v19 = vld [vmem:[%s2724_s11 + $0x290] sm:$0xf] }
  0x1f   : > { %209 = vst [vmem:[%s2729_s12 + $0x48] sm:$0xff] %v208_v6  ;;  %v1984_v20 = vld [vmem:[%s2724_s11 + $0x368] sm:$0xf]  ;;  %v1986_v21 = vld [vmem:[%s2724_s11 + $0x440] sm:$0xf] }
  0x20   : > { %211 = vst [vmem:[%s2729_s12 + $0x54] sm:$0xff] %v210_v7  ;;  %v1988_v22 = vld [vmem:[%s2724_s11 + $0x518] sm:$0xf]  ;;  %v1990_v23 = vld [vmem:[%s2724_s11 + $0x5f0] sm:$0xf] }
  0x21   : > { %213 = vst [vmem:[%s2729_s12 + $0x60] sm:$0xff] %v212_v8  ;;  %v1992_v24 = vld [vmem:[%s2724_s11 + $0x6c8] sm:$0xf]  ;;  %v1994_v25 = vld [vmem:[%s2724_s11 + $0x7a0] sm:$0xf] }
  0x22   : > { %215 = vst [vmem:[%s2729_s12 + $0x6c] sm:$0xff] %v214_v9  ;;  %v1996_v26 = vld [vmem:[%s2724_s11 + $0x878] sm:$0xf]  ;;  %v1998_v27 = vld [vmem:[%s2724_s11 + $0x950] sm:$0xf] }
  0x23   : > { %217 = vst [vmem:[%s2729_s12 + $0x78] sm:$0xff] %v216_v10  ;;  %v2000_v28 = vld [vmem:[%s2724_s11 + $0xa28] sm:$0xf]  ;;  %v2002_v29 = vld [vmem:[%s2724_s11 + $0xb00] sm:$0xf] }
  0x24   : > { %219 = vst [vmem:[%s2729_s12 + $0x84] sm:$0xff] %v218_v11  ;;  %v2004_v30 = vld [vmem:[%s2724_s11 + $0xbd8] sm:$0xf]  ;;  %v2006_v31 = vld [vmem:[%s2724_s11 + $0xcb0] sm:$0xf] }
  0x25   : > { %221 = vst [vmem:[%s2729_s12 + $0x90] sm:$0xff] %v220_v12 }
  0x26   : > { %223 = vst [vmem:[%s2729_s12 + $0x9c] sm:$0xff] %v222_v13 }
  0x27   : > { %225 = vst [vmem:[%s2729_s12 + $0xa8] sm:$0xff] %v224_v14 }
  0x28   : > { %227 = vst [vmem:[%s2729_s12 + $0xb4] sm:$0xff] %v226_v15 }
  0x29   : > { %1977 = vst [vmem:[%s2729_s12 + $0x8] sm:$0xf] %v1976_v16 }
  0x2a   : > { %1979 = vst [vmem:[%s2729_s12 + $0x14] sm:$0xf] %v1978_v17 }
  0x2b   : > { %1981 = vst [vmem:[%s2729_s12 + $0x20] sm:$0xf] %v1980_v18 }
  0x2c   : > { %1983 = vst [vmem:[%s2729_s12 + $0x2c] sm:$0xf] %v1982_v19 }
  0x2d   : > { %1985 = vst [vmem:[%s2729_s12 + $0x38] sm:$0xf] %v1984_v20 }
  0x2e   : > { %1987 = vst [vmem:[%s2729_s12 + $0x44] sm:$0xf] %v1986_v21 }
  0x2f   : > { %1989 = vst [vmem:[%s2729_s12 + $0x50] sm:$0xf] %v1988_v22 }
  0x30   : > { %1991 = vst [vmem:[%s2729_s12 + $0x5c] sm:$0xf] %v1990_v23 }
  0x31   : > { %1993 = vst [vmem:[%s2729_s12 + $0x68] sm:$0xf] %v1992_v24 }
  0x32   : > { %1995 = vst [vmem:[%s2729_s12 + $0x74] sm:$0xf] %v1994_v25 }
  0x33   : > { %1997 = vst [vmem:[%s2729_s12 + $0x80] sm:$0xf] %v1996_v26 }
  0x34   : > { %1999 = vst [vmem:[%s2729_s12 + $0x8c] sm:$0xf] %v1998_v27 }
  0x35   : > { %2001 = vst [vmem:[%s2729_s12 + $0x98] sm:$0xf] %v2000_v28 }
  0x36   : > { %2003 = vst [vmem:[%s2729_s12 + $0xa4] sm:$0xf] %v2002_v29 }
  0x37   : > { %2005 = vst [vmem:[%s2729_s12 + $0xb0] sm:$0xf] %v2004_v30 }
  0x38   : > { %2007 = vst [vmem:[%s2729_s12 + $0xbc] sm:$0xf] %v2006_v31 }
  0x39 PF: > { %p2008_p7 = scmp.ge.s32.totalorder %s2636_s21, 1  ;;  %p282_p8 = scmp.lt.s32.totalorder %s2636_s21, 37 }
  0x3b   : > { %p283_p9 = pnand %p2008_p7, %p282_p8 }
  0x3c   : > { %s289_s13 = sand.u32 (!%p283_p9), 1, %s2612_s15   ;;  %s323_s14 = smul.u32 (!%p283_p9), 48, %s2620_s17 }
  0x3d   : > { %286 = sbr.rel (%p283_p9) target bundleno = 635 (0x27b), region = 58  ;;  %s2010_s25 = sshll.u32 (!%p283_p9), %s2624_s18, 4 }
  0x3e   : > { %s2522_s24 = smul.u32 (!%p283_p9), 192, %s289_s13  ;;  %p324_p10 = scmp.lt.s32.totalorder (!%p283_p9), %s323_s14, 863 }
  0x3f   : > { %p331_p11 = scmp.lt.s32.totalorder (!%p283_p9), %s2010_s25, 31  ;;  %p2012_p12 = scmp.ne.s32.totalorder (!%p283_p9), %s2620_s17, 0 }
  0x40   : > { %s2807_s15 = scalar_lea.vmem (!%p283_p9), [#allocation2], %s2522_s24 }
  0x42   : > { %s3600_s14 = smov (!%p324_p10, %s323_s14), 863  ;;  %s3602_s25 = smov (!%p331_p11, %s2010_s25), 31 }
  0x43   : > { %s2523_s26 = smul.u32 12, %s3600_s14 }
  0x44   : > { %s2524_s27 = smul.u32 24, %s3602_s25 }
  0x45   : > { %s2800_s5 = scalar_lea.vmem %s3583_s1, %s2523_s26  ;;  %340 = sbr.rel (%p2012_p12) target bundleno = 123 (0x7b), region = 66 }
  0x46   : > { %s2805_s8 = scalar_lea.vmem %s3586_s4, %s2524_s27 }
  0x4a   : > { %v2638_v32 = vmov 0.0  }
  0x4b   : > { %341 = vst [vmem:[%s2805_s8] sm:$0xff] %v2638_v32 }
  0x4c   : > { %342 = vst [vmem:[%s2805_s8 + $0x8] sm:$0xff] %v2638_v32 }
  0x4d   : > { %343 = vst [vmem:[%s2805_s8 + $0x10] sm:$0xff] %v2638_v32 }
  0x4e   : > { %344 = vst [vmem:[%s2805_s8 + $0x18] sm:$0xff] %v2638_v32 }
  0x4f   : > { %345 = vst [vmem:[%s2805_s8 + $0x20] sm:$0xff] %v2638_v32 }
  0x50   : > { %346 = vst [vmem:[%s2805_s8 + $0x28] sm:$0xff] %v2638_v32 }
  0x51   : > { %347 = vst [vmem:[%s2805_s8 + $0x30] sm:$0xff] %v2638_v32 }
  0x52   : > { %348 = vst [vmem:[%s2805_s8 + $0x38] sm:$0xff] %v2638_v32 }
  0x53   : > { %349 = vst [vmem:[%s2805_s8 + $0x40] sm:$0xff] %v2638_v32 }
  0x54   : > { %350 = vst [vmem:[%s2805_s8 + $0x48] sm:$0xff] %v2638_v32 }
  0x55   : > { %351 = vst [vmem:[%s2805_s8 + $0x50] sm:$0xff] %v2638_v32 }
  0x56   : > { %352 = vst [vmem:[%s2805_s8 + $0x58] sm:$0xff] %v2638_v32 }
  0x57   : > { %353 = vst [vmem:[%s2805_s8 + $0x60] sm:$0xff] %v2638_v32 }
  0x58   : > { %354 = vst [vmem:[%s2805_s8 + $0x68] sm:$0xff] %v2638_v32 }
  0x59   : > { %355 = vst [vmem:[%s2805_s8 + $0x70] sm:$0xff] %v2638_v32 }
  0x5a   : > { %356 = vst [vmem:[%s2805_s8 + $0x78] sm:$0xff] %v2638_v32 }
  0x5b   : > { %357 = vst [vmem:[%s2805_s8 + $0x80] sm:$0xff] %v2638_v32 }
  0x5c   : > { %358 = vst [vmem:[%s2805_s8 + $0x88] sm:$0xff] %v2638_v32 }
  0x5d   : > { %359 = vst [vmem:[%s2805_s8 + $0x90] sm:$0xff] %v2638_v32 }
  0x5e   : > { %360 = vst [vmem:[%s2805_s8 + $0x98] sm:$0xff] %v2638_v32 }
  0x5f   : > { %361 = vst [vmem:[%s2805_s8 + $0xa0] sm:$0xff] %v2638_v32 }
  0x60   : > { %362 = vst [vmem:[%s2805_s8 + $0xa8] sm:$0xff] %v2638_v32 }
  0x61   : > { %363 = vst [vmem:[%s2805_s8 + $0xb0] sm:$0xff] %v2638_v32 }
  0x62   : > { %364 = vst [vmem:[%s2805_s8 + $0xb8] sm:$0xff] %v2638_v32 }
  0x63   : > { %365 = vst [vmem:[%s2805_s8 + $0xc0] sm:$0xff] %v2638_v32 }
  0x64   : > { %366 = vst [vmem:[%s2805_s8 + $0xc8] sm:$0xff] %v2638_v32 }
  0x65   : > { %367 = vst [vmem:[%s2805_s8 + $0xd0] sm:$0xff] %v2638_v32 }
  0x66   : > { %368 = vst [vmem:[%s2805_s8 + $0xd8] sm:$0xff] %v2638_v32 }
  0x67   : > { %369 = vst [vmem:[%s2805_s8 + $0xe0] sm:$0xff] %v2638_v32 }
  0x68   : > { %370 = vst [vmem:[%s2805_s8 + $0xe8] sm:$0xff] %v2638_v32 }
  0x69   : > { %371 = vst [vmem:[%s2805_s8 + $0xf0] sm:$0xff] %v2638_v32 }
  0x6a   : > { %372 = vst [vmem:[%s2805_s8 + $0xf8] sm:$0xff] %v2638_v32 }
  0x6b   : > { %373 = vst [vmem:[%s2805_s8 + $0x100] sm:$0xff] %v2638_v32 }
  0x6c   : > { %374 = vst [vmem:[%s2805_s8 + $0x108] sm:$0xff] %v2638_v32 }
  0x6d   : > { %375 = vst [vmem:[%s2805_s8 + $0x110] sm:$0xff] %v2638_v32 }
  0x6e   : > { %376 = vst [vmem:[%s2805_s8 + $0x118] sm:$0xff] %v2638_v32 }
  0x6f   : > { %377 = vst [vmem:[%s2805_s8 + $0x120] sm:$0xff] %v2638_v32 }
  0x70   : > { %378 = vst [vmem:[%s2805_s8 + $0x128] sm:$0xff] %v2638_v32 }
  0x71   : > { %379 = vst [vmem:[%s2805_s8 + $0x130] sm:$0xff] %v2638_v32 }
  0x72   : > { %380 = vst [vmem:[%s2805_s8 + $0x138] sm:$0xff] %v2638_v32 }
  0x73   : > { %381 = vst [vmem:[%s2805_s8 + $0x140] sm:$0xff] %v2638_v32 }
  0x74   : > { %382 = vst [vmem:[%s2805_s8 + $0x148] sm:$0xff] %v2638_v32 }
  0x75   : > { %383 = vst [vmem:[%s2805_s8 + $0x150] sm:$0xff] %v2638_v32 }
  0x76   : > { %384 = vst [vmem:[%s2805_s8 + $0x158] sm:$0xff] %v2638_v32 }
  0x77   : > { %385 = vst [vmem:[%s2805_s8 + $0x160] sm:$0xff] %v2638_v32 }
  0x78   : > { %386 = vst [vmem:[%s2805_s8 + $0x168] sm:$0xff] %v2638_v32 }
  0x79   : > { %387 = vst [vmem:[%s2805_s8 + $0x170] sm:$0xff] %v2638_v32 }
  0x7a   : > { %388 = vst [vmem:[%s2805_s8 + $0x178] sm:$0xff] %v2638_v32 }
  0x7b PF: > { %v2195_v33 = vld [vmem:[%s2800_s5 + $0xa8] sm:$0xf]  ;;  %v2446_v34 = vld [vmem:[%s2800_s5 + $0xb0] sm:$0xf0]  ;;  %v2183_v35 = vld [vmem:[%s2800_s5 + $0x90] sm:$0xf] }
  0x7c   : > { %v2196_v36 = vor.u32 %v2446_v34, %v2195_v33  ;;  %v2443_v37 = vld [vmem:[%s2800_s5 + $0x98] sm:$0xf0]  ;;  %v2171_v39 = vld [vmem:[%s2800_s5 + $0x78] sm:$0xf]  ;;  %v2440_v40 = vld [vmem:[%s2800_s5 + $0x80] sm:$0xf0] }
  0x7d   : > { %v2184_v38 = vor.u32 %v2443_v37, %v2183_v35  ;;  %v2172_v41 = vor.u32 %v2440_v40, %v2171_v39  ;;  %v2159_v42 = vld [vmem:[%s2800_s5 + $0x60] sm:$0xf]  ;;  %v2437_v43 = vld [vmem:[%s2800_s5 + $0x68] sm:$0xf0]  ;;  %v2147_v45 = vld [vmem:[%s2800_s5 + $0x48] sm:$0xf] }
  0x7e   : > { %1077 = vmatpush.bf16.msra.mxu0 %v2196_v36  ;;  %2496 = vmatpush.bf16.msra.mxu1 %v2196_v36  ;;  %v2160_v44 = vor.u32 %v2437_v43, %v2159_v42  ;;  %v2434_v46 = vld [vmem:[%s2800_s5 + $0x50] sm:$0xf0]  ;;  %v2135_v48 = vld [vmem:[%s2800_s5 + $0x30] sm:$0xf]  ;;  %v2431_v49 = vld [vmem:[%s2800_s5 + $0x38] sm:$0xf0] }
  0x7f   : > { %2497 = vmatpush.bf16.msra.mxu2 %v2196_v36  ;;  %2498 = vmatpush.bf16.msra.mxu3 %v2196_v36  ;;  %v2148_v47 = vor.u32 %v2434_v46, %v2147_v45  ;;  %v2136_v50 = vor.u32 %v2431_v49, %v2135_v48  ;;  %v2123_v51 = vld [vmem:[%s2800_s5 + $0x18] sm:$0xf]  ;;  %v2428_v52 = vld [vmem:[%s2800_s5 + $0x20] sm:$0xf0]  ;;  %v2111_v54 = vld [vmem:[%s2800_s5] sm:$0xf] }
  0x80   : > { %v2124_v53 = vor.u32 %v2428_v52, %v2123_v51  ;;  %v2425_v55 = vld [vmem:[%s2800_s5 + $0x8] sm:$0xf0]  ;;  %v2015_v56 = vld [vmem:[%s2807_s15] sm:$0xf]  ;;  %v2039_v58 = vld [vmem:[%s2807_s15 + $0x30] sm:$0xf] }
  0x81   : > { %v2401_v57 = vld [vmem:[%s2807_s15 + $0x8] sm:$0xf0]  ;;  %v2407_v59 = vld [vmem:[%s2807_s15 + $0x38] sm:$0xf0]  ;;  %v2387_v60 = vld [vmem:[%s2800_s5 + $0x228] sm:$0xf]  ;;  %v2112_v0 = vor.u32 %v2425_v55, %v2111_v54 }
  0x82   : > { %1078 = vmatpush.bf16.msra.mxu0 %v2184_v38  ;;  %2499 = vmatpush.bf16.msra.mxu1 %v2184_v38  ;;  %v2494_v61 = vld [vmem:[%s2800_s5 + $0x230] sm:$0xf0]  ;;  %v2445_v62 = vld [vmem:[%s2800_s5 + $0xac] sm:$0xf]  ;;  %v2197_v63 = vld [vmem:[%s2800_s5 + $0xb4] sm:$0xf0]  ;;  %v2891_v12 = vor.u32 %v2401_v57, %v2015_v56  ;;  %v2893_v13 = vor.u32 %v2407_v59, %v2039_v58 }
  0x83   : > { %2500 = vmatpush.bf16.msra.mxu2 %v2184_v38  ;;  %2501 = vmatpush.bf16.msra.mxu3 %v2184_v38  ;;  %v2063_v1 = vld [vmem:[%s2807_s15 + $0x60] sm:$0xf]  ;;  %v2413_v2 = vld [vmem:[%s2807_s15 + $0x68] sm:$0xf0]  ;;  %v2087_v3 = vld [vmem:[%s2807_s15 + $0x90] sm:$0xf]  ;;  %v2388_v7 = vor.u32 %v2494_v61, %v2387_v60  ;;  %v2200_v8 = vor.u32 %v2445_v62, %v2197_v63 }
  0x84   : > { %v2419_v4 = vld [vmem:[%s2807_s15 + $0x98] sm:$0xf0]  ;;  %v2291_v5 = vld [vmem:[%s2800_s5 + $0x168] sm:$0xf]  ;;  %v2470_v6 = vld [vmem:[%s2800_s5 + $0x170] sm:$0xf0]  ;;  %v2898_v17 = vor.u32 %v2413_v2, %v2063_v1 }
  0x85   : > { %v2469_v9 = vld [vmem:[%s2800_s5 + $0x16c] sm:$0xf]  ;;  %v2293_v10 = vld [vmem:[%s2800_s5 + $0x174] sm:$0xf0]  ;;  %v2375_v11 = vld [vmem:[%s2800_s5 + $0x210] sm:$0xf]  ;;  %v2900_v18 = vor.u32 %v2419_v4, %v2087_v3  ;;  %v2292_v19 = vor.u32 %v2470_v6, %v2291_v5 }
  0x86   : > { %1079 = vmatpush.bf16.msra.mxu0 %v2172_v41  ;;  %2502 = vmatpush.bf16.msra.mxu1 %v2172_v41  ;;  %v2491_v14 = vld [vmem:[%s2800_s5 + $0x218] sm:$0xf0]  ;;  %v2442_v15 = vld [vmem:[%s2800_s5 + $0x94] sm:$0xf]  ;;  %v2185_v16 = vld [vmem:[%s2800_s5 + $0x9c] sm:$0xf0]  ;;  %v2296_v20 = vor.u32 %v2469_v9, %v2293_v10 }
  0x87   : > { %2503 = vmatpush.bf16.msra.mxu2 %v2172_v41  ;;  %2504 = vmatpush.bf16.msra.mxu3 %v2172_v41  ;;  %v2279_v21 = vld [vmem:[%s2800_s5 + $0x150] sm:$0xf]  ;;  %v2467_v22 = vld [vmem:[%s2800_s5 + $0x158] sm:$0xf0]  ;;  %v2376_v23 = vor.u32 %v2491_v14, %v2375_v11  ;;  %v2188_v24 = vor.u32 %v2442_v15, %v2185_v16  ;;  %v2466_v25 = vld [vmem:[%s2800_s5 + $0x154] sm:$0xf] }
  0x88   : > { %v2281_v26 = vld [vmem:[%s2800_s5 + $0x15c] sm:$0xf0]  ;;  %v2363_v27 = vld [vmem:[%s2800_s5 + $0x1f8] sm:$0xf]  ;;  %v2488_v28 = vld [vmem:[%s2800_s5 + $0x200] sm:$0xf0]  ;;  %v2280_v31 = vor.u32 %v2467_v22, %v2279_v21 }
  0x89   : > { %v2439_v29 = vld [vmem:[%s2800_s5 + $0x7c] sm:$0xf]  ;;  %v2173_v30 = vld [vmem:[%s2800_s5 + $0x84] sm:$0xf0]  ;;  %v2284_v32 = vor.u32 %v2466_v25, %v2281_v26  ;;  %v2267_v33 = vld [vmem:[%s2800_s5 + $0x138] sm:$0xf]  ;;  %v2364_v35 = vor.u32 %v2488_v28, %v2363_v27 }
  0x8a   : > { %1080 = vmatpush.bf16.msra.mxu0 %v2160_v44  ;;  %2505 = vmatpush.bf16.msra.mxu1 %v2160_v44  ;;  %v2464_v34 = vld [vmem:[%s2800_s5 + $0x140] sm:$0xf0]  ;;  %v2176_v36 = vor.u32 %v2439_v29, %v2173_v30  ;;  %v2463_v37 = vld [vmem:[%s2800_s5 + $0x13c] sm:$0xf]  ;;  %v2269_v38 = vld [vmem:[%s2800_s5 + $0x144] sm:$0xf0] }
  0x8b   : > { %2506 = vmatpush.bf16.msra.mxu2 %v2160_v44  ;;  %2507 = vmatpush.bf16.msra.mxu3 %v2160_v44  ;;  %v2351_v39 = vld [vmem:[%s2800_s5 + $0x1e0] sm:$0xf]  ;;  %v2485_v40 = vld [vmem:[%s2800_s5 + $0x1e8] sm:$0xf0]  ;;  %v2436_v41 = vld [vmem:[%s2800_s5 + $0x64] sm:$0xf]  ;;  %v2268_v44 = vor.u32 %v2464_v34, %v2267_v33  ;;  %v2272_v45 = vor.u32 %v2463_v37, %v2269_v38 }
  0x8c   : > { %v2161_v42 = vld [vmem:[%s2800_s5 + $0x6c] sm:$0xf0]  ;;  %v2255_v43 = vld [vmem:[%s2800_s5 + $0x120] sm:$0xf]  ;;  %v2461_v46 = vld [vmem:[%s2800_s5 + $0x128] sm:$0xf0]  ;;  %v2352_v49 = vor.u32 %v2485_v40, %v2351_v39 }
  0x8d   : > { %v2257_v48 = vld [vmem:[%s2800_s5 + $0x12c] sm:$0xf0]  ;;  %v2027_v51 = vld [vmem:[%s2807_s15 + $0x18] sm:$0xf]  ;;  %v2404_v52 = vld [vmem:[%s2807_s15 + $0x20] sm:$0xf0]  ;;  %v2256_v62 = vor.u32 %v2461_v46, %v2255_v43 }
  0x8e   : > { %1081 = vmatpush.bf16.msra.mxu0 %v2148_v47  ;;  %2508 = vmatpush.bf16.msra.mxu1 %v2148_v47  ;;  %v2410_v54 = vld [vmem:[%s2807_s15 + $0x50] sm:$0xf0]  ;;  %v2339_v55 = vld [vmem:[%s2800_s5 + $0x1c8] sm:$0xf]  ;;  %v2433_v57 = vld [vmem:[%s2800_s5 + $0x4c] sm:$0xf] }
  0x8f   : > { %2509 = vmatpush.bf16.msra.mxu2 %v2148_v47  ;;  %2510 = vmatpush.bf16.msra.mxu3 %v2148_v47  ;;  %v2460_v47 = vld [vmem:[%s2800_s5 + $0x124] sm:$0xf]  ;;  %v2482_v56 = vld [vmem:[%s2800_s5 + $0x1d0] sm:$0xf0]  ;;  %v2149_v58 = vld [vmem:[%s2800_s5 + $0x54] sm:$0xf0] }
  0x90   : > { %v2075_v59 = vld [vmem:[%s2807_s15 + $0x78] sm:$0xf]  ;;  %v2416_v60 = vld [vmem:[%s2807_s15 + $0x80] sm:$0xf0]  ;;  %v2099_v61 = vld [vmem:[%s2807_s15 + $0xa8] sm:$0xf]  ;;  %v2260_v63 = vor.u32 %v2460_v47, %v2257_v48  ;;  %v2340_v3 = vor.u32 %v2482_v56, %v2339_v55  ;;  %v2152_v4 = vor.u32 %v2433_v57, %v2149_v58 }
  0x91   : > { %v2243_v1 = vld [vmem:[%s2800_s5 + $0x108] sm:$0xf]  ;;  %v2458_v2 = vld [vmem:[%s2800_s5 + $0x110] sm:$0xf0]  ;;  %v2457_v5 = vld [vmem:[%s2800_s5 + $0x10c] sm:$0xf]  ;;  %v2950_v15 = vor.u32 %v2416_v60, %v2075_v59 }
  0x92   : > { %1082 = vmatpush.bf16.msra.mxu0 %v2136_v50  ;;  %2511 = vmatpush.bf16.msra.mxu1 %v2136_v50  ;;  %v2245_v6 = vld [vmem:[%s2800_s5 + $0x114] sm:$0xf0]  ;;  %v2479_v10 = vld [vmem:[%s2800_s5 + $0x1b8] sm:$0xf0]  ;;  %v2430_v11 = vld [vmem:[%s2800_s5 + $0x34] sm:$0xf] }
  0x93   : > { %2512 = vmatpush.bf16.msra.mxu2 %v2136_v50  ;;  %2513 = vmatpush.bf16.msra.mxu3 %v2136_v50  ;;  %v2164_v50 = vor.u32 %v2436_v41, %v2161_v42  ;;  %v2137_v14 = vld [vmem:[%s2800_s5 + $0x3c] sm:$0xf0]  ;;  %v2231_v21 = vld [vmem:[%s2800_s5 + $0xf0] sm:$0xf]  ;;  %v2455_v22 = vld [vmem:[%s2800_s5 + $0xf8] sm:$0xf0] }
  0x94   : > { %v2454_v25 = vld [vmem:[%s2800_s5 + $0xf4] sm:$0xf]  ;;  %v2233_v26 = vld [vmem:[%s2800_s5 + $0xfc] sm:$0xf0]  ;;  %v2315_v27 = vld [vmem:[%s2800_s5 + $0x198] sm:$0xf] }
  0x95   : > { %v2476_v28 = vld [vmem:[%s2800_s5 + $0x1a0] sm:$0xf0]  ;;  %v2427_v29 = vld [vmem:[%s2800_s5 + $0x1c] sm:$0xf]  ;;  %v2125_v30 = vld [vmem:[%s2800_s5 + $0x24] sm:$0xf0] }
  0x96   : > { %1083 = vmatpush.bf16.msra.mxu0 %v2124_v53  ;;  %2514 = vmatpush.bf16.msra.mxu1 %v2124_v53  ;;  %v2219_v33 = vld [vmem:[%s2800_s5 + $0xd8] sm:$0xf]  ;;  %v2452_v34 = vld [vmem:[%s2800_s5 + $0xe0] sm:$0xf0]  ;;  %v2128_v37 = vor.u32 %v2427_v29, %v2125_v30  ;;  %v2221_v38 = vld [vmem:[%s2800_s5 + $0xe4] sm:$0xf0] }
  0x97   : > { %2515 = vmatpush.bf16.msra.mxu2 %v2124_v53  ;;  %2516 = vmatpush.bf16.msra.mxu3 %v2124_v53  ;;  %v2051_v53 = vld [vmem:[%s2807_s15 + $0x48] sm:$0xf]  ;;  %v2303_v39 = vld [vmem:[%s2800_s5 + $0x180] sm:$0xf]  ;;  %v2473_v40 = vld [vmem:[%s2800_s5 + $0x188] sm:$0xf0]  ;;  %v2220_v47 = vor.u32 %v2452_v34, %v2219_v33 }
  0x98   : > { %v2945_v9 = vor.u32 %v2410_v54, %v2051_v53  ;;  %v2424_v41 = vld [vmem:[%s2800_s5 + $0x4] sm:$0xf]  ;;  %v2113_v42 = vld [vmem:[%s2800_s5 + $0xc] sm:$0xf0]  ;;  %v2471_v46 = vld [vmem:[%s2800_s5 + $0x178] sm:$0xf0] }
  0x99   : > { %v2203_v43 = vld [vmem:[%s2800_s5 + $0xb0] sm:$0xf]  ;;  %v2116_v53 = vor.u32 %v2424_v41, %v2113_v42  ;;  %v2493_v55 = vld [vmem:[%s2800_s5 + $0x22c] sm:$0xf]  ;;  %v2389_v56 = vld [vmem:[%s2800_s5 + $0x234] sm:$0xf0] }
  0x9a   : > { %1084 = vmatpush.bf16.msra.mxu0 %v2112_v0  ;;  %2517 = vmatpush.bf16.msra.mxu1 %v2112_v0  ;;  %v2209_v54 = vld [vmem:[%s2800_s5 + $0xcc] sm:$0xf0]  ;;  %v2400_v57 = vld [vmem:[%s2807_s15 + $0x4] sm:$0xf]  ;;  %v2275_v29 = vld [vmem:[%s2800_s5 + $0x140] sm:$0xf] }
  0x9b   : > { %2518 = vmatpush.bf16.msra.mxu2 %v2112_v0  ;;  %2519 = vmatpush.bf16.msra.mxu3 %v2112_v0  ;;  %v2422_v0 = vld [vmem:[%s2807_s15 + $0xb0] sm:$0xf0]  ;;  %v2395_v60 = vld [vmem:[%s2800_s5 + $0x230] sm:$0xf]  ;;  %v2365_v33 = vld [vmem:[%s2800_s5 + $0x204] sm:$0xf0] }
  0x9c   : > { %v2952_v16 = vor.u32 %v2422_v0, %v2099_v61  ;;  %v2495_v61 = vld [vmem:[%s2800_s5 + $0x238] sm:$0xf0]  ;;  %v2287_v0 = vld [vmem:[%s2800_s5 + $0x158] sm:$0xf]  ;;  %v2035_v41 = vld [vmem:[%s2807_s15 + $0x20] sm:$0xf] }
  0x9d   : > { %1085 = vmatmul.bf16.vlgmr.msra.gmra.mxu0 %v2891_v12  ;;  %1095 = vmatmul.bf16.vlgmr.msra.gmra.mxu1 %v2893_v13  ;;  %v2405_v42 = vld [vmem:[%s2807_s15 + $0x28] sm:$0xf0]  ;;  %p2397_p13 = scmp.ne.s32.totalorder %s2620_s17, 17 }
  0x9e   : > { %1105 = vmatmul.bf16.vlgmr.msra.gmra.mxu2 %v2898_v17  ;;  %1115 = vmatmul.bf16.vlgmr.msra.gmra.mxu3 %v2900_v18 }
  0x9f   : > { %1175 = vmatpush.bf16.msrb.mxu2 %v2388_v7  ;;  %1224 = vmatpush.bf16.msrb.mxu3 %v2200_v8  ;;  %v2327_v7 = vld [vmem:[%s2800_s5 + $0x1b0] sm:$0xf]  ;;  %v2943_v8 = vor.u32 %v2404_v52, %v2027_v51  ;;  %v2448_v51 = vld [vmem:[%s2800_s5 + $0xc4] sm:$0xf]  ;;  %v2304_v52 = vor.u32 %v2473_v40, %v2303_v39  ;;  %v2403_v39 = vld [vmem:[%s2807_s15 + $0x1c] sm:$0xf] }
  0xa0   : > { %1126 = vmatpush.bf16.msrb.mxu1 %v2292_v19  ;;  %1273 = vmatpush.bf16.msrb.mxu0 %v2296_v20  ;;  %v2244_v19 = vor.u32 %v2458_v2, %v2243_v1  ;;  %v2248_v20 = vor.u32 %v2457_v5, %v2245_v6  ;;  %v2468_v1 = vld [vmem:[%s2800_s5 + $0x160] sm:$0xf0]  ;;  %v2023_v5 = vld [vmem:[%s2807_s15 + $0x8] sm:$0xf]  ;;  %v2402_v6 = vld [vmem:[%s2807_s15 + $0x10] sm:$0xf0] }
  0xa1   : > { %v2029_v40 = vld [vmem:[%s2807_s15 + $0x24] sm:$0xf0] }
  0xa3   : > { %1176 = vmatpush.bf16.msrb.mxu2 %v2376_v23  ;;  %1225 = vmatpush.bf16.msrb.mxu3 %v2188_v24  ;;  %v2328_v23 = vor.u32 %v2479_v10, %v2327_v7  ;;  %v2140_v24 = vor.u32 %v2430_v11, %v2137_v14  ;;  %v2392_v7 = vor.u32 %v2493_v55, %v2389_v56  ;;  %v2490_v11 = vld [vmem:[%s2800_s5 + $0x214] sm:$0xf] }
  0xa4   : > { %1127 = vmatpush.bf16.msrb.mxu1 %v2280_v31  ;;  %1274 = vmatpush.bf16.msrb.mxu0 %v2284_v32  ;;  %v2232_v31 = vor.u32 %v2455_v22, %v2231_v21  ;;  %v2236_v32 = vor.u32 %v2454_v25, %v2233_v26  ;;  %v2396_v10 = vor.u32 %v2495_v61, %v2395_v60  ;;  %v2383_v21 = vld [vmem:[%s2800_s5 + $0x218] sm:$0xf]  ;;  %v2492_v22 = vld [vmem:[%s2800_s5 + $0x220] sm:$0xf0]  ;;  %v2486_v55 = vld [vmem:[%s2800_s5 + $0x1f0] sm:$0xf0] }
  0xa5   : > { %v2384_v26 = vor.u32 %v2492_v22, %v2383_v21  ;;  %v2408_v60 = vld [vmem:[%s2807_s15 + $0x40] sm:$0xf0]  ;;  %v2059_v21 = vld [vmem:[%s2807_s15 + $0x50] sm:$0xf]  ;;  %v2411_v22 = vld [vmem:[%s2807_s15 + $0x58] sm:$0xf0] }
  0xa7   : > { %1177 = vmatpush.bf16.msrb.mxu2 %v2364_v35  ;;  %1226 = vmatpush.bf16.msrb.mxu3 %v2176_v36  ;;  %v2451_v35 = vld [vmem:[%s2800_s5 + $0xdc] sm:$0xf]  ;;  %v2316_v36 = vor.u32 %v2476_v28, %v2315_v27  ;;  %v2179_v27 = vld [vmem:[%s2800_s5 + $0x80] sm:$0xf]  ;;  %v2441_v28 = vld [vmem:[%s2800_s5 + $0x88] sm:$0xf0] }
  0xa8   : > { %1128 = vmatpush.bf16.msrb.mxu1 %v2268_v44  ;;  %1275 = vmatpush.bf16.msrb.mxu0 %v2272_v45  ;;  %v2447_v44 = vld [vmem:[%s2800_s5 + $0xb8] sm:$0xf0]  ;;  %v2299_v45 = vld [vmem:[%s2800_s5 + $0x170] sm:$0xf]  ;;  %v2224_v48 = vor.u32 %v2451_v35, %v2221_v38  ;;  %v2180_v30 = vor.u32 %v2441_v28, %v2179_v27  ;;  %v2143_v27 = vld [vmem:[%s2800_s5 + $0x38] sm:$0xf] }
  0xa9   : > { %v2204_v58 = vor.u32 %v2447_v44, %v2203_v43  ;;  %v2300_v59 = vor.u32 %v2471_v46, %v2299_v45  ;;  %v3018_v43 = vor.u32 %v2403_v39, %v2029_v40  ;;  %v3020_v44 = vor.u32 %v2405_v42, %v2035_v41  ;;  %v2167_v45 = vld [vmem:[%s2800_s5 + $0x68] sm:$0xf]  ;;  %v2438_v46 = vld [vmem:[%s2800_s5 + $0x70] sm:$0xf0]  ;;  %v2432_v28 = vld [vmem:[%s2800_s5 + $0x40] sm:$0xf0] }
  0xaa   : > { %v2412_v39 = vld [vmem:[%s2807_s15 + $0x64] sm:$0xf]  ;;  %v2065_v40 = vld [vmem:[%s2807_s15 + $0x6c] sm:$0xf0]  ;;  %v2071_v41 = vld [vmem:[%s2807_s15 + $0x68] sm:$0xf] }
  0xab   : > { %1178 = vmatpush.bf16.msrb.mxu2 %v2352_v49  ;;  %1227 = vmatpush.bf16.msrb.mxu3 %v2164_v50  ;;  %v2207_v49 = vld [vmem:[%s2800_s5 + $0xc0] sm:$0xf]  ;;  %v2449_v50 = vld [vmem:[%s2800_s5 + $0xc8] sm:$0xf0]  ;;  %v2414_v42 = vld [vmem:[%s2807_s15 + $0x70] sm:$0xf0] }
  0xac   : > { %1129 = vmatpush.bf16.msrb.mxu1 %v2256_v62  ;;  %1276 = vmatpush.bf16.msrb.mxu0 %v2260_v63  ;;  %v2191_v62 = vld [vmem:[%s2800_s5 + $0x98] sm:$0xf]  ;;  %v2444_v63 = vld [vmem:[%s2800_s5 + $0xa0] sm:$0xf0]  ;;  %v2208_v2 = vor.u32 %v2449_v50, %v2207_v49  ;;  %v2462_v49 = vld [vmem:[%s2800_s5 + $0x130] sm:$0xf0] }
  0xad   : > { %1090 = vmatmul.bf16.gmra.mxu0 %v2943_v8  ;;  %1100 = vmatmul.bf16.gmra.mxu1 %v2945_v9  ;;  %v2192_v14 = vor.u32 %v2444_v63, %v2191_v62  ;;  %v2484_v50 = vld [vmem:[%s2800_s5 + $0x1e4] sm:$0xf]  ;;  %v2155_v63 = vld [vmem:[%s2800_s5 + $0x50] sm:$0xf] }
  0xae   : > { %1110 = vmatmul.bf16.gmra.mxu2 %v2950_v15  ;;  %1120 = vmatmul.bf16.gmra.mxu3 %v2952_v16 }
  0xaf   : > { %1179 = vmatpush.bf16.msrb.mxu2 %v2340_v3  ;;  %1228 = vmatpush.bf16.msrb.mxu3 %v2152_v4  ;;  %v2212_v3 = vor.u32 %v2448_v51, %v2209_v54  ;;  %v2017_v4 = vld [vmem:[%s2807_s15 + $0xc] sm:$0xf0]  ;;  %v2359_v54 = vld [vmem:[%s2800_s5 + $0x1e8] sm:$0xf] }
  0xb0   : > { %1130 = vmatpush.bf16.msrb.mxu1 %v2244_v19  ;;  %1277 = vmatpush.bf16.msrb.mxu0 %v2248_v20  ;;  %v2288_v19 = vor.u32 %v2468_v1, %v2287_v0  ;;  %v2377_v20 = vld [vmem:[%s2800_s5 + $0x21c] sm:$0xf0]  ;;  %v2353_v51 = vld [vmem:[%s2800_s5 + $0x1ec] sm:$0xf0]  ;;  %v2360_v56 = vor.u32 %v2486_v55, %v2359_v54  ;;  %v2435_v0 = vld [vmem:[%s2800_s5 + $0x58] sm:$0xf0] }
  0xb1   : > { %v2380_v25 = vor.u32 %v2490_v11, %v2377_v20  ;;  %v2251_v1 = vld [vmem:[%s2800_s5 + $0x110] sm:$0xf]  ;;  %v2483_v11 = vld [vmem:[%s2800_s5 + $0x1d8] sm:$0xf0]  ;;  %v2053_v20 = vld [vmem:[%s2807_s15 + $0x54] sm:$0xf0] }
  0xb2   : > { %v2317_v54 = vld [vmem:[%s2800_s5 + $0x1a4] sm:$0xf0]  ;;  %v2323_v55 = vld [vmem:[%s2800_s5 + $0x1a0] sm:$0xf] }
  0xb3   : > { %1180 = vmatpush.bf16.msrb.mxu2 %v2328_v23  ;;  %1229 = vmatpush.bf16.msrb.mxu3 %v2140_v24  ;;  %v2998_v23 = vor.u32 %v2400_v57, %v2017_v4  ;;  %v3000_v24 = vor.u32 %v2402_v6, %v2023_v5  ;;  %v2406_v57 = vld [vmem:[%s2807_s15 + $0x34] sm:$0xf]  ;;  %v2481_v4 = vld [vmem:[%s2800_s5 + $0x1cc] sm:$0xf]  ;;  %v2341_v5 = vld [vmem:[%s2800_s5 + $0x1d4] sm:$0xf0] }
  0xb4   : > { %1131 = vmatpush.bf16.msrb.mxu1 %v2232_v31  ;;  %1278 = vmatpush.bf16.msrb.mxu0 %v2236_v32  ;;  %v2465_v31 = vld [vmem:[%s2800_s5 + $0x148] sm:$0xf0]  ;;  %v2487_v32 = vld [vmem:[%s2800_s5 + $0x1fc] sm:$0xf] }
  0xb5   : > { %v2276_v34 = vor.u32 %v2465_v31, %v2275_v29  ;;  %v2368_v35 = vor.u32 %v2487_v32, %v2365_v33  ;;  %v2239_v29 = vld [vmem:[%s2800_s5 + $0xf8] sm:$0xf]  ;;  %v2456_v31 = vld [vmem:[%s2800_s5 + $0x100] sm:$0xf0]  ;;  %v2478_v32 = vld [vmem:[%s2800_s5 + $0x1b4] sm:$0xf] }
  0xb6   : > { %v2329_v33 = vld [vmem:[%s2800_s5 + $0x1bc] sm:$0xf0] }
  0xb7   : > { %1181 = vmatpush.bf16.msrb.mxu2 %v2316_v36  ;;  %1230 = vmatpush.bf16.msrb.mxu3 %v2128_v37  ;;  %v2371_v36 = vld [vmem:[%s2800_s5 + $0x200] sm:$0xf]  ;;  %v2489_v37 = vld [vmem:[%s2800_s5 + $0x208] sm:$0xf0] }
  0xb8   : > { %1132 = vmatpush.bf16.msrb.mxu1 %v2220_v47  ;;  %1279 = vmatpush.bf16.msrb.mxu0 %v2224_v48  ;;  %v2372_v38 = vor.u32 %v2489_v37, %v2371_v36  ;;  %v2263_v47 = vld [vmem:[%s2800_s5 + $0x128] sm:$0xf]  ;;  %v2168_v48 = vor.u32 %v2438_v46, %v2167_v45  ;;  %v2335_v36 = vld [vmem:[%s2800_s5 + $0x1b8] sm:$0xf]  ;;  %v2480_v37 = vld [vmem:[%s2800_s5 + $0x1c0] sm:$0xf0]  ;;  %v3078_v45 = vor.u32 %v2412_v39, %v2065_v40 }
  0xb9   : > { %v3080_v46 = vor.u32 %v2414_v42, %v2071_v41  ;;  %v2421_v39 = vld [vmem:[%s2807_s15 + $0xac] sm:$0xf]  ;;  %v2101_v40 = vld [vmem:[%s2807_s15 + $0xb4] sm:$0xf0]  ;;  %v2107_v41 = vld [vmem:[%s2807_s15 + $0xb0] sm:$0xf] }
  0xba   : > { %v2423_v42 = vld [vmem:[%s2807_s15 + $0xb8] sm:$0xf0] }
  0xbb   : > { %1182 = vmatpush.bf16.msrb.mxu2 %v2304_v52  ;;  %1231 = vmatpush.bf16.msrb.mxu3 %v2116_v53  ;;  %v2264_v52 = vor.u32 %v2462_v49, %v2263_v47  ;;  %v2356_v53 = vor.u32 %v2484_v50, %v2353_v51  ;;  %v2131_v47 = vld [vmem:[%s2800_s5 + $0x20] sm:$0xf]  ;;  %v2453_v51 = vld [vmem:[%s2800_s5 + $0xe8] sm:$0xf0] }
  0xbc   : > { %1133 = vmatpush.bf16.msrb.mxu1 %v2208_v2  ;;  %1280 = vmatpush.bf16.msrb.mxu0 %v2212_v3  ;;  %v2156_v2 = vor.u32 %v2435_v0, %v2155_v63  ;;  %v2459_v3 = vld [vmem:[%s2800_s5 + $0x118] sm:$0xf0]  ;;  %v2227_v49 = vld [vmem:[%s2800_s5 + $0xe0] sm:$0xf]  ;;  %v2417_v0 = vld [vmem:[%s2807_s15 + $0x88] sm:$0xf0] }
  0xbd   : > { %v2252_v6 = vor.u32 %v2459_v3, %v2251_v1  ;;  %v2083_v63 = vld [vmem:[%s2807_s15 + $0x80] sm:$0xf]  ;;  %v2119_v3 = vld [vmem:[%s2800_s5 + $0x8] sm:$0xf] }
  0xbe   : > { %1183 = vmatmul.bf16.vlgmr.msrb.gmra.mxu2 %v3000_v24  ;;  %1232 = vmatmul.bf16.vlgmr.msrb.gmra.mxu3 %v2891_v12 }
  0xbf   : > { %1371 = vmatpush.bf16.msra.mxu2 %v2204_v58  ;;  %1420 = vmatpush.bf16.msra.mxu3 %v2300_v59  ;;  %v2041_v58 = vld [vmem:[%s2807_s15 + $0x3c] sm:$0xf0]  ;;  %v2047_v59 = vld [vmem:[%s2807_s15 + $0x38] sm:$0xf] }
  0xc0   : > { %1322 = vmatpush.bf16.msra.mxu1 %v2392_v7  ;;  %1469 = vmatpush.bf16.msra.mxu0 %v2396_v10  ;;  %v3038_v61 = vor.u32 %v2406_v57, %v2041_v58  ;;  %v3040_v62 = vor.u32 %v2408_v60, %v2047_v59  ;;  %v2344_v7 = vor.u32 %v2481_v4, %v2341_v5  ;;  %v2347_v10 = vld [vmem:[%s2800_s5 + $0x1d0] sm:$0xf]  ;;  %v2477_v57 = vld [vmem:[%s2800_s5 + $0x1a8] sm:$0xf0]  ;;  %v2415_v59 = vld [vmem:[%s2807_s15 + $0x7c] sm:$0xf] }
  0xc1   : > { %1134 = vmatmul.bf16.vlgmr.msrb.gmra.mxu1 %v2998_v23  ;;  %1281 = vmatmul.bf16.vlgmr.msrb.gmra.mxu0 %v2998_v23  ;;  %v2324_v58 = vor.u32 %v2477_v57, %v2323_v55  ;;  %v2077_v60 = vld [vmem:[%s2807_s15 + $0x84] sm:$0xf0]  ;;  %v2426_v4 = vld [vmem:[%s2800_s5 + $0x10] sm:$0xf0] }
  0xc2   : > { %v3098_v1 = vor.u32 %v2415_v59, %v2077_v60  ;;  %v2215_v5 = vld [vmem:[%s2800_s5 + $0xc8] sm:$0xf] }
  0xc3   : > { %1372 = vmatpush.bf16.msra.mxu2 %v2192_v14  ;;  %1421 = vmatpush.bf16.msra.mxu3 %v2288_v19  ;;  %v2348_v14 = vor.u32 %v2483_v11, %v2347_v10  ;;  %v2409_v19 = vld [vmem:[%s2807_s15 + $0x4c] sm:$0xf]  ;;  %v2472_v11 = vld [vmem:[%s2800_s5 + $0x184] sm:$0xf] }
  0xc4   : > { %1323 = vmatpush.bf16.msra.mxu1 %v2380_v25  ;;  %1470 = vmatpush.bf16.msra.mxu0 %v2384_v26  ;;  %v3058_v25 = vor.u32 %v2409_v19, %v2053_v20  ;;  %v3060_v26 = vor.u32 %v2411_v22, %v2059_v21  ;;  %v2311_v19 = vld [vmem:[%s2800_s5 + $0x188] sm:$0xf]  ;;  %v2474_v21 = vld [vmem:[%s2800_s5 + $0x190] sm:$0xf0] }
  0xc5   : > { %v2312_v22 = vor.u32 %v2474_v21, %v2311_v19  ;;  %v392_v19 = vld [vmem:[%s2805_s8 + $0x18] sm:$0xff] }
  0xc7   : > { %1373 = vmatpush.bf16.msra.mxu2 %v2180_v30  ;;  %1422 = vmatpush.bf16.msra.mxu3 %v2276_v34  ;;  %v2144_v30 = vor.u32 %v2432_v28, %v2143_v27  ;;  %v2240_v34 = vor.u32 %v2456_v31, %v2239_v29  ;;  %v2418_v27 = vld [vmem:[%s2807_s15 + $0x94] sm:$0xf]  ;;  %v2089_v28 = vld [vmem:[%s2807_s15 + $0x9c] sm:$0xf0]  ;;  %v2095_v29 = vld [vmem:[%s2807_s15 + $0x98] sm:$0xf] }
  0xc8   : > { %1324 = vmatpush.bf16.msra.mxu1 %v2368_v35  ;;  %1471 = vmatpush.bf16.msra.mxu0 %v2372_v38  ;;  %v2332_v35 = vor.u32 %v2478_v32, %v2329_v33  ;;  %v2336_v38 = vor.u32 %v2480_v37, %v2335_v36  ;;  %v3120_v33 = vor.u32 %v2418_v27, %v2089_v28 }
  0xcb   : > { %1374 = vmatpush.bf16.msra.mxu2 %v2168_v48  ;;  %1423 = vmatpush.bf16.msra.mxu3 %v2264_v52  ;;  %v2429_v48 = vld [vmem:[%s2800_s5 + $0x28] sm:$0xf0]  ;;  %v2228_v52 = vor.u32 %v2453_v51, %v2227_v49  ;;  %v3144_v51 = vor.u32 %v2421_v39, %v2101_v40 }
  0xcc   : > { %1325 = vmatpush.bf16.msra.mxu1 %v2356_v53  ;;  %1472 = vmatpush.bf16.msra.mxu0 %v2360_v56  ;;  %v2132_v50 = vor.u32 %v2429_v48, %v2131_v47  ;;  %v2475_v53 = vld [vmem:[%s2800_s5 + $0x19c] sm:$0xf] }
  0xcd   : > { %v2320_v56 = vor.u32 %v2475_v53, %v2317_v54 }
  0xce   : > { %1188 = vmatmul.bf16.gmra.mxu2 %v3020_v44  ;;  %1237 = vmatmul.bf16.gmra.mxu3 %v2943_v8 }
  0xcf   : > { %1375 = vmatpush.bf16.msra.mxu2 %v2156_v2  ;;  %1424 = vmatpush.bf16.msra.mxu3 %v2252_v6  ;;  %v3100_v2 = vor.u32 %v2417_v0, %v2083_v63  ;;  %v2120_v6 = vor.u32 %v2426_v4, %v2119_v3  ;;  %v389_v0 = vld [vmem:[%s2805_s8] sm:$0xff] }
  0xd0   : > { %1326 = vmatpush.bf16.msra.mxu1 %v2344_v7  ;;  %1473 = vmatpush.bf16.msra.mxu0 %v2348_v14  ;;  %v2450_v7 = vld [vmem:[%s2800_s5 + $0xd0] sm:$0xf0]  ;;  %v2305_v14 = vld [vmem:[%s2800_s5 + $0x18c] sm:$0xf0] }
  0xd1   : > { %1139 = vmatmul.bf16.gmra.mxu1 %v3018_v43  ;;  %1286 = vmatmul.bf16.gmra.mxu0 %v3018_v43  ;;  %v2216_v10 = vor.u32 %v2450_v7, %v2215_v5  ;;  %v2308_v20 = vor.u32 %v2472_v11, %v2305_v14 }
  0xd3   : > { %1376 = vmatpush.bf16.msra.mxu2 %v2144_v30  ;;  %1425 = vmatpush.bf16.msra.mxu3 %v2240_v34  ;;  %v2420_v30 = vld [vmem:[%s2807_s15 + $0xa0] sm:$0xf0] }
  0xd4   : > { %1327 = vmatpush.bf16.msra.mxu1 %v2332_v35  ;;  %1474 = vmatpush.bf16.msra.mxu0 %v2336_v38  ;;  %v3122_v34 = vor.u32 %v2420_v30, %v2095_v29  ;;  %v395_v29 = vld [vmem:[%s2805_s8 + $0x30] sm:$0xff] }
  0xd7   : > { %1377 = vmatpush.bf16.msra.mxu2 %v2132_v50  ;;  %1426 = vmatpush.bf16.msra.mxu3 %v2228_v52  ;;  %v3146_v52 = vor.u32 %v2423_v42, %v2107_v41 }
  0xd8   : > { %1328 = vmatpush.bf16.msra.mxu1 %v2320_v56  ;;  %1475 = vmatpush.bf16.msra.mxu0 %v2324_v58 }
  0xdb   : > { %1378 = vmatpush.bf16.msra.mxu2 %v2120_v6  ;;  %1427 = vmatpush.bf16.msra.mxu3 %v2216_v10 }
  0xdc   : > { %1329 = vmatpush.bf16.msra.mxu1 %v2308_v20  ;;  %1476 = vmatpush.bf16.msra.mxu0 %v2312_v22 }
  0xde   : > { %1193 = vmatmul.bf16.gmra.mxu2 %v3040_v62  ;;  %1242 = vmatmul.bf16.gmra.mxu3 %v2893_v13 }
  0xe1   : > { %1144 = vmatmul.bf16.gmra.mxu1 %v3038_v61  ;;  %1291 = vmatmul.bf16.gmra.mxu0 %v3038_v61 }
  0xee   : > { %1198 = vmatmul.bf16.gmra.mxu2 %v3060_v26  ;;  %1247 = vmatmul.bf16.gmra.mxu3 %v2945_v9 }
  0xf1   : > { %1149 = vmatmul.bf16.gmra.mxu1 %v3058_v25  ;;  %1296 = vmatmul.bf16.gmra.mxu0 %v3058_v25 }
  0xfe   : > { %1203 = vmatmul.bf16.gmra.mxu2 %v3080_v46  ;;  %1252 = vmatmul.bf16.gmra.mxu3 %v2898_v17 }
 0x101   : > { %1154 = vmatmul.bf16.gmra.mxu1 %v3078_v45  ;;  %1301 = vmatmul.bf16.gmra.mxu0 %v3078_v45 }
 0x10e   : > { %1208 = vmatmul.bf16.gmra.mxu2 %v3100_v2  ;;  %1257 = vmatmul.bf16.gmra.mxu3 %v2950_v15 }
 0x111   : > { %1159 = vmatmul.bf16.gmra.mxu1 %v3098_v1  ;;  %1306 = vmatmul.bf16.gmra.mxu0 %v3098_v1 }
 0x11a   : > { %v1086_v31 = vpop.f32.mrf.mxu0  ;;  %v3118_v32 = vpop.f32.mrf.mxu1 }
 0x11e   : > { %1213 = vmatmul.bf16.gmra.mxu2 %v3122_v34  ;;  %1262 = vmatmul.bf16.gmra.mxu3 %v2900_v18 }
 0x121   : > { %1164 = vmatmul.bf16.gmra.mxu1 %v3120_v33  ;;  %1311 = vmatmul.bf16.gmra.mxu0 %v3120_v33  ;;  %v3128_v35 = vpop.f32.mrf.mxu2  ;;  %v3130_v36 = vpop.f32.mrf.mxu3 }
 0x122   : > { %v1088_v37 = vpop.f32.mrf.mxu0  ;;  %v3132_v38 = vpop.f32.mrf.mxu1 }
 0x129   : > { %v3138_v47 = vpop.f32.mrf.mxu2  ;;  %v3140_v48 = vpop.f32.mrf.mxu3 }
 0x12a   : > { %v1091_v49 = vpop.f32.mrf.mxu0  ;;  %v3142_v50 = vpop.f32.mrf.mxu1 }
 0x12e   : > { %1218 = vmatmul.bf16.gmra.mxu2 %v3146_v52  ;;  %1267 = vmatmul.bf16.gmra.mxu3 %v2952_v16 }
 0x131   : > { %1169 = vmatmul.bf16.gmra.mxu1 %v3144_v51  ;;  %1316 = vmatmul.bf16.gmra.mxu0 %v3144_v51  ;;  %v3152_v53 = vpop.f32.mrf.mxu2  ;;  %v3154_v54 = vpop.f32.mrf.mxu3 }
 0x132   : > { %v1093_v55 = vpop.f32.mrf.mxu0  ;;  %v3156_v56 = vpop.f32.mrf.mxu1 }
 0x139   : > { %v3158_v57 = vpop.f32.mrf.mxu2  ;;  %v3160_v58 = vpop.f32.mrf.mxu3 }
 0x13e   : > { %v1135_v59 = vpop.f32.mrf.mxu1  ;;  %v1282_v60 = vpop.f32.mrf.mxu0  ;;  %1379 = vmatmul.bf16.vlgmr.msra.gmra.mxu2 %v2891_v12  ;;  %1428 = vmatmul.bf16.vlgmr.msra.gmra.mxu3 %v2998_v23 }
 0x13f   : > { %v1136_v63 = vadd.f32 %v1135_v59, %v1086_v31 }
 0x141   : > { %1330 = vmatmul.bf16.vlgmr.msra.gmra.mxu1 %v3000_v24  ;;  %1477 = vmatmul.bf16.vlgmr.msra.gmra.mxu0 %v3000_v24  ;;  %v1184_v3 = vpop.f32.mrf.mxu2  ;;  %v1233_v5 = vpop.f32.mrf.mxu3 }
 0x142   : > { %v1185_v4 = vadd.f32 %v1184_v3, %v1136_v63  ;;  %v3167_v6 = vadd.f32 %v1282_v60, %v1233_v5  ;;  %v398_v60 = vld [vmem:[%s2805_s8 + $0x48] sm:$0xff] }
 0x144   : > { %v1518_v10 = vadd.f32 %v1185_v4, %v389_v0  ;;  %v401_v4 = vld [vmem:[%s2805_s8 + $0x60] sm:$0xff] }
 0x146   : > { %v1137_v7 = vpop.f32.mrf.mxu1  ;;  %v1284_v11 = vpop.f32.mrf.mxu0  ;;  %1566 = vst [vmem:[%s2805_s8] sm:$0xff] %v1518_v10 }
 0x147   : > { %v1138_v14 = vadd.f32 %v1137_v7, %v1088_v37 }
 0x149   : > { %v1186_v12 = vpop.f32.mrf.mxu2  ;;  %v1235_v23 = vpop.f32.mrf.mxu3 }
 0x14a   : > { %v1187_v20 = vadd.f32 %v1186_v12, %v1138_v14  ;;  %v3171_v21 = vadd.f32 %v1284_v11, %v1235_v23 }
 0x14c   : > { %v1521_v22 = vadd.f32 %v1187_v20, %v392_v19  ;;  %v404_v20 = vld [vmem:[%s2805_s8 + $0x78] sm:$0xff] }
 0x14e   : > { %v1140_v24 = vpop.f32.mrf.mxu1  ;;  %v1287_v27 = vpop.f32.mrf.mxu0  ;;  %1569 = vst [vmem:[%s2805_s8 + $0x18] sm:$0xff] %v1521_v22  ;;  %1384 = vmatmul.bf16.gmra.mxu2 %v2943_v8  ;;  %1433 = vmatmul.bf16.gmra.mxu3 %v3018_v43 }
 0x14f   : > { %v1141_v28 = vadd.f32 %v1140_v24, %v1091_v49 }
 0x151   : > { %1335 = vmatmul.bf16.gmra.mxu1 %v3020_v44  ;;  %1482 = vmatmul.bf16.gmra.mxu0 %v3020_v44  ;;  %v1189_v30 = vpop.f32.mrf.mxu2  ;;  %v1238_v37 = vpop.f32.mrf.mxu3 }
 0x152   : > { %v1190_v31 = vadd.f32 %v1189_v30, %v1141_v28  ;;  %v3179_v39 = vadd.f32 %v1287_v27, %v1238_v37  ;;  %v407_v28 = vld [vmem:[%s2805_s8 + $0x90] sm:$0xff] }
 0x154   : > { %v1524_v41 = vadd.f32 %v1190_v31, %v395_v29 }
 0x156   : > { %v1142_v40 = vpop.f32.mrf.mxu1  ;;  %v1289_v42 = vpop.f32.mrf.mxu0  ;;  %1572 = vst [vmem:[%s2805_s8 + $0x30] sm:$0xff] %v1524_v41 }
 0x157   : > { %v1143_v59 = vadd.f32 %v1142_v40, %v1093_v55 }
 0x159   : > { %v1191_v8 = vpop.f32.mrf.mxu2  ;;  %v1240_v43 = vpop.f32.mrf.mxu3 }
 0x15a   : > { %v1192_v63 = vadd.f32 %v1191_v8, %v1143_v59  ;;  %v3183_v0 = vadd.f32 %v1289_v42, %v1240_v43  ;;  %v410_v59 = vld [vmem:[%s2805_s8 + $0xa8] sm:$0xff] }
 0x15c   : > { %v1527_v49 = vadd.f32 %v1192_v63, %v398_v60 }
 0x15e   : > { %v1145_v44 = vpop.f32.mrf.mxu1  ;;  %v1292_v3 = vpop.f32.mrf.mxu0  ;;  %1575 = vst [vmem:[%s2805_s8 + $0x48] sm:$0xff] %v1527_v49  ;;  %1389 = vmatmul.bf16.gmra.mxu2 %v2893_v13  ;;  %1438 = vmatmul.bf16.gmra.mxu3 %v3038_v61 }
 0x15f   : > { %v1146_v55 = vadd.f32 %v1145_v44, %v3118_v32  ;;  %v413_v44 = vld [vmem:[%s2805_s8 + $0xc0] sm:$0xff] }
 0x161   : > { %1340 = vmatmul.bf16.gmra.mxu1 %v3040_v62  ;;  %1487 = vmatmul.bf16.gmra.mxu0 %v3040_v62  ;;  %v1194_v5 = vpop.f32.mrf.mxu2  ;;  %v1243_v10 = vpop.f32.mrf.mxu3 }
 0x162   : > { %v1195_v7 = vadd.f32 %v1194_v5, %v1146_v55  ;;  %v3192_v11 = vadd.f32 %v1292_v3, %v1243_v10 }
 0x164   : > { %v1530_v19 = vadd.f32 %v1195_v7, %v401_v4 }
 0x166   : > { %v1147_v14 = vpop.f32.mrf.mxu1  ;;  %v1294_v12 = vpop.f32.mrf.mxu0  ;;  %1578 = vst [vmem:[%s2805_s8 + $0x60] sm:$0xff] %v1530_v19 }
 0x167   : > { %v1148_v13 = vadd.f32 %v1147_v14, %v3132_v38  ;;  %v416_v14 = vld [vmem:[%s2805_s8 + $0xd8] sm:$0xff] }
 0x169   : > { %v1196_v61 = vpop.f32.mrf.mxu2  ;;  %v1245_v62 = vpop.f32.mrf.mxu3 }
 0x16a   : > { %v1197_v23 = vadd.f32 %v1196_v61, %v1148_v13  ;;  %v3197_v24 = vadd.f32 %v1294_v12, %v1245_v62  ;;  %v419_v61 = vld [vmem:[%s2805_s8 + $0xf0] sm:$0xff] }
 0x16c   : > { %v1533_v22 = vadd.f32 %v1197_v23, %v404_v20 }
 0x16e   : > { %v1150_v32 = vpop.f32.mrf.mxu1  ;;  %v1297_v27 = vpop.f32.mrf.mxu0  ;;  %1581 = vst [vmem:[%s2805_s8 + $0x78] sm:$0xff] %v1533_v22  ;;  %1394 = vmatmul.bf16.gmra.mxu2 %v2945_v9  ;;  %1443 = vmatmul.bf16.gmra.mxu3 %v3058_v25 }
 0x16f   : > { %v1151_v38 = vadd.f32 %v1150_v32, %v3142_v50 }
 0x171   : > { %1345 = vmatmul.bf16.gmra.mxu1 %v3060_v26  ;;  %1492 = vmatmul.bf16.gmra.mxu0 %v3060_v26  ;;  %v1199_v29 = vpop.f32.mrf.mxu2  ;;  %v1248_v31 = vpop.f32.mrf.mxu3 }
 0x172   : > { %v1200_v30 = vadd.f32 %v1199_v29, %v1151_v38  ;;  %v3206_v37 = vadd.f32 %v1297_v27, %v1248_v31  ;;  %v422_v29 = vld [vmem:[%s2805_s8 + $0x108] sm:$0xff] }
 0x174   : > { %v1536_v41 = vadd.f32 %v1200_v30, %v407_v28 }
 0x176   : > { %v1152_v40 = vpop.f32.mrf.mxu1  ;;  %v1299_v42 = vpop.f32.mrf.mxu0  ;;  %1584 = vst [vmem:[%s2805_s8 + $0x90] sm:$0xff] %v1536_v41 }
 0x177   : > { %v1153_v9 = vadd.f32 %v1152_v40, %v3156_v56 }
 0x179   : > { %v1201_v25 = vpop.f32.mrf.mxu2  ;;  %v1250_v26 = vpop.f32.mrf.mxu3 }
 0x17a   : > { %v1202_v60 = vadd.f32 %v1201_v25, %v1153_v9  ;;  %v3211_v8 = vadd.f32 %v1299_v42, %v1250_v26  ;;  %v425_v42 = vld [vmem:[%s2805_s8 + $0x120] sm:$0xff] }
 0x17c   : > { %v1539_v63 = vadd.f32 %v1202_v60, %v410_v59 }
 0x17e   : > { %v1155_v50 = vpop.f32.mrf.mxu1  ;;  %v1302_v43 = vpop.f32.mrf.mxu0  ;;  %1587 = vst [vmem:[%s2805_s8 + $0xa8] sm:$0xff] %v1539_v63  ;;  %1399 = vmatmul.bf16.gmra.mxu2 %v2898_v17  ;;  %1448 = vmatmul.bf16.gmra.mxu3 %v3078_v45 }
 0x17f   : > { %v1156_v56 = vadd.f32 %v1155_v50, %v3128_v35 }
 0x181   : > { %1350 = vmatmul.bf16.gmra.mxu1 %v3080_v46  ;;  %1497 = vmatmul.bf16.gmra.mxu0 %v3080_v46  ;;  %v1204_v49 = vpop.f32.mrf.mxu2  ;;  %v1253_v55 = vpop.f32.mrf.mxu3 }
 0x182   : > { %v1205_v3 = vadd.f32 %v1204_v49, %v1156_v56  ;;  %v3220_v4 = vadd.f32 %v1302_v43, %v1253_v55  ;;  %v428_v43 = vld [vmem:[%s2805_s8 + $0x138] sm:$0xff]  ;;  %v431_v55 = vld [vmem:[%s2805_s8 + $0x150] sm:$0xff] }
 0x184   : > { %v1542_v7 = vadd.f32 %v1205_v3, %v413_v44 }
 0x186   : > { %v1157_v5 = vpop.f32.mrf.mxu1  ;;  %v1304_v10 = vpop.f32.mrf.mxu0  ;;  %1590 = vst [vmem:[%s2805_s8 + $0xc0] sm:$0xff] %v1542_v7 }
 0x187   : > { %v1158_v17 = vadd.f32 %v1157_v5, %v3138_v47 }
 0x189   : > { %v1206_v45 = vpop.f32.mrf.mxu2  ;;  %v1255_v46 = vpop.f32.mrf.mxu3 }
 0x18a   : > { %v1207_v19 = vadd.f32 %v1206_v45, %v1158_v17  ;;  %v3225_v12 = vadd.f32 %v1304_v10, %v1255_v46 }
 0x18c   : > { %v1545_v13 = vadd.f32 %v1207_v19, %v416_v14 }
 0x18e   : > { %v1160_v35 = vpop.f32.mrf.mxu1  ;;  %v1307_v20 = vpop.f32.mrf.mxu0  ;;  %1593 = vst [vmem:[%s2805_s8 + $0xd8] sm:$0xff] %v1545_v13  ;;  %1404 = vmatmul.bf16.gmra.mxu2 %v2950_v15  ;;  %1453 = vmatmul.bf16.gmra.mxu3 %v3098_v1  ;;  %v390_v13 = vld [vmem:[%s2805_s8 + $0x8] sm:$0xff] }
 0x18f   : > { %v1161_v47 = vadd.f32 %v1160_v35, %v3152_v53 }
 0x191   : > { %1355 = vmatmul.bf16.gmra.mxu1 %v3100_v2  ;;  %1502 = vmatmul.bf16.gmra.mxu0 %v3100_v2  ;;  %v1209_v23 = vpop.f32.mrf.mxu2  ;;  %v1258_v32 = vpop.f32.mrf.mxu3 }
 0x192   : > { %v1210_v62 = vadd.f32 %v1209_v23, %v1161_v47  ;;  %v3234_v22 = vadd.f32 %v1307_v20, %v1258_v32 }
 0x194   : > { %v1548_v38 = vadd.f32 %v1210_v62, %v419_v61 }
 0x196   : > { %v1162_v27 = vpop.f32.mrf.mxu1  ;;  %v1309_v28 = vpop.f32.mrf.mxu0  ;;  %1596 = vst [vmem:[%s2805_s8 + $0xf0] sm:$0xff] %v1548_v38  ;;  %v393_v38 = vld [vmem:[%s2805_s8 + $0x20] sm:$0xff] }
 0x197   : > { %v1163_v15 = vadd.f32 %v1162_v27, %v3158_v57 }
 0x199   : > { %v1211_v1 = vpop.f32.mrf.mxu2  ;;  %v1260_v2 = vpop.f32.mrf.mxu3 }
 0x19a   : > { %v1212_v30 = vadd.f32 %v1211_v1, %v1163_v15  ;;  %v3239_v31 = vadd.f32 %v1309_v28, %v1260_v2  ;;  %v391_v15 = vld [vmem:[%s2805_s8 + $0x10] sm:$0xff] }
 0x19c   : > { %v1551_v40 = vadd.f32 %v1212_v30, %v422_v29 }
 0x19e   : > { %v1165_v53 = vpop.f32.mrf.mxu1  ;;  %v1312_v41 = vpop.f32.mrf.mxu0  ;;  %1599 = vst [vmem:[%s2805_s8 + $0x108] sm:$0xff] %v1551_v40  ;;  %1409 = vmatmul.bf16.gmra.mxu2 %v2900_v18  ;;  %1458 = vmatmul.bf16.gmra.mxu3 %v3120_v33 }
 0x19f   : > { %v1166_v57 = vadd.f32 %v1165_v53, %v3130_v36 }
 0x1a1   : > { %1360 = vmatmul.bf16.gmra.mxu1 %v3122_v34  ;;  %1507 = vmatmul.bf16.gmra.mxu0 %v3122_v34  ;;  %v1214_v9 = vpop.f32.mrf.mxu2  ;;  %v1263_v25 = vpop.f32.mrf.mxu3 }
 0x1a2   : > { %v1215_v59 = vadd.f32 %v1214_v9, %v1166_v57  ;;  %v3248_v60 = vadd.f32 %v1312_v41, %v1263_v25  ;;  %v396_v57 = vld [vmem:[%s2805_s8 + $0x38] sm:$0xff]  ;;  %v394_v9 = vld [vmem:[%s2805_s8 + $0x28] sm:$0xff] }
 0x1a4   : > { %v1554_v50 = vadd.f32 %v1215_v59, %v425_v42 }
 0x1a6   : > { %v1167_v26 = vpop.f32.mrf.mxu1  ;;  %v1314_v63 = vpop.f32.mrf.mxu0  ;;  %1602 = vst [vmem:[%s2805_s8 + $0x120] sm:$0xff] %v1554_v50 }
 0x1a7   : > { %v1168_v18 = vadd.f32 %v1167_v26, %v3140_v48 }
 0x1a9   : > { %v1216_v33 = vpop.f32.mrf.mxu2  ;;  %v1265_v34 = vpop.f32.mrf.mxu3 }
 0x1aa   : > { %v1217_v56 = vadd.f32 %v1216_v33, %v1168_v18  ;;  %v3253_v44 = vadd.f32 %v1314_v63, %v1265_v34  ;;  %v399_v33 = vld [vmem:[%s2805_s8 + $0x50] sm:$0xff]  ;;  %v397_v34 = vld [vmem:[%s2805_s8 + $0x40] sm:$0xff] }
 0x1ac   : > { %v1557_v49 = vadd.f32 %v1217_v56, %v428_v43 }
 0x1ae   : > { %v1170_v36 = vpop.f32.mrf.mxu1  ;;  %v1317_v3 = vpop.f32.mrf.mxu0  ;;  %1605 = vst [vmem:[%s2805_s8 + $0x138] sm:$0xff] %v1557_v49  ;;  %1414 = vmatmul.bf16.gmra.mxu2 %v2952_v16  ;;  %1463 = vmatmul.bf16.gmra.mxu3 %v3144_v51  ;;  %v434_v51 = vld [vmem:[%s2805_s8 + $0x168] sm:$0xff] }
 0x1af   : > { %v1171_v48 = vadd.f32 %v1170_v36, %v3154_v54 }
 0x1b1   : > { %1365 = vmatmul.bf16.gmra.mxu1 %v3146_v52  ;;  %1512 = vmatmul.bf16.gmra.mxu0 %v3146_v52  ;;  %v1219_v5 = vpop.f32.mrf.mxu2  ;;  %v1268_v10 = vpop.f32.mrf.mxu3 }
 0x1b2   : > { %v1220_v7 = vadd.f32 %v1219_v5, %v1171_v48  ;;  %v3262_v17 = vadd.f32 %v1317_v3, %v1268_v10  ;;  %v402_v10 = vld [vmem:[%s2805_s8 + $0x68] sm:$0xff] }
 0x1b4   : > { %v1560_v45 = vadd.f32 %v1220_v7, %v431_v55 }
 0x1b6   : > { %v1172_v14 = vpop.f32.mrf.mxu1  ;;  %v1319_v19 = vpop.f32.mrf.mxu0  ;;  %1608 = vst [vmem:[%s2805_s8 + $0x150] sm:$0xff] %v1560_v45  ;;  %v400_v45 = vld [vmem:[%s2805_s8 + $0x58] sm:$0xff] }
 0x1b7   : > { %v1173_v16 = vadd.f32 %v1172_v14, %v3160_v58 }
 0x1b9   : > { %v1221_v52 = vpop.f32.mrf.mxu2  ;;  %v1270_v54 = vpop.f32.mrf.mxu3 }
 0x1ba   : > { %v1222_v46 = vadd.f32 %v1221_v52, %v1173_v16  ;;  %v3267_v35 = vadd.f32 %v1319_v19, %v1270_v54 }
 0x1bc   : > { %v1563_v47 = vadd.f32 %v1222_v46, %v434_v51 }
 0x1be   : > { %v1331_v20 = vpop.f32.mrf.mxu1  ;;  %v1478_v23 = vpop.f32.mrf.mxu0  ;;  %1611 = vst [vmem:[%s2805_s8 + $0x168] sm:$0xff] %v1563_v47 }
 0x1bf   : > { %v1332_v61 = vadd.f32 %v1331_v20, %v3167_v6  ;;  %v405_v20 = vld [vmem:[%s2805_s8 + $0x80] sm:$0xff] }
 0x1c1   : > { %v1519_v62 = vadd.f32 %v1332_v61, %v390_v13  ;;  %v1380_v58 = vpop.f32.mrf.mxu2  ;;  %v1429_v32 = vpop.f32.mrf.mxu3  ;;  %v403_v61 = vld [vmem:[%s2805_s8 + $0x70] sm:$0xff] }
 0x1c2   : > { %v1430_v27 = vadd.f32 %v1429_v32, %v1380_v58 }
 0x1c3   : > { %1567 = vst [vmem:[%s2805_s8 + $0x8] sm:$0xff] %v1519_v62 }
 0x1c4   : > { %v1479_v30 = vadd.f32 %v1478_v23, %v1430_v27 }
 0x1c6   : > { %v1333_v28 = vpop.f32.mrf.mxu1  ;;  %v1480_v1 = vpop.f32.mrf.mxu0  ;;  %v1520_v2 = vadd.f32 %v1479_v30, %v391_v15  ;;  %v408_v15 = vld [vmem:[%s2805_s8 + $0x98] sm:$0xff] }
 0x1c7   : > { %v1334_v29 = vadd.f32 %v1333_v28, %v3171_v21 }
 0x1c8   : > { %1568 = vst [vmem:[%s2805_s8 + $0x10] sm:$0xff] %v1520_v2 }
 0x1c9   : > { %v1522_v6 = vadd.f32 %v1334_v29, %v393_v38  ;;  %v1382_v53 = vpop.f32.mrf.mxu2  ;;  %v1431_v40 = vpop.f32.mrf.mxu3 }
 0x1ca   : > { %v1432_v41 = vadd.f32 %v1431_v40, %v1382_v53 }
 0x1cb   : > { %1570 = vst [vmem:[%s2805_s8 + $0x20] sm:$0xff] %v1522_v6 }
 0x1cc   : > { %v1481_v21 = vadd.f32 %v1480_v1, %v1432_v41  ;;  %v406_v1 = vld [vmem:[%s2805_s8 + $0x88] sm:$0xff] }
 0x1ce   : > { %v1336_v42 = vpop.f32.mrf.mxu1  ;;  %v1483_v25 = vpop.f32.mrf.mxu0  ;;  %v1523_v50 = vadd.f32 %v1481_v21, %v394_v9 }
 0x1cf   : > { %v1337_v59 = vadd.f32 %v1336_v42, %v3179_v39  ;;  %v411_v42 = vld [vmem:[%s2805_s8 + $0xb0] sm:$0xff] }
 0x1d0   : > { %1571 = vst [vmem:[%s2805_s8 + $0x28] sm:$0xff] %v1523_v50 }
 0x1d1   : > { %v1525_v26 = vadd.f32 %v1337_v59, %v396_v57  ;;  %v1385_v63 = vpop.f32.mrf.mxu2  ;;  %v1434_v18 = vpop.f32.mrf.mxu3  ;;  %v409_v59 = vld [vmem:[%s2805_s8 + $0xa0] sm:$0xff] }
 0x1d2   : > { %v1435_v43 = vadd.f32 %v1434_v18, %v1385_v63 }
 0x1d3   : > { %1573 = vst [vmem:[%s2805_s8 + $0x38] sm:$0xff] %v1525_v26 }
 0x1d4   : > { %v1484_v39 = vadd.f32 %v1483_v25, %v1435_v43 }
 0x1d6   : > { %v1338_v56 = vpop.f32.mrf.mxu1  ;;  %v1485_v49 = vpop.f32.mrf.mxu0  ;;  %v1526_v48 = vadd.f32 %v1484_v39, %v397_v34  ;;  %v412_v34 = vld [vmem:[%s2805_s8 + $0xb8] sm:$0xff] }
 0x1d7   : > { %v1339_v36 = vadd.f32 %v1338_v56, %v3183_v0 }
 0x1d8   : > { %1574 = vst [vmem:[%s2805_s8 + $0x40] sm:$0xff] %v1526_v48 }
 0x1d9   : > { %v1528_v3 = vadd.f32 %v1339_v36, %v399_v33  ;;  %v1387_v55 = vpop.f32.mrf.mxu2  ;;  %v1436_v5 = vpop.f32.mrf.mxu3  ;;  %v414_v33 = vld [vmem:[%s2805_s8 + $0xc8] sm:$0xff] }
 0x1da   : > { %v1437_v7 = vadd.f32 %v1436_v5, %v1387_v55 }
 0x1db   : > { %1576 = vst [vmem:[%s2805_s8 + $0x50] sm:$0xff] %v1528_v3 }
 0x1dc   : > { %v1486_v0 = vadd.f32 %v1485_v49, %v1437_v7  ;;  %v417_v7 = vld [vmem:[%s2805_s8 + $0xe0] sm:$0xff] }
 0x1de   : > { %v1341_v14 = vpop.f32.mrf.mxu1  ;;  %v1488_v16 = vpop.f32.mrf.mxu0  ;;  %v1529_v52 = vadd.f32 %v1486_v0, %v400_v45 }
 0x1df   : > { %v1342_v19 = vadd.f32 %v1341_v14, %v3192_v11  ;;  %v415_v14 = vld [vmem:[%s2805_s8 + $0xd0] sm:$0xff] }
 0x1e0   : > { %1577 = vst [vmem:[%s2805_s8 + $0x58] sm:$0xff] %v1529_v52 }
 0x1e1   : > { %v1531_v51 = vadd.f32 %v1342_v19, %v402_v10  ;;  %v1390_v46 = vpop.f32.mrf.mxu2  ;;  %v1439_v54 = vpop.f32.mrf.mxu3 }
 0x1e2   : > { %v1440_v13 = vadd.f32 %v1439_v54, %v1390_v46  ;;  %v420_v54 = vld [vmem:[%s2805_s8 + $0xf8] sm:$0xff] }
 0x1e3   : > { %1579 = vst [vmem:[%s2805_s8 + $0x68] sm:$0xff] %v1531_v51 }
 0x1e4   : > { %v1489_v11 = vadd.f32 %v1488_v16, %v1440_v13 }
 0x1e6   : > { %v1343_v47 = vpop.f32.mrf.mxu1  ;;  %v1490_v62 = vpop.f32.mrf.mxu0  ;;  %v1532_v32 = vadd.f32 %v1489_v11, %v403_v61 }
 0x1e7   : > { %v1344_v23 = vadd.f32 %v1343_v47, %v3197_v24 }
 0x1e8   : > { %1580 = vst [vmem:[%s2805_s8 + $0x70] sm:$0xff] %v1532_v32 }
 0x1e9   : > { %v1534_v58 = vadd.f32 %v1344_v23, %v405_v20  ;;  %v1392_v27 = vpop.f32.mrf.mxu2  ;;  %v1441_v38 = vpop.f32.mrf.mxu3  ;;  %v418_v20 = vld [vmem:[%s2805_s8 + $0xe8] sm:$0xff] }
 0x1ea   : > { %v1442_v28 = vadd.f32 %v1441_v38, %v1392_v27  ;;  %v423_v27 = vld [vmem:[%s2805_s8 + $0x110] sm:$0xff] }
 0x1eb   : > { %1582 = vst [vmem:[%s2805_s8 + $0x80] sm:$0xff] %v1534_v58 }
 0x1ec   : > { %v1491_v24 = vadd.f32 %v1490_v62, %v1442_v28  ;;  %v421_v28 = vld [vmem:[%s2805_s8 + $0x100] sm:$0xff] }
 0x1ee   : > { %v1346_v29 = vpop.f32.mrf.mxu1  ;;  %v1493_v6 = vpop.f32.mrf.mxu0  ;;  %v1535_v53 = vadd.f32 %v1491_v24, %v406_v1 }
 0x1ef   : > { %v1347_v30 = vadd.f32 %v1346_v29, %v3206_v37 }
 0x1f0   : > { %1583 = vst [vmem:[%s2805_s8 + $0x88] sm:$0xff] %v1535_v53  ;;  %v426_v53 = vld [vmem:[%s2805_s8 + $0x128] sm:$0xff] }
 0x1f1   : > { %v1537_v2 = vadd.f32 %v1347_v30, %v408_v15  ;;  %v1395_v40 = vpop.f32.mrf.mxu2  ;;  %v1444_v41 = vpop.f32.mrf.mxu3 }
 0x1f2   : > { %v1445_v57 = vadd.f32 %v1444_v41, %v1395_v40  ;;  %v424_v41 = vld [vmem:[%s2805_s8 + $0x118] sm:$0xff] }
 0x1f3   : > { %1585 = vst [vmem:[%s2805_s8 + $0x98] sm:$0xff] %v1537_v2 }
 0x1f4   : > { %v1494_v37 = vadd.f32 %v1493_v6, %v1445_v57 }
 0x1f6   : > { %v1348_v9 = vpop.f32.mrf.mxu1  ;;  %v1495_v21 = vpop.f32.mrf.mxu0  ;;  %v1538_v50 = vadd.f32 %v1494_v37, %v409_v59 }
 0x1f7   : > { %v1349_v25 = vadd.f32 %v1348_v9, %v3211_v8 }
 0x1f8   : > { %1586 = vst [vmem:[%s2805_s8 + $0xa0] sm:$0xff] %v1538_v50 }
 0x1f9   : > { %v1540_v26 = vadd.f32 %v1349_v25, %v411_v42  ;;  %v1397_v63 = vpop.f32.mrf.mxu2  ;;  %v1446_v18 = vpop.f32.mrf.mxu3 }
 0x1fa   : > { %v1447_v43 = vadd.f32 %v1446_v18, %v1397_v63  ;;  %v427_v63 = vld [vmem:[%s2805_s8 + $0x130] sm:$0xff] }
 0x1fb   : > { %1588 = vst [vmem:[%s2805_s8 + $0xb0] sm:$0xff] %v1540_v26  ;;  %v429_v26 = vld [vmem:[%s2805_s8 + $0x140] sm:$0xff] }
 0x1fc   : > { %v1496_v8 = vadd.f32 %v1495_v21, %v1447_v43 }
 0x1fe   : > { %v1351_v56 = vpop.f32.mrf.mxu1  ;;  %v1498_v49 = vpop.f32.mrf.mxu0  ;;  %v1541_v3 = vadd.f32 %v1496_v8, %v412_v34  ;;  %v432_v8 = vld [vmem:[%s2805_s8 + $0x158] sm:$0xff] }
 0x1ff   : > { %v1352_v36 = vadd.f32 %v1351_v56, %v3220_v4 }
 0x200   : > { %1589 = vst [vmem:[%s2805_s8 + $0xb8] sm:$0xff] %v1541_v3  ;;  %v430_v3 = vld [vmem:[%s2805_s8 + $0x148] sm:$0xff] }
 0x201   : > { %v1543_v39 = vadd.f32 %v1352_v36, %v414_v33  ;;  %v1400_v48 = vpop.f32.mrf.mxu2  ;;  %v1449_v55 = vpop.f32.mrf.mxu3 }
 0x202   : > { %v1450_v5 = vadd.f32 %v1449_v55, %v1400_v48 }
 0x203   : > { %1591 = vst [vmem:[%s2805_s8 + $0xc8] sm:$0xff] %v1543_v39 }
 0x204   : > { %v1499_v4 = vadd.f32 %v1498_v49, %v1450_v5 }
 0x206   : > { %v1353_v10 = vpop.f32.mrf.mxu1  ;;  %v1500_v19 = vpop.f32.mrf.mxu0  ;;  %v1544_v0 = vadd.f32 %v1499_v4, %v415_v14 }
 0x207   : > { %v1354_v45 = vadd.f32 %v1353_v10, %v3225_v12 }
 0x208   : > { %1592 = vst [vmem:[%s2805_s8 + $0xd0] sm:$0xff] %v1544_v0 }
 0x209   : > { %v1546_v16 = vadd.f32 %v1354_v45, %v417_v7  ;;  %v1402_v51 = vpop.f32.mrf.mxu2  ;;  %v1451_v52 = vpop.f32.mrf.mxu3 }
 0x20a   : > { %v1452_v46 = vadd.f32 %v1451_v52, %v1402_v51 }
 0x20b   : > { %1594 = vst [vmem:[%s2805_s8 + $0xe0] sm:$0xff] %v1546_v16  ;;  %v433_v16 = vld [vmem:[%s2805_s8 + $0x160] sm:$0xff] }
 0x20c   : > { %v1501_v12 = vadd.f32 %v1500_v19, %v1452_v46  ;;  %v435_v19 = vld [vmem:[%s2805_s8 + $0x170] sm:$0xff] }
 0x20e   : > { %v1356_v13 = vpop.f32.mrf.mxu1  ;;  %v1503_v61 = vpop.f32.mrf.mxu0  ;;  %v1547_v62 = vadd.f32 %v1501_v12, %v418_v20 }
 0x20f   : > { %v1357_v47 = vadd.f32 %v1356_v13, %v3234_v22 }
 0x210   : > { %1595 = vst [vmem:[%s2805_s8 + $0xe8] sm:$0xff] %v1547_v62 }
 0x211   : > { %v1549_v23 = vadd.f32 %v1357_v47, %v420_v54  ;;  %v1405_v11 = vpop.f32.mrf.mxu2  ;;  %v1454_v58 = vpop.f32.mrf.mxu3  ;;  %v436_v47 = vld [vmem:[%s2805_s8 + $0x178] sm:$0xff] }
 0x212   : > { %v1455_v32 = vadd.f32 %v1454_v58, %v1405_v11 }
 0x213   : > { %1597 = vst [vmem:[%s2805_s8 + $0xf8] sm:$0xff] %v1549_v23 }
 0x214   : > { %v1504_v22 = vadd.f32 %v1503_v61, %v1455_v32 }
 0x216   : > { %v1358_v38 = vpop.f32.mrf.mxu1  ;;  %v1505_v29 = vpop.f32.mrf.mxu0  ;;  %v1550_v30 = vadd.f32 %v1504_v22, %v421_v28 }
 0x217   : > { %v1359_v15 = vadd.f32 %v1358_v38, %v3239_v31 }
 0x218   : > { %1598 = vst [vmem:[%s2805_s8 + $0x100] sm:$0xff] %v1550_v30 }
 0x219   : > { %v1552_v1 = vadd.f32 %v1359_v15, %v423_v27  ;;  %v1407_v6 = vpop.f32.mrf.mxu2  ;;  %v1456_v24 = vpop.f32.mrf.mxu3 }
 0x21a   : > { %v1457_v2 = vadd.f32 %v1456_v24, %v1407_v6 }
 0x21b   : > { %1600 = vst [vmem:[%s2805_s8 + $0x110] sm:$0xff] %v1552_v1 }
 0x21c   : > { %v1506_v42 = vadd.f32 %v1505_v29, %v1457_v2 }
 0x21e   : > { %v1361_v40 = vpop.f32.mrf.mxu1  ;;  %v1508_v9 = vpop.f32.mrf.mxu0  ;;  %v1553_v59 = vadd.f32 %v1506_v42, %v424_v41 }
 0x21f   : > { %v1362_v57 = vadd.f32 %v1361_v40, %v3248_v60 }
 0x220   : > { %1601 = vst [vmem:[%s2805_s8 + $0x118] sm:$0xff] %v1553_v59 }
 0x221   : > { %v1555_v31 = vadd.f32 %v1362_v57, %v426_v53  ;;  %v1410_v25 = vpop.f32.mrf.mxu2  ;;  %v1459_v21 = vpop.f32.mrf.mxu3 }
 0x222   : > { %v1460_v37 = vadd.f32 %v1459_v21, %v1410_v25 }
 0x223   : > { %1603 = vst [vmem:[%s2805_s8 + $0x128] sm:$0xff] %v1555_v31 }
 0x224   : > { %v1509_v43 = vadd.f32 %v1508_v9, %v1460_v37 }
 0x226   : > { %v1363_v50 = vpop.f32.mrf.mxu1  ;;  %v1556_v33 = vadd.f32 %v1509_v43, %v427_v63  ;;  %v1510_v56 = vpop.f32.mrf.mxu0 }
 0x227   : > { %v1364_v18 = vadd.f32 %v1363_v50, %v3253_v44 }
 0x228   : > { %1604 = vst [vmem:[%s2805_s8 + $0x130] sm:$0xff] %v1556_v33 }
 0x229   : > { %v1558_v60 = vadd.f32 %v1364_v18, %v429_v26  ;;  %v1412_v34 = vpop.f32.mrf.mxu2  ;;  %v1461_v36 = vpop.f32.mrf.mxu3 }
 0x22a   : > { %v1462_v49 = vadd.f32 %v1461_v36, %v1412_v34 }
 0x22b   : > { %1606 = vst [vmem:[%s2805_s8 + $0x140] sm:$0xff] %v1558_v60 }
 0x22c   : > { %v1511_v55 = vadd.f32 %v1510_v56, %v1462_v49 }
 0x22e   : > { %v1366_v39 = vpop.f32.mrf.mxu1  ;;  %v1559_v5 = vadd.f32 %v1511_v55, %v430_v3  ;;  %v1513_v10 = vpop.f32.mrf.mxu0 }
 0x22f   : > { %v1367_v48 = vadd.f32 %v1366_v39, %v3262_v17 }
 0x230   : > { %1607 = vst [vmem:[%s2805_s8 + $0x148] sm:$0xff] %v1559_v5 }
 0x231   : > { %v1561_v44 = vadd.f32 %v1367_v48, %v432_v8  ;;  %v1415_v7 = vpop.f32.mrf.mxu2  ;;  %v1464_v14 = vpop.f32.mrf.mxu3 }
 0x232   : > { %v1465_v45 = vadd.f32 %v1464_v14, %v1415_v7 }
 0x233   : > { %1609 = vst [vmem:[%s2805_s8 + $0x158] sm:$0xff] %v1561_v44 }
 0x234   : > { %v1514_v51 = vadd.f32 %v1513_v10, %v1465_v45 }
 0x236   : > { %v1368_v4 = vpop.f32.mrf.mxu1  ;;  %v1562_v52 = vadd.f32 %v1514_v51, %v433_v16  ;;  %v1515_v20 = vpop.f32.mrf.mxu0 }
 0x237   : > { %v1369_v0 = vadd.f32 %v1368_v4, %v3267_v35 }
 0x238   : > { %1610 = vst [vmem:[%s2805_s8 + $0x160] sm:$0xff] %v1562_v52 }
 0x239   : > { %v1564_v17 = vadd.f32 %v1369_v0, %v435_v19  ;;  %v1417_v46 = vpop.f32.mrf.mxu2  ;;  %v1466_v54 = vpop.f32.mrf.mxu3 }
 0x23a   : > { %v1467_v13 = vadd.f32 %v1466_v54, %v1417_v46 }
 0x23b   : > { %1612 = vst [vmem:[%s2805_s8 + $0x170] sm:$0xff] %v1564_v17 }
 0x23c   : > { %v1516_v61 = vadd.f32 %v1515_v20, %v1467_v13  ;;  %1617 = sbr.rel (%p2397_p13) target bundleno = 635 (0x27b), region = 70 }
 0x23e   : > { %v1565_v12 = vadd.f32 %v1516_v61, %v436_v47 }
 0x240   : > { %1613 = vst [vmem:[%s2805_s8 + $0x178] sm:$0xff] %v1565_v12 }
 0x241   : > { %v1618_v35 = vld [vmem:[%s2805_s8] sm:$0xff]  ;;  %v1619_v32 = vld [vmem:[%s2805_s8 + $0x8] sm:$0xff]  ;;  %v1620_v28 = vld [vmem:[%s2805_s8 + $0x10] sm:$0xff] }
 0x242   : > { %v1666_v23 = vld [vmem:[%s3584_s2] sm:$0x7]  ;;  %v1621_v22 = vld [vmem:[%s2805_s8 + $0x18] sm:$0xff]  ;;  %v1623_v30 = vld [vmem:[%s2805_s8 + $0x28] sm:$0xff] }
 0x243   : > { %v1722_v62 = vld [vmem:[%s3585_s3] sm:$0x7]  ;;  %v3358_v11 = vperm.slane %v1666_v23, 0  ;;  %v3363_v27 = vperm.slane %v1666_v23, 1  ;;  %v3368_v15 = vperm.slane %v1666_v23, 2  ;;  %v1624_v40 = vld [vmem:[%s2805_s8 + $0x30] sm:$0xff] }
 0x244   : > { %v3360_v58 = vperm.slane %v1722_v62, 0  ;;  %v3365_v38 = vperm.slane %v1722_v62, 1  ;;  %v3370_v29 = vperm.slane %v1722_v62, 2  ;;  %v1622_v1 = vld [vmem:[%s2805_s8 + $0x20] sm:$0xff]  ;;  %v1625_v41 = vld [vmem:[%s2805_s8 + $0x38] sm:$0xff]  ;;  %v1627_v18 = vld [vmem:[%s2805_s8 + $0x48] sm:$0xff] }
 0x245   : > { %v1674_v6 = vmul.f32 %v3358_v11, %v1618_v35  ;;  %v1675_v24 = vmul.f32 %v3363_v27, %v1619_v32  ;;  %v1677_v2 = vmul.f32 %v3358_v11, %v1621_v22  ;;  %v1678_v53 = vmul.f32 %v3363_v27, %v1622_v1  ;;  %v1626_v26 = vld [vmem:[%s2805_s8 + $0x40] sm:$0xff]  ;;  %v1628_v43 = vld [vmem:[%s2805_s8 + $0x50] sm:$0xff]  ;;  %v1629_v60 = vld [vmem:[%s2805_s8 + $0x58] sm:$0xff] }
 0x246   : > { %v1676_v57 = vmul.f32 %v3368_v15, %v1620_v28  ;;  %v1679_v42 = vmul.f32 %v3368_v15, %v1623_v30  ;;  %v1680_v31 = vmul.f32 %v3358_v11, %v1624_v40  ;;  %v1681_v9 = vmul.f32 %v3363_v27, %v1625_v41  ;;  %v1630_v36 = vld [vmem:[%s2805_s8 + $0x60] sm:$0xff]  ;;  %v1631_v49 = vld [vmem:[%s2805_s8 + $0x68] sm:$0xff]  ;;  %v1632_v8 = vld [vmem:[%s2805_s8 + $0x70] sm:$0xff] }
 0x247   : > { %v1730_v59 = vadd.f32 %v3360_v58, %v1674_v6  ;;  %v1731_v25 = vadd.f32 %v3365_v38, %v1675_v24  ;;  %v1733_v21 = vadd.f32 %v3360_v58, %v1677_v2  ;;  %v1734_v37 = vadd.f32 %v3365_v38, %v1678_v53  ;;  %v1633_v14 = vld [vmem:[%s2805_s8 + $0x78] sm:$0xff]  ;;  %v1634_v20 = vld [vmem:[%s2805_s8 + $0x80] sm:$0xff]  ;;  %v1635_v47 = vld [vmem:[%s2805_s8 + $0x88] sm:$0xff] }
 0x248   : > { %v1732_v50 = vadd.f32 %v3370_v29, %v1676_v57  ;;  %v1735_v63 = vadd.f32 %v3370_v29, %v1679_v42  ;;  %v1736_v34 = vadd.f32 %v3360_v58, %v1680_v31  ;;  %v1737_v55 = vadd.f32 %v3365_v38, %v1681_v9  ;;  %v1636_v61 = vld [vmem:[%s2805_s8 + $0x90] sm:$0xff]  ;;  %v1637_v23 = vld [vmem:[%s2805_s8 + $0x98] sm:$0xff]  ;;  %v1638_v22 = vld [vmem:[%s2805_s8 + $0xa0] sm:$0xff] }
 0x249   : > { %v1778_v33 = vmax.f32 %v1730_v59, 0.0  ;;  %v1779_v56 = vmax.f32 %v1731_v25, 0.0  ;;  %v1781_v3 = vmax.f32 %v1733_v21, 0.0  ;;  %v1782_v48 = vmax.f32 %v1734_v37, 0.0  ;;  %v1639_v2 = vld [vmem:[%s2805_s8 + $0xa8] sm:$0xff]  ;;  %v1640_v57 = vld [vmem:[%s2805_s8 + $0xb0] sm:$0xff] }
 0x24a   : > { %v1780_v39 = vmax.f32 %v1732_v50, 0.0  ;;  %v1682_v44 = vmul.f32 %v3368_v15, %v1626_v26  ;;  %v1683_v5 = vmul.f32 %v3358_v11, %v1627_v18  ;;  %v1684_v7 = vmul.f32 %v3363_v27, %v1628_v43  ;;  %v1641_v59 = vld [vmem:[%s2805_s8 + $0xb8] sm:$0xff]  ;;  %v1642_v26 = vld [vmem:[%s2805_s8 + $0xc0] sm:$0xff]  ;;  %v1643_v43 = vld [vmem:[%s2805_s8 + $0xc8] sm:$0xff] }
 0x24b   : > { %1826 = vst [vmem:[%s2805_s8] sm:$0xff] %v1778_v33  ;;  %v1685_v10 = vmul.f32 %v3368_v15, %v1629_v60  ;;  %v1783_v45 = vmax.f32 %v1735_v63, 0.0  ;;  %v1686_v19 = vmul.f32 %v3358_v11, %v1630_v36  ;;  %v1687_v4 = vmul.f32 %v3363_v27, %v1631_v49 }
 0x24c   : > { %1827 = vst [vmem:[%s2805_s8 + $0x8] sm:$0xff] %v1779_v56  ;;  %v1688_v16 = vmul.f32 %v3368_v15, %v1632_v8  ;;  %v1784_v0 = vmax.f32 %v1736_v34, 0.0  ;;  %v1738_v51 = vadd.f32 %v3370_v29, %v1682_v44  ;;  %v1739_v17 = vadd.f32 %v3360_v58, %v1683_v5  ;;  %v1644_v34 = vld [vmem:[%s2805_s8 + $0xd0] sm:$0xff]  ;;  %v1646_v44 = vld [vmem:[%s2805_s8 + $0xe0] sm:$0xff] }
 0x24d   : > { %1828 = vst [vmem:[%s2805_s8 + $0x10] sm:$0xff] %v1780_v39  ;;  %v1740_v52 = vadd.f32 %v3365_v38, %v1684_v7  ;;  %v1785_v46 = vmax.f32 %v1737_v55, 0.0  ;;  %v1741_v54 = vadd.f32 %v3370_v29, %v1685_v10  ;;  %v1689_v13 = vmul.f32 %v3358_v11, %v1633_v14  ;;  %v1645_v39 = vld [vmem:[%s2805_s8 + $0xd8] sm:$0xff]  ;;  %v1647_v14 = vld [vmem:[%s2805_s8 + $0xe8] sm:$0xff] }
 0x24e   : > { %1829 = vst [vmem:[%s2805_s8 + $0x18] sm:$0xff] %v1781_v3  ;;  %v1786_v12 = vmax.f32 %v1738_v51, 0.0  ;;  %v1742_v35 = vadd.f32 %v3360_v58, %v1686_v19  ;;  %v1787_v62 = vmax.f32 %v1739_v17, 0.0  ;;  %v1743_v32 = vadd.f32 %v3365_v38, %v1687_v4 }
 0x24f   : > { %1830 = vst [vmem:[%s2805_s8 + $0x20] sm:$0xff] %v1782_v48  ;;  %v1744_v28 = vadd.f32 %v3370_v29, %v1688_v16  ;;  %v1788_v1 = vmax.f32 %v1740_v52, 0.0  ;;  %v1690_v30 = vmul.f32 %v3363_v27, %v1634_v20  ;;  %v1691_v6 = vmul.f32 %v3368_v15, %v1635_v47  ;;  %v1648_v16 = vld [vmem:[%s2805_s8 + $0xf0] sm:$0xff]  ;;  %v1649_v52 = vld [vmem:[%s2805_s8 + $0xf8] sm:$0xff]  ;;  %v1650_v20 = vld [vmem:[%s2805_s8 + $0x100] sm:$0xff] }
 0x250   : > { %1831 = vst [vmem:[%s2805_s8 + $0x28] sm:$0xff] %v1783_v45  ;;  %v1692_v24 = vmul.f32 %v3358_v11, %v1636_v61  ;;  %v1789_v53 = vmax.f32 %v1741_v54, 0.0  ;;  %v1745_v40 = vadd.f32 %v3360_v58, %v1689_v13  ;;  %v1693_v41 = vmul.f32 %v3363_v27, %v1637_v23 }
 0x251   : > { %1832 = vst [vmem:[%s2805_s8 + $0x30] sm:$0xff] %v1784_v0  ;;  %v1790_v42 = vmax.f32 %v1742_v35, 0.0  ;;  %v1746_v31 = vadd.f32 %v3365_v38, %v1690_v30  ;;  %v1694_v9 = vmul.f32 %v3368_v15, %v1638_v22  ;;  %v1791_v25 = vmax.f32 %v1743_v32, 0.0  ;;  %v1651_v35 = vld [vmem:[%s2805_s8 + $0x108] sm:$0xff] }
 0x252   : > { %1833 = vst [vmem:[%s2805_s8 + $0x38] sm:$0xff] %v1785_v46  ;;  %v1747_v21 = vadd.f32 %v3370_v29, %v1691_v6  ;;  %v1695_v37 = vmul.f32 %v3358_v11, %v1639_v2  ;;  %v1792_v50 = vmax.f32 %v1744_v28, 0.0  ;;  %v1748_v63 = vadd.f32 %v3360_v58, %v1692_v24  ;;  %v1652_v28 = vld [vmem:[%s2805_s8 + $0x110] sm:$0xff]  ;;  %v1653_v6 = vld [vmem:[%s2805_s8 + $0x118] sm:$0xff] }
 0x253   : > { %1834 = vst [vmem:[%s2805_s8 + $0x40] sm:$0xff] %v1786_v12  ;;  %v1696_v18 = vmul.f32 %v3363_v27, %v1640_v57  ;;  %v1793_v60 = vmax.f32 %v1745_v40, 0.0  ;;  %v1749_v33 = vadd.f32 %v3365_v38, %v1693_v41  ;;  %v1697_v56 = vmul.f32 %v3368_v15, %v1641_v59  ;;  %v1654_v40 = vld [vmem:[%s2805_s8 + $0x120] sm:$0xff] }
 0x254   : > { %1835 = vst [vmem:[%s2805_s8 + $0x48] sm:$0xff] %v1787_v62  ;;  %v1794_v36 = vmax.f32 %v1746_v31, 0.0  ;;  %v1750_v49 = vadd.f32 %v3370_v29, %v1694_v9  ;;  %v1698_v8 = vmul.f32 %v3358_v11, %v1642_v26  ;;  %v1795_v3 = vmax.f32 %v1747_v21, 0.0  ;;  %v1655_v31 = vld [vmem:[%s2805_s8 + $0x128] sm:$0xff]  ;;  %v1656_v21 = vld [vmem:[%s2805_s8 + $0x130] sm:$0xff] }
 0x255   : > { %1836 = vst [vmem:[%s2805_s8 + $0x50] sm:$0xff] %v1788_v1  ;;  %v1751_v48 = vadd.f32 %v3360_v58, %v1695_v37  ;;  %v1699_v55 = vmul.f32 %v3363_v27, %v1643_v43  ;;  %v1796_v5 = vmax.f32 %v1748_v63, 0.0  ;;  %v1752_v7 = vadd.f32 %v3365_v38, %v1696_v18  ;;  %v1657_v63 = vld [vmem:[%s2805_s8 + $0x138] sm:$0xff] }
 0x256   : > { %1837 = vst [vmem:[%s2805_s8 + $0x58] sm:$0xff] %v1789_v53  ;;  %v1700_v10 = vmul.f32 %v3368_v15, %v1644_v34  ;;  %v1797_v45 = vmax.f32 %v1749_v33, 0.0  ;;  %v1753_v19 = vadd.f32 %v3370_v29, %v1697_v56  ;;  %v1701_v4 = vmul.f32 %v3358_v11, %v1645_v39  ;;  %v1658_v33 = vld [vmem:[%s2805_s8 + $0x140] sm:$0xff] }
 0x257   : > { %1838 = vst [vmem:[%s2805_s8 + $0x60] sm:$0xff] %v1790_v42  ;;  %v1798_v0 = vmax.f32 %v1750_v49, 0.0  ;;  %v1754_v51 = vadd.f32 %v3360_v58, %v1698_v8  ;;  %v1702_v17 = vmul.f32 %v3363_v27, %v1646_v44  ;;  %v1799_v46 = vmax.f32 %v1751_v48, 0.0  ;;  %v1659_v49 = vld [vmem:[%s2805_s8 + $0x148] sm:$0xff]  ;;  %v1660_v48 = vld [vmem:[%s2805_s8 + $0x150] sm:$0xff] }
 0x258   : > { %1839 = vst [vmem:[%s2805_s8 + $0x68] sm:$0xff] %v1791_v25  ;;  %v1755_v54 = vadd.f32 %v3365_v38, %v1699_v55  ;;  %v1703_v13 = vmul.f32 %v3368_v15, %v1647_v14  ;;  %v1800_v47 = vmax.f32 %v1752_v7, 0.0  ;;  %v1756_v61 = vadd.f32 %v3370_v29, %v1700_v10  ;;  %v1661_v7 = vld [vmem:[%s2805_s8 + $0x158] sm:$0xff] }
 0x259   : > { %1840 = vst [vmem:[%s2805_s8 + $0x70] sm:$0xff] %v1792_v50  ;;  %v1704_v12 = vmul.f32 %v3358_v11, %v1648_v16  ;;  %v1801_v23 = vmax.f32 %v1753_v19, 0.0  ;;  %v1757_v62 = vadd.f32 %v3360_v58, %v1701_v4  ;;  %v1705_v32 = vmul.f32 %v3363_v27, %v1649_v52  ;;  %v1662_v19 = vld [vmem:[%s2805_s8 + $0x160] sm:$0xff] }
 0x25a   : > { %1841 = vst [vmem:[%s2805_s8 + $0x78] sm:$0xff] %v1793_v60  ;;  %v1802_v22 = vmax.f32 %v1754_v51, 0.0  ;;  %v1758_v1 = vadd.f32 %v3365_v38, %v1702_v17  ;;  %v1706_v30 = vmul.f32 %v3368_v15, %v1650_v20  ;;  %v1803_v24 = vmax.f32 %v1755_v54, 0.0  ;;  %v1663_v51 = vld [vmem:[%s2805_s8 + $0x168] sm:$0xff]  ;;  %v1664_v54 = vld [vmem:[%s2805_s8 + $0x170] sm:$0xff] }
 0x25b   : > { %1842 = vst [vmem:[%s2805_s8 + $0x80] sm:$0xff] %v1794_v36  ;;  %v1759_v2 = vadd.f32 %v3370_v29, %v1703_v13  ;;  %v1707_v53 = vmul.f32 %v3358_v11, %v1651_v35  ;;  %v1804_v41 = vmax.f32 %v1756_v61, 0.0  ;;  %v1760_v57 = vadd.f32 %v3360_v58, %v1704_v12  ;;  %v1665_v61 = vld [vmem:[%s2805_s8 + $0x178] sm:$0xff] }
 0x25c   : > { %1843 = vst [vmem:[%s2805_s8 + $0x88] sm:$0xff] %v1795_v3  ;;  %v1708_v42 = vmul.f32 %v3363_v27, %v1652_v28  ;;  %v1805_v9 = vmax.f32 %v1757_v62, 0.0  ;;  %v1761_v59 = vadd.f32 %v3365_v38, %v1705_v32  ;;  %v1709_v25 = vmul.f32 %v3368_v15, %v1653_v6 }
 0x25d   : > { %1844 = vst [vmem:[%s2805_s8 + $0x90] sm:$0xff] %v1796_v5  ;;  %v1806_v37 = vmax.f32 %v1758_v1, 0.0  ;;  %v1762_v26 = vadd.f32 %v3370_v29, %v1706_v30  ;;  %v1710_v50 = vmul.f32 %v3358_v11, %v1654_v40  ;;  %v1807_v18 = vmax.f32 %v1759_v2, 0.0 }
 0x25e   : > { %1845 = vst [vmem:[%s2805_s8 + $0x98] sm:$0xff] %v1797_v45  ;;  %v1763_v43 = vadd.f32 %v3360_v58, %v1707_v53  ;;  %v1711_v60 = vmul.f32 %v3363_v27, %v1655_v31  ;;  %v1808_v56 = vmax.f32 %v1760_v57, 0.0  ;;  %v1764_v34 = vadd.f32 %v3365_v38, %v1708_v42 }
 0x25f   : > { %1846 = vst [vmem:[%s2805_s8 + $0xa0] sm:$0xff] %v1798_v0  ;;  %v1712_v36 = vmul.f32 %v3368_v15, %v1656_v21  ;;  %v1809_v8 = vmax.f32 %v1761_v59, 0.0  ;;  %v1765_v39 = vadd.f32 %v3370_v29, %v1709_v25  ;;  %v1713_v3 = vmul.f32 %v3358_v11, %v1657_v63 }
 0x260   : > { %1847 = vst [vmem:[%s2805_s8 + $0xa8] sm:$0xff] %v1799_v46  ;;  %v1810_v55 = vmax.f32 %v1762_v26, 0.0  ;;  %v1766_v44 = vadd.f32 %v3360_v58, %v1710_v50  ;;  %v1714_v5 = vmul.f32 %v3363_v27, %v1658_v33  ;;  %v1811_v10 = vmax.f32 %v1763_v43, 0.0 }
 0x261   : > { %1848 = vst [vmem:[%s2805_s8 + $0xb0] sm:$0xff] %v1800_v47  ;;  %v1767_v14 = vadd.f32 %v3365_v38, %v1711_v60  ;;  %v1715_v45 = vmul.f32 %v3368_v15, %v1659_v49  ;;  %v1812_v4 = vmax.f32 %v1764_v34, 0.0  ;;  %v1768_v16 = vadd.f32 %v3370_v29, %v1712_v36 }
 0x262   : > { %1849 = vst [vmem:[%s2805_s8 + $0xb8] sm:$0xff] %v1801_v23  ;;  %v1716_v0 = vmul.f32 %v3358_v11, %v1660_v48  ;;  %v1813_v17 = vmax.f32 %v1765_v39, 0.0  ;;  %v1769_v52 = vadd.f32 %v3360_v58, %v1713_v3  ;;  %v1717_v46 = vmul.f32 %v3363_v27, %v1661_v7 }
 0x263   : > { %1850 = vst [vmem:[%s2805_s8 + $0xc0] sm:$0xff] %v1802_v22  ;;  %v1814_v13 = vmax.f32 %v1766_v44, 0.0  ;;  %v1770_v20 = vadd.f32 %v3365_v38, %v1714_v5  ;;  %v1718_v47 = vmul.f32 %v3368_v15, %v1662_v19  ;;  %v1815_v12 = vmax.f32 %v1767_v14, 0.0 }
 0x264   : > { %1851 = vst [vmem:[%s2805_s8 + $0xc8] sm:$0xff] %v1803_v24  ;;  %v1771_v35 = vadd.f32 %v3370_v29, %v1715_v45  ;;  %v1719_v23 = vmul.f32 %v3358_v11, %v1663_v51  ;;  %v1816_v62 = vmax.f32 %v1768_v16, 0.0  ;;  %v1772_v32 = vadd.f32 %v3360_v58, %v1716_v0 }
 0x265   : > { %1852 = vst [vmem:[%s2805_s8 + $0xd0] sm:$0xff] %v1804_v41  ;;  %v1720_v28 = vmul.f32 %v3363_v27, %v1664_v54  ;;  %v1817_v22 = vmax.f32 %v1769_v52, 0.0  ;;  %v1773_v1 = vadd.f32 %v3365_v38, %v1717_v46  ;;  %v1721_v30 = vmul.f32 %v3368_v15, %v1665_v61 }
 0x266   : > { %1853 = vst [vmem:[%s2805_s8 + $0xd8] sm:$0xff] %v1805_v9  ;;  %v1818_v6 = vmax.f32 %v1770_v20, 0.0  ;;  %v1774_v11 = vadd.f32 %v3370_v29, %v1718_v47  ;;  %v1819_v24 = vmax.f32 %v1771_v35, 0.0  ;;  %v1775_v2 = vadd.f32 %v3360_v58, %v1719_v23 }
 0x267   : > { %1854 = vst [vmem:[%s2805_s8 + $0xe0] sm:$0xff] %v1806_v37  ;;  %v1820_v27 = vmax.f32 %v1772_v32, 0.0  ;;  %v1776_v53 = vadd.f32 %v3365_v38, %v1720_v28  ;;  %v1821_v15 = vmax.f32 %v1773_v1, 0.0  ;;  %v1777_v40 = vadd.f32 %v3370_v29, %v1721_v30 }
 0x268   : > { %1855 = vst [vmem:[%s2805_s8 + $0xe8] sm:$0xff] %v1807_v18  ;;  %v1822_v41 = vmax.f32 %v1774_v11, 0.0  ;;  %v1823_v57 = vmax.f32 %v1775_v2, 0.0 }
 0x269   : > { %1856 = vst [vmem:[%s2805_s8 + $0xf0] sm:$0xff] %v1808_v56  ;;  %v1824_v42 = vmax.f32 %v1776_v53, 0.0  ;;  %v1825_v31 = vmax.f32 %v1777_v40, 0.0 }
 0x26a   : > { %1857 = vst [vmem:[%s2805_s8 + $0xf8] sm:$0xff] %v1809_v8 }
 0x26b   : > { %1858 = vst [vmem:[%s2805_s8 + $0x100] sm:$0xff] %v1810_v55 }
 0x26c   : > { %1859 = vst [vmem:[%s2805_s8 + $0x108] sm:$0xff] %v1811_v10 }
 0x26d   : > { %1860 = vst [vmem:[%s2805_s8 + $0x110] sm:$0xff] %v1812_v4 }
 0x26e   : > { %1861 = vst [vmem:[%s2805_s8 + $0x118] sm:$0xff] %v1813_v17 }
 0x26f   : > { %1862 = vst [vmem:[%s2805_s8 + $0x120] sm:$0xff] %v1814_v13 }
 0x270   : > { %1863 = vst [vmem:[%s2805_s8 + $0x128] sm:$0xff] %v1815_v12 }
 0x271   : > { %1864 = vst [vmem:[%s2805_s8 + $0x130] sm:$0xff] %v1816_v62 }
 0x272   : > { %1865 = vst [vmem:[%s2805_s8 + $0x138] sm:$0xff] %v1817_v22 }
 0x273   : > { %1866 = vst [vmem:[%s2805_s8 + $0x140] sm:$0xff] %v1818_v6 }
 0x274   : > { %1867 = vst [vmem:[%s2805_s8 + $0x148] sm:$0xff] %v1819_v24 }
 0x275   : > { %1868 = vst [vmem:[%s2805_s8 + $0x150] sm:$0xff] %v1820_v27 }
 0x276   : > { %1869 = vst [vmem:[%s2805_s8 + $0x158] sm:$0xff] %v1821_v15 }
 0x277   : > { %1870 = vst [vmem:[%s2805_s8 + $0x160] sm:$0xff] %v1822_v41 }
 0x278   : > { %1871 = vst [vmem:[%s2805_s8 + $0x168] sm:$0xff] %v1823_v57 }
 0x279   : > { %1872 = vst [vmem:[%s2805_s8 + $0x170] sm:$0xff] %v1824_v42 }
 0x27a   : > { %1873 = vst [vmem:[%s2805_s8 + $0x178] sm:$0xff] %v1825_v31 }
 0x27b PF: > { %s14_s21 = sadd.s32 1, %s2636_s21   ;;  %s3587_s15 = smov %s2616_s16 }
 0x27c   : > { %p11_p0 = scmp.ge.s32.totalorder %s14_s21, 38   ;;  %s3588_s16 = smov %s2715_s28 }
 0x27d   : > { %s3589_s17 = smov %s2628_s19  ;;  %s3590_s18 = smov %s2632_s20 }
 0x27e   : > { %s3591_s19 = smov %s3594_s22  ;;  %s3592_s20 = smov %s3598_s23 }
 0x27f   :  { %13 = sbr.rel (!%p11_p0) target bundleno = 4 (0x4), region = 114 }

// kernel: reduction_b_forward.11
= control target key start
LH: loop header
LB: loop body
LE: loop exit
PB: predicated region body
PF: predicated region fallthrough
CT: control target
= control target key end

     0   :  { %s1576_s15 = smov 0   ;;  %s1578_s16 = smov 0   ;;  %s1908_s0 = inlined_call_operand.vmem [shape: bf16[16,8064], index: 0, kind: input, shape index: {}]   ;;  %s1909_s1 = inlined_call_operand.vmem [shape: bf16[8064,384], index: 1, kind: input, shape index: {}]   ;;  %s1910_s2 = inlined_call_operand.vmem [shape: f32[1,384], index: 2, kind: input, shape index: {}]   ;;  %s1911_s3 = inlined_call_operand.vmem [shape: f32[1,384], index: 3, kind: input, shape index: {}]   ;;  %s1912_s4 = inlined_call_operand.vmem [shape: f32[16,384], index: 4, kind: output, shape index: {}]  }
   0x1   :  { %s1580_s17 = smov 0   ;;  %s1582_s18 = smov 0  }
   0x2   :  { %s1584_s19 = smov 0  }
   0x3 LB: > { %s23_s20 = sadd.s32 1, %s1544_s18  ;;  %p42_p1 = scmp.ne.s32.totalorder %s1536_s16, %s1532_s15  ;;  %s1548_s19 = sphi %s1584_s19, %s14_s19   ;;  %s1544_s18 = sphi %s1582_s18, %s1916_s18   ;;  %s1540_s17 = sphi %s1580_s17, %s1915_s17   ;;  %s1536_s16 = sphi %s1578_s16, %s1914_s16   ;;  %s1532_s15 = sphi %s1576_s15, %s1913_s15  }
   0x4   : > { %p24_p0 = scmp.ge.s32.totalorder %s23_s20, 21  ;;  %p43_p2 = scmp.eq.s32.totalorder %s1548_s19, 0 }
   0x5   : > { %s35_s22 = sadd.s32 1, %s1536_s16  ;;  %p1076_p5 = scmp.ge.s32.totalorder %s1548_s19, 21 }
   0x6   : > { %s1918_s20 = smov (%p24_p0, %s23_s20), 0  ;;  %p44_p3 = por %p43_p2, %p42_p1 }
   0x7   : > { %s31_s21 = ssub.s32 %s1544_s18, %s1918_s20  ;;  %168 = sbr.rel (%p1076_p5) target bundleno = 21 (0x15), region = 24 }
   0x8   : > { %p33_p4 = scmp.eq.s32.totalorder %s31_s21, 0 }
   0xa   : > { %s1611_s23 = scalar_select %p33_p4, %s1536_s16, %s35_s22  }
   0xc   : > { %171 = sbr.rel (!%p44_p3) target bundleno = 21 (0x15), region = 28  ;;  %s173_s24 = sand.u32 (%p44_p3), 1, %s1536_s16  }
   0xd   : > { %s1390_s25 = smul.u32 (%p44_p3), 12, %s1544_s18 }
   0xe   : > { %s1466_s26 = smul.u32 (%p44_p3), 24, %s173_s24 }
   0xf   : > { %s181_s29 = scalar_lea.vmem (%p44_p3), %s1908_s0, %s1390_s25 }
  0x10   : > { %v196_v0 = vld [vmem:[%s181_s29] sm:$0xff] (%p44_p3)  ;;  %v1078_v2 = vld [vmem:[%s181_s29 + $0x8] sm:$0xf] (%p44_p3)  ;;  %s175_s30 = scalar_lea.vmem (%p44_p3), [#allocation2], %s1466_s26 }
  0x11   : > { %v198_v1 = vld [vmem:[%s181_s29 + $0xfc] sm:$0xff]  ;;  %197 = vst [vmem:[%s175_s30] sm:$0xff] %v196_v0  ;;  %v1080_v3 = vld [vmem:[%s181_s29 + $0x104] sm:$0xf] }
  0x12   : > { %199 = vst [vmem:[%s175_s30 + $0xc] sm:$0xff] %v198_v1 }
  0x13   : > { %1079 = vst [vmem:[%s175_s30 + $0x8] sm:$0xf] %v1078_v2 }
  0x14   : > { %1081 = vst [vmem:[%s175_s30 + $0x14] sm:$0xf] %v1080_v3 }
  0x15 PF: > { %p1082_p6 = scmp.ge.s32.totalorder %s1548_s19, 1  ;;  %p226_p7 = scmp.lt.s32.totalorder %s1548_s19, 22 }
  0x17   : > { %p227_p8 = pnand %p1082_p6, %p226_p7 }
  0x18   : > { %s233_s5 = sand.u32 (!%p227_p8), 1, %s1532_s15   ;;  %s267_s6 = smul.u32 (!%p227_p8), 48, %s1540_s17 }
  0x19   : > { %230 = sbr.rel (%p227_p8) target bundleno = 295 (0x127), region = 58  ;;  %p1084_p10 = scmp.ne.s32.totalorder (!%p227_p8), %s1540_s17, 0 }
  0x1a   : > { %s1467_s7 = smul.u32 (!%p227_p8), 24, %s233_s5  ;;  %p268_p9 = scmp.lt.s32.totalorder (!%p227_p8), %s267_s6, 1007 }
  0x1c   : > { %s1628_s12 = scalar_lea.vmem (!%p227_p8), [#allocation2], %s1467_s7 }
  0x1e   : > { %s1920_s6 = smov (!%p268_p9, %s267_s6), 1007  ;;  %284 = sbr.rel (%p1084_p10) target bundleno = 42 (0x2a), region = 66 }
  0x1f   : > { %s1468_s8 = smul.u32 12, %s1920_s6 }
  0x21   : > { %s1626_s11 = scalar_lea.vmem %s1909_s1, %s1468_s8 }
  0x23   : > { %v1550_v4 = vmov 0.0  }
  0x24   : > { %285 = vst [vmem:[%s1912_s4] sm:$0xff] %v1550_v4 }
  0x25   : > { %286 = vst [vmem:[%s1912_s4 + $0x8] sm:$0xff] %v1550_v4 }
  0x26   : > { %287 = vst [vmem:[%s1912_s4 + $0x10] sm:$0xff] %v1550_v4 }
  0x27   : > { %288 = vst [vmem:[%s1912_s4 + $0x18] sm:$0xff] %v1550_v4 }
  0x28   : > { %289 = vst [vmem:[%s1912_s4 + $0x20] sm:$0xff] %v1550_v4 }
  0x29   : > { %290 = vst [vmem:[%s1912_s4 + $0x28] sm:$0xff] %v1550_v4 }
  0x2a PF: > { %v1183_v5 = vld [vmem:[%s1626_s11 + $0xa8] sm:$0xf]  ;;  %v1416_v6 = vld [vmem:[%s1626_s11 + $0xb0] sm:$0xf0]  ;;  %v1171_v7 = vld [vmem:[%s1626_s11 + $0x90] sm:$0xf] }
  0x2b   : > { %v1184_v8 = vor.u32 %v1416_v6, %v1183_v5  ;;  %v1413_v9 = vld [vmem:[%s1626_s11 + $0x98] sm:$0xf0]  ;;  %v1279_v10 = vld [vmem:[%s1626_s11 + $0x168] sm:$0xf]  ;;  %v1440_v11 = vld [vmem:[%s1626_s11 + $0x170] sm:$0xf0] }
  0x2c   : > { %v1280_v12 = vor.u32 %v1440_v11, %v1279_v10  ;;  %v1267_v13 = vld [vmem:[%s1626_s11 + $0x150] sm:$0xf]  ;;  %v1172_v14 = vor.u32 %v1413_v9, %v1171_v7  ;;  %v1159_v15 = vld [vmem:[%s1626_s11 + $0x78] sm:$0xf]  ;;  %v1410_v16 = vld [vmem:[%s1626_s11 + $0x80] sm:$0xf0] }
  0x2d   : > { %797 = vmatpush.bf16.msra.mxu0 %v1184_v8  ;;  %v1437_v17 = vld [vmem:[%s1626_s11 + $0x158] sm:$0xf0]  ;;  %v1255_v19 = vld [vmem:[%s1626_s11 + $0x138] sm:$0xf]  ;;  %v1434_v20 = vld [vmem:[%s1626_s11 + $0x140] sm:$0xf0]  ;;  %v1160_v27 = vor.u32 %v1410_v16, %v1159_v15 }
  0x2e   : > { %811 = vmatpush.bf16.msra.mxu1 %v1280_v12  ;;  %v1268_v18 = vor.u32 %v1437_v17, %v1267_v13  ;;  %v1375_v21 = vld [vmem:[%s1626_s11 + $0x228] sm:$0xf]  ;;  %v1464_v22 = vld [vmem:[%s1626_s11 + $0x230] sm:$0xf0]  ;;  %v1415_v23 = vld [vmem:[%s1626_s11 + $0xac] sm:$0xf]  ;;  %v1256_v32 = vor.u32 %v1434_v20, %v1255_v19 }
  0x2f   : > { %v1185_v24 = vld [vmem:[%s1626_s11 + $0xb4] sm:$0xf0]  ;;  %v1376_v25 = vor.u32 %v1464_v22, %v1375_v21  ;;  %v1147_v28 = vld [vmem:[%s1626_s11 + $0x60] sm:$0xf]  ;;  %v1363_v29 = vld [vmem:[%s1626_s11 + $0x210] sm:$0xf] }
  0x30   : > { %v1188_v26 = vor.u32 %v1415_v23, %v1185_v24  ;;  %v1461_v30 = vld [vmem:[%s1626_s11 + $0x218] sm:$0xf0]  ;;  %v1407_v31 = vld [vmem:[%s1626_s11 + $0x68] sm:$0xf0]  ;;  %v1412_v34 = vld [vmem:[%s1626_s11 + $0x94] sm:$0xf] }
  0x31   : > { %798 = vmatpush.bf16.msra.mxu0 %v1172_v14  ;;  %825 = vmatpush.bf16.msra.mxu2 %v1376_v25  ;;  %v1364_v33 = vor.u32 %v1461_v30, %v1363_v29  ;;  %v1173_v35 = vld [vmem:[%s1626_s11 + $0x9c] sm:$0xf0]  ;;  %v1431_v37 = vld [vmem:[%s1626_s11 + $0x128] sm:$0xf0]  ;;  %v1351_v39 = vld [vmem:[%s1626_s11 + $0x1f8] sm:$0xf]  ;;  %v1148_v42 = vor.u32 %v1407_v31, %v1147_v28 }
  0x32   : > { %812 = vmatpush.bf16.msra.mxu1 %v1268_v18  ;;  %839 = vmatpush.bf16.msra.mxu3 %v1188_v26  ;;  %v1243_v36 = vld [vmem:[%s1626_s11 + $0x120] sm:$0xf]  ;;  %v1176_v38 = vor.u32 %v1412_v34, %v1173_v35  ;;  %v1458_v40 = vld [vmem:[%s1626_s11 + $0x200] sm:$0xf0]  ;;  %v1409_v41 = vld [vmem:[%s1626_s11 + $0x7c] sm:$0xf] }
  0x33   : > { %v1161_v43 = vld [vmem:[%s1626_s11 + $0x84] sm:$0xf0]  ;;  %v1404_v45 = vld [vmem:[%s1626_s11 + $0x50] sm:$0xf0]  ;;  %v1244_v46 = vor.u32 %v1431_v37, %v1243_v36  ;;  %v1352_v48 = vor.u32 %v1458_v40, %v1351_v39  ;;  %v1339_v51 = vld [vmem:[%s1626_s11 + $0x1e0] sm:$0xf] }
  0x34   : > { %v1135_v44 = vld [vmem:[%s1626_s11 + $0x48] sm:$0xf]  ;;  %v1428_v49 = vld [vmem:[%s1626_s11 + $0x110] sm:$0xf0]  ;;  %v1164_v50 = vor.u32 %v1409_v41, %v1161_v43  ;;  %v1455_v52 = vld [vmem:[%s1626_s11 + $0x1e8] sm:$0xf0] }
  0x35   : > { %799 = vmatpush.bf16.msra.mxu0 %v1160_v27  ;;  %826 = vmatpush.bf16.msra.mxu2 %v1364_v33  ;;  %v1231_v47 = vld [vmem:[%s1626_s11 + $0x108] sm:$0xf]  ;;  %v1406_v53 = vld [vmem:[%s1626_s11 + $0x64] sm:$0xf]  ;;  %v1149_v54 = vld [vmem:[%s1626_s11 + $0x6c] sm:$0xf0]  ;;  %v1136_v55 = vor.u32 %v1404_v45, %v1135_v44  ;;  %v1340_v60 = vor.u32 %v1455_v52, %v1339_v51 }
  0x36   : > { %813 = vmatpush.bf16.msra.mxu1 %v1256_v32  ;;  %840 = vmatpush.bf16.msra.mxu3 %v1176_v38  ;;  %v1123_v56 = vld [vmem:[%s1626_s11 + $0x30] sm:$0xf]  ;;  %v1401_v57 = vld [vmem:[%s1626_s11 + $0x38] sm:$0xf0]  ;;  %v1232_v58 = vor.u32 %v1428_v49, %v1231_v47  ;;  %v1152_v62 = vor.u32 %v1406_v53, %v1149_v54  ;;  %v1327_v63 = vld [vmem:[%s1626_s11 + $0x1c8] sm:$0xf] }
  0x37   : > { %v1219_v59 = vld [vmem:[%s1626_s11 + $0xf0] sm:$0xf]  ;;  %v1425_v61 = vld [vmem:[%s1626_s11 + $0xf8] sm:$0xf0]  ;;  %v1452_v0 = vld [vmem:[%s1626_s11 + $0x1d0] sm:$0xf0]  ;;  %v1124_v3 = vor.u32 %v1401_v57, %v1123_v56 }
  0x38   : > { %v1403_v1 = vld [vmem:[%s1626_s11 + $0x4c] sm:$0xf]  ;;  %v1137_v2 = vld [vmem:[%s1626_s11 + $0x54] sm:$0xf0]  ;;  %v1398_v5 = vld [vmem:[%s1626_s11 + $0x20] sm:$0xf0]  ;;  %v1220_v6 = vor.u32 %v1425_v61, %v1219_v59  ;;  %v1328_v8 = vor.u32 %v1452_v0, %v1327_v63 }
  0x39   : > { %800 = vmatpush.bf16.msra.mxu0 %v1148_v42  ;;  %827 = vmatpush.bf16.msra.mxu2 %v1352_v48  ;;  %v1111_v4 = vld [vmem:[%s1626_s11 + $0x18] sm:$0xf]  ;;  %v1422_v9 = vld [vmem:[%s1626_s11 + $0xe0] sm:$0xf0]  ;;  %v1140_v10 = vor.u32 %v1403_v1, %v1137_v2  ;;  %v1315_v11 = vld [vmem:[%s1626_s11 + $0x1b0] sm:$0xf] }
  0x3a   : > { %814 = vmatpush.bf16.msra.mxu1 %v1244_v46  ;;  %841 = vmatpush.bf16.msra.mxu3 %v1164_v50  ;;  %v1207_v7 = vld [vmem:[%s1626_s11 + $0xd8] sm:$0xf]  ;;  %v1449_v12 = vld [vmem:[%s1626_s11 + $0x1b8] sm:$0xf0]  ;;  %v1400_v13 = vld [vmem:[%s1626_s11 + $0x34] sm:$0xf]  ;;  %v1112_v15 = vor.u32 %v1398_v5, %v1111_v4 }
  0x3b   : > { %v1125_v14 = vld [vmem:[%s1626_s11 + $0x3c] sm:$0xf0]  ;;  %v1395_v17 = vld [vmem:[%s1626_s11 + $0x8] sm:$0xf0]  ;;  %v1208_v18 = vor.u32 %v1422_v9, %v1207_v7  ;;  %v1281_v20 = vld [vmem:[%s1626_s11 + $0x174] sm:$0xf0]  ;;  %v1316_v21 = vor.u32 %v1449_v12, %v1315_v11 }
  0x3c   : > { %v1099_v16 = vld [vmem:[%s1626_s11] sm:$0xf]  ;;  %v1439_v19 = vld [vmem:[%s1626_s11 + $0x16c] sm:$0xf]  ;;  %v1128_v24 = vor.u32 %v1400_v13, %v1125_v14  ;;  %v1377_v26 = vld [vmem:[%s1626_s11 + $0x234] sm:$0xf0] }
  0x3d   : > { %801 = vmatpush.bf16.msra.mxu0 %v1136_v55  ;;  %828 = vmatpush.bf16.msra.mxu2 %v1340_v60  ;;  %v1195_v22 = vld [vmem:[%s1626_s11 + $0xc0] sm:$0xf]  ;;  %v1419_v23 = vld [vmem:[%s1626_s11 + $0xc8] sm:$0xf0]  ;;  %v1303_v27 = vld [vmem:[%s1626_s11 + $0x198] sm:$0xf]  ;;  %v1100_v29 = vor.u32 %v1395_v17, %v1099_v16  ;;  %v1284_v34 = vor.u32 %v1439_v19, %v1281_v20 }
  0x3e   : > { %815 = vmatpush.bf16.msra.mxu1 %v1232_v58  ;;  %842 = vmatpush.bf16.msra.mxu3 %v1152_v62  ;;  %v1463_v25 = vld [vmem:[%s1626_s11 + $0x22c] sm:$0xf]  ;;  %v1446_v28 = vld [vmem:[%s1626_s11 + $0x1a0] sm:$0xf0]  ;;  %v1436_v30 = vld [vmem:[%s1626_s11 + $0x154] sm:$0xf]  ;;  %v1196_v35 = vor.u32 %v1419_v23, %v1195_v22 }
  0x3f   : > { %v1269_v31 = vld [vmem:[%s1626_s11 + $0x15c] sm:$0xf0]  ;;  %v1397_v32 = vld [vmem:[%s1626_s11 + $0x1c] sm:$0xf]  ;;  %v1113_v33 = vld [vmem:[%s1626_s11 + $0x24] sm:$0xf0]  ;;  %v1380_v39 = vor.u32 %v1463_v25, %v1377_v26  ;;  %v1304_v40 = vor.u32 %v1446_v28, %v1303_v27 }
  0x40   : > { %v1460_v36 = vld [vmem:[%s1626_s11 + $0x214] sm:$0xf]  ;;  %v1365_v37 = vld [vmem:[%s1626_s11 + $0x21c] sm:$0xf0]  ;;  %v1443_v41 = vld [vmem:[%s1626_s11 + $0x188] sm:$0xf0]  ;;  %v1116_v44 = vor.u32 %v1397_v32, %v1113_v33  ;;  %v1272_v51 = vor.u32 %v1436_v30, %v1269_v31 }
  0x41   : > { %802 = vmatpush.bf16.msra.mxu0 %v1124_v3  ;;  %829 = vmatpush.bf16.msra.mxu2 %v1328_v8  ;;  %v1291_v38 = vld [vmem:[%s1626_s11 + $0x180] sm:$0xf]  ;;  %v1394_v42 = vld [vmem:[%s1626_s11 + $0x4] sm:$0xf]  ;;  %v1101_v43 = vld [vmem:[%s1626_s11 + $0xc] sm:$0xf0]  ;;  %v1368_v58 = vor.u32 %v1460_v36, %v1365_v37 }
  0x42   : > { %816 = vmatpush.bf16.msra.mxu1 %v1220_v6  ;;  %843 = vmatpush.bf16.msra.mxu3 %v1140_v10  ;;  %v1191_v45 = vld [vmem:[%s1626_s11 + $0xb0] sm:$0xf]  ;;  %v1417_v46 = vld [vmem:[%s1626_s11 + $0xb8] sm:$0xf0]  ;;  %v1087_v47 = vld [vmem:[%s1628_s12] sm:$0xf]  ;;  %v1292_v59 = vor.u32 %v1443_v41, %v1291_v38  ;;  %v1104_v62 = vor.u32 %v1394_v42, %v1101_v43 }
  0x43   : > { %v1392_v48 = vld [vmem:[%s1628_s12 + $0x8] sm:$0xf0]  ;;  %v1391_v49 = vld [vmem:[%s1628_s12 + $0x4] sm:$0xf]  ;;  %v1089_v50 = vld [vmem:[%s1628_s12 + $0xc] sm:$0xf0]  ;;  %v1192_v1 = vor.u32 %v1417_v46, %v1191_v45 }
  0x44   : > { %v1433_v52 = vld [vmem:[%s1626_s11 + $0x13c] sm:$0xf]  ;;  %v1287_v53 = vld [vmem:[%s1626_s11 + $0x170] sm:$0xf]  ;;  %v1730_v55 = vor.u32 %v1392_v48, %v1087_v47  ;;  %v1732_v56 = vor.u32 %v1391_v49, %v1089_v50  ;;  %v1257_v57 = vld [vmem:[%s1626_s11 + $0x144] sm:$0xf0] }
  0x45   : > { %803 = vmatpush.bf16.msra.mxu0 %v1112_v15  ;;  %830 = vmatpush.bf16.msra.mxu2 %v1316_v21  ;;  %v1441_v54 = vld [vmem:[%s1626_s11 + $0x178] sm:$0xf0]  ;;  %v1095_v60 = vld [vmem:[%s1628_s12 + $0x8] sm:$0xf]  ;;  %v1393_v61 = vld [vmem:[%s1628_s12 + $0x10] sm:$0xf0]  ;;  %v1260_v5 = vor.u32 %v1433_v52, %v1257_v57 }
  0x46   : > { %817 = vmatpush.bf16.msra.mxu1 %v1208_v18  ;;  %844 = vmatpush.bf16.msra.mxu3 %v1128_v24  ;;  %v1457_v63 = vld [vmem:[%s1626_s11 + $0x1fc] sm:$0xf]  ;;  %v1353_v0 = vld [vmem:[%s1626_s11 + $0x204] sm:$0xf0]  ;;  %v1288_v2 = vor.u32 %v1441_v54, %v1287_v53  ;;  %v1179_v3 = vld [vmem:[%s1626_s11 + $0x98] sm:$0xf]  ;;  %v1743_v6 = vor.u32 %v1393_v61, %v1095_v60 }
  0x47   : > { %v1414_v4 = vld [vmem:[%s1626_s11 + $0xa0] sm:$0xf0]  ;;  %v1275_v7 = vld [vmem:[%s1626_s11 + $0x158] sm:$0xf]  ;;  %v1245_v10 = vld [vmem:[%s1626_s11 + $0x12c] sm:$0xf0]  ;;  %v1356_v11 = vor.u32 %v1457_v63, %v1353_v0 }
  0x48   : > { %v1438_v8 = vld [vmem:[%s1626_s11 + $0x160] sm:$0xf0]  ;;  %v1341_v13 = vld [vmem:[%s1626_s11 + $0x1ec] sm:$0xf0]  ;;  %v1180_v14 = vor.u32 %v1414_v4, %v1179_v3  ;;  %v1167_v16 = vld [vmem:[%s1626_s11 + $0x80] sm:$0xf] }
  0x49   : > { %804 = vmatpush.bf16.msra.mxu0 %v1100_v29  ;;  %831 = vmatpush.bf16.msra.mxu2 %v1304_v40  ;;  %v1430_v9 = vld [vmem:[%s1626_s11 + $0x124] sm:$0xf]  ;;  %v1276_v15 = vor.u32 %v1438_v8, %v1275_v7  ;;  %v1411_v17 = vld [vmem:[%s1626_s11 + $0x88] sm:$0xf0]  ;;  %v1263_v19 = vld [vmem:[%s1626_s11 + $0x140] sm:$0xf] }
  0x4a   : > { %818 = vmatpush.bf16.msra.mxu1 %v1196_v35  ;;  %845 = vmatpush.bf16.msra.mxu3 %v1116_v44  ;;  %v1454_v12 = vld [vmem:[%s1626_s11 + $0x1e4] sm:$0xf]  ;;  %v1248_v18 = vor.u32 %v1430_v9, %v1245_v10  ;;  %v1435_v20 = vld [vmem:[%s1626_s11 + $0x148] sm:$0xf0]  ;;  %v1233_v22 = vld [vmem:[%s1626_s11 + $0x114] sm:$0xf0]  ;;  %v1168_v26 = vor.u32 %v1411_v17, %v1167_v16 }
  0x4b   : > { %v1427_v21 = vld [vmem:[%s1626_s11 + $0x10c] sm:$0xf]  ;;  %v1344_v23 = vor.u32 %v1454_v12, %v1341_v13  ;;  %v1329_v25 = vld [vmem:[%s1626_s11 + $0x1d4] sm:$0xf0]  ;;  %v1264_v27 = vor.u32 %v1435_v20, %v1263_v19  ;;  %v1155_v28 = vld [vmem:[%s1626_s11 + $0x68] sm:$0xf] }
  0x4c   : > { %805 = vmatmul.bf16.vlgmr.msra.gmra.mxu0 %v1730_v55  ;;  %v1451_v24 = vld [vmem:[%s1626_s11 + $0x1cc] sm:$0xf]  ;;  %v1408_v29 = vld [vmem:[%s1626_s11 + $0x70] sm:$0xf0]  ;;  %v1236_v30 = vor.u32 %v1427_v21, %v1233_v22  ;;  %v1251_v31 = vld [vmem:[%s1626_s11 + $0x128] sm:$0xf] }
  0x4d   : > { %853 = vmatpush.bf16.msrb.mxu0 %v1284_v34  ;;  %819 = vmatmul.bf16.vlgmr.msra.gmra.mxu1 %v1732_v56  ;;  %v1432_v32 = vld [vmem:[%s1626_s11 + $0x130] sm:$0xf0]  ;;  %v1221_v34 = vld [vmem:[%s1626_s11 + $0xfc] sm:$0xf0]  ;;  %v1332_v35 = vor.u32 %v1451_v24, %v1329_v25  ;;  %v1156_v38 = vor.u32 %v1408_v29, %v1155_v28  ;;  %v1143_v40 = vld [vmem:[%s1626_s11 + $0x50] sm:$0xf] }
  0x4e   : > { %867 = vmatpush.bf16.msrb.mxu1 %v1380_v39  ;;  %832 = vmatpush.bf16.msra.mxu2 %v1292_v59  ;;  %v1424_v33 = vld [vmem:[%s1626_s11 + $0xf4] sm:$0xf]  ;;  %v1317_v37 = vld [vmem:[%s1626_s11 + $0x1bc] sm:$0xf0]  ;;  %v1252_v39 = vor.u32 %v1432_v32, %v1251_v31  ;;  %v1405_v41 = vld [vmem:[%s1626_s11 + $0x58] sm:$0xf0] }
  0x4f   : > { %846 = vmatpush.bf16.msra.mxu3 %v1104_v62  ;;  %v1448_v36 = vld [vmem:[%s1626_s11 + $0x1b4] sm:$0xf]  ;;  %v1224_v42 = vor.u32 %v1424_v33, %v1221_v34  ;;  %v1239_v43 = vld [vmem:[%s1626_s11 + $0x110] sm:$0xf]  ;;  %v1429_v44 = vld [vmem:[%s1626_s11 + $0x118] sm:$0xf0]  ;;  %v1144_v50 = vor.u32 %v1405_v41, %v1143_v40 }
  0x50   : > { %v1421_v45 = vld [vmem:[%s1626_s11 + $0xdc] sm:$0xf]  ;;  %v1209_v46 = vld [vmem:[%s1626_s11 + $0xe4] sm:$0xf0]  ;;  %v1320_v47 = vor.u32 %v1448_v36, %v1317_v37  ;;  %v1131_v52 = vld [vmem:[%s1626_s11 + $0x38] sm:$0xf] }
  0x51   : > { %854 = vmatpush.bf16.msrb.mxu0 %v1272_v51  ;;  %833 = vmatmul.bf16.vlgmr.msra.gmra.mxu2 %v1743_v6  ;;  %v1445_v48 = vld [vmem:[%s1626_s11 + $0x19c] sm:$0xf]  ;;  %v1305_v49 = vld [vmem:[%s1626_s11 + $0x1a4] sm:$0xf0]  ;;  %v1240_v51 = vor.u32 %v1429_v44, %v1239_v43  ;;  %v1402_v53 = vld [vmem:[%s1626_s11 + $0x40] sm:$0xf0]  ;;  %v1212_v54 = vor.u32 %v1421_v45, %v1209_v46 }
  0x52   : > { %868 = vmatpush.bf16.msrb.mxu1 %v1368_v58  ;;  %881 = vmatpush.bf16.msrb.mxu2 %v1192_v1  ;;  %v1227_v57 = vld [vmem:[%s1626_s11 + $0xf8] sm:$0xf]  ;;  %v1426_v58 = vld [vmem:[%s1626_s11 + $0x100] sm:$0xf0]  ;;  %v1197_v60 = vld [vmem:[%s1626_s11 + $0xcc] sm:$0xf0]  ;;  %v1308_v61 = vor.u32 %v1445_v48, %v1305_v49 }
  0x53   : > { %895 = vmatpush.bf16.msrb.mxu3 %v1288_v2  ;;  %v1418_v59 = vld [vmem:[%s1626_s11 + $0xc4] sm:$0xf]  ;;  %v1383_v62 = vld [vmem:[%s1626_s11 + $0x230] sm:$0xf]  ;;  %v1465_v63 = vld [vmem:[%s1626_s11 + $0x238] sm:$0xf0]  ;;  %v1132_v2 = vor.u32 %v1402_v53, %v1131_v52  ;;  %v1228_v3 = vor.u32 %v1426_v58, %v1227_v57 }
  0x54   : > { %847 = vmatmul.bf16.vlgmr.msra.gmra.mxu3 %v1730_v55  ;;  %v1442_v0 = vld [vmem:[%s1626_s11 + $0x184] sm:$0xf]  ;;  %v1293_v1 = vld [vmem:[%s1626_s11 + $0x18c] sm:$0xf0]  ;;  %v1119_v4 = vld [vmem:[%s1626_s11 + $0x20] sm:$0xf]  ;;  %v1200_v7 = vor.u32 %v1418_v59, %v1197_v60  ;;  %v1384_v10 = vor.u32 %v1465_v63, %v1383_v62 }
  0x55   : > { %855 = vmatpush.bf16.msrb.mxu0 %v1260_v5  ;;  %v1399_v5 = vld [vmem:[%s1626_s11 + $0x28] sm:$0xf0]  ;;  %v1215_v8 = vld [vmem:[%s1626_s11 + $0xe0] sm:$0xf]  ;;  %v1371_v12 = vld [vmem:[%s1626_s11 + $0x218] sm:$0xf] }
  0x56   : > { %869 = vmatpush.bf16.msrb.mxu1 %v1356_v11  ;;  %882 = vmatpush.bf16.msrb.mxu2 %v1180_v14  ;;  %v1423_v9 = vld [vmem:[%s1626_s11 + $0xe8] sm:$0xf0]  ;;  %v1296_v11 = vor.u32 %v1442_v0, %v1293_v1  ;;  %v1462_v13 = vld [vmem:[%s1626_s11 + $0x220] sm:$0xf0]  ;;  %v1120_v14 = vor.u32 %v1399_v5, %v1119_v4  ;;  %v1107_v16 = vld [vmem:[%s1626_s11 + $0x8] sm:$0xf] }
  0x57   : > { %896 = vmatpush.bf16.msrb.mxu3 %v1276_v15  ;;  %v1216_v15 = vor.u32 %v1423_v9, %v1215_v8  ;;  %v1396_v17 = vld [vmem:[%s1626_s11 + $0x10] sm:$0xf0]  ;;  %v1372_v20 = vor.u32 %v1462_v13, %v1371_v12  ;;  %v1359_v21 = vld [vmem:[%s1626_s11 + $0x200] sm:$0xf]  ;;  %v1459_v22 = vld [vmem:[%s1626_s11 + $0x208] sm:$0xf0] }
  0x58   : > { %v1420_v19 = vld [vmem:[%s1626_s11 + $0xd0] sm:$0xf0]  ;;  %v1360_v25 = vor.u32 %v1459_v22, %v1359_v21  ;;  %v1335_v29 = vld [vmem:[%s1626_s11 + $0x1d0] sm:$0xf]  ;;  %v1323_v32 = vld [vmem:[%s1626_s11 + $0x1b8] sm:$0xf] }
  0x59   : > { %856 = vmatpush.bf16.msrb.mxu0 %v1248_v18  ;;  %v1203_v18 = vld [vmem:[%s1626_s11 + $0xc8] sm:$0xf]  ;;  %v1450_v33 = vld [vmem:[%s1626_s11 + $0x1c0] sm:$0xf0]  ;;  %v1447_v36 = vld [vmem:[%s1626_s11 + $0x1a8] sm:$0xf0] }
  0x5a   : > { %870 = vmatpush.bf16.msrb.mxu1 %v1344_v23  ;;  %883 = vmatpush.bf16.msrb.mxu2 %v1168_v26  ;;  %v1108_v23 = vor.u32 %v1396_v17, %v1107_v16  ;;  %v1204_v24 = vor.u32 %v1420_v19, %v1203_v18  ;;  %v1347_v26 = vld [vmem:[%s1626_s11 + $0x1e8] sm:$0xf]  ;;  %v1324_v34 = vor.u32 %v1450_v33, %v1323_v32  ;;  %v295_v1 = vld [vmem:[%s1912_s4 + $0x20] sm:$0xff]  ;;  %v293_v8 = vld [vmem:[%s1912_s4 + $0x10] sm:$0xff]  ;;  %p1385_p11 = scmp.ne.s32.totalorder %s1540_s17, 20 }
  0x5b   : > { %897 = vmatpush.bf16.msrb.mxu3 %v1264_v27  ;;  %v1456_v27 = vld [vmem:[%s1626_s11 + $0x1f0] sm:$0xf0]  ;;  %v292_v58 = vld [vmem:[%s1912_s4 + $0x8] sm:$0xff] }
  0x5c   : > { %v1348_v28 = vor.u32 %v1456_v27, %v1347_v26 }
  0x5d   : > { %857 = vmatpush.bf16.msrb.mxu0 %v1236_v30  ;;  %v1453_v30 = vld [vmem:[%s1626_s11 + $0x1d8] sm:$0xf0] }
  0x5e   : > { %871 = vmatpush.bf16.msrb.mxu1 %v1332_v35  ;;  %884 = vmatpush.bf16.msrb.mxu2 %v1156_v38  ;;  %v1336_v31 = vor.u32 %v1453_v30, %v1335_v29  ;;  %v1311_v35 = vld [vmem:[%s1626_s11 + $0x1a0] sm:$0xf]  ;;  %v1299_v38 = vld [vmem:[%s1626_s11 + $0x188] sm:$0xf] }
  0x5f   : > { %898 = vmatpush.bf16.msrb.mxu3 %v1252_v39  ;;  %v1312_v37 = vor.u32 %v1447_v36, %v1311_v35  ;;  %v1444_v39 = vld [vmem:[%s1626_s11 + $0x190] sm:$0xf0] }
  0x60   : > { %v1300_v40 = vor.u32 %v1444_v39, %v1299_v38 }
  0x61   : > { %858 = vmatpush.bf16.msrb.mxu0 %v1224_v42  ;;  %v291_v42 = vld [vmem:[%s1912_s4] sm:$0xff] }
  0x62   : > { %872 = vmatpush.bf16.msrb.mxu1 %v1320_v47  ;;  %885 = vmatpush.bf16.msrb.mxu2 %v1144_v50 }
  0x63   : > { %899 = vmatpush.bf16.msrb.mxu3 %v1240_v51 }
  0x65   : > { %859 = vmatpush.bf16.msrb.mxu0 %v1212_v54 }
  0x66   : > { %873 = vmatpush.bf16.msrb.mxu1 %v1308_v61  ;;  %886 = vmatpush.bf16.msrb.mxu2 %v1132_v2 }
  0x67   : > { %900 = vmatpush.bf16.msrb.mxu3 %v1228_v3 }
  0x69   : > { %860 = vmatpush.bf16.msrb.mxu0 %v1200_v7 }
  0x6a   : > { %874 = vmatpush.bf16.msrb.mxu1 %v1296_v11  ;;  %887 = vmatpush.bf16.msrb.mxu2 %v1120_v14 }
  0x6b   : > { %901 = vmatpush.bf16.msrb.mxu3 %v1216_v15  ;;  %v296_v15 = vld [vmem:[%s1912_s4 + $0x28] sm:$0xff] }
  0x6c   : > { %861 = vmatmul.bf16.vlgmr.msrb.gmra.mxu0 %v1732_v56 }
  0x6d   : > { %909 = vmatpush.bf16.msra.mxu0 %v1384_v10  ;;  %875 = vmatmul.bf16.vlgmr.msrb.gmra.mxu1 %v1743_v6 }
  0x6e   : > { %888 = vmatpush.bf16.msrb.mxu2 %v1108_v23 }
  0x6f   : > { %902 = vmatpush.bf16.msrb.mxu3 %v1204_v24 }
  0x71   : > { %910 = vmatpush.bf16.msra.mxu0 %v1372_v20  ;;  %889 = vmatmul.bf16.vlgmr.msrb.gmra.mxu2 %v1730_v55 }
  0x72   : > { %903 = vmatmul.bf16.vlgmr.msrb.gmra.mxu3 %v1732_v56 }
  0x75   : > { %911 = vmatpush.bf16.msra.mxu0 %v1360_v25 }
  0x79   : > { %912 = vmatpush.bf16.msra.mxu0 %v1348_v28 }
  0x7d   : > { %913 = vmatpush.bf16.msra.mxu0 %v1336_v31 }
  0x81   : > { %914 = vmatpush.bf16.msra.mxu0 %v1324_v34 }
  0x85   : > { %915 = vmatpush.bf16.msra.mxu0 %v1312_v37 }
  0x89   : > { %916 = vmatpush.bf16.msra.mxu0 %v1300_v40 }
  0x8c   : > { %917 = vmatmul.bf16.vlgmr.msra.gmra.mxu0 %v1743_v6  ;;  %v294_v6 = vld [vmem:[%s1912_s4 + $0x18] sm:$0xff] }
  0xc9   : > { %v806_v56 = vpop.f32.mrf.mxu0 }
  0xca   : > { %v820_v55 = vpop.f32.mrf.mxu1 }
  0xcb   : > { %v821_v41 = vadd.f32 %v820_v55, %v806_v56 }
  0xd1   : > { %v808_v47 = vpop.f32.mrf.mxu0 }
  0xd2   : > { %v822_v45 = vpop.f32.mrf.mxu1 }
  0xd3   : > { %v823_v48 = vadd.f32 %v822_v45, %v808_v47 }
  0xd4   : > { %v834_v43 = vpop.f32.mrf.mxu2 }
  0xd5   : > { %v835_v44 = vadd.f32 %v834_v43, %v821_v41 }
  0xd7   : > { %v923_v46 = vadd.f32 %v835_v44, %v291_v42  ;;  %v848_v52 = vpop.f32.mrf.mxu3 }
  0xd9   : > { %929 = vst [vmem:[%s1912_s4] sm:$0xff] %v923_v46 }
  0xdc   : > { %v836_v49 = vpop.f32.mrf.mxu2 }
  0xdd   : > { %v837_v50 = vadd.f32 %v836_v49, %v823_v48 }
  0xdf   : > { %v926_v51 = vadd.f32 %v837_v50, %v294_v6  ;;  %v850_v61 = vpop.f32.mrf.mxu3 }
  0xe1   : > { %932 = vst [vmem:[%s1912_s4 + $0x18] sm:$0xff] %v926_v51 }
  0xe9   : > { %v862_v53 = vpop.f32.mrf.mxu0 }
  0xea   : > { %v863_v54 = vadd.f32 %v862_v53, %v848_v52  ;;  %v876_v57 = vpop.f32.mrf.mxu1 }
  0xec   : > { %v877_v59 = vadd.f32 %v876_v57, %v863_v54 }
  0xee   : > { %v924_v60 = vadd.f32 %v877_v59, %v292_v58 }
  0xf0   : > { %930 = vst [vmem:[%s1912_s4 + $0x8] sm:$0xff] %v924_v60 }
  0xf1   : > { %v864_v62 = vpop.f32.mrf.mxu0 }
  0xf2   : > { %v865_v63 = vadd.f32 %v864_v62, %v850_v61  ;;  %v878_v0 = vpop.f32.mrf.mxu1 }
  0xf4   : > { %v879_v2 = vadd.f32 %v878_v0, %v865_v63  ;;  %v890_v4 = vpop.f32.mrf.mxu2 }
  0xf5   : > { %v904_v5 = vpop.f32.mrf.mxu3 }
  0xf6   : > { %v927_v3 = vadd.f32 %v879_v2, %v295_v1  ;;  %v905_v7 = vadd.f32 %v904_v5, %v890_v4 }
  0xf8   : > { %933 = vst [vmem:[%s1912_s4 + $0x20] sm:$0xff] %v927_v3 }
  0xfc   : > { %v892_v12 = vpop.f32.mrf.mxu2 }
  0xfd   : > { %v906_v13 = vpop.f32.mrf.mxu3 }
  0xfe   : > { %v907_v14 = vadd.f32 %v906_v13, %v892_v12 }
 0x109   : > { %v918_v9 = vpop.f32.mrf.mxu0 }
 0x10a   : > { %v919_v10 = vadd.f32 %v918_v9, %v905_v7 }
 0x10c   : > { %v925_v11 = vadd.f32 %v919_v10, %v293_v8 }
 0x10e   : > { %931 = vst [vmem:[%s1912_s4 + $0x10] sm:$0xff] %v925_v11 }
 0x111   : > { %v920_v16 = vpop.f32.mrf.mxu0 }
 0x112   : > { %v921_v17 = vadd.f32 %v920_v16, %v907_v14  ;;  %938 = sbr.rel (%p1385_p11) target bundleno = 295 (0x127), region = 70 }
 0x114   : > { %v928_v18 = vadd.f32 %v921_v17, %v296_v15 }
 0x116   : > { %934 = vst [vmem:[%s1912_s4 + $0x28] sm:$0xff] %v928_v18 }
 0x117   : > { %v939_v19 = vld [vmem:[%s1912_s4] sm:$0xff]  ;;  %v940_v24 = vld [vmem:[%s1912_s4 + $0x8] sm:$0xff]  ;;  %v941_v27 = vld [vmem:[%s1912_s4 + $0x10] sm:$0xff] }
 0x118   : > { %v945_v20 = vld [vmem:[%s1910_s2] sm:$0x7]  ;;  %v942_v30 = vld [vmem:[%s1912_s4 + $0x18] sm:$0xff] }
 0x119   : > { %v959_v21 = vld [vmem:[%s1911_s3] sm:$0x7]  ;;  %v947_v22 = vperm.slane %v945_v20, 0  ;;  %v948_v25 = vperm.slane %v945_v20, 1  ;;  %v949_v28 = vperm.slane %v945_v20, 2 }
 0x11a   : > { %v961_v23 = vperm.slane %v959_v21, 0  ;;  %v962_v26 = vperm.slane %v959_v21, 1  ;;  %v963_v29 = vperm.slane %v959_v21, 2  ;;  %v943_v31 = vld [vmem:[%s1912_s4 + $0x20] sm:$0xff] }
 0x11b   : > { %v953_v33 = vmul.f32 %v947_v22, %v939_v19  ;;  %v954_v34 = vmul.f32 %v948_v25, %v940_v24  ;;  %v956_v35 = vmul.f32 %v947_v22, %v942_v30  ;;  %v957_v36 = vmul.f32 %v948_v25, %v943_v31 }
 0x11c   : > { %v955_v37 = vmul.f32 %v949_v28, %v941_v27 }
 0x11d   : > { %v944_v32 = vld [vmem:[%s1912_s4 + $0x28] sm:$0xff]  ;;  %v967_v39 = vadd.f32 %v961_v23, %v953_v33  ;;  %v968_v40 = vadd.f32 %v962_v26, %v954_v34  ;;  %v970_v55 = vadd.f32 %v961_v23, %v956_v35  ;;  %v971_v56 = vadd.f32 %v962_v26, %v957_v36 }
 0x11e   : > { %v958_v38 = vmul.f32 %v949_v28, %v944_v32  ;;  %v969_v41 = vadd.f32 %v963_v29, %v955_v37 }
 0x11f   : > { %v973_v43 = vmax.f32 %v967_v39, 0.0  ;;  %v974_v44 = vmax.f32 %v968_v40, 0.0  ;;  %v976_v46 = vmax.f32 %v970_v55, 0.0  ;;  %v977_v47 = vmax.f32 %v971_v56, 0.0 }
 0x120   : > { %v972_v42 = vadd.f32 %v963_v29, %v958_v38  ;;  %v975_v45 = vmax.f32 %v969_v41, 0.0 }
 0x121   : > { %979 = vst [vmem:[%s1912_s4] sm:$0xff] %v973_v43 }
 0x122   : > { %980 = vst [vmem:[%s1912_s4 + $0x8] sm:$0xff] %v974_v44  ;;  %v978_v48 = vmax.f32 %v972_v42, 0.0 }
 0x123   : > { %981 = vst [vmem:[%s1912_s4 + $0x10] sm:$0xff] %v975_v45 }
 0x124   : > { %982 = vst [vmem:[%s1912_s4 + $0x18] sm:$0xff] %v976_v46 }
 0x125   : > { %983 = vst [vmem:[%s1912_s4 + $0x20] sm:$0xff] %v977_v47 }
 0x126   : > { %984 = vst [vmem:[%s1912_s4 + $0x28] sm:$0xff] %v978_v48 }
 0x127 PF: > { %s14_s19 = sadd.s32 1, %s1548_s19   ;;  %s1913_s15 = smov %s1536_s16 }
 0x128   : > { %p11_p12 = scmp.ge.s32.totalorder %s14_s19, 23   ;;  %s1914_s16 = smov %s1611_s23 }
 0x129   : > { %s1915_s17 = smov %s1544_s18  ;;  %s1916_s18 = smov %s1918_s20 }
 0x12a   :  { %13 = sbr.rel (!%p11_p12) target bundleno = 3 (0x3), region = 114 }

</bundles_post_ra>
